<compile_context>
chip_gen: v7x
topology: tpu7x:2x2x1
jax: 0.10.0
libtpu: 0.0.40
codegen_flags: <defaults>
</compile_context>

<pallas_src>
import functools

import jax
import jax.numpy as jnp
from jax.experimental import pallas as pl
from jax.experimental.pallas import tpu as pltpu

# ----------------------------- model config ---------------------------------
C = 8            # number of tabular columns
H = 16           # hidden_dim (per-column embedding width)
D = C * H        # flattened feature width = 128
N_D = 16         # decision width
N_A = 16         # attention width
U = N_D + N_A    # GLU unit width = 32
N_STEPS = 3      # decision steps
N_GLU_U = 1 + 2 * (N_STEPS + 1)   # shared layer 1 + step-specific layers = 9
OUT_DIM = 2      # output_dim (binary classification head, Titanic)
OUT_PAD = 128    # lane-dense padded head width
GAMMA_RELAX = 1.3
SQRT_HALF = 0.7071067811865476


# ------------------------------- kernel -------------------------------------
def tabnet_kernel(x_ref,
                  w_emb_ref, b_emb_ref,
                  w_glu0_ref, b_glu0_ref,
                  w_gluu_ref, b_gluu_ref,
                  w_att_ref, b_att_ref,
                  w_fin_ref, b_fin_ref,
                  out_ref, *, act_dtype=jnp.bfloat16):
    bb = x_ref.shape[0]

    # --- column embedding + folded input-BN affine (single matmul + bias) ---
    x = x_ref[...].astype(jnp.bfloat16)
    x_bn = jnp.dot(x, w_emb_ref[...], preferred_element_type=jnp.float32)
    x_bn = x_bn + b_emb_ref[...]                       # (bb, D) f32

    def glu_big(inp):
        # shared GLU layer 0 (K = D); value/gate split, bf16 MXU operands
        inp = inp.astype(jnp.bfloat16)
        v = jnp.dot(inp, w_glu0_ref[0], preferred_element_type=jnp.float32)
        g = jnp.dot(inp, w_glu0_ref[1], preferred_element_type=jnp.float32)
        v = (v + b_glu0_ref[0]).astype(act_dtype)
        g = (g + b_glu0_ref[1]).astype(act_dtype)
        return v * jax.nn.sigmoid(g)

    def glu_small(inp, idx):
        # K = U GLU layer idx (value at 2*idx, gate at 2*idx+1)
        inp = inp.astype(jnp.bfloat16)
        v = jnp.dot(inp, w_gluu_ref[2 * idx], preferred_element_type=jnp.float32)
        g = jnp.dot(inp, w_gluu_ref[2 * idx + 1], preferred_element_type=jnp.float32)
        v = (v + b_gluu_ref[2 * idx]).astype(act_dtype)
        g = (g + b_gluu_ref[2 * idx + 1]).astype(act_dtype)
        return v * jax.nn.sigmoid(g)

    def feat_transform(inp_act, t):
        y = glu_big(inp_act)                            # shared layer 0 (no residual)
        y = (y + glu_small(y, 0)) * SQRT_HALF           # shared layer 1 (residual)
        for l in range(2):                              # step-specific layers (residual)
            y = (y + glu_small(y, 1 + 2 * t + l)) * SQRT_HALF
        return y                                        # (bb, U) act_dtype

    # initial feature transformer -> attention features (full U width, no slice)
    a = feat_transform(x_bn.astype(act_dtype), 0)

    prior = jnp.ones((bb, D), jnp.float32)
    d_sum = jnp.zeros((bb, U), jnp.float32)

    for step in range(N_STEPS):
        # attentive transformer (w_att rows 0..N_D-1 are zero -> only the
        # attention half of `a` contributes; no lane extract needed)
        att = jnp.dot(a.astype(jnp.bfloat16), w_att_ref[step],
                      preferred_element_type=jnp.float32)
        att = (att + b_att_ref[step]) * prior
        # TODO(synk): canonical TabNet uses sparsemax here; softmax is used as
        # the mask normalizer since sparsemax needs a lane-axis sort.
        att = att - jnp.max(att, axis=-1, keepdims=True)
        e = jnp.exp(att)
        s = jnp.sum(e, axis=-1, keepdims=True)
        r = pl.reciprocal(s, approx=True)
        r = r * (2.0 - s * r)                           # one Newton step (cheap VALU)
        m = e * r                                       # softmax mask (bb, D) f32
        prior = prior * (GAMMA_RELAX - m)

        out = feat_transform((m * x_bn).astype(act_dtype), step + 1)
        d_sum = d_sum + jax.nn.relu(out).astype(jnp.float32)
        a = out

    # final linear head; w_fin rows N_D..U-1 are zero, so the accumulated
    # attention lanes of d_sum contribute nothing. Padded to 128 lanes for an
    # unmasked store (f32 writeback; switch to bf16 only if HBM-bound).
    res = jnp.dot(d_sum.astype(jnp.bfloat16), w_fin_ref[...],
                  preferred_element_type=jnp.float32)
    out_ref[...] = (res + b_fin_ref[...]).astype(out_ref.dtype)


# ------------------------------- wrapper -------------------------------------
def _const_spec(p):
    """Grid-invariant BlockSpec: full array, same block every grid step (stays resident in VMEM)."""
    zeros = (0,) * p.ndim
    return pl.BlockSpec(p.shape, lambda i, _z=zeros: _z)


def tabnet_forward(x, params, *, block_b=512, act_dtype=jnp.bfloat16):
    batch = x.shape[0]
    # Keep >= 2 grid steps (v7x has two TensorCores to shard the "parallel"
    # axis across) while maximizing the tile; rows stay a multiple of 16
    # (bf16 MXU operand packing).  For realistic batches this yields tiles of
    # several hundred rows, amortizing the ~0.35us per-grid-step overhead.
    half = -(-batch // 2)
    half = max(16, -(-half // 16) * 16)
    block_b = max(16, min(block_b, half))
    padded = -(-batch // block_b) * block_b
    if padded != batch:
        x = jnp.pad(x, ((0, padded - batch), (0, 0)))
    grid = (padded // block_b,)

    in_specs = [pl.BlockSpec((block_b, C), lambda i: (i, 0))]
    in_specs += [_const_spec(p) for p in params]
    out_spec = pl.BlockSpec((block_b, OUT_PAD), lambda i: (i, 0))

    # rough cost hint for XLA's scheduler
    flops_per_row = (2 * C * D                                   # embedding (+ folded BN)
                     + (N_STEPS + 1) * (4 * D * U + 12 * U * U)  # 4 feature transformers
                     + N_STEPS * 2 * U * D                       # attentive transformers
                     + 2 * U * OUT_PAD)                          # head
    trans_per_row = (N_STEPS + 1) * 4 * U + N_STEPS * (D + 1)
    weight_bytes = sum(int(p.size) * p.dtype.itemsize for p in params)
    cost = pl.CostEstimate(
        flops=padded * flops_per_row,
        transcendentals=padded * trans_per_row,
        bytes_accessed=padded * (C + OUT_PAD) * 4 + weight_bytes)

    kernel = functools.partial(tabnet_kernel, act_dtype=act_dtype)
    out = pl.pallas_call(
        kernel,
        out_shape=jax.ShapeDtypeStruct((padded, OUT_PAD), jnp.float32),
        grid=grid,
        in_specs=in_specs,
        out_specs=out_spec,
        compiler_params=pltpu.CompilerParams(
            dimension_semantics=("parallel",)),
        cost_estimate=cost,
    )(x, *params)
    return out[:batch, :OUT_DIM]


# ------------------------------- params --------------------------------------
def init_params(key):
    ks = jax.random.split(key, 10)

    # per-column embedding weights -> block-diagonal [C, D] matrix (glue)
    w_col = jax.random.normal(ks[0], (C, H), jnp.float32) * 0.1
    b_col = jax.random.normal(ks[1], (C, H), jnp.float32) * 0.1
    w_emb = jnp.zeros((C, D), jnp.float32)
    for c in range(C):
        w_emb = w_emb.at[c, c * H:(c + 1) * H].set(w_col[c])
    b_emb = b_col.reshape(1, D)

    # initial BN (inference affine), folded into the embedding matmul
    bn_g = jnp.ones((1, D), jnp.float32) * 1.05
    bn_b = jnp.ones((1, D), jnp.float32) * 0.01
    w_emb = w_emb * bn_g
    b_emb = b_emb * bn_g + bn_b

    # shared GLU layer 0 (K = D): value/gate stacked -> (2, D, U) / (2, 1, U)
    w0 = jax.random.normal(ks[2], (D, 2 * U), jnp.float32) * 0.05
    b0 = jax.random.normal(ks[3], (1, 2 * U), jnp.float32) * 0.05
    w_glu0 = jnp.stack([w0[:, :U], w0[:, U:]], axis=0)
    b_glu0 = jnp.stack([b0[:, :U], b0[:, U:]], axis=0)

    # K = U GLU layers: shared layer 1 + 2*(n_steps+1) step-specific layers,
    # value/gate interleaved -> (2*N_GLU_U, U, U) / (2*N_GLU_U, 1, U)
    wu = jax.random.normal(ks[4], (N_GLU_U, U, 2 * U), jnp.float32) * 0.05
    bu = jax.random.normal(ks[5], (N_GLU_U, 1, 2 * U), jnp.float32) * 0.05
    w_gluu = jnp.stack([wu[:, :, :U], wu[:, :, U:]], axis=1).reshape(2 * N_GLU_U, U, U)
    b_gluu = jnp.stack([bu[:, :, :U], bu[:, :, U:]], axis=1).reshape(2 * N_GLU_U, 1, U)

    # attentive transformers (one per step); zero-padded over the decision
    # rows so the full (bb, U) GLU output can feed the dot with no lane slice.
    w_att_raw = jax.random.normal(ks[6], (N_STEPS, N_A, D), jnp.float32) * 0.05
    b_att = jax.random.normal(ks[7], (N_STEPS, 1, D), jnp.float32) * 0.05
    w_att = jnp.zeros((N_STEPS, U, D), jnp.float32).at[:, N_D:, :].set(w_att_raw)

    # final linear head: zero-padded over the attention rows and lane-padded
    # to OUT_PAD.
    w_fin_raw = jax.random.normal(ks[8], (N_D, OUT_DIM), jnp.float32) * 0.05
    b_fin_raw = jax.random.normal(ks[9], (1, OUT_DIM), jnp.float32) * 0.05
    w_fin = jnp.zeros((U, OUT_PAD), jnp.float32).at[:N_D, :OUT_DIM].set(w_fin_raw)
    b_fin = jnp.zeros((1, OUT_PAD), jnp.float32).at[:, :OUT_DIM].set(b_fin_raw)

    bf = lambda w: w.astype(jnp.bfloat16)   # matmul operands in bf16

    return (bf(w_emb), b_emb,
            bf(w_glu0), b_glu0,
            bf(w_gluu), b_gluu,
            bf(w_att), b_att,
            bf(w_fin), b_fin)


# ---------------------------- pure-JAX reference ------------------------------
def tabnet_reference(x, params):
    (w_emb, b_emb, w_glu0, b_glu0, w_gluu, b_gluu,
     w_att, b_att, w_fin, b_fin) = params
    f32 = lambda a: a.astype(jnp.float32)

    x_bn = x @ f32(w_emb) + b_emb

    def glu(inp, wv, bv, wg, bg):
        return (inp @ f32(wv) + bv) * jax.nn.sigmoid(inp @ f32(wg) + bg)

    def feat(inp, t):
        y = glu(inp, w_glu0[0], b_glu0[0], w_glu0[1], b_glu0[1])
        y = (y + glu(y, w_gluu[0], b_gluu[0], w_gluu[1], b_gluu[1])) * SQRT_HALF
        for l in range(2):
            i = 1 + 2 * t + l
            y = (y + glu(y, w_gluu[2 * i], b_gluu[2 * i],
                         w_gluu[2 * i + 1], b_gluu[2 * i + 1])) * SQRT_HALF
        return y

    a = feat(x_bn, 0)
    prior = jnp.ones_like(x_bn)
    d_sum = jnp.zeros((x.shape[0], U), jnp.float32)
    for step in range(N_STEPS):
        att = (a @ f32(w_att[step]) + b_att[step]) * prior
        m = jax.nn.softmax(att, axis=-1)
        prior = prior * (GAMMA_RELAX - m)
        out = feat(m * x_bn, step + 1)
        d_sum = d_sum + jax.nn.relu(out)
        a = out
    return (d_sum @ f32(w_fin) + b_fin)[:, :OUT_DIM]


if __name__ == "__main__":
    key = jax.random.PRNGKey(0)
    kx, kp = jax.random.split(key)
    batch = 256
    x = jax.random.normal(kx, (batch, C), jnp.float32)
    params = init_params(kp)

    out = tabnet_forward(x, params)
    out = jax.block_until_ready(out)
    assert out.shape == (batch, OUT_DIM) and out.dtype == jnp.float32
    assert bool(jnp.all(jnp.isfinite(out)))

    ref = tabnet_reference(x, params)
    max_diff = float(jnp.max(jnp.abs(out - ref)))
    assert max_diff < 5e-2, f"kernel vs reference mismatch: {max_diff}"
    print("KERNEL_OK")
</pallas_src>

<mosaic_0001>
module attributes {stable_mosaic.version = 11 : i64} {
  func.func @tabnet_kernel(%arg0: i32, %arg1: memref<128x8xf32, #tpu.memory_space<vmem>>, %arg2: memref<8x128xbf16, #tpu.memory_space<vmem>>, %arg3: memref<1x128xf32, #tpu.memory_space<vmem>>, %arg4: memref<2x128x32xbf16, #tpu.memory_space<vmem>>, %arg5: memref<2x1x32xf32, #tpu.memory_space<vmem>>, %arg6: memref<18x32x32xbf16, #tpu.memory_space<vmem>>, %arg7: memref<18x1x32xf32, #tpu.memory_space<vmem>>, %arg8: memref<3x32x128xbf16, #tpu.memory_space<vmem>>, %arg9: memref<3x1x128xf32, #tpu.memory_space<vmem>>, %arg10: memref<32x128xbf16, #tpu.memory_space<vmem>>, %arg11: memref<1x128xf32, #tpu.memory_space<vmem>>, %arg12: memref<128x128xf32, #tpu.memory_space<vmem>>) attributes {dimension_semantics = [#tpu.dimension_semantics<parallel>], iteration_bounds = array<i64: 2>, scalar_prefetch = 0 : i64, scratch_operands = 0 : i64, tpu.core_type = #tpu.core_type<tc>, window_params = [{transform_indices = @transform_0, window_bounds = array<i64: 128, 8>}, {pipeline_mode = #tpu.pipeline_mode<synchronous>, transform_indices = @transform_1, window_bounds = array<i64: 8, 128>}, {pipeline_mode = #tpu.pipeline_mode<synchronous>, transform_indices = @transform_2, window_bounds = array<i64: 1, 128>}, {pipeline_mode = #tpu.pipeline_mode<synchronous>, transform_indices = @transform_3, window_bounds = array<i64: 2, 128, 32>}, {pipeline_mode = #tpu.pipeline_mode<synchronous>, transform_indices = @transform_4, window_bounds = array<i64: 2, 1, 32>}, {pipeline_mode = #tpu.pipeline_mode<synchronous>, transform_indices = @transform_5, window_bounds = array<i64: 18, 32, 32>}, {pipeline_mode = #tpu.pipeline_mode<synchronous>, transform_indices = @transform_6, window_bounds = array<i64: 18, 1, 32>}, {pipeline_mode = #tpu.pipeline_mode<synchronous>, transform_indices = @transform_7, window_bounds = array<i64: 3, 32, 128>}, {pipeline_mode = #tpu.pipeline_mode<synchronous>, transform_indices = @transform_8, window_bounds = array<i64: 3, 1, 128>}, {pipeline_mode = #tpu.pipeline_mode<synchronous>, transform_indices = @transform_9, window_bounds = array<i64: 32, 128>}, {pipeline_mode = #tpu.pipeline_mode<synchronous>, transform_indices = @transform_10, window_bounds = array<i64: 1, 128>}, {transform_indices = @transform_11, window_bounds = array<i64: 128, 128>}]} {
    %c0 = arith.constant 0 : index
    %c0_0 = arith.constant 0 : index
    %0 = vector.load %arg1[%c0, %c0_0] : memref<128x8xf32, #tpu.memory_space<vmem>>, vector<128x8xf32>
    %1 = arith.truncf %0 : vector<128x8xf32> to vector<128x8xbf16>
    %c0_1 = arith.constant 0 : index
    %c0_2 = arith.constant 0 : index
    %2 = vector.load %arg2[%c0_1, %c0_2] : memref<8x128xbf16, #tpu.memory_space<vmem>>, vector<8x128xbf16>
    %cst = arith.constant dense<0.000000e+00> : vector<128x128xf32>
    %3 = tpu.matmul %1, %2, %cst {dimension_numbers = #tpu.dot_dimension_numbers<[1], [0], [0], [1], [0, 0, 1, 1], [], []>} : vector<128x8xbf16>, vector<8x128xbf16>, vector<128x128xf32> -> vector<128x128xf32>
    %c0_3 = arith.constant 0 : index
    %c0_4 = arith.constant 0 : index
    %4 = vector.load %arg3[%c0_3, %c0_4] : memref<1x128xf32, #tpu.memory_space<vmem>>, vector<1x128xf32>
    %5 = vector.broadcast %4 : vector<1x128xf32> to vector<128x128xf32>
    %6 = arith.addf %3, %5 : vector<128x128xf32>
    %7 = arith.truncf %6 : vector<128x128xf32> to vector<128x128xbf16>
    %c0_5 = arith.constant 0 : index
    %c0_6 = arith.constant 0 : index
    %c0_7 = arith.constant 0 : index
    %8 = vector.load %arg4[%c0_5, %c0_6, %c0_7] : memref<2x128x32xbf16, #tpu.memory_space<vmem>>, vector<1x128x32xbf16>
    %9 = vector.shape_cast %8 : vector<1x128x32xbf16> to vector<128x32xbf16>
    %cst_8 = arith.constant dense<0.000000e+00> : vector<128x32xf32>
    %10 = tpu.matmul %7, %9, %cst_8 {dimension_numbers = #tpu.dot_dimension_numbers<[1], [0], [0], [1], [0, 0, 1, 1], [], []>} : vector<128x128xbf16>, vector<128x32xbf16>, vector<128x32xf32> -> vector<128x32xf32>
    %c1 = arith.constant 1 : index
    %c0_9 = arith.constant 0 : index
    %c0_10 = arith.constant 0 : index
    %11 = vector.load %arg4[%c1, %c0_9, %c0_10] : memref<2x128x32xbf16, #tpu.memory_space<vmem>>, vector<1x128x32xbf16>
    %12 = vector.shape_cast %11 : vector<1x128x32xbf16> to vector<128x32xbf16>
    %cst_11 = arith.constant dense<0.000000e+00> : vector<128x32xf32>
    %13 = tpu.matmul %7, %12, %cst_11 {dimension_numbers = #tpu.dot_dimension_numbers<[1], [0], [0], [1], [0, 0, 1, 1], [], []>} : vector<128x128xbf16>, vector<128x32xbf16>, vector<128x32xf32> -> vector<128x32xf32>
    %c0_12 = arith.constant 0 : index
    %c0_13 = arith.constant 0 : index
    %c0_14 = arith.constant 0 : index
    %14 = vector.load %arg5[%c0_12, %c0_13, %c0_14] : memref<2x1x32xf32, #tpu.memory_space<vmem>>, vector<1x1x32xf32>
    %15 = vector.shape_cast %14 : vector<1x1x32xf32> to vector<1x32xf32>
    %16 = vector.broadcast %15 : vector<1x32xf32> to vector<128x32xf32>
    %17 = arith.addf %10, %16 : vector<128x32xf32>
    %18 = arith.truncf %17 : vector<128x32xf32> to vector<128x32xbf16>
    %c1_15 = arith.constant 1 : index
    %c0_16 = arith.constant 0 : index
    %c0_17 = arith.constant 0 : index
    %19 = vector.load %arg5[%c1_15, %c0_16, %c0_17] : memref<2x1x32xf32, #tpu.memory_space<vmem>>, vector<1x1x32xf32>
    %20 = vector.shape_cast %19 : vector<1x1x32xf32> to vector<1x32xf32>
    %21 = vector.broadcast %20 : vector<1x32xf32> to vector<128x32xf32>
    %22 = arith.addf %13, %21 : vector<128x32xf32>
    %23 = arith.truncf %22 : vector<128x32xf32> to vector<128x32xbf16>
    %24 = arith.negf %23 : vector<128x32xbf16>
    %25 = math.exp %24 : vector<128x32xbf16>
    %cst_18 = arith.constant 1.000000e+00 : bf16
    %26 = vector.broadcast %cst_18 : bf16 to vector<128x32xbf16>
    %27 = arith.addf %26, %25 : vector<128x32xbf16>
    %28 = arith.divf %26, %27 : vector<128x32xbf16>
    %29 = arith.mulf %18, %28 : vector<128x32xbf16>
    %c0_19 = arith.constant 0 : index
    %c0_20 = arith.constant 0 : index
    %c0_21 = arith.constant 0 : index
    %30 = vector.load %arg6[%c0_19, %c0_20, %c0_21] : memref<18x32x32xbf16, #tpu.memory_space<vmem>>, vector<1x32x32xbf16>
    %31 = vector.shape_cast %30 : vector<1x32x32xbf16> to vector<32x32xbf16>
    %cst_22 = arith.constant dense<0.000000e+00> : vector<128x32xf32>
    %32 = tpu.matmul %29, %31, %cst_22 {dimension_numbers = #tpu.dot_dimension_numbers<[1], [0], [0], [1], [0, 0, 1, 1], [], []>} : vector<128x32xbf16>, vector<32x32xbf16>, vector<128x32xf32> -> vector<128x32xf32>
    %c1_23 = arith.constant 1 : index
    %c0_24 = arith.constant 0 : index
    %c0_25 = arith.constant 0 : index
    %33 = vector.load %arg6[%c1_23, %c0_24, %c0_25] : memref<18x32x32xbf16, #tpu.memory_space<vmem>>, vector<1x32x32xbf16>
    %34 = vector.shape_cast %33 : vector<1x32x32xbf16> to vector<32x32xbf16>
    %cst_26 = arith.constant dense<0.000000e+00> : vector<128x32xf32>
    %35 = tpu.matmul %29, %34, %cst_26 {dimension_numbers = #tpu.dot_dimension_numbers<[1], [0], [0], [1], [0, 0, 1, 1], [], []>} : vector<128x32xbf16>, vector<32x32xbf16>, vector<128x32xf32> -> vector<128x32xf32>
    %c0_27 = arith.constant 0 : index
    %c0_28 = arith.constant 0 : index
    %c0_29 = arith.constant 0 : index
    %36 = vector.load %arg7[%c0_27, %c0_28, %c0_29] : memref<18x1x32xf32, #tpu.memory_space<vmem>>, vector<1x1x32xf32>
    %37 = vector.shape_cast %36 : vector<1x1x32xf32> to vector<1x32xf32>
    %38 = vector.broadcast %37 : vector<1x32xf32> to vector<128x32xf32>
    %39 = arith.addf %32, %38 : vector<128x32xf32>
    %40 = arith.truncf %39 : vector<128x32xf32> to vector<128x32xbf16>
    %c1_30 = arith.constant 1 : index
    %c0_31 = arith.constant 0 : index
    %c0_32 = arith.constant 0 : index
    %41 = vector.load %arg7[%c1_30, %c0_31, %c0_32] : memref<18x1x32xf32, #tpu.memory_space<vmem>>, vector<1x1x32xf32>
    %42 = vector.shape_cast %41 : vector<1x1x32xf32> to vector<1x32xf32>
    %43 = vector.broadcast %42 : vector<1x32xf32> to vector<128x32xf32>
    %44 = arith.addf %35, %43 : vector<128x32xf32>
    %45 = arith.truncf %44 : vector<128x32xf32> to vector<128x32xbf16>
    %46 = arith.negf %45 : vector<128x32xbf16>
    %47 = math.exp %46 : vector<128x32xbf16>
    %cst_33 = arith.constant 1.000000e+00 : bf16
    %48 = vector.broadcast %cst_33 : bf16 to vector<128x32xbf16>
    %49 = arith.addf %48, %47 : vector<128x32xbf16>
    %50 = arith.divf %48, %49 : vector<128x32xbf16>
    %51 = arith.mulf %40, %50 : vector<128x32xbf16>
    %52 = arith.addf %29, %51 : vector<128x32xbf16>
    %cst_34 = arith.constant 7.070310e-01 : bf16
    %53 = vector.broadcast %cst_34 : bf16 to vector<128x32xbf16>
    %54 = arith.mulf %52, %53 : vector<128x32xbf16>
    %c2 = arith.constant 2 : index
    %c0_35 = arith.constant 0 : index
    %c0_36 = arith.constant 0 : index
    %55 = vector.load %arg6[%c2, %c0_35, %c0_36] : memref<18x32x32xbf16, #tpu.memory_space<vmem>>, vector<1x32x32xbf16>
    %56 = vector.shape_cast %55 : vector<1x32x32xbf16> to vector<32x32xbf16>
    %cst_37 = arith.constant dense<0.000000e+00> : vector<128x32xf32>
    %57 = tpu.matmul %54, %56, %cst_37 {dimension_numbers = #tpu.dot_dimension_numbers<[1], [0], [0], [1], [0, 0, 1, 1], [], []>} : vector<128x32xbf16>, vector<32x32xbf16>, vector<128x32xf32> -> vector<128x32xf32>
    %c3 = arith.constant 3 : index
    %c0_38 = arith.constant 0 : index
    %c0_39 = arith.constant 0 : index
    %58 = vector.load %arg6[%c3, %c0_38, %c0_39] : memref<18x32x32xbf16, #tpu.memory_space<vmem>>, vector<1x32x32xbf16>
    %59 = vector.shape_cast %58 : vector<1x32x32xbf16> to vector<32x32xbf16>
    %cst_40 = arith.constant dense<0.000000e+00> : vector<128x32xf32>
    %60 = tpu.matmul %54, %59, %cst_40 {dimension_numbers = #tpu.dot_dimension_numbers<[1], [0], [0], [1], [0, 0, 1, 1], [], []>} : vector<128x32xbf16>, vector<32x32xbf16>, vector<128x32xf32> -> vector<128x32xf32>
    %c2_41 = arith.constant 2 : index
    %c0_42 = arith.constant 0 : index
    %c0_43 = arith.constant 0 : index
    %61 = vector.load %arg7[%c2_41, %c0_42, %c0_43] : memref<18x1x32xf32, #tpu.memory_space<vmem>>, vector<1x1x32xf32>
    %62 = vector.shape_cast %61 : vector<1x1x32xf32> to vector<1x32xf32>
    %63 = vector.broadcast %62 : vector<1x32xf32> to vector<128x32xf32>
    %64 = arith.addf %57, %63 : vector<128x32xf32>
    %65 = arith.truncf %64 : vector<128x32xf32> to vector<128x32xbf16>
    %c3_44 = arith.constant 3 : index
    %c0_45 = arith.constant 0 : index
    %c0_46 = arith.constant 0 : index
    %66 = vector.load %arg7[%c3_44, %c0_45, %c0_46] : memref<18x1x32xf32, #tpu.memory_space<vmem>>, vector<1x1x32xf32>
    %67 = vector.shape_cast %66 : vector<1x1x32xf32> to vector<1x32xf32>
    %68 = vector.broadcast %67 : vector<1x32xf32> to vector<128x32xf32>
    %69 = arith.addf %60, %68 : vector<128x32xf32>
    %70 = arith.truncf %69 : vector<128x32xf32> to vector<128x32xbf16>
    %71 = arith.negf %70 : vector<128x32xbf16>
    %72 = math.exp %71 : vector<128x32xbf16>
    %cst_47 = arith.constant 1.000000e+00 : bf16
    %73 = vector.broadcast %cst_47 : bf16 to vector<128x32xbf16>
    %74 = arith.addf %73, %72 : vector<128x32xbf16>
    %75 = arith.divf %73, %74 : vector<128x32xbf16>
    %76 = arith.mulf %65, %75 : vector<128x32xbf16>
    %77 = arith.addf %54, %76 : vector<128x32xbf16>
    %cst_48 = arith.constant 7.070310e-01 : bf16
    %78 = vector.broadcast %cst_48 : bf16 to vector<128x32xbf16>
    %79 = arith.mulf %77, %78 : vector<128x32xbf16>
    %c4 = arith.constant 4 : index
    %c0_49 = arith.constant 0 : index
    %c0_50 = arith.constant 0 : index
    %80 = vector.load %arg6[%c4, %c0_49, %c0_50] : memref<18x32x32xbf16, #tpu.memory_space<vmem>>, vector<1x32x32xbf16>
    %81 = vector.shape_cast %80 : vector<1x32x32xbf16> to vector<32x32xbf16>
    %cst_51 = arith.constant dense<0.000000e+00> : vector<128x32xf32>
    %82 = tpu.matmul %79, %81, %cst_51 {dimension_numbers = #tpu.dot_dimension_numbers<[1], [0], [0], [1], [0, 0, 1, 1], [], []>} : vector<128x32xbf16>, vector<32x32xbf16>, vector<128x32xf32> -> vector<128x32xf32>
    %c5 = arith.constant 5 : index
    %c0_52 = arith.constant 0 : index
    %c0_53 = arith.constant 0 : index
    %83 = vector.load %arg6[%c5, %c0_52, %c0_53] : memref<18x32x32xbf16, #tpu.memory_space<vmem>>, vector<1x32x32xbf16>
    %84 = vector.shape_cast %83 : vector<1x32x32xbf16> to vector<32x32xbf16>
    %cst_54 = arith.constant dense<0.000000e+00> : vector<128x32xf32>
    %85 = tpu.matmul %79, %84, %cst_54 {dimension_numbers = #tpu.dot_dimension_numbers<[1], [0], [0], [1], [0, 0, 1, 1], [], []>} : vector<128x32xbf16>, vector<32x32xbf16>, vector<128x32xf32> -> vector<128x32xf32>
    %c4_55 = arith.constant 4 : index
    %c0_56 = arith.constant 0 : index
    %c0_57 = arith.constant 0 : index
    %86 = vector.load %arg7[%c4_55, %c0_56, %c0_57] : memref<18x1x32xf32, #tpu.memory_space<vmem>>, vector<1x1x32xf32>
    %87 = vector.shape_cast %86 : vector<1x1x32xf32> to vector<1x32xf32>
    %88 = vector.broadcast %87 : vector<1x32xf32> to vector<128x32xf32>
    %89 = arith.addf %82, %88 : vector<128x32xf32>
    %90 = arith.truncf %89 : vector<128x32xf32> to vector<128x32xbf16>
    %c5_58 = arith.constant 5 : index
    %c0_59 = arith.constant 0 : index
    %c0_60 = arith.constant 0 : index
    %91 = vector.load %arg7[%c5_58, %c0_59, %c0_60] : memref<18x1x32xf32, #tpu.memory_space<vmem>>, vector<1x1x32xf32>
    %92 = vector.shape_cast %91 : vector<1x1x32xf32> to vector<1x32xf32>
    %93 = vector.broadcast %92 : vector<1x32xf32> to vector<128x32xf32>
    %94 = arith.addf %85, %93 : vector<128x32xf32>
    %95 = arith.truncf %94 : vector<128x32xf32> to vector<128x32xbf16>
    %96 = arith.negf %95 : vector<128x32xbf16>
    %97 = math.exp %96 : vector<128x32xbf16>
    %cst_61 = arith.constant 1.000000e+00 : bf16
    %98 = vector.broadcast %cst_61 : bf16 to vector<128x32xbf16>
    %99 = arith.addf %98, %97 : vector<128x32xbf16>
    %100 = arith.divf %98, %99 : vector<128x32xbf16>
    %101 = arith.mulf %90, %100 : vector<128x32xbf16>
    %102 = arith.addf %79, %101 : vector<128x32xbf16>
    %cst_62 = arith.constant 7.070310e-01 : bf16
    %103 = vector.broadcast %cst_62 : bf16 to vector<128x32xbf16>
    %104 = arith.mulf %102, %103 : vector<128x32xbf16>
    %cst_63 = arith.constant 1.000000e+00 : f32
    %105 = vector.broadcast %cst_63 : f32 to vector<128x128xf32>
    %cst_64 = arith.constant 0.000000e+00 : f32
    %106 = vector.broadcast %cst_64 : f32 to vector<128x32xf32>
    %c0_65 = arith.constant 0 : index
    %c0_66 = arith.constant 0 : index
    %c0_67 = arith.constant 0 : index
    %107 = vector.load %arg8[%c0_65, %c0_66, %c0_67] : memref<3x32x128xbf16, #tpu.memory_space<vmem>>, vector<1x32x128xbf16>
    %108 = vector.shape_cast %107 : vector<1x32x128xbf16> to vector<32x128xbf16>
    %cst_68 = arith.constant dense<0.000000e+00> : vector<128x128xf32>
    %109 = tpu.matmul %104, %108, %cst_68 {dimension_numbers = #tpu.dot_dimension_numbers<[1], [0], [0], [1], [0, 0, 1, 1], [], []>} : vector<128x32xbf16>, vector<32x128xbf16>, vector<128x128xf32> -> vector<128x128xf32>
    %c0_69 = arith.constant 0 : index
    %c0_70 = arith.constant 0 : index
    %c0_71 = arith.constant 0 : index
    %110 = vector.load %arg9[%c0_69, %c0_70, %c0_71] : memref<3x1x128xf32, #tpu.memory_space<vmem>>, vector<1x1x128xf32>
    %111 = vector.shape_cast %110 : vector<1x1x128xf32> to vector<1x128xf32>
    %112 = vector.broadcast %111 : vector<1x128xf32> to vector<128x128xf32>
    %113 = arith.addf %109, %112 : vector<128x128xf32>
    %114 = arith.mulf %113, %105 : vector<128x128xf32>
    %cst_72 = arith.constant dense<0xFF800000> : vector<128xf32>
    %115 = vector.multi_reduction <maximumf>, %114, %cst_72 [1] : vector<128x128xf32> to vector<128xf32>
    %116 = vector.shape_cast %115 : vector<128xf32> to vector<128x1xf32>
    %117 = vector.broadcast %116 : vector<128x1xf32> to vector<128x128xf32>
    %118 = arith.subf %114, %117 : vector<128x128xf32>
    %119 = math.exp %118 : vector<128x128xf32>
    %cst_73 = arith.constant dense<0.000000e+00> : vector<128xf32>
    %120 = vector.multi_reduction <add>, %119, %cst_73 [1] : vector<128x128xf32> to vector<128xf32>
    %121 = vector.shape_cast %120 : vector<128xf32> to vector<128x1xf32>
    %122 = tpu.reciprocal %121 {approx = true} : vector<128x1xf32> -> vector<128x1xf32>
    %123 = arith.mulf %121, %122 : vector<128x1xf32>
    %cst_74 = arith.constant 2.000000e+00 : f32
    %124 = vector.broadcast %cst_74 : f32 to vector<128x1xf32>
    %125 = arith.subf %124, %123 : vector<128x1xf32>
    %126 = arith.mulf %122, %125 : vector<128x1xf32>
    %127 = vector.broadcast %126 : vector<128x1xf32> to vector<128x128xf32>
    %128 = arith.mulf %119, %127 : vector<128x128xf32>
    %cst_75 = arith.constant 1.300000e+00 : f32
    %129 = vector.broadcast %cst_75 : f32 to vector<128x128xf32>
    %130 = arith.subf %129, %128 : vector<128x128xf32>
    %131 = arith.mulf %105, %130 : vector<128x128xf32>
    %132 = arith.mulf %128, %6 : vector<128x128xf32>
    %133 = arith.truncf %132 : vector<128x128xf32> to vector<128x128xbf16>
    %c0_76 = arith.constant 0 : index
    %c0_77 = arith.constant 0 : index
    %c0_78 = arith.constant 0 : index
    %134 = vector.load %arg4[%c0_76, %c0_77, %c0_78] : memref<2x128x32xbf16, #tpu.memory_space<vmem>>, vector<1x128x32xbf16>
    %135 = vector.shape_cast %134 : vector<1x128x32xbf16> to vector<128x32xbf16>
    %cst_79 = arith.constant dense<0.000000e+00> : vector<128x32xf32>
    %136 = tpu.matmul %133, %135, %cst_79 {dimension_numbers = #tpu.dot_dimension_numbers<[1], [0], [0], [1], [0, 0, 1, 1], [], []>} : vector<128x128xbf16>, vector<128x32xbf16>, vector<128x32xf32> -> vector<128x32xf32>
    %c1_80 = arith.constant 1 : index
    %c0_81 = arith.constant 0 : index
    %c0_82 = arith.constant 0 : index
    %137 = vector.load %arg4[%c1_80, %c0_81, %c0_82] : memref<2x128x32xbf16, #tpu.memory_space<vmem>>, vector<1x128x32xbf16>
    %138 = vector.shape_cast %137 : vector<1x128x32xbf16> to vector<128x32xbf16>
    %cst_83 = arith.constant dense<0.000000e+00> : vector<128x32xf32>
    %139 = tpu.matmul %133, %138, %cst_83 {dimension_numbers = #tpu.dot_dimension_numbers<[1], [0], [0], [1], [0, 0, 1, 1], [], []>} : vector<128x128xbf16>, vector<128x32xbf16>, vector<128x32xf32> -> vector<128x32xf32>
    %c0_84 = arith.constant 0 : index
    %c0_85 = arith.constant 0 : index
    %c0_86 = arith.constant 0 : index
    %140 = vector.load %arg5[%c0_84, %c0_85, %c0_86] : memref<2x1x32xf32, #tpu.memory_space<vmem>>, vector<1x1x32xf32>
    %141 = vector.shape_cast %140 : vector<1x1x32xf32> to vector<1x32xf32>
    %142 = vector.broadcast %141 : vector<1x32xf32> to vector<128x32xf32>
    %143 = arith.addf %136, %142 : vector<128x32xf32>
    %144 = arith.truncf %143 : vector<128x32xf32> to vector<128x32xbf16>
    %c1_87 = arith.constant 1 : index
    %c0_88 = arith.constant 0 : index
    %c0_89 = arith.constant 0 : index
    %145 = vector.load %arg5[%c1_87, %c0_88, %c0_89] : memref<2x1x32xf32, #tpu.memory_space<vmem>>, vector<1x1x32xf32>
    %146 = vector.shape_cast %145 : vector<1x1x32xf32> to vector<1x32xf32>
    %147 = vector.broadcast %146 : vector<1x32xf32> to vector<128x32xf32>
    %148 = arith.addf %139, %147 : vector<128x32xf32>
    %149 = arith.truncf %148 : vector<128x32xf32> to vector<128x32xbf16>
    %150 = arith.negf %149 : vector<128x32xbf16>
    %151 = math.exp %150 : vector<128x32xbf16>
    %cst_90 = arith.constant 1.000000e+00 : bf16
    %152 = vector.broadcast %cst_90 : bf16 to vector<128x32xbf16>
    %153 = arith.addf %152, %151 : vector<128x32xbf16>
    %154 = arith.divf %152, %153 : vector<128x32xbf16>
    %155 = arith.mulf %144, %154 : vector<128x32xbf16>
    %c0_91 = arith.constant 0 : index
    %c0_92 = arith.constant 0 : index
    %c0_93 = arith.constant 0 : index
    %156 = vector.load %arg6[%c0_91, %c0_92, %c0_93] : memref<18x32x32xbf16, #tpu.memory_space<vmem>>, vector<1x32x32xbf16>
    %157 = vector.shape_cast %156 : vector<1x32x32xbf16> to vector<32x32xbf16>
    %cst_94 = arith.constant dense<0.000000e+00> : vector<128x32xf32>
    %158 = tpu.matmul %155, %157, %cst_94 {dimension_numbers = #tpu.dot_dimension_numbers<[1], [0], [0], [1], [0, 0, 1, 1], [], []>} : vector<128x32xbf16>, vector<32x32xbf16>, vector<128x32xf32> -> vector<128x32xf32>
    %c1_95 = arith.constant 1 : index
    %c0_96 = arith.constant 0 : index
    %c0_97 = arith.constant 0 : index
    %159 = vector.load %arg6[%c1_95, %c0_96, %c0_97] : memref<18x32x32xbf16, #tpu.memory_space<vmem>>, vector<1x32x32xbf16>
    %160 = vector.shape_cast %159 : vector<1x32x32xbf16> to vector<32x32xbf16>
    %cst_98 = arith.constant dense<0.000000e+00> : vector<128x32xf32>
    %161 = tpu.matmul %155, %160, %cst_98 {dimension_numbers = #tpu.dot_dimension_numbers<[1], [0], [0], [1], [0, 0, 1, 1], [], []>} : vector<128x32xbf16>, vector<32x32xbf16>, vector<128x32xf32> -> vector<128x32xf32>
    %c0_99 = arith.constant 0 : index
    %c0_100 = arith.constant 0 : index
    %c0_101 = arith.constant 0 : index
    %162 = vector.load %arg7[%c0_99, %c0_100, %c0_101] : memref<18x1x32xf32, #tpu.memory_space<vmem>>, vector<1x1x32xf32>
    %163 = vector.shape_cast %162 : vector<1x1x32xf32> to vector<1x32xf32>
    %164 = vector.broadcast %163 : vector<1x32xf32> to vector<128x32xf32>
    %165 = arith.addf %158, %164 : vector<128x32xf32>
    %166 = arith.truncf %165 : vector<128x32xf32> to vector<128x32xbf16>
    %c1_102 = arith.constant 1 : index
    %c0_103 = arith.constant 0 : index
    %c0_104 = arith.constant 0 : index
    %167 = vector.load %arg7[%c1_102, %c0_103, %c0_104] : memref<18x1x32xf32, #tpu.memory_space<vmem>>, vector<1x1x32xf32>
    %168 = vector.shape_cast %167 : vector<1x1x32xf32> to vector<1x32xf32>
    %169 = vector.broadcast %168 : vector<1x32xf32> to vector<128x32xf32>
    %170 = arith.addf %161, %169 : vector<128x32xf32>
    %171 = arith.truncf %170 : vector<128x32xf32> to vector<128x32xbf16>
    %172 = arith.negf %171 : vector<128x32xbf16>
    %173 = math.exp %172 : vector<128x32xbf16>
    %cst_105 = arith.constant 1.000000e+00 : bf16
    %174 = vector.broadcast %cst_105 : bf16 to vector<128x32xbf16>
    %175 = arith.addf %174, %173 : vector<128x32xbf16>
    %176 = arith.divf %174, %175 : vector<128x32xbf16>
    %177 = arith.mulf %166, %176 : vector<128x32xbf16>
    %178 = arith.addf %155, %177 : vector<128x32xbf16>
    %cst_106 = arith.constant 7.070310e-01 : bf16
    %179 = vector.broadcast %cst_106 : bf16 to vector<128x32xbf16>
    %180 = arith.mulf %178, %179 : vector<128x32xbf16>
    %c6 = arith.constant 6 : index
    %c0_107 = arith.constant 0 : index
    %c0_108 = arith.constant 0 : index
    %181 = vector.load %arg6[%c6, %c0_107, %c0_108] : memref<18x32x32xbf16, #tpu.memory_space<vmem>>, vector<1x32x32xbf16>
    %182 = vector.shape_cast %181 : vector<1x32x32xbf16> to vector<32x32xbf16>
    %cst_109 = arith.constant dense<0.000000e+00> : vector<128x32xf32>
    %183 = tpu.matmul %180, %182, %cst_109 {dimension_numbers = #tpu.dot_dimension_numbers<[1], [0], [0], [1], [0, 0, 1, 1], [], []>} : vector<128x32xbf16>, vector<32x32xbf16>, vector<128x32xf32> -> vector<128x32xf32>
    %c7 = arith.constant 7 : index
    %c0_110 = arith.constant 0 : index
    %c0_111 = arith.constant 0 : index
    %184 = vector.load %arg6[%c7, %c0_110, %c0_111] : memref<18x32x32xbf16, #tpu.memory_space<vmem>>, vector<1x32x32xbf16>
    %185 = vector.shape_cast %184 : vector<1x32x32xbf16> to vector<32x32xbf16>
    %cst_112 = arith.constant dense<0.000000e+00> : vector<128x32xf32>
    %186 = tpu.matmul %180, %185, %cst_112 {dimension_numbers = #tpu.dot_dimension_numbers<[1], [0], [0], [1], [0, 0, 1, 1], [], []>} : vector<128x32xbf16>, vector<32x32xbf16>, vector<128x32xf32> -> vector<128x32xf32>
    %c6_113 = arith.constant 6 : index
    %c0_114 = arith.constant 0 : index
    %c0_115 = arith.constant 0 : index
    %187 = vector.load %arg7[%c6_113, %c0_114, %c0_115] : memref<18x1x32xf32, #tpu.memory_space<vmem>>, vector<1x1x32xf32>
    %188 = vector.shape_cast %187 : vector<1x1x32xf32> to vector<1x32xf32>
    %189 = vector.broadcast %188 : vector<1x32xf32> to vector<128x32xf32>
    %190 = arith.addf %183, %189 : vector<128x32xf32>
    %191 = arith.truncf %190 : vector<128x32xf32> to vector<128x32xbf16>
    %c7_116 = arith.constant 7 : index
    %c0_117 = arith.constant 0 : index
    %c0_118 = arith.constant 0 : index
    %192 = vector.load %arg7[%c7_116, %c0_117, %c0_118] : memref<18x1x32xf32, #tpu.memory_space<vmem>>, vector<1x1x32xf32>
    %193 = vector.shape_cast %192 : vector<1x1x32xf32> to vector<1x32xf32>
    %194 = vector.broadcast %193 : vector<1x32xf32> to vector<128x32xf32>
    %195 = arith.addf %186, %194 : vector<128x32xf32>
    %196 = arith.truncf %195 : vector<128x32xf32> to vector<128x32xbf16>
    %197 = arith.negf %196 : vector<128x32xbf16>
    %198 = math.exp %197 : vector<128x32xbf16>
    %cst_119 = arith.constant 1.000000e+00 : bf16
    %199 = vector.broadcast %cst_119 : bf16 to vector<128x32xbf16>
    %200 = arith.addf %199, %198 : vector<128x32xbf16>
    %201 = arith.divf %199, %200 : vector<128x32xbf16>
    %202 = arith.mulf %191, %201 : vector<128x32xbf16>
    %203 = arith.addf %180, %202 : vector<128x32xbf16>
    %cst_120 = arith.constant 7.070310e-01 : bf16
    %204 = vector.broadcast %cst_120 : bf16 to vector<128x32xbf16>
    %205 = arith.mulf %203, %204 : vector<128x32xbf16>
    %c8 = arith.constant 8 : index
    %c0_121 = arith.constant 0 : index
    %c0_122 = arith.constant 0 : index
    %206 = vector.load %arg6[%c8, %c0_121, %c0_122] : memref<18x32x32xbf16, #tpu.memory_space<vmem>>, vector<1x32x32xbf16>
    %207 = vector.shape_cast %206 : vector<1x32x32xbf16> to vector<32x32xbf16>
    %cst_123 = arith.constant dense<0.000000e+00> : vector<128x32xf32>
    %208 = tpu.matmul %205, %207, %cst_123 {dimension_numbers = #tpu.dot_dimension_numbers<[1], [0], [0], [1], [0, 0, 1, 1], [], []>} : vector<128x32xbf16>, vector<32x32xbf16>, vector<128x32xf32> -> vector<128x32xf32>
    %c9 = arith.constant 9 : index
    %c0_124 = arith.constant 0 : index
    %c0_125 = arith.constant 0 : index
    %209 = vector.load %arg6[%c9, %c0_124, %c0_125] : memref<18x32x32xbf16, #tpu.memory_space<vmem>>, vector<1x32x32xbf16>
    %210 = vector.shape_cast %209 : vector<1x32x32xbf16> to vector<32x32xbf16>
    %cst_126 = arith.constant dense<0.000000e+00> : vector<128x32xf32>
    %211 = tpu.matmul %205, %210, %cst_126 {dimension_numbers = #tpu.dot_dimension_numbers<[1], [0], [0], [1], [0, 0, 1, 1], [], []>} : vector<128x32xbf16>, vector<32x32xbf16>, vector<128x32xf32> -> vector<128x32xf32>
    %c8_127 = arith.constant 8 : index
    %c0_128 = arith.constant 0 : index
    %c0_129 = arith.constant 0 : index
    %212 = vector.load %arg7[%c8_127, %c0_128, %c0_129] : memref<18x1x32xf32, #tpu.memory_space<vmem>>, vector<1x1x32xf32>
    %213 = vector.shape_cast %212 : vector<1x1x32xf32> to vector<1x32xf32>
    %214 = vector.broadcast %213 : vector<1x32xf32> to vector<128x32xf32>
    %215 = arith.addf %208, %214 : vector<128x32xf32>
    %216 = arith.truncf %215 : vector<128x32xf32> to vector<128x32xbf16>
    %c9_130 = arith.constant 9 : index
    %c0_131 = arith.constant 0 : index
    %c0_132 = arith.constant 0 : index
    %217 = vector.load %arg7[%c9_130, %c0_131, %c0_132] : memref<18x1x32xf32, #tpu.memory_space<vmem>>, vector<1x1x32xf32>
    %218 = vector.shape_cast %217 : vector<1x1x32xf32> to vector<1x32xf32>
    %219 = vector.broadcast %218 : vector<1x32xf32> to vector<128x32xf32>
    %220 = arith.addf %211, %219 : vector<128x32xf32>
    %221 = arith.truncf %220 : vector<128x32xf32> to vector<128x32xbf16>
    %222 = arith.negf %221 : vector<128x32xbf16>
    %223 = math.exp %222 : vector<128x32xbf16>
    %cst_133 = arith.constant 1.000000e+00 : bf16
    %224 = vector.broadcast %cst_133 : bf16 to vector<128x32xbf16>
    %225 = arith.addf %224, %223 : vector<128x32xbf16>
    %226 = arith.divf %224, %225 : vector<128x32xbf16>
    %227 = arith.mulf %216, %226 : vector<128x32xbf16>
    %228 = arith.addf %205, %227 : vector<128x32xbf16>
    %cst_134 = arith.constant 7.070310e-01 : bf16
    %229 = vector.broadcast %cst_134 : bf16 to vector<128x32xbf16>
    %230 = arith.mulf %228, %229 : vector<128x32xbf16>
    %cst_135 = arith.constant 0.000000e+00 : bf16
    %231 = vector.broadcast %cst_135 : bf16 to vector<128x32xbf16>
    %232 = arith.maximumf %230, %231 : vector<128x32xbf16>
    %233 = arith.extf %232 : vector<128x32xbf16> to vector<128x32xf32>
    %234 = arith.addf %106, %233 : vector<128x32xf32>
    %c1_136 = arith.constant 1 : index
    %c0_137 = arith.constant 0 : index
    %c0_138 = arith.constant 0 : index
    %235 = vector.load %arg8[%c1_136, %c0_137, %c0_138] : memref<3x32x128xbf16, #tpu.memory_space<vmem>>, vector<1x32x128xbf16>
    %236 = vector.shape_cast %235 : vector<1x32x128xbf16> to vector<32x128xbf16>
    %cst_139 = arith.constant dense<0.000000e+00> : vector<128x128xf32>
    %237 = tpu.matmul %230, %236, %cst_139 {dimension_numbers = #tpu.dot_dimension_numbers<[1], [0], [0], [1], [0, 0, 1, 1], [], []>} : vector<128x32xbf16>, vector<32x128xbf16>, vector<128x128xf32> -> vector<128x128xf32>
    %c1_140 = arith.constant 1 : index
    %c0_141 = arith.constant 0 : index
    %c0_142 = arith.constant 0 : index
    %238 = vector.load %arg9[%c1_140, %c0_141, %c0_142] : memref<3x1x128xf32, #tpu.memory_space<vmem>>, vector<1x1x128xf32>
    %239 = vector.shape_cast %238 : vector<1x1x128xf32> to vector<1x128xf32>
    %240 = vector.broadcast %239 : vector<1x128xf32> to vector<128x128xf32>
    %241 = arith.addf %237, %240 : vector<128x128xf32>
    %242 = arith.mulf %241, %131 : vector<128x128xf32>
    %cst_143 = arith.constant dense<0xFF800000> : vector<128xf32>
    %243 = vector.multi_reduction <maximumf>, %242, %cst_143 [1] : vector<128x128xf32> to vector<128xf32>
    %244 = vector.shape_cast %243 : vector<128xf32> to vector<128x1xf32>
    %245 = vector.broadcast %244 : vector<128x1xf32> to vector<128x128xf32>
    %246 = arith.subf %242, %245 : vector<128x128xf32>
    %247 = math.exp %246 : vector<128x128xf32>
    %cst_144 = arith.constant dense<0.000000e+00> : vector<128xf32>
    %248 = vector.multi_reduction <add>, %247, %cst_144 [1] : vector<128x128xf32> to vector<128xf32>
    %249 = vector.shape_cast %248 : vector<128xf32> to vector<128x1xf32>
    %250 = tpu.reciprocal %249 {approx = true} : vector<128x1xf32> -> vector<128x1xf32>
    %251 = arith.mulf %249, %250 : vector<128x1xf32>
    %cst_145 = arith.constant 2.000000e+00 : f32
    %252 = vector.broadcast %cst_145 : f32 to vector<128x1xf32>
    %253 = arith.subf %252, %251 : vector<128x1xf32>
    %254 = arith.mulf %250, %253 : vector<128x1xf32>
    %255 = vector.broadcast %254 : vector<128x1xf32> to vector<128x128xf32>
    %256 = arith.mulf %247, %255 : vector<128x128xf32>
    %cst_146 = arith.constant 1.300000e+00 : f32
    %257 = vector.broadcast %cst_146 : f32 to vector<128x128xf32>
    %258 = arith.subf %257, %256 : vector<128x128xf32>
    %259 = arith.mulf %131, %258 : vector<128x128xf32>
    %260 = arith.mulf %256, %6 : vector<128x128xf32>
    %261 = arith.truncf %260 : vector<128x128xf32> to vector<128x128xbf16>
    %c0_147 = arith.constant 0 : index
    %c0_148 = arith.constant 0 : index
    %c0_149 = arith.constant 0 : index
    %262 = vector.load %arg4[%c0_147, %c0_148, %c0_149] : memref<2x128x32xbf16, #tpu.memory_space<vmem>>, vector<1x128x32xbf16>
    %263 = vector.shape_cast %262 : vector<1x128x32xbf16> to vector<128x32xbf16>
    %cst_150 = arith.constant dense<0.000000e+00> : vector<128x32xf32>
    %264 = tpu.matmul %261, %263, %cst_150 {dimension_numbers = #tpu.dot_dimension_numbers<[1], [0], [0], [1], [0, 0, 1, 1], [], []>} : vector<128x128xbf16>, vector<128x32xbf16>, vector<128x32xf32> -> vector<128x32xf32>
    %c1_151 = arith.constant 1 : index
    %c0_152 = arith.constant 0 : index
    %c0_153 = arith.constant 0 : index
    %265 = vector.load %arg4[%c1_151, %c0_152, %c0_153] : memref<2x128x32xbf16, #tpu.memory_space<vmem>>, vector<1x128x32xbf16>
    %266 = vector.shape_cast %265 : vector<1x128x32xbf16> to vector<128x32xbf16>
    %cst_154 = arith.constant dense<0.000000e+00> : vector<128x32xf32>
    %267 = tpu.matmul %261, %266, %cst_154 {dimension_numbers = #tpu.dot_dimension_numbers<[1], [0], [0], [1], [0, 0, 1, 1], [], []>} : vector<128x128xbf16>, vector<128x32xbf16>, vector<128x32xf32> -> vector<128x32xf32>
    %c0_155 = arith.constant 0 : index
    %c0_156 = arith.constant 0 : index
    %c0_157 = arith.constant 0 : index
    %268 = vector.load %arg5[%c0_155, %c0_156, %c0_157] : memref<2x1x32xf32, #tpu.memory_space<vmem>>, vector<1x1x32xf32>
    %269 = vector.shape_cast %268 : vector<1x1x32xf32> to vector<1x32xf32>
    %270 = vector.broadcast %269 : vector<1x32xf32> to vector<128x32xf32>
    %271 = arith.addf %264, %270 : vector<128x32xf32>
    %272 = arith.truncf %271 : vector<128x32xf32> to vector<128x32xbf16>
    %c1_158 = arith.constant 1 : index
    %c0_159 = arith.constant 0 : index
    %c0_160 = arith.constant 0 : index
    %273 = vector.load %arg5[%c1_158, %c0_159, %c0_160] : memref<2x1x32xf32, #tpu.memory_space<vmem>>, vector<1x1x32xf32>
    %274 = vector.shape_cast %273 : vector<1x1x32xf32> to vector<1x32xf32>
    %275 = vector.broadcast %274 : vector<1x32xf32> to vector<128x32xf32>
    %276 = arith.addf %267, %275 : vector<128x32xf32>
    %277 = arith.truncf %276 : vector<128x32xf32> to vector<128x32xbf16>
    %278 = arith.negf %277 : vector<128x32xbf16>
    %279 = math.exp %278 : vector<128x32xbf16>
    %cst_161 = arith.constant 1.000000e+00 : bf16
    %280 = vector.broadcast %cst_161 : bf16 to vector<128x32xbf16>
    %281 = arith.addf %280, %279 : vector<128x32xbf16>
    %282 = arith.divf %280, %281 : vector<128x32xbf16>
    %283 = arith.mulf %272, %282 : vector<128x32xbf16>
    %c0_162 = arith.constant 0 : index
    %c0_163 = arith.constant 0 : index
    %c0_164 = arith.constant 0 : index
    %284 = vector.load %arg6[%c0_162, %c0_163, %c0_164] : memref<18x32x32xbf16, #tpu.memory_space<vmem>>, vector<1x32x32xbf16>
    %285 = vector.shape_cast %284 : vector<1x32x32xbf16> to vector<32x32xbf16>
    %cst_165 = arith.constant dense<0.000000e+00> : vector<128x32xf32>
    %286 = tpu.matmul %283, %285, %cst_165 {dimension_numbers = #tpu.dot_dimension_numbers<[1], [0], [0], [1], [0, 0, 1, 1], [], []>} : vector<128x32xbf16>, vector<32x32xbf16>, vector<128x32xf32> -> vector<128x32xf32>
    %c1_166 = arith.constant 1 : index
    %c0_167 = arith.constant 0 : index
    %c0_168 = arith.constant 0 : index
    %287 = vector.load %arg6[%c1_166, %c0_167, %c0_168] : memref<18x32x32xbf16, #tpu.memory_space<vmem>>, vector<1x32x32xbf16>
    %288 = vector.shape_cast %287 : vector<1x32x32xbf16> to vector<32x32xbf16>
    %cst_169 = arith.constant dense<0.000000e+00> : vector<128x32xf32>
    %289 = tpu.matmul %283, %288, %cst_169 {dimension_numbers = #tpu.dot_dimension_numbers<[1], [0], [0], [1], [0, 0, 1, 1], [], []>} : vector<128x32xbf16>, vector<32x32xbf16>, vector<128x32xf32> -> vector<128x32xf32>
    %c0_170 = arith.constant 0 : index
    %c0_171 = arith.constant 0 : index
    %c0_172 = arith.constant 0 : index
    %290 = vector.load %arg7[%c0_170, %c0_171, %c0_172] : memref<18x1x32xf32, #tpu.memory_space<vmem>>, vector<1x1x32xf32>
    %291 = vector.shape_cast %290 : vector<1x1x32xf32> to vector<1x32xf32>
    %292 = vector.broadcast %291 : vector<1x32xf32> to vector<128x32xf32>
    %293 = arith.addf %286, %292 : vector<128x32xf32>
    %294 = arith.truncf %293 : vector<128x32xf32> to vector<128x32xbf16>
    %c1_173 = arith.constant 1 : index
    %c0_174 = arith.constant 0 : index
    %c0_175 = arith.constant 0 : index
    %295 = vector.load %arg7[%c1_173, %c0_174, %c0_175] : memref<18x1x32xf32, #tpu.memory_space<vmem>>, vector<1x1x32xf32>
    %296 = vector.shape_cast %295 : vector<1x1x32xf32> to vector<1x32xf32>
    %297 = vector.broadcast %296 : vector<1x32xf32> to vector<128x32xf32>
    %298 = arith.addf %289, %297 : vector<128x32xf32>
    %299 = arith.truncf %298 : vector<128x32xf32> to vector<128x32xbf16>
    %300 = arith.negf %299 : vector<128x32xbf16>
    %301 = math.exp %300 : vector<128x32xbf16>
    %cst_176 = arith.constant 1.000000e+00 : bf16
    %302 = vector.broadcast %cst_176 : bf16 to vector<128x32xbf16>
    %303 = arith.addf %302, %301 : vector<128x32xbf16>
    %304 = arith.divf %302, %303 : vector<128x32xbf16>
    %305 = arith.mulf %294, %304 : vector<128x32xbf16>
    %306 = arith.addf %283, %305 : vector<128x32xbf16>
    %cst_177 = arith.constant 7.070310e-01 : bf16
    %307 = vector.broadcast %cst_177 : bf16 to vector<128x32xbf16>
    %308 = arith.mulf %306, %307 : vector<128x32xbf16>
    %c10 = arith.constant 10 : index
    %c0_178 = arith.constant 0 : index
    %c0_179 = arith.constant 0 : index
    %309 = vector.load %arg6[%c10, %c0_178, %c0_179] : memref<18x32x32xbf16, #tpu.memory_space<vmem>>, vector<1x32x32xbf16>
    %310 = vector.shape_cast %309 : vector<1x32x32xbf16> to vector<32x32xbf16>
    %cst_180 = arith.constant dense<0.000000e+00> : vector<128x32xf32>
    %311 = tpu.matmul %308, %310, %cst_180 {dimension_numbers = #tpu.dot_dimension_numbers<[1], [0], [0], [1], [0, 0, 1, 1], [], []>} : vector<128x32xbf16>, vector<32x32xbf16>, vector<128x32xf32> -> vector<128x32xf32>
    %c11 = arith.constant 11 : index
    %c0_181 = arith.constant 0 : index
    %c0_182 = arith.constant 0 : index
    %312 = vector.load %arg6[%c11, %c0_181, %c0_182] : memref<18x32x32xbf16, #tpu.memory_space<vmem>>, vector<1x32x32xbf16>
    %313 = vector.shape_cast %312 : vector<1x32x32xbf16> to vector<32x32xbf16>
    %cst_183 = arith.constant dense<0.000000e+00> : vector<128x32xf32>
    %314 = tpu.matmul %308, %313, %cst_183 {dimension_numbers = #tpu.dot_dimension_numbers<[1], [0], [0], [1], [0, 0, 1, 1], [], []>} : vector<128x32xbf16>, vector<32x32xbf16>, vector<128x32xf32> -> vector<128x32xf32>
    %c10_184 = arith.constant 10 : index
    %c0_185 = arith.constant 0 : index
    %c0_186 = arith.constant 0 : index
    %315 = vector.load %arg7[%c10_184, %c0_185, %c0_186] : memref<18x1x32xf32, #tpu.memory_space<vmem>>, vector<1x1x32xf32>
    %316 = vector.shape_cast %315 : vector<1x1x32xf32> to vector<1x32xf32>
    %317 = vector.broadcast %316 : vector<1x32xf32> to vector<128x32xf32>
    %318 = arith.addf %311, %317 : vector<128x32xf32>
    %319 = arith.truncf %318 : vector<128x32xf32> to vector<128x32xbf16>
    %c11_187 = arith.constant 11 : index
    %c0_188 = arith.constant 0 : index
    %c0_189 = arith.constant 0 : index
    %320 = vector.load %arg7[%c11_187, %c0_188, %c0_189] : memref<18x1x32xf32, #tpu.memory_space<vmem>>, vector<1x1x32xf32>
    %321 = vector.shape_cast %320 : vector<1x1x32xf32> to vector<1x32xf32>
    %322 = vector.broadcast %321 : vector<1x32xf32> to vector<128x32xf32>
    %323 = arith.addf %314, %322 : vector<128x32xf32>
    %324 = arith.truncf %323 : vector<128x32xf32> to vector<128x32xbf16>
    %325 = arith.negf %324 : vector<128x32xbf16>
    %326 = math.exp %325 : vector<128x32xbf16>
    %cst_190 = arith.constant 1.000000e+00 : bf16
    %327 = vector.broadcast %cst_190 : bf16 to vector<128x32xbf16>
    %328 = arith.addf %327, %326 : vector<128x32xbf16>
    %329 = arith.divf %327, %328 : vector<128x32xbf16>
    %330 = arith.mulf %319, %329 : vector<128x32xbf16>
    %331 = arith.addf %308, %330 : vector<128x32xbf16>
    %cst_191 = arith.constant 7.070310e-01 : bf16
    %332 = vector.broadcast %cst_191 : bf16 to vector<128x32xbf16>
    %333 = arith.mulf %331, %332 : vector<128x32xbf16>
    %c12 = arith.constant 12 : index
    %c0_192 = arith.constant 0 : index
    %c0_193 = arith.constant 0 : index
    %334 = vector.load %arg6[%c12, %c0_192, %c0_193] : memref<18x32x32xbf16, #tpu.memory_space<vmem>>, vector<1x32x32xbf16>
    %335 = vector.shape_cast %334 : vector<1x32x32xbf16> to vector<32x32xbf16>
    %cst_194 = arith.constant dense<0.000000e+00> : vector<128x32xf32>
    %336 = tpu.matmul %333, %335, %cst_194 {dimension_numbers = #tpu.dot_dimension_numbers<[1], [0], [0], [1], [0, 0, 1, 1], [], []>} : vector<128x32xbf16>, vector<32x32xbf16>, vector<128x32xf32> -> vector<128x32xf32>
    %c13 = arith.constant 13 : index
    %c0_195 = arith.constant 0 : index
    %c0_196 = arith.constant 0 : index
    %337 = vector.load %arg6[%c13, %c0_195, %c0_196] : memref<18x32x32xbf16, #tpu.memory_space<vmem>>, vector<1x32x32xbf16>
    %338 = vector.shape_cast %337 : vector<1x32x32xbf16> to vector<32x32xbf16>
    %cst_197 = arith.constant dense<0.000000e+00> : vector<128x32xf32>
    %339 = tpu.matmul %333, %338, %cst_197 {dimension_numbers = #tpu.dot_dimension_numbers<[1], [0], [0], [1], [0, 0, 1, 1], [], []>} : vector<128x32xbf16>, vector<32x32xbf16>, vector<128x32xf32> -> vector<128x32xf32>
    %c12_198 = arith.constant 12 : index
    %c0_199 = arith.constant 0 : index
    %c0_200 = arith.constant 0 : index
    %340 = vector.load %arg7[%c12_198, %c0_199, %c0_200] : memref<18x1x32xf32, #tpu.memory_space<vmem>>, vector<1x1x32xf32>
    %341 = vector.shape_cast %340 : vector<1x1x32xf32> to vector<1x32xf32>
    %342 = vector.broadcast %341 : vector<1x32xf32> to vector<128x32xf32>
    %343 = arith.addf %336, %342 : vector<128x32xf32>
    %344 = arith.truncf %343 : vector<128x32xf32> to vector<128x32xbf16>
    %c13_201 = arith.constant 13 : index
    %c0_202 = arith.constant 0 : index
    %c0_203 = arith.constant 0 : index
    %345 = vector.load %arg7[%c13_201, %c0_202, %c0_203] : memref<18x1x32xf32, #tpu.memory_space<vmem>>, vector<1x1x32xf32>
    %346 = vector.shape_cast %345 : vector<1x1x32xf32> to vector<1x32xf32>
    %347 = vector.broadcast %346 : vector<1x32xf32> to vector<128x32xf32>
    %348 = arith.addf %339, %347 : vector<128x32xf32>
    %349 = arith.truncf %348 : vector<128x32xf32> to vector<128x32xbf16>
    %350 = arith.negf %349 : vector<128x32xbf16>
    %351 = math.exp %350 : vector<128x32xbf16>
    %cst_204 = arith.constant 1.000000e+00 : bf16
    %352 = vector.broadcast %cst_204 : bf16 to vector<128x32xbf16>
    %353 = arith.addf %352, %351 : vector<128x32xbf16>
    %354 = arith.divf %352, %353 : vector<128x32xbf16>
    %355 = arith.mulf %344, %354 : vector<128x32xbf16>
    %356 = arith.addf %333, %355 : vector<128x32xbf16>
    %cst_205 = arith.constant 7.070310e-01 : bf16
    %357 = vector.broadcast %cst_205 : bf16 to vector<128x32xbf16>
    %358 = arith.mulf %356, %357 : vector<128x32xbf16>
    %cst_206 = arith.constant 0.000000e+00 : bf16
    %359 = vector.broadcast %cst_206 : bf16 to vector<128x32xbf16>
    %360 = arith.maximumf %358, %359 : vector<128x32xbf16>
    %361 = arith.extf %360 : vector<128x32xbf16> to vector<128x32xf32>
    %362 = arith.addf %234, %361 : vector<128x32xf32>
    %c2_207 = arith.constant 2 : index
    %c0_208 = arith.constant 0 : index
    %c0_209 = arith.constant 0 : index
    %363 = vector.load %arg8[%c2_207, %c0_208, %c0_209] : memref<3x32x128xbf16, #tpu.memory_space<vmem>>, vector<1x32x128xbf16>
    %364 = vector.shape_cast %363 : vector<1x32x128xbf16> to vector<32x128xbf16>
    %cst_210 = arith.constant dense<0.000000e+00> : vector<128x128xf32>
    %365 = tpu.matmul %358, %364, %cst_210 {dimension_numbers = #tpu.dot_dimension_numbers<[1], [0], [0], [1], [0, 0, 1, 1], [], []>} : vector<128x32xbf16>, vector<32x128xbf16>, vector<128x128xf32> -> vector<128x128xf32>
    %c2_211 = arith.constant 2 : index
    %c0_212 = arith.constant 0 : index
    %c0_213 = arith.constant 0 : index
    %366 = vector.load %arg9[%c2_211, %c0_212, %c0_213] : memref<3x1x128xf32, #tpu.memory_space<vmem>>, vector<1x1x128xf32>
    %367 = vector.shape_cast %366 : vector<1x1x128xf32> to vector<1x128xf32>
    %368 = vector.broadcast %367 : vector<1x128xf32> to vector<128x128xf32>
    %369 = arith.addf %365, %368 : vector<128x128xf32>
    %370 = arith.mulf %369, %259 : vector<128x128xf32>
    %cst_214 = arith.constant dense<0xFF800000> : vector<128xf32>
    %371 = vector.multi_reduction <maximumf>, %370, %cst_214 [1] : vector<128x128xf32> to vector<128xf32>
    %372 = vector.shape_cast %371 : vector<128xf32> to vector<128x1xf32>
    %373 = vector.broadcast %372 : vector<128x1xf32> to vector<128x128xf32>
    %374 = arith.subf %370, %373 : vector<128x128xf32>
    %375 = math.exp %374 : vector<128x128xf32>
    %cst_215 = arith.constant dense<0.000000e+00> : vector<128xf32>
    %376 = vector.multi_reduction <add>, %375, %cst_215 [1] : vector<128x128xf32> to vector<128xf32>
    %377 = vector.shape_cast %376 : vector<128xf32> to vector<128x1xf32>
    %378 = tpu.reciprocal %377 {approx = true} : vector<128x1xf32> -> vector<128x1xf32>
    %379 = arith.mulf %377, %378 : vector<128x1xf32>
    %cst_216 = arith.constant 2.000000e+00 : f32
    %380 = vector.broadcast %cst_216 : f32 to vector<128x1xf32>
    %381 = arith.subf %380, %379 : vector<128x1xf32>
    %382 = arith.mulf %378, %381 : vector<128x1xf32>
    %383 = vector.broadcast %382 : vector<128x1xf32> to vector<128x128xf32>
    %384 = arith.mulf %375, %383 : vector<128x128xf32>
    %385 = arith.mulf %384, %6 : vector<128x128xf32>
    %386 = arith.truncf %385 : vector<128x128xf32> to vector<128x128xbf16>
    %c0_217 = arith.constant 0 : index
    %c0_218 = arith.constant 0 : index
    %c0_219 = arith.constant 0 : index
    %387 = vector.load %arg4[%c0_217, %c0_218, %c0_219] : memref<2x128x32xbf16, #tpu.memory_space<vmem>>, vector<1x128x32xbf16>
    %388 = vector.shape_cast %387 : vector<1x128x32xbf16> to vector<128x32xbf16>
    %cst_220 = arith.constant dense<0.000000e+00> : vector<128x32xf32>
    %389 = tpu.matmul %386, %388, %cst_220 {dimension_numbers = #tpu.dot_dimension_numbers<[1], [0], [0], [1], [0, 0, 1, 1], [], []>} : vector<128x128xbf16>, vector<128x32xbf16>, vector<128x32xf32> -> vector<128x32xf32>
    %c1_221 = arith.constant 1 : index
    %c0_222 = arith.constant 0 : index
    %c0_223 = arith.constant 0 : index
    %390 = vector.load %arg4[%c1_221, %c0_222, %c0_223] : memref<2x128x32xbf16, #tpu.memory_space<vmem>>, vector<1x128x32xbf16>
    %391 = vector.shape_cast %390 : vector<1x128x32xbf16> to vector<128x32xbf16>
    %cst_224 = arith.constant dense<0.000000e+00> : vector<128x32xf32>
    %392 = tpu.matmul %386, %391, %cst_224 {dimension_numbers = #tpu.dot_dimension_numbers<[1], [0], [0], [1], [0, 0, 1, 1], [], []>} : vector<128x128xbf16>, vector<128x32xbf16>, vector<128x32xf32> -> vector<128x32xf32>
    %c0_225 = arith.constant 0 : index
    %c0_226 = arith.constant 0 : index
    %c0_227 = arith.constant 0 : index
    %393 = vector.load %arg5[%c0_225, %c0_226, %c0_227] : memref<2x1x32xf32, #tpu.memory_space<vmem>>, vector<1x1x32xf32>
    %394 = vector.shape_cast %393 : vector<1x1x32xf32> to vector<1x32xf32>
    %395 = vector.broadcast %394 : vector<1x32xf32> to vector<128x32xf32>
    %396 = arith.addf %389, %395 : vector<128x32xf32>
    %397 = arith.truncf %396 : vector<128x32xf32> to vector<128x32xbf16>
    %c1_228 = arith.constant 1 : index
    %c0_229 = arith.constant 0 : index
    %c0_230 = arith.constant 0 : index
    %398 = vector.load %arg5[%c1_228, %c0_229, %c0_230] : memref<2x1x32xf32, #tpu.memory_space<vmem>>, vector<1x1x32xf32>
    %399 = vector.shape_cast %398 : vector<1x1x32xf32> to vector<1x32xf32>
    %400 = vector.broadcast %399 : vector<1x32xf32> to vector<128x32xf32>
    %401 = arith.addf %392, %400 : vector<128x32xf32>
    %402 = arith.truncf %401 : vector<128x32xf32> to vector<128x32xbf16>
    %403 = arith.negf %402 : vector<128x32xbf16>
    %404 = math.exp %403 : vector<128x32xbf16>
    %cst_231 = arith.constant 1.000000e+00 : bf16
    %405 = vector.broadcast %cst_231 : bf16 to vector<128x32xbf16>
    %406 = arith.addf %405, %404 : vector<128x32xbf16>
    %407 = arith.divf %405, %406 : vector<128x32xbf16>
    %408 = arith.mulf %397, %407 : vector<128x32xbf16>
    %c0_232 = arith.constant 0 : index
    %c0_233 = arith.constant 0 : index
    %c0_234 = arith.constant 0 : index
    %409 = vector.load %arg6[%c0_232, %c0_233, %c0_234] : memref<18x32x32xbf16, #tpu.memory_space<vmem>>, vector<1x32x32xbf16>
    %410 = vector.shape_cast %409 : vector<1x32x32xbf16> to vector<32x32xbf16>
    %cst_235 = arith.constant dense<0.000000e+00> : vector<128x32xf32>
    %411 = tpu.matmul %408, %410, %cst_235 {dimension_numbers = #tpu.dot_dimension_numbers<[1], [0], [0], [1], [0, 0, 1, 1], [], []>} : vector<128x32xbf16>, vector<32x32xbf16>, vector<128x32xf32> -> vector<128x32xf32>
    %c1_236 = arith.constant 1 : index
    %c0_237 = arith.constant 0 : index
    %c0_238 = arith.constant 0 : index
    %412 = vector.load %arg6[%c1_236, %c0_237, %c0_238] : memref<18x32x32xbf16, #tpu.memory_space<vmem>>, vector<1x32x32xbf16>
    %413 = vector.shape_cast %412 : vector<1x32x32xbf16> to vector<32x32xbf16>
    %cst_239 = arith.constant dense<0.000000e+00> : vector<128x32xf32>
    %414 = tpu.matmul %408, %413, %cst_239 {dimension_numbers = #tpu.dot_dimension_numbers<[1], [0], [0], [1], [0, 0, 1, 1], [], []>} : vector<128x32xbf16>, vector<32x32xbf16>, vector<128x32xf32> -> vector<128x32xf32>
    %c0_240 = arith.constant 0 : index
    %c0_241 = arith.constant 0 : index
    %c0_242 = arith.constant 0 : index
    %415 = vector.load %arg7[%c0_240, %c0_241, %c0_242] : memref<18x1x32xf32, #tpu.memory_space<vmem>>, vector<1x1x32xf32>
    %416 = vector.shape_cast %415 : vector<1x1x32xf32> to vector<1x32xf32>
    %417 = vector.broadcast %416 : vector<1x32xf32> to vector<128x32xf32>
    %418 = arith.addf %411, %417 : vector<128x32xf32>
    %419 = arith.truncf %418 : vector<128x32xf32> to vector<128x32xbf16>
    %c1_243 = arith.constant 1 : index
    %c0_244 = arith.constant 0 : index
    %c0_245 = arith.constant 0 : index
    %420 = vector.load %arg7[%c1_243, %c0_244, %c0_245] : memref<18x1x32xf32, #tpu.memory_space<vmem>>, vector<1x1x32xf32>
    %421 = vector.shape_cast %420 : vector<1x1x32xf32> to vector<1x32xf32>
    %422 = vector.broadcast %421 : vector<1x32xf32> to vector<128x32xf32>
    %423 = arith.addf %414, %422 : vector<128x32xf32>
    %424 = arith.truncf %423 : vector<128x32xf32> to vector<128x32xbf16>
    %425 = arith.negf %424 : vector<128x32xbf16>
    %426 = math.exp %425 : vector<128x32xbf16>
    %cst_246 = arith.constant 1.000000e+00 : bf16
    %427 = vector.broadcast %cst_246 : bf16 to vector<128x32xbf16>
    %428 = arith.addf %427, %426 : vector<128x32xbf16>
    %429 = arith.divf %427, %428 : vector<128x32xbf16>
    %430 = arith.mulf %419, %429 : vector<128x32xbf16>
    %431 = arith.addf %408, %430 : vector<128x32xbf16>
    %cst_247 = arith.constant 7.070310e-01 : bf16
    %432 = vector.broadcast %cst_247 : bf16 to vector<128x32xbf16>
    %433 = arith.mulf %431, %432 : vector<128x32xbf16>
    %c14 = arith.constant 14 : index
    %c0_248 = arith.constant 0 : index
    %c0_249 = arith.constant 0 : index
    %434 = vector.load %arg6[%c14, %c0_248, %c0_249] : memref<18x32x32xbf16, #tpu.memory_space<vmem>>, vector<1x32x32xbf16>
    %435 = vector.shape_cast %434 : vector<1x32x32xbf16> to vector<32x32xbf16>
    %cst_250 = arith.constant dense<0.000000e+00> : vector<128x32xf32>
    %436 = tpu.matmul %433, %435, %cst_250 {dimension_numbers = #tpu.dot_dimension_numbers<[1], [0], [0], [1], [0, 0, 1, 1], [], []>} : vector<128x32xbf16>, vector<32x32xbf16>, vector<128x32xf32> -> vector<128x32xf32>
    %c15 = arith.constant 15 : index
    %c0_251 = arith.constant 0 : index
    %c0_252 = arith.constant 0 : index
    %437 = vector.load %arg6[%c15, %c0_251, %c0_252] : memref<18x32x32xbf16, #tpu.memory_space<vmem>>, vector<1x32x32xbf16>
    %438 = vector.shape_cast %437 : vector<1x32x32xbf16> to vector<32x32xbf16>
    %cst_253 = arith.constant dense<0.000000e+00> : vector<128x32xf32>
    %439 = tpu.matmul %433, %438, %cst_253 {dimension_numbers = #tpu.dot_dimension_numbers<[1], [0], [0], [1], [0, 0, 1, 1], [], []>} : vector<128x32xbf16>, vector<32x32xbf16>, vector<128x32xf32> -> vector<128x32xf32>
    %c14_254 = arith.constant 14 : index
    %c0_255 = arith.constant 0 : index
    %c0_256 = arith.constant 0 : index
    %440 = vector.load %arg7[%c14_254, %c0_255, %c0_256] : memref<18x1x32xf32, #tpu.memory_space<vmem>>, vector<1x1x32xf32>
    %441 = vector.shape_cast %440 : vector<1x1x32xf32> to vector<1x32xf32>
    %442 = vector.broadcast %441 : vector<1x32xf32> to vector<128x32xf32>
    %443 = arith.addf %436, %442 : vector<128x32xf32>
    %444 = arith.truncf %443 : vector<128x32xf32> to vector<128x32xbf16>
    %c15_257 = arith.constant 15 : index
    %c0_258 = arith.constant 0 : index
    %c0_259 = arith.constant 0 : index
    %445 = vector.load %arg7[%c15_257, %c0_258, %c0_259] : memref<18x1x32xf32, #tpu.memory_space<vmem>>, vector<1x1x32xf32>
    %446 = vector.shape_cast %445 : vector<1x1x32xf32> to vector<1x32xf32>
    %447 = vector.broadcast %446 : vector<1x32xf32> to vector<128x32xf32>
    %448 = arith.addf %439, %447 : vector<128x32xf32>
    %449 = arith.truncf %448 : vector<128x32xf32> to vector<128x32xbf16>
    %450 = arith.negf %449 : vector<128x32xbf16>
    %451 = math.exp %450 : vector<128x32xbf16>
    %cst_260 = arith.constant 1.000000e+00 : bf16
    %452 = vector.broadcast %cst_260 : bf16 to vector<128x32xbf16>
    %453 = arith.addf %452, %451 : vector<128x32xbf16>
    %454 = arith.divf %452, %453 : vector<128x32xbf16>
    %455 = arith.mulf %444, %454 : vector<128x32xbf16>
    %456 = arith.addf %433, %455 : vector<128x32xbf16>
    %cst_261 = arith.constant 7.070310e-01 : bf16
    %457 = vector.broadcast %cst_261 : bf16 to vector<128x32xbf16>
    %458 = arith.mulf %456, %457 : vector<128x32xbf16>
    %c16 = arith.constant 16 : index
    %c0_262 = arith.constant 0 : index
    %c0_263 = arith.constant 0 : index
    %459 = vector.load %arg6[%c16, %c0_262, %c0_263] : memref<18x32x32xbf16, #tpu.memory_space<vmem>>, vector<1x32x32xbf16>
    %460 = vector.shape_cast %459 : vector<1x32x32xbf16> to vector<32x32xbf16>
    %cst_264 = arith.constant dense<0.000000e+00> : vector<128x32xf32>
    %461 = tpu.matmul %458, %460, %cst_264 {dimension_numbers = #tpu.dot_dimension_numbers<[1], [0], [0], [1], [0, 0, 1, 1], [], []>} : vector<128x32xbf16>, vector<32x32xbf16>, vector<128x32xf32> -> vector<128x32xf32>
    %c17 = arith.constant 17 : index
    %c0_265 = arith.constant 0 : index
    %c0_266 = arith.constant 0 : index
    %462 = vector.load %arg6[%c17, %c0_265, %c0_266] : memref<18x32x32xbf16, #tpu.memory_space<vmem>>, vector<1x32x32xbf16>
    %463 = vector.shape_cast %462 : vector<1x32x32xbf16> to vector<32x32xbf16>
    %cst_267 = arith.constant dense<0.000000e+00> : vector<128x32xf32>
    %464 = tpu.matmul %458, %463, %cst_267 {dimension_numbers = #tpu.dot_dimension_numbers<[1], [0], [0], [1], [0, 0, 1, 1], [], []>} : vector<128x32xbf16>, vector<32x32xbf16>, vector<128x32xf32> -> vector<128x32xf32>
    %c16_268 = arith.constant 16 : index
    %c0_269 = arith.constant 0 : index
    %c0_270 = arith.constant 0 : index
    %465 = vector.load %arg7[%c16_268, %c0_269, %c0_270] : memref<18x1x32xf32, #tpu.memory_space<vmem>>, vector<1x1x32xf32>
    %466 = vector.shape_cast %465 : vector<1x1x32xf32> to vector<1x32xf32>
    %467 = vector.broadcast %466 : vector<1x32xf32> to vector<128x32xf32>
    %468 = arith.addf %461, %467 : vector<128x32xf32>
    %469 = arith.truncf %468 : vector<128x32xf32> to vector<128x32xbf16>
    %c17_271 = arith.constant 17 : index
    %c0_272 = arith.constant 0 : index
    %c0_273 = arith.constant 0 : index
    %470 = vector.load %arg7[%c17_271, %c0_272, %c0_273] : memref<18x1x32xf32, #tpu.memory_space<vmem>>, vector<1x1x32xf32>
    %471 = vector.shape_cast %470 : vector<1x1x32xf32> to vector<1x32xf32>
    %472 = vector.broadcast %471 : vector<1x32xf32> to vector<128x32xf32>
    %473 = arith.addf %464, %472 : vector<128x32xf32>
    %474 = arith.truncf %473 : vector<128x32xf32> to vector<128x32xbf16>
    %475 = arith.negf %474 : vector<128x32xbf16>
    %476 = math.exp %475 : vector<128x32xbf16>
    %cst_274 = arith.constant 1.000000e+00 : bf16
    %477 = vector.broadcast %cst_274 : bf16 to vector<128x32xbf16>
    %478 = arith.addf %477, %476 : vector<128x32xbf16>
    %479 = arith.divf %477, %478 : vector<128x32xbf16>
    %480 = arith.mulf %469, %479 : vector<128x32xbf16>
    %481 = arith.addf %458, %480 : vector<128x32xbf16>
    %cst_275 = arith.constant 7.070310e-01 : bf16
    %482 = vector.broadcast %cst_275 : bf16 to vector<128x32xbf16>
    %483 = arith.mulf %481, %482 : vector<128x32xbf16>
    %cst_276 = arith.constant 0.000000e+00 : bf16
    %484 = vector.broadcast %cst_276 : bf16 to vector<128x32xbf16>
    %485 = arith.maximumf %483, %484 : vector<128x32xbf16>
    %486 = arith.extf %485 : vector<128x32xbf16> to vector<128x32xf32>
    %487 = arith.addf %362, %486 : vector<128x32xf32>
    %488 = arith.truncf %487 : vector<128x32xf32> to vector<128x32xbf16>
    %c0_277 = arith.constant 0 : index
    %c0_278 = arith.constant 0 : index
    %489 = vector.load %arg10[%c0_277, %c0_278] : memref<32x128xbf16, #tpu.memory_space<vmem>>, vector<32x128xbf16>
    %cst_279 = arith.constant dense<0.000000e+00> : vector<128x128xf32>
    %490 = tpu.matmul %488, %489, %cst_279 {dimension_numbers = #tpu.dot_dimension_numbers<[1], [0], [0], [1], [0, 0, 1, 1], [], []>} : vector<128x32xbf16>, vector<32x128xbf16>, vector<128x128xf32> -> vector<128x128xf32>
    %c0_280 = arith.constant 0 : index
    %c0_281 = arith.constant 0 : index
    %491 = vector.load %arg11[%c0_280, %c0_281] : memref<1x128xf32, #tpu.memory_space<vmem>>, vector<1x128xf32>
    %492 = vector.broadcast %491 : vector<1x128xf32> to vector<128x128xf32>
    %493 = arith.addf %490, %492 : vector<128x128xf32>
    %c0_282 = arith.constant 0 : index
    %c0_283 = arith.constant 0 : index
    %494 = vector.load %arg12[%c0_282, %c0_283] : memref<128x128xf32, #tpu.memory_space<vmem>>, vector<128x128xf32>
    tpu.vector_store %arg12[%c0_282, %c0_283], %493 {strides = array<i32>} : memref<128x128xf32, #tpu.memory_space<vmem>>, vector<128x128xf32>,
    return
  }
  func.func @transform_0(%arg0: i32) -> (i32, i32) {
    %c0_i32 = arith.constant 0 : i32
    %c0_i32_0 = arith.constant 0 : i32
    return %arg0, %c0_i32 : i32, i32
  }
  func.func @transform_1(%arg0: i32) -> (i32, i32) {
    %c0_i32 = arith.constant 0 : i32
    %c0_i32_0 = arith.constant 0 : i32
    %c0_i32_1 = arith.constant 0 : i32
    return %c0_i32, %c0_i32_0 : i32, i32
  }
  func.func @transform_2(%arg0: i32) -> (i32, i32) {
    %c0_i32 = arith.constant 0 : i32
    %c0_i32_0 = arith.constant 0 : i32
    %c0_i32_1 = arith.constant 0 : i32
    return %c0_i32, %c0_i32_0 : i32, i32
  }
  func.func @transform_3(%arg0: i32) -> (i32, i32, i32) {
    %c0_i32 = arith.constant 0 : i32
    %c0_i32_0 = arith.constant 0 : i32
    %c0_i32_1 = arith.constant 0 : i32
    %c0_i32_2 = arith.constant 0 : i32
    return %c0_i32, %c0_i32_0, %c0_i32_1 : i32, i32, i32
  }
  func.func @transform_4(%arg0: i32) -> (i32, i32, i32) {
    %c0_i32 = arith.constant 0 : i32
    %c0_i32_0 = arith.constant 0 : i32
    %c0_i32_1 = arith.constant 0 : i32
    %c0_i32_2 = arith.constant 0 : i32
    return %c0_i32, %c0_i32_0, %c0_i32_1 : i32, i32, i32
  }
  func.func @transform_5(%arg0: i32) -> (i32, i32, i32) {
    %c0_i32 = arith.constant 0 : i32
    %c0_i32_0 = arith.constant 0 : i32
    %c0_i32_1 = arith.constant 0 : i32
    %c0_i32_2 = arith.constant 0 : i32
    return %c0_i32, %c0_i32_0, %c0_i32_1 : i32, i32, i32
  }
  func.func @transform_6(%arg0: i32) -> (i32, i32, i32) {
    %c0_i32 = arith.constant 0 : i32
    %c0_i32_0 = arith.constant 0 : i32
    %c0_i32_1 = arith.constant 0 : i32
    %c0_i32_2 = arith.constant 0 : i32
    return %c0_i32, %c0_i32_0, %c0_i32_1 : i32, i32, i32
  }
  func.func @transform_7(%arg0: i32) -> (i32, i32, i32) {
    %c0_i32 = arith.constant 0 : i32
    %c0_i32_0 = arith.constant 0 : i32
    %c0_i32_1 = arith.constant 0 : i32
    %c0_i32_2 = arith.constant 0 : i32
    return %c0_i32, %c0_i32_0, %c0_i32_1 : i32, i32, i32
  }
  func.func @transform_8(%arg0: i32) -> (i32, i32, i32) {
    %c0_i32 = arith.constant 0 : i32
    %c0_i32_0 = arith.constant 0 : i32
    %c0_i32_1 = arith.constant 0 : i32
    %c0_i32_2 = arith.constant 0 : i32
    return %c0_i32, %c0_i32_0, %c0_i32_1 : i32, i32, i32
  }
  func.func @transform_9(%arg0: i32) -> (i32, i32) {
    %c0_i32 = arith.constant 0 : i32
    %c0_i32_0 = arith.constant 0 : i32
    %c0_i32_1 = arith.constant 0 : i32
    return %c0_i32, %c0_i32_0 : i32, i32
  }
  func.func @transform_10(%arg0: i32) -> (i32, i32) {
    %c0_i32 = arith.constant 0 : i32
    %c0_i32_0 = arith.constant 0 : i32
    %c0_i32_1 = arith.constant 0 : i32
    return %c0_i32, %c0_i32_0 : i32, i32
  }
  func.func @transform_11(%arg0: i32) -> (i32, i32) {
    %c0_i32 = arith.constant 0 : i32
    %c0_i32_0 = arith.constant 0 : i32
    return %arg0, %c0_i32 : i32, i32
  }
}

</mosaic_0001>

<bundles_post_ra>
// kernel: tpu_custom_call.1
= control target key start
LH: loop header
LB: loop body
LE: loop exit
PB: predicated region body
PF: predicated region fallthrough
CT: control target
= control target key end

     0   :  { %16 = vsyncpa [#allocation3], 0  ;;  %s14231_s0 = inlined_call_operand.vmem [shape: f32[256,8], index: 0, kind: input, shape index: {}]   ;;  %s14232_s1 = inlined_call_operand.vmem [shape: bf16[8,128], index: 1, kind: input, shape index: {}]   ;;  %s14233_s2 = inlined_call_operand.vmem [shape: f32[1,128], index: 2, kind: input, shape index: {}]   ;;  %s14234_s3 = inlined_call_operand.vmem [shape: bf16[2,128,32], index: 3, kind: input, shape index: {}]   ;;  %s14235_s4 = inlined_call_operand.vmem [shape: f32[2,1,32], index: 4, kind: input, shape index: {}]   ;;  %s14236_s5 = inlined_call_operand.vmem [shape: bf16[18,32,32], index: 5, kind: input, shape index: {}]   ;;  %s14237_s6 = inlined_call_operand.vmem [shape: f32[18,1,32], index: 6, kind: input, shape index: {}]   ;;  %s14238_s7 = inlined_call_operand.vmem [shape: bf16[3,32,128], index: 7, kind: input, shape index: {}]   ;;  %s14239_s8 = inlined_call_operand.vmem [shape: f32[3,1,128], index: 8, kind: input, shape index: {}]   ;;  %s14240_s9 = inlined_call_operand.vmem [shape: bf16[32,128], index: 9, kind: input, shape index: {}]   ;;  %s14241_s10 = inlined_call_operand.vmem [shape: f32[1,128], index: 10, kind: input, shape index: {}]   ;;  %s14242_s11 = inlined_call_operand.hbm [shape: f32[256,128], index: 11, kind: output, shape index: {}]  }
   0x1   :  { %18 = vsyncpa [#allocation3 + $0x1], 0  ;;  %s10371_s17 = smov 0   ;;  %s10373_s18 = smov 0  }
   0x2   :  { %s10375_s19 = smov 0   ;;  %s10377_s20 = smov 0  }
   0x3 LB: > { %s10392_s21 = sadd.s32 4294967295, %s10305_s20   ;;  %s7542_s22 = sadd.s32 4294967294, %s10305_s20   ;;  %s10305_s20 = sphi %s10377_s20, %s14478_s20   ;;  %s10301_s19 = sphi %s10375_s19, %s14477_s19   ;;  %s10297_s18 = sphi %s10373_s18, %s14476_s18   ;;  %s10293_s17 = sphi %s10371_s17, %s14475_s17  }
   0x4   : > { %s10396_s23 = sadd.s32 1, %s10305_s20   ;;  %s267_s24 = sadd.s32 1, %s10301_s19 }
   0x5   : > { %s264_s25 = ssub.s32 %s10305_s20, %s10396_s23  ;;  %p277_p0 = scmp.ne.s32.totalorder %s10301_s19, %s10297_s18 }
   0x6   : > { %p265_p1 = scmp.eq.s32.totalorder %s264_s25, 0  ;;  %p278_p2 = scmp.eq.s32.totalorder %s10392_s21, 1 }
   0x7   : > { %p283_p3 = scmp.ne.s32.totalorder %s10297_s18, %s10293_s17  ;;  %p284_p4 = scmp.eq.s32.totalorder %s7542_s22, 1 }
   0x8   : > { %s10407_s26 = scalar_select %p265_p1, %s10301_s19, %s267_s24  }
   0x9   : > { %p10409_p5 = por %p278_p2, %p277_p0  ;;  %p10413_p6 = por %p284_p4, %p283_p3 }
   0xa   : > { %p7545_p7 = scmp.ge.s32.totalorder %s10305_s20, 1  ;;  %p341_p8 = scmp.lt.s32.totalorder %s10305_s20, 3 }
   0xc   : > { %p342_p9 = pnand %p7545_p7, %p341_p8 }
   0xe   : > { %345 = sbr.rel (%p342_p9) target bundleno = 6240 (0x1860), region = 64 }
  0x15   : > { %v415_v0 = vld [vmem:[%s14232_s1] sm:$0xf]  ;;  %vm448_vm0 = vcmask 1043456   ;;  %s7547_s12 = sshll.u32 %s10392_s21, 4  ;;  %v9409_v4 = vld [vmem:[%s14234_s3 + $0x8] sm:$0xff]   ;;  %v9411_v5 = vld [vmem:[%s14234_s3 + $0x10] sm:$0xff]  }
  0x16   : > { %v9406_v1 = vld [vmem:[%s14234_s3 + $0x40] sm:$0xff]   ;;  %9363 = vmatprep.subr.msk.bf16.mxu0 %vm448_vm0, %v415_v0  ;;  %v450_v2 = vsel %vm448_vm0, %v415_v0, 0  ;;  %p382_p10 = scmp.lt.s32.totalorder %s7547_s12, 31  ;;  %vm423_vm1 = vcmask 64512   ;;  %v9408_v15 = vld [vmem:[%s14234_s3 + $0x48] sm:$0xff]   ;;  %v9410_v18 = vld [vmem:[%s14234_s3 + $0x50] sm:$0xff]  }
  0x17   : > { %8530 = vmatpush3.bf16.msra.mxu0 %v450_v2  ;;  %v9407_v3 = vld [vmem:[%s14234_s3] sm:$0xff]   ;;  %v9413_v21 = vld [vmem:[%s14234_s3 + $0x18] sm:$0xff]   ;;  %v9417_v28 = vld [vmem:[%s14234_s3 + $0x28] sm:$0xff]   ;;  %vm1003_vm2 = vcmask 261120   ;;  %s378_s14 = sand.u32 1, %s10297_s18   ;;  %s8111_s22 = sshll.u32 %s10392_s21, 11 }
  0x18   : > { %s14480_s12 = smov (!%p382_p10, %s7547_s12), 31  ;;  %8579 = vmatprep.subr.bf16.mxu0 %v9406_v1  ;;  %8547 = vmatprep.subr.bf16.mxu1 %v9407_v3  ;;  %v9415_v24 = vld [vmem:[%s14234_s3 + $0x20] sm:$0xff]   ;;  %v9412_v25 = vld [vmem:[%s14234_s3 + $0x58] sm:$0xff]   ;;  %v9416_v33 = vld [vmem:[%s14234_s3 + $0x68] sm:$0xff]   ;;  %s7546_s15 = sshll.u32 %s378_s14, 7 }
  0x19   : > { %s7548_s25 = sshll.u32 %s14480_s12, 3  ;;  %8548 = vmatpush3.bf16.msra.mxu1 %v9407_v3  ;;  %v9414_v31 = vld [vmem:[%s14234_s3 + $0x60] sm:$0xff]   ;;  %v9418_v38 = vld [vmem:[%s14234_s3 + $0x70] sm:$0xff]   ;;  %v9420_v40 = vld [vmem:[%s14234_s3 + $0x78] sm:$0xff]   ;;  %s14181_s30 = scalar_lea.hbm %s14242_s11, %s8111_s22 }
  0x1a   : > { %s10435_s13 = scalar_lea.vmem %s14231_s0, %s7548_s25  ;;  %8549 = vmatprep.subr.bf16.mxu1 %v9409_v4  ;;  %v9419_v39 = vld [vmem:[%s14234_s3 + $0x30] sm:$0xff]   ;;  %v9421_v41 = vld [vmem:[%s14234_s3 + $0x38] sm:$0xff]   ;;  %v7549_v43 = vld [vmem:[%s14233_s2] ss:$0 sm:$0xff]  ;;  %s14190_s21 = scalar_lea.sflag [#allocation3], %s378_s14 }
  0x1b   : > { %v391_v6 = vld [vmem:[%s10435_s13] sm:$0xff]  ;;  %v392_v7 = vld [vmem:[%s10435_s13 + $0x8] sm:$0xff]  ;;  %v393_v8 = vld [vmem:[%s10435_s13 + $0x10] sm:$0xff]  ;;  %s10308_s12 = smov [#allocation2]  }
  0x1c   : > { %v407_v9 = vpack.c.bf16 %v392_v7, %v391_v6  ;;  %v394_v10 = vld [vmem:[%s10435_s13 + $0x18] sm:$0xff]  ;;  %v395_v11 = vld [vmem:[%s10435_s13 + $0x20] sm:$0xff]  ;;  %v396_v12 = vld [vmem:[%s10435_s13 + $0x28] sm:$0xff]  ;;  %s10247_s16 = sshll.u32 %s10308_s12, 4  ;;  %s10248_s16 = int_to_ptr.vmem [resolvable:$false] %s10247_s16 }
  0x1d   : > { %v408_v13 = vpack.c.bf16 %v394_v10, %v393_v8  ;;  %v409_v14 = vpack.c.bf16 %v396_v12, %v395_v11  ;;  %8550 = vmatpush3.bf16.msra.mxu1 %v9409_v4  ;;  %v397_v16 = vld [vmem:[%s10435_s13 + $0x30] sm:$0xff]  ;;  %v398_v17 = vld [vmem:[%s10435_s13 + $0x38] sm:$0xff]  ;;  %v399_v19 = vld [vmem:[%s10435_s13 + $0x40] sm:$0xff]  ;;  %s10249_s22 = scalar_lea.vmem %s10248_s16, 4096 }
  0x1e   : > { %8531 = vmatprep.mubr.msk.bf16.mxu0 %vm423_vm1, %v407_v9  ;;  %8551 = vmatprep.subr.bf16.mxu1 %v9411_v5  ;;  %v400_v20 = vld [vmem:[%s10435_s13 + $0x48] sm:$0xff]  ;;  %v410_v22 = vpack.c.bf16 %v398_v17, %v397_v16  ;;  %v401_v26 = vld [vmem:[%s10435_s13 + $0x50] sm:$0xff]  ;;  %v402_v27 = vld [vmem:[%s10435_s13 + $0x58] sm:$0xff] }
  0x1f   : > { %8532 = vmatmul.mubr.msk.bf16.vlgmr.msra.gmra.mrb[0].mxu0 %vm423_vm1, %v408_v13  ;;  %v411_v23 = vpack.c.bf16 %v400_v20, %v399_v19  ;;  %v403_v29 = vld [vmem:[%s10435_s13 + $0x60] sm:$0xff]  ;;  %v404_v30 = vld [vmem:[%s10435_s13 + $0x68] sm:$0xff]  ;;  %v412_v32 = vpack.c.bf16 %v402_v27, %v401_v26  ;;  %v405_v35 = vld [vmem:[%s10435_s13 + $0x70] sm:$0xff] }
  0x20   : > { %8535 = vmatprep.mubr.msk.bf16.mxu0 %vm423_vm1, %v409_v14  ;;  %8580 = vmatpush3.bf16.msra.mxu0 %v9406_v1  ;;  %v413_v34 = vpack.c.bf16 %v404_v30, %v403_v29  ;;  %v406_v36 = vld [vmem:[%s10435_s13 + $0x78] sm:$0xff]  ;;  %v9422_v19 = vld [vmem:[%s14236_s5 + $0x10] sm:$0xff]   ;;  %v9424_v20 = vld [vmem:[%s14236_s5] sm:$0xff]   ;;  %s14161_s13 = scalar_lea.vmem [#allocation2], %s7546_s15 }
  0x21   : > { %8581 = vmatprep.subr.bf16.mxu0 %v9408_v15  ;;  %8552 = vmatpush3.bf16.msra.mxu1 %v9411_v5  ;;  %v414_v37 = vpack.c.bf16 %v406_v36, %v405_v35  ;;  %v10571_v26 = vld [vmem:[%s14235_s4 + $0x1] ss:$0 sm:$0xff]  ;;  %s7480_s24 = sshll.u32 %s14161_s13, 4  ;;  %s14183_s24 = int_to_ptr.vmem [resolvable:$true] %s7480_s24 }
  0x22   : > { %8553 = vmatprep.subr.bf16.mxu1 %v9413_v21  ;;  %s10243_s15 = scalar_lea.vmem %s14183_s24, 2048  ;;  %p10250_p0 = scmp.lt.s32.totalorder %s14183_s24, %s10248_s16 }
  0x23   : > { %p10244_p11 = scmp.ne.s32.totalorder %s14183_s24, %s10243_s15  ;;  %p10251_p1 = scmp.lt.s32.totalorder %s10249_s22, %s10243_s15 }
  0x24   : > { %8582 = vmatpush3.bf16.msra.mxu0 %v9408_v15 }
  0x25   : > { %8583 = vmatprep.subr.bf16.mxu0 %v9410_v18  ;;  %8554 = vmatpush3.bf16.msra.mxu1 %v9413_v21  ;;  %v9423_v21 = vld [vmem:[%s14236_s5 + $0x18] sm:$0xff]   ;;  %p10245_p12 = pnand %p10244_p11, %p10409_p5  ;;  %p10252_p2 = por %p10251_p1, %p10250_p0 }
  0x26   : > { %8555 = vmatprep.subr.bf16.mxu1 %v9415_v24 }
  0x27   : > { %8536 = vmatmul.mubr.msk.bf16.gmra.mrb[4].mxu0 %vm423_vm1, %v410_v22  ;;  %v9425_v22 = vld [vmem:[%s14236_s5 + $0x8] sm:$0xff]   ;;  %p10246_p13 = pneg %p10245_p12 }
  0x28   : > { %8539 = vmatprep.mubr.msk.bf16.mxu0 %vm423_vm1, %v411_v23  ;;  %8584 = vmatpush3.bf16.msra.mxu0 %v9410_v18 }
  0x29   : > { %8585 = vmatprep.subr.bf16.mxu0 %v9412_v25  ;;  %8556 = vmatpush3.bf16.msra.mxu1 %v9415_v24  ;;  %v10566_v24 = vld [vmem:[%s14235_s4] ss:$0 sm:$0xff]  ;;  %p10253_p3 = pnand %p10252_p2, %p10246_p13 }
  0x2a   : > { %8557 = vmatprep.subr.bf16.mxu1 %v9417_v28 }
  0x2c   : > { %8586 = vmatpush3.bf16.msra.mxu0 %v9412_v25 }
  0x2d   : > { %8587 = vmatprep.subr.bf16.mxu0 %v9414_v31  ;;  %8558 = vmatpush3.bf16.msra.mxu1 %v9417_v28 }
  0x2e   : > { %8559 = vmatprep.subr.bf16.mxu1 %v9419_v39 }
  0x2f   : > { %8540 = vmatmul.mubr.msk.bf16.gmra.mrb[8].mxu0 %vm423_vm1, %v412_v32 }
  0x30   : > { %8543 = vmatprep.mubr.msk.bf16.mxu0 %vm423_vm1, %v413_v34  ;;  %8588 = vmatpush3.bf16.msra.mxu0 %v9414_v31 }
  0x31   : > { %8589 = vmatprep.subr.bf16.mxu0 %v9416_v33  ;;  %8560 = vmatpush3.bf16.msra.mxu1 %v9419_v39 }
  0x32   : > { %8561 = vmatprep.subr.bf16.mxu1 %v9421_v41 }
  0x34   : > { %8590 = vmatpush3.bf16.msra.mxu0 %v9416_v33 }
  0x35   : > { %8591 = vmatprep.subr.bf16.mxu0 %v9418_v38  ;;  %8562 = vmatpush3.bf16.msra.mxu1 %v9421_v41 }
  0x36   : > { %8611 = vmatprep.subr.bf16.mxu1 %v9424_v20 }
  0x37   : > { %8544 = vmatmul.mubr.msk.bf16.gmra.mrb[12].mxu0 %vm423_vm1, %v414_v37 }
  0x38   : > { %8592 = vmatpush3.bf16.msra.mxu0 %v9418_v38 }
  0x39   : > { %8593 = vmatprep.subr.bf16.mxu0 %v9420_v40 }
  0x3c   : > { %8594 = vmatpush3.bf16.msra.mxu0 %v9420_v40 }
  0x3d   : > { %8631 = vmatprep.subr.bf16.mxu0 %v9422_v19 }
  0xf2   : > { %v8533_v42 = vpop.f32.mrb[0].mxu0 }
  0xf3   : > { %v486_v44 = vpop.f32.mrb[1].mxu0  ;;  %v10509_v50 = vadd.f32 %v8533_v42, %v7549_v43 }
  0xf4   : > { %v8534_v45 = vpop.f32.mrb[2].mxu0  ;;  %v10505_v48 = vadd.f32 %v7549_v43, %v486_v44 }
  0xf5   : > { %v10503_v46 = vadd.f32 %v8534_v45, %v7549_v43  ;;  %v489_v47 = vpop.f32.mrb[3].mxu0  ;;  %14315 = vst [vmem:[#allocation8_spill] sm:$0xff] %v10509_v50 }
  0xf6   : > { %14313 = vst [vmem:[#allocation6_spill] sm:$0xff] %v10505_v48  ;;  %v10507_v49 = vadd.f32 %v7549_v43, %v489_v47 }
  0xf7   : > { %14312 = vst [vmem:[#allocation5_spill] sm:$0xff] %v10503_v46  ;;  %v550_v52 = vpack.c.bf16 %v10503_v46, %v10509_v50 }
  0xf8   : > { %14314 = vst [vmem:[#allocation7_spill] sm:$0xff] %v10507_v49  ;;  %v549_v51 = vpack.c.bf16 %v10507_v49, %v10505_v48 }
  0xfa   : > { %v8537_v53 = vpop.f32.mrb[4].mxu0  ;;  %8563 = vmatprep.mubr.bf16.mxu1 %v549_v51  ;;  %8595 = vmatprep.mubr.bf16.mxu0 %v549_v51 }
  0xfb   : > { %v502_v54 = vpop.f32.mrb[5].mxu0  ;;  %8564 = vmatmul.mubr.bf16.vlgmr.msra.gmra.mrb[0].mxu1 %v550_v52  ;;  %8596 = vmatmul.mubr.bf16.vlgmr.msra.gmra.mrb[16].mxu0 %v550_v52  ;;  %v10517_v57 = vadd.f32 %v8537_v53, %v7549_v43 }
  0xfc   : > { %v10515_v55 = vadd.f32 %v7549_v43, %v502_v54  ;;  %v8538_v56 = vpop.f32.mrb[6].mxu0  ;;  %8632 = vmatpush3.bf16.msra.mxu0 %v9422_v19  ;;  %8612 = vmatpush3.bf16.msra.mxu1 %v9424_v20 }
  0xfd   : > { %14317 = vst [vmem:[#allocation10_spill] sm:$0xff] %v10517_v57  ;;  %v10519_v58 = vadd.f32 %v8538_v56, %v7549_v43  ;;  %v505_v59 = vpop.f32.mrb[7].mxu0  ;;  %8633 = vmatprep.subr.bf16.mxu0 %v9423_v21  ;;  %8613 = vmatprep.subr.bf16.mxu1 %v9425_v22 }
  0xfe   : > { %14316 = vst [vmem:[#allocation9_spill] sm:$0xff] %v10515_v55  ;;  %v10521_v60 = vadd.f32 %v7549_v43, %v505_v59 }
  0xff   : > { %14318 = vst [vmem:[#allocation11_spill] sm:$0xff] %v10519_v58  ;;  %v552_v62 = vpack.c.bf16 %v10519_v58, %v10517_v57 }
 0x100   : > { %14319 = vst [vmem:[#allocation12_spill] sm:$0xff] %v10521_v60  ;;  %v551_v61 = vpack.c.bf16 %v10521_v60, %v10515_v55  ;;  %8634 = vmatpush3.bf16.msra.mxu0 %v9423_v21  ;;  %8614 = vmatpush3.bf16.msra.mxu1 %v9425_v22 }
 0x102   : > { %v8541_v63 = vpop.f32.mrb[8].mxu0  ;;  %8567 = vmatprep.mubr.bf16.mxu1 %v551_v61  ;;  %8599 = vmatprep.mubr.bf16.mxu0 %v551_v61 }
 0x103   : > { %v518_v0 = vpop.f32.mrb[9].mxu0  ;;  %8568 = vmatmul.mubr.bf16.gmra.mrb[4].mxu1 %v552_v62  ;;  %8600 = vmatmul.mubr.bf16.gmra.mrb[20].mxu0 %v552_v62  ;;  %v10529_v3 = vadd.f32 %v8541_v63, %v7549_v43 }
 0x104   : > { %v10527_v1 = vadd.f32 %v7549_v43, %v518_v0  ;;  %v8542_v2 = vpop.f32.mrb[10].mxu0 }
 0x105   : > { %14321 = vst [vmem:[#allocation14_spill] sm:$0xff] %v10529_v3  ;;  %v10531_v4 = vadd.f32 %v8542_v2, %v7549_v43  ;;  %v521_v5 = vpop.f32.mrb[11].mxu0 }
 0x106   : > { %14320 = vst [vmem:[#allocation13_spill] sm:$0xff] %v10527_v1  ;;  %v10533_v6 = vadd.f32 %v7549_v43, %v521_v5 }
 0x107   : > { %14322 = vst [vmem:[#allocation15_spill] sm:$0xff] %v10531_v4  ;;  %v554_v8 = vpack.c.bf16 %v10531_v4, %v10529_v3 }
 0x108   : > { %14323 = vst [vmem:[#allocation16_spill] sm:$0xff] %v10533_v6  ;;  %v553_v7 = vpack.c.bf16 %v10533_v6, %v10527_v1 }
 0x10a   : > { %v8545_v9 = vpop.f32.mrb[12].mxu0  ;;  %8571 = vmatprep.mubr.bf16.mxu1 %v553_v7  ;;  %8603 = vmatprep.mubr.bf16.mxu0 %v553_v7 }
 0x10b   : > { %v534_v10 = vpop.f32.mrb[13].mxu0  ;;  %8572 = vmatmul.mubr.bf16.gmra.mrb[8].mxu1 %v554_v8  ;;  %8604 = vmatmul.mubr.bf16.gmra.mrb[24].mxu0 %v554_v8  ;;  %v10541_v13 = vadd.f32 %v8545_v9, %v7549_v43 }
 0x10c   : > { %v10539_v11 = vadd.f32 %v7549_v43, %v534_v10  ;;  %v8546_v12 = vpop.f32.mrb[14].mxu0 }
 0x10d   : > { %14325 = vst [vmem:[#allocation18_spill] sm:$0xff] %v10541_v13  ;;  %v10543_v14 = vadd.f32 %v8546_v12, %v7549_v43  ;;  %v537_v15 = vpop.f32.mrb[15].mxu0 }
 0x10e   : > { %14324 = vst [vmem:[#allocation17_spill] sm:$0xff] %v10539_v11  ;;  %v10545_v16 = vadd.f32 %v7549_v43, %v537_v15 }
 0x10f   : > { %14326 = vst [vmem:[#allocation19_spill] sm:$0xff] %v10543_v14  ;;  %v556_v18 = vpack.c.bf16 %v10543_v14, %v10541_v13 }
 0x110   : > { %14327 = vst [vmem:[#allocation20_spill] sm:$0xff] %v10545_v16  ;;  %v555_v17 = vpack.c.bf16 %v10545_v16, %v10539_v11 }
 0x112   : > { %8575 = vmatprep.mubr.bf16.mxu1 %v555_v17  ;;  %8607 = vmatprep.mubr.bf16.mxu0 %v555_v17 }
 0x113   : > { %8576 = vmatmul.mubr.bf16.gmra.mrb[12].mxu1 %v556_v18  ;;  %8608 = vmatmul.mubr.bf16.gmra.mrb[28].mxu0 %v556_v18 }
 0x1ce   : > { %v8565_v23 = vpop.f32.mrb[0].mxu1  ;;  %v8597_v25 = vpop.f32.mrb[16].mxu0 }
 0x1cf   : > { %v679_v27 = vpop.f32.mrb[1].mxu1  ;;  %v840_v28 = vpop.f32.mrb[17].mxu0  ;;  %v10574_v31 = vadd.f32 %v8565_v23, %v10566_v24  ;;  %v849_v32 = vadd.f32 %v8597_v25, %v10571_v26 }
 0x1d0   : > { %v8566_v29 = vpop.f32.mrb[2].mxu1  ;;  %v8598_v30 = vpop.f32.mrb[18].mxu0  ;;  %v10582_v37 = vadd.f32 %v10566_v24, %v679_v27  ;;  %v841_v38 = vadd.f32 %v10571_v26, %v840_v28 }
 0x1d1   : > { %v10578_v33 = vadd.f32 %v8566_v29, %v10566_v24  ;;  %v852_v34 = vadd.f32 %v8598_v30, %v10571_v26  ;;  %v682_v35 = vpop.f32.mrb[3].mxu1  ;;  %v843_v36 = vpop.f32.mrb[19].mxu0 }
 0x1d2   : > { %v10586_v39 = vadd.f32 %v10566_v24, %v682_v35  ;;  %v844_v40 = vadd.f32 %v10571_v26, %v843_v36 }
 0x1d3   : > { %v743_v41 = vpack.c.bf16 %v10578_v33, %v10574_v31  ;;  %v904_v42 = vpack.c.bf16 %v852_v34, %v849_v32 }
 0x1d4   : > { %v742_v43 = vpack.c.bf16 %v10586_v39, %v10582_v37  ;;  %v903_v44 = vpack.c.bf16 %v844_v40, %v841_v38 }
 0x1d5   : > { %v7594_v45 = vmul.bf16 3216621497, %v904_v42 }
 0x1d6   : > { %v7593_v47 = vmul.bf16 3216621497, %v903_v44  ;;  %v8569_v51 = vpop.f32.mrb[4].mxu1  ;;  %v8601_v52 = vpop.f32.mrb[20].mxu0 }
 0x1d7   : > { %9466 = vpow.bf16 %v7594_v45  ;;  %v695_v53 = vpop.f32.mrb[5].mxu1  ;;  %v856_v54 = vpop.f32.mrb[21].mxu0  ;;  %v10594_v61 = vadd.f32 %v8569_v51, %v10566_v24  ;;  %v865_v62 = vadd.f32 %v8601_v52, %v10571_v26 }
 0x1d8   : > { %9468 = vpow.bf16 %v7593_v47  ;;  %v8570_v56 = vpop.f32.mrb[6].mxu1  ;;  %v8602_v59 = vpop.f32.mrb[22].mxu0  ;;  %v10602_v7 = vadd.f32 %v10566_v24, %v695_v53  ;;  %v857_v8 = vadd.f32 %v10571_v26, %v856_v54 }
 0x1d9   : > { %v10598_v63 = vadd.f32 %v8570_v56, %v10566_v24  ;;  %v868_v0 = vadd.f32 %v8602_v59, %v10571_v26  ;;  %v698_v2 = vpop.f32.mrb[7].mxu1  ;;  %v859_v5 = vpop.f32.mrb[23].mxu0 }
 0x1da   : > { %v10606_v9 = vadd.f32 %v10566_v24, %v698_v2  ;;  %v860_v10 = vadd.f32 %v10571_v26, %v859_v5 }
 0x1db   : > { %v745_v12 = vpack.c.bf16 %v10598_v63, %v10594_v61  ;;  %v906_v15 = vpack.c.bf16 %v868_v0, %v865_v62 }
 0x1dc   : > { %v744_v17 = vpack.c.bf16 %v10606_v9, %v10602_v7  ;;  %v905_v18 = vpack.c.bf16 %v860_v10, %v857_v8 }
 0x1dd   : > { %v7596_v19 = vmul.bf16 3216621497, %v906_v15 }
 0x1de   : > { %v7595_v20 = vmul.bf16 3216621497, %v905_v18  ;;  %v8573_v21 = vpop.f32.mrb[8].mxu1  ;;  %v8605_v22 = vpop.f32.mrb[24].mxu0 }
 0x1df   : > { %9470 = vpow.bf16 %v7596_v19  ;;  %v711_v23 = vpop.f32.mrb[9].mxu1  ;;  %v872_v25 = vpop.f32.mrb[25].mxu0  ;;  %v10614_v29 = vadd.f32 %v8573_v21, %v10566_v24  ;;  %v881_v30 = vadd.f32 %v8605_v22, %v10571_v26 }
 0x1e0   : > { %9472 = vpow.bf16 %v7595_v20  ;;  %v8574_v27 = vpop.f32.mrb[10].mxu1  ;;  %v8606_v28 = vpop.f32.mrb[26].mxu0  ;;  %v10622_v40 = vadd.f32 %v10566_v24, %v711_v23  ;;  %v873_v42 = vadd.f32 %v10571_v26, %v872_v25 }
 0x1e1   : > { %v10618_v32 = vadd.f32 %v8574_v27, %v10566_v24  ;;  %v884_v34 = vadd.f32 %v8606_v28, %v10571_v26  ;;  %v714_v35 = vpop.f32.mrb[11].mxu1  ;;  %v875_v36 = vpop.f32.mrb[27].mxu0 }
 0x1e2   : > { %v9467_v38 = vpop.eup %9466  ;;  %v10626_v44 = vadd.f32 %v10566_v24, %v714_v35  ;;  %v876_v45 = vadd.f32 %v10571_v26, %v875_v36 }
 0x1e3   : > { %v9469_v47 = vpop.eup %9468  ;;  %v944_v51 = vadd.bf16 1065369472, %v9467_v38  ;;  %v747_v52 = vpack.c.bf16 %v10618_v32, %v10614_v29  ;;  %v908_v53 = vpack.c.bf16 %v884_v34, %v881_v30 }
 0x1e4   : > { %v943_v54 = vadd.bf16 1065369472, %v9469_v47  ;;  %v746_v56 = vpack.c.bf16 %v10626_v44, %v10622_v40  ;;  %v907_v59 = vpack.c.bf16 %v876_v45, %v873_v42  ;;  %v9426_v44 = vld [vmem:[%s14236_s5 + $0x30] sm:$0xff]  }
 0x1e5   : > { %9474 = vrcp.bf16 %v944_v51  ;;  %v7598_v62 = vmul.bf16 3216621497, %v908_v53  ;;  %8671 = vmatprep.subr.bf16.mxu0 %v9426_v44 }
 0x1e6   : > { %9476 = vrcp.bf16 %v943_v54  ;;  %v7597_v0 = vmul.bf16 3216621497, %v907_v59  ;;  %v8577_v2 = vpop.f32.mrb[12].mxu1  ;;  %v8609_v5 = vpop.f32.mrb[28].mxu0 }
 0x1e7   : > { %9478 = vpow.bf16 %v7598_v62  ;;  %v727_v8 = vpop.f32.mrb[13].mxu1  ;;  %v888_v10 = vpop.f32.mrb[29].mxu0  ;;  %v10634_v19 = vadd.f32 %v8577_v2, %v10566_v24  ;;  %v897_v20 = vadd.f32 %v8609_v5, %v10571_v26 }
 0x1e8   : > { %9480 = vpow.bf16 %v7597_v0  ;;  %v8578_v15 = vpop.f32.mrb[14].mxu1  ;;  %v8610_v18 = vpop.f32.mrb[30].mxu0  ;;  %v10642_v28 = vadd.f32 %v10566_v24, %v727_v8  ;;  %v889_v30 = vadd.f32 %v10571_v26, %v888_v10 }
 0x1e9   : > { %v10638_v21 = vadd.f32 %v8578_v15, %v10566_v24  ;;  %v900_v22 = vadd.f32 %v8610_v18, %v10571_v26  ;;  %v730_v23 = vpop.f32.mrb[15].mxu1  ;;  %v891_v25 = vpop.f32.mrb[31].mxu0 }
 0x1ea   : > { %v9471_v27 = vpop.eup %9470  ;;  %v10646_v34 = vadd.f32 %v10566_v24, %v730_v23  ;;  %v892_v35 = vadd.f32 %v10571_v26, %v891_v25 }
 0x1eb   : > { %v9473_v36 = vpop.eup %9472  ;;  %v946_v38 = vadd.bf16 1065369472, %v9471_v27  ;;  %v749_v42 = vpack.c.bf16 %v10638_v21, %v10634_v19  ;;  %v910_v45 = vpack.c.bf16 %v900_v22, %v897_v20  ;;  %v9427_v27 = vld [vmem:[%s14236_s5 + $0x38] sm:$0xff]  }
 0x1ec   : > { %v945_v47 = vadd.bf16 1065369472, %v9473_v36  ;;  %v748_v51 = vpack.c.bf16 %v10646_v34, %v10642_v28  ;;  %v909_v53 = vpack.c.bf16 %v892_v35, %v889_v30  ;;  %v9429_v28 = vld [vmem:[%s14236_s5 + $0x28] sm:$0xff]   ;;  %v10734_v34 = vld [vmem:[%s14237_s6] ss:$0 sm:$0xff] }
 0x1ed   : > { %9482 = vrcp.bf16 %v946_v38  ;;  %v7600_v54 = vmul.bf16 3216621497, %v910_v45  ;;  %v10739_v36 = vld [vmem:[%s14237_s6 + $0x1] ss:$0 sm:$0xff] }
 0x1ee   : > { %9484 = vrcp.bf16 %v945_v47  ;;  %v7599_v59 = vmul.bf16 3216621497, %v909_v53 }
 0x1ef   : > { %9486 = vpow.bf16 %v7600_v54 }
 0x1f0   : > { %v9475_v24 = vpop.eup %9474  ;;  %9488 = vpow.bf16 %v7599_v59 }
 0x1f1   : > { %v9477_v62 = vpop.eup %9476  ;;  %v954_v26 = vmul.bf16 1065369472, %v9475_v24 }
 0x1f2   : > { %v9479_v0 = vpop.eup %9478  ;;  %v952_v2 = vmul.bf16 1065369472, %v9477_v62 }
 0x1f3   : > { %v9481_v5 = vpop.eup %9480  ;;  %v10656_v8 = vmul.bf16 %v954_v26, %v743_v41  ;;  %v948_v10 = vadd.bf16 1065369472, %v9479_v0 }
 0x1f4   : > { %v947_v15 = vadd.bf16 1065369472, %v9481_v5  ;;  %v10661_v18 = vmul.bf16 %v952_v2, %v742_v43 }
 0x1f5   : > { %9490 = vrcp.bf16 %v948_v10 }
 0x1f6   : > { %9492 = vrcp.bf16 %v947_v15  ;;  %8615 = vmatprep.mubr.msk.bf16.mxu1 %vm1003_vm2, %v10661_v18  ;;  %8635 = vmatprep.mubr.msk.bf16.mxu0 %vm1003_vm2, %v10661_v18 }
 0x1f7   : > { %8616 = vmatmul.mubr.msk.bf16.vlgmr.msra.gmra.mrb[16].mxu1 %vm1003_vm2, %v10656_v8  ;;  %8636 = vmatmul.mubr.msk.bf16.vlgmr.msra.gmra.mrb[32].mxu0 %vm1003_vm2, %v10656_v8 }
 0x1f8   : > { %v9483_v31 = vpop.eup %9482  ;;  %8672 = vmatpush3.bf16.msra.mxu0 %v9426_v44 }
 0x1f9   : > { %v9485_v33 = vpop.eup %9484  ;;  %v958_v41 = vmul.bf16 1065369472, %v9483_v31  ;;  %8673 = vmatprep.subr.bf16.mxu0 %v9427_v27 }
 0x1fa   : > { %v9487_v37 = vpop.eup %9486  ;;  %v956_v39 = vmul.bf16 1065369472, %v9485_v33 }
 0x1fb   : > { %v9489_v43 = vpop.eup %9488  ;;  %v950_v19 = vadd.bf16 1065369472, %v9487_v37  ;;  %v10674_v20 = vmul.bf16 %v958_v41, %v745_v12 }
 0x1fc   : > { %v949_v21 = vadd.bf16 1065369472, %v9489_v43  ;;  %v10679_v22 = vmul.bf16 %v956_v39, %v744_v17  ;;  %8674 = vmatpush3.bf16.msra.mxu0 %v9427_v27 }
 0x1fd   : > { %9494 = vrcp.bf16 %v950_v19 }
 0x1fe   : > { %9496 = vrcp.bf16 %v949_v21  ;;  %8619 = vmatprep.mubr.msk.bf16.mxu1 %vm1003_vm2, %v10679_v22  ;;  %8639 = vmatprep.mubr.msk.bf16.mxu0 %vm1003_vm2, %v10679_v22 }
 0x1ff   : > { %8620 = vmatmul.mubr.msk.bf16.gmra.mrb[20].mxu1 %vm1003_vm2, %v10674_v20  ;;  %8640 = vmatmul.mubr.msk.bf16.gmra.mrb[36].mxu0 %vm1003_vm2, %v10674_v20 }
 0x200   : > { %v9491_v61 = vpop.eup %9490 }
 0x201   : > { %v9493_v63 = vpop.eup %9492  ;;  %v962_v12 = vmul.bf16 1065369472, %v9491_v61 }
 0x202   : > { %v960_v7 = vmul.bf16 1065369472, %v9493_v63 }
 0x203   : > { %v10692_v9 = vmul.bf16 %v962_v12, %v747_v52 }
 0x204   : > { %v10697_v17 = vmul.bf16 %v960_v7, %v746_v56  ;;  %v9428_v56 = vld [vmem:[%s14236_s5 + $0x20] sm:$0xff]  }
 0x205   : > { %8651 = vmatprep.subr.bf16.mxu1 %v9428_v56 }
 0x206   : > { %8623 = vmatprep.mubr.msk.bf16.mxu1 %vm1003_vm2, %v10697_v17  ;;  %8643 = vmatprep.mubr.msk.bf16.mxu0 %vm1003_vm2, %v10697_v17 }
 0x207   : > { %8624 = vmatmul.mubr.msk.bf16.gmra.mrb[24].mxu1 %vm1003_vm2, %v10692_v9  ;;  %8644 = vmatmul.mubr.msk.bf16.gmra.mrb[40].mxu0 %vm1003_vm2, %v10692_v9 }
 0x208   : > { %v9495_v29 = vpop.eup %9494  ;;  %8652 = vmatpush3.bf16.msra.mxu1 %v9428_v56 }
 0x209   : > { %v9497_v32 = vpop.eup %9496  ;;  %v966_v52 = vmul.bf16 1065369472, %v9495_v29  ;;  %8653 = vmatprep.subr.bf16.mxu1 %v9429_v28 }
 0x20a   : > { %v964_v23 = vmul.bf16 1065369472, %v9497_v32 }
 0x20b   : > { %v10707_v25 = vmul.bf16 %v966_v52, %v749_v42 }
 0x20c   : > { %v10709_v40 = vmul.bf16 %v964_v23, %v748_v51  ;;  %8654 = vmatpush3.bf16.msra.mxu1 %v9429_v28 }
 0x20e   : > { %8627 = vmatprep.mubr.msk.bf16.mxu1 %vm1003_vm2, %v10709_v40  ;;  %8647 = vmatprep.mubr.msk.bf16.mxu0 %vm1003_vm2, %v10709_v40 }
 0x20f   : > { %8628 = vmatmul.mubr.msk.bf16.gmra.mrb[28].mxu1 %vm1003_vm2, %v10707_v25  ;;  %8648 = vmatmul.mubr.msk.bf16.gmra.mrb[44].mxu0 %vm1003_vm2, %v10707_v25 }
 0x2ca   : > { %v8617_v30 = vpop.f32.mrb[16].mxu1  ;;  %v8637_v35 = vpop.f32.mrb[32].mxu0 }
 0x2cb   : > { %v1062_v38 = vpop.f32.mrb[17].mxu1  ;;  %v1187_v42 = vpop.f32.mrb[33].mxu0  ;;  %v10742_v51 = vadd.f32 %v8617_v30, %v10734_v34  ;;  %v1196_v53 = vadd.f32 %v8637_v35, %v10739_v36 }
 0x2cc   : > { %v8618_v45 = vpop.f32.mrb[18].mxu1  ;;  %v8638_v47 = vpop.f32.mrb[34].mxu0  ;;  %v10750_v26 = vadd.f32 %v10734_v34, %v1062_v38  ;;  %v1188_v0 = vadd.f32 %v10739_v36, %v1187_v42 }
 0x2cd   : > { %v10746_v54 = vadd.f32 %v8618_v45, %v10734_v34  ;;  %v1199_v59 = vadd.f32 %v8638_v47, %v10739_v36  ;;  %v1065_v24 = vpop.f32.mrb[19].mxu1  ;;  %v1190_v62 = vpop.f32.mrb[35].mxu0 }
 0x2ce   : > { %v10754_v2 = vadd.f32 %v10734_v34, %v1065_v24  ;;  %v1191_v5 = vadd.f32 %v10739_v36, %v1190_v62 }
 0x2cf   : > { %v1126_v10 = vpack.c.bf16 %v10746_v54, %v10742_v51  ;;  %v1251_v15 = vpack.c.bf16 %v1199_v59, %v1196_v53 }
 0x2d0   : > { %v1125_v31 = vpack.c.bf16 %v10754_v2, %v10750_v26  ;;  %v1250_v33 = vpack.c.bf16 %v1191_v5, %v1188_v0 }
 0x2d1   : > { %v7629_v41 = vmul.bf16 3216621497, %v1251_v15 }
 0x2d2   : > { %v7628_v37 = vmul.bf16 3216621497, %v1250_v33  ;;  %v8621_v39 = vpop.f32.mrb[20].mxu1  ;;  %v8641_v43 = vpop.f32.mrb[36].mxu0 }
 0x2d3   : > { %9498 = vpow.bf16 %v7629_v41  ;;  %v1078_v19 = vpop.f32.mrb[21].mxu1  ;;  %v1203_v21 = vpop.f32.mrb[37].mxu0  ;;  %v10762_v12 = vadd.f32 %v8621_v39, %v10734_v34  ;;  %v1212_v7 = vadd.f32 %v8641_v43, %v10739_v36 }
 0x2d4   : > { %9500 = vpow.bf16 %v7628_v37  ;;  %v8622_v61 = vpop.f32.mrb[22].mxu1  ;;  %v8642_v63 = vpop.f32.mrb[38].mxu0  ;;  %v10770_v44 = vadd.f32 %v10734_v34, %v1078_v19  ;;  %v1204_v56 = vadd.f32 %v10739_v36, %v1203_v21 }
 0x2d5   : > { %v10766_v29 = vadd.f32 %v8622_v61, %v10734_v34  ;;  %v1215_v32 = vadd.f32 %v8642_v63, %v10739_v36  ;;  %v1081_v52 = vpop.f32.mrb[23].mxu1  ;;  %v1206_v23 = vpop.f32.mrb[39].mxu0 }
 0x2d6   : > { %v10774_v27 = vadd.f32 %v10734_v34, %v1081_v52  ;;  %v1207_v28 = vadd.f32 %v10739_v36, %v1206_v23 }
 0x2d7   : > { %v1128_v30 = vpack.c.bf16 %v10766_v29, %v10762_v12  ;;  %v1253_v35 = vpack.c.bf16 %v1215_v32, %v1212_v7 }
 0x2d8   : > { %v1127_v38 = vpack.c.bf16 %v10774_v27, %v10770_v44  ;;  %v1252_v42 = vpack.c.bf16 %v1207_v28, %v1204_v56 }
 0x2d9   : > { %v7631_v45 = vmul.bf16 3216621497, %v1253_v35 }
 0x2da   : > { %v7630_v47 = vmul.bf16 3216621497, %v1252_v42  ;;  %v8625_v53 = vpop.f32.mrb[24].mxu1  ;;  %v8645_v59 = vpop.f32.mrb[40].mxu0 }
 0x2db   : > { %9502 = vpow.bf16 %v7631_v45  ;;  %v1094_v24 = vpop.f32.mrb[25].mxu1  ;;  %v1219_v62 = vpop.f32.mrb[41].mxu0  ;;  %v10782_v15 = vadd.f32 %v8625_v53, %v10734_v34  ;;  %v1228_v33 = vadd.f32 %v8645_v59, %v10739_v36 }
 0x2dc   : > { %9504 = vpow.bf16 %v7630_v47  ;;  %v8626_v0 = vpop.f32.mrb[26].mxu1  ;;  %v8646_v5 = vpop.f32.mrb[42].mxu0  ;;  %v10790_v21 = vadd.f32 %v10734_v34, %v1094_v24  ;;  %v1220_v61 = vadd.f32 %v10739_v36, %v1219_v62 }
 0x2dd   : > { %v10786_v41 = vadd.f32 %v8626_v0, %v10734_v34  ;;  %v1231_v37 = vadd.f32 %v8646_v5, %v10739_v36  ;;  %v1097_v39 = vpop.f32.mrb[27].mxu1  ;;  %v1222_v43 = vpop.f32.mrb[43].mxu0 }
 0x2de   : > { %v9499_v19 = vpop.eup %9498  ;;  %v10794_v63 = vadd.f32 %v10734_v34, %v1097_v39  ;;  %v1223_v7 = vadd.f32 %v10739_v36, %v1222_v43 }
 0x2df   : > { %v9501_v32 = vpop.eup %9500  ;;  %v1291_v52 = vadd.bf16 1065369472, %v9499_v19  ;;  %v1130_v23 = vpack.c.bf16 %v10786_v41, %v10782_v15  ;;  %v1255_v56 = vpack.c.bf16 %v1231_v37, %v1228_v33 }
 0x2e0   : > { %v1290_v28 = vadd.bf16 1065369472, %v9501_v32  ;;  %v1254_v42 = vpack.c.bf16 %v1223_v7, %v1220_v61 }
 0x2e1   : > { %9506 = vrcp.bf16 %v1291_v52  ;;  %v7633_v45 = vmul.bf16 3216621497, %v1255_v56 }
 0x2e2   : > { %9508 = vrcp.bf16 %v1290_v28  ;;  %v7632_v47 = vmul.bf16 3216621497, %v1254_v42  ;;  %v8629_v53 = vpop.f32.mrb[28].mxu1  ;;  %v8649_v59 = vpop.f32.mrb[44].mxu0 }
 0x2e3   : > { %9510 = vpow.bf16 %v7633_v45  ;;  %v1110_v24 = vpop.f32.mrb[29].mxu1  ;;  %v1235_v62 = vpop.f32.mrb[45].mxu0  ;;  %v10802_v39 = vadd.f32 %v8629_v53, %v10734_v34  ;;  %v1244_v33 = vadd.f32 %v8649_v59, %v10739_v36 }
 0x2e4   : > { %9512 = vpow.bf16 %v7632_v47  ;;  %v8630_v0 = vpop.f32.mrb[30].mxu1  ;;  %v8650_v5 = vpop.f32.mrb[46].mxu0  ;;  %v10810_v32 = vadd.f32 %v10734_v34, %v1110_v24  ;;  %v1236_v52 = vadd.f32 %v10739_v36, %v1235_v62 }
 0x2e5   : > { %v10806_v37 = vadd.f32 %v8630_v0, %v10734_v34  ;;  %v1247_v43 = vadd.f32 %v8650_v5, %v10739_v36  ;;  %v1113_v19 = vpop.f32.mrb[31].mxu1  ;;  %v1238_v61 = vpop.f32.mrb[47].mxu0 }
 0x2e6   : > { %v9503_v7 = vpop.eup %9502  ;;  %v10814_v56 = vadd.f32 %v10734_v34, %v1113_v19  ;;  %v1239_v28 = vadd.f32 %v10739_v36, %v1238_v61 }
 0x2e7   : > { %v9505_v42 = vpop.eup %9504  ;;  %v1293_v45 = vadd.bf16 1065369472, %v9503_v7  ;;  %v1132_v47 = vpack.c.bf16 %v10806_v37, %v10802_v39  ;;  %v1257_v53 = vpack.c.bf16 %v1247_v43, %v1244_v33  ;;  %v9431_v39 = vld [vmem:[%s14236_s5 + $0x58] sm:$0xff]   ;;  %v9433_v37 = vld [vmem:[%s14236_s5 + $0x48] sm:$0xff]  }
 0x2e8   : > { %v1292_v59 = vadd.bf16 1065369472, %v9505_v42  ;;  %v1131_v0 = vpack.c.bf16 %v10814_v56, %v10810_v32  ;;  %v1256_v5 = vpack.c.bf16 %v1239_v28, %v1236_v52  ;;  %v10916_v32 = vld [vmem:[%s14234_s3] sm:$0xff]  }
 0x2e9   : > { %9514 = vrcp.bf16 %v1293_v45  ;;  %v7635_v24 = vmul.bf16 3216621497, %v1257_v53 }
 0x2ea   : > { %9516 = vrcp.bf16 %v1292_v59  ;;  %v7634_v62 = vmul.bf16 3216621497, %v1256_v5 }
 0x2eb   : > { %9518 = vpow.bf16 %v7635_v24 }
 0x2ec   : > { %v9507_v34 = vpop.eup %9506  ;;  %9520 = vpow.bf16 %v7634_v62 }
 0x2ed   : > { %v9509_v19 = vpop.eup %9508  ;;  %v1301_v36 = vmul.bf16 1065369472, %v9507_v34 }
 0x2ee   : > { %v9511_v61 = vpop.eup %9510  ;;  %v1299_v7 = vmul.bf16 1065369472, %v9509_v19 }
 0x2ef   : > { %v9513_v35 = vpop.eup %9512  ;;  %v1315_v33 = vmul.bf16 %v1301_v36, %v1126_v10  ;;  %v1295_v43 = vadd.bf16 1065369472, %v9511_v61 }
 0x2f0   : > { %v1294_v42 = vadd.bf16 1065369472, %v9513_v35  ;;  %v1314_v52 = vmul.bf16 %v1299_v7, %v1125_v31 }
 0x2f1   : > { %v1323_v28 = vadd.bf16 %v1315_v33, %v10656_v8  ;;  %9522 = vrcp.bf16 %v1295_v43 }
 0x2f2   : > { %9524 = vrcp.bf16 %v1294_v42  ;;  %v1322_v45 = vadd.bf16 %v1314_v52, %v10661_v18  ;;  %v10927_v52 = vld [vmem:[%s14237_s6 + $0x3] ss:$0 sm:$0xff] }
 0x2f3   : > { %v10831_v24 = vmul.bf16 1060454197, %v1323_v28 }
 0x2f4   : > { %v9515_v53 = vpop.eup %9514  ;;  %v10829_v59 = vmul.bf16 1060454197, %v1322_v45 }
 0x2f5   : > { %v9517_v5 = vpop.eup %9516  ;;  %v1305_v51 = vmul.bf16 1065369472, %v9515_v53 }
 0x2f6   : > { %v9519_v54 = vpop.eup %9518  ;;  %8655 = vmatprep.mubr.msk.bf16.mxu1 %vm1003_vm2, %v10829_v59  ;;  %8675 = vmatprep.mubr.msk.bf16.mxu0 %vm1003_vm2, %v10829_v59  ;;  %v1303_v26 = vmul.bf16 1065369472, %v9517_v5 }
 0x2f7   : > { %v9521_v8 = vpop.eup %9520  ;;  %v1297_v2 = vadd.bf16 1065369472, %v9519_v54  ;;  %8656 = vmatmul.mubr.msk.bf16.vlgmr.msra.gmra.mrb[32].mxu1 %vm1003_vm2, %v10831_v24  ;;  %8676 = vmatmul.mubr.msk.bf16.vlgmr.msra.gmra.mrb[48].mxu0 %vm1003_vm2, %v10831_v24  ;;  %v1317_v18 = vmul.bf16 %v1305_v51, %v1128_v30 }
 0x2f8   : > { %v1296_v10 = vadd.bf16 1065369472, %v9521_v8  ;;  %v1316_v31 = vmul.bf16 %v1303_v26, %v1127_v38 }
 0x2f9   : > { %9526 = vrcp.bf16 %v1297_v2  ;;  %v1325_v35 = vadd.bf16 %v1317_v18, %v10674_v20 }
 0x2fa   : > { %9528 = vrcp.bf16 %v1296_v10  ;;  %v1324_v62 = vadd.bf16 %v1316_v31, %v10679_v22  ;;  %v14328_v22 = vpack.c.bf16 %v10794_v63, %v10790_v21 }
 0x2fb   : > { %v10851_v61 = vmul.bf16 1060454197, %v1325_v35 }
 0x2fc   : > { %v9523_v34 = vpop.eup %9522  ;;  %v10849_v19 = vmul.bf16 1060454197, %v1324_v62 }
 0x2fd   : > { %v9525_v36 = vpop.eup %9524  ;;  %v1309_v7 = vmul.bf16 1065369472, %v9523_v34 }
 0x2fe   : > { %8659 = vmatprep.mubr.msk.bf16.mxu1 %vm1003_vm2, %v10849_v19  ;;  %8679 = vmatprep.mubr.msk.bf16.mxu0 %vm1003_vm2, %v10849_v19  ;;  %v1307_v12 = vmul.bf16 1065369472, %v9525_v36 }
 0x2ff   : > { %8660 = vmatmul.mubr.msk.bf16.gmra.mrb[36].mxu1 %vm1003_vm2, %v10851_v61  ;;  %8680 = vmatmul.mubr.msk.bf16.gmra.mrb[52].mxu0 %vm1003_vm2, %v10851_v61  ;;  %v1319_v20 = vmul.bf16 %v1309_v7, %v1130_v23 }
 0x300   : > { %v1318_v29 = vmul.bf16 %v1307_v12, %v14328_v22 }
 0x301   : > { %v1327_v44 = vadd.bf16 %v1319_v20, %v10692_v9 }
 0x302   : > { %v1326_v27 = vadd.bf16 %v1318_v29, %v10697_v17 }
 0x303   : > { %v10871_v43 = vmul.bf16 1060454197, %v1327_v44 }
 0x304   : > { %v9527_v30 = vpop.eup %9526  ;;  %v10869_v38 = vmul.bf16 1060454197, %v1326_v27 }
 0x305   : > { %v9529_v33 = vpop.eup %9528  ;;  %v1313_v42 = vmul.bf16 1065369472, %v9527_v30 }
 0x306   : > { %8663 = vmatprep.mubr.msk.bf16.mxu1 %vm1003_vm2, %v10869_v38  ;;  %8683 = vmatprep.mubr.msk.bf16.mxu0 %vm1003_vm2, %v10869_v38  ;;  %v1311_v15 = vmul.bf16 1065369472, %v9529_v33 }
 0x307   : > { %8664 = vmatmul.mubr.msk.bf16.gmra.mrb[40].mxu1 %vm1003_vm2, %v10871_v43  ;;  %8684 = vmatmul.mubr.msk.bf16.gmra.mrb[56].mxu0 %vm1003_vm2, %v10871_v43  ;;  %v1321_v9 = vmul.bf16 %v1313_v42, %v1132_v47  ;;  %v10922_v47 = vld [vmem:[%s14237_s6 + $0x2] ss:$0 sm:$0xff] }
 0x308   : > { %v1320_v17 = vmul.bf16 %v1311_v15, %v1131_v0 }
 0x309   : > { %v1329_v41 = vadd.bf16 %v1321_v9, %v10707_v25  ;;  %v9430_v25 = vld [vmem:[%s14236_s5 + $0x50] sm:$0xff]  }
 0x30a   : > { %v1328_v21 = vadd.bf16 %v1320_v17, %v10709_v40  ;;  %v9432_v40 = vld [vmem:[%s14236_s5 + $0x40] sm:$0xff]   ;;  %8711 = vmatprep.subr.bf16.mxu0 %v9430_v25 }
 0x30b   : > { %v10891_v23 = vmul.bf16 1060454197, %v1329_v41  ;;  %8691 = vmatprep.subr.bf16.mxu1 %v9432_v40  ;;  %8712 = vmatpush3.bf16.msra.mxu0 %v9430_v25 }
 0x30c   : > { %v10889_v63 = vmul.bf16 1060454197, %v1328_v21  ;;  %8692 = vmatpush3.bf16.msra.mxu1 %v9432_v40  ;;  %8713 = vmatprep.subr.bf16.mxu0 %v9431_v39 }
 0x30d   : > { %8693 = vmatprep.subr.bf16.mxu1 %v9433_v37 }
 0x30e   : > { %8667 = vmatprep.mubr.msk.bf16.mxu1 %vm1003_vm2, %v10889_v63  ;;  %8687 = vmatprep.mubr.msk.bf16.mxu0 %vm1003_vm2, %v10889_v63 }
 0x30f   : > { %8668 = vmatmul.mubr.msk.bf16.gmra.mrb[44].mxu1 %vm1003_vm2, %v10891_v23  ;;  %8688 = vmatmul.mubr.msk.bf16.gmra.mrb[60].mxu0 %vm1003_vm2, %v10891_v23 }
 0x310   : > { %8714 = vmatpush3.bf16.msra.mxu0 %v9431_v39  ;;  %8694 = vmatpush3.bf16.msra.mxu1 %v9433_v37 }
 0x311   : > { %8751 = vmatprep.subr.bf16.mxu0 %v10916_v32 }
 0x3ca   : > { %v8657_v56 = vpop.f32.mrb[32].mxu1  ;;  %v8677_v0 = vpop.f32.mrb[48].mxu0 }
 0x3cb   : > { %v1426_v28 = vpop.f32.mrb[33].mxu1  ;;  %v1551_v45 = vpop.f32.mrb[49].mxu0  ;;  %v10930_v51 = vadd.f32 %v8657_v56, %v10922_v47  ;;  %v1560_v54 = vadd.f32 %v8677_v0, %v10927_v52 }
 0x3cc   : > { %v8658_v53 = vpop.f32.mrb[34].mxu1  ;;  %v8678_v5 = vpop.f32.mrb[50].mxu0  ;;  %v10938_v10 = vadd.f32 %v10922_v47, %v1426_v28  ;;  %v1552_v31 = vadd.f32 %v10927_v52, %v1551_v45 }
 0x3cd   : > { %v10934_v26 = vadd.f32 %v8658_v53, %v10922_v47  ;;  %v1563_v8 = vadd.f32 %v8678_v5, %v10927_v52  ;;  %v1429_v2 = vpop.f32.mrb[35].mxu1  ;;  %v1554_v18 = vpop.f32.mrb[51].mxu0 }
 0x3ce   : > { %v10942_v35 = vadd.f32 %v10922_v47, %v1429_v2  ;;  %v1555_v62 = vadd.f32 %v10927_v52, %v1554_v18 }
 0x3cf   : > { %v1490_v34 = vpack.c.bf16 %v10934_v26, %v10930_v51  ;;  %v1615_v36 = vpack.c.bf16 %v1563_v8, %v1560_v54 }
 0x3d0   : > { %v1489_v7 = vpack.c.bf16 %v10942_v35, %v10938_v10  ;;  %v1614_v12 = vpack.c.bf16 %v1555_v62, %v1552_v31 }
 0x3d1   : > { %v7669_v20 = vmul.bf16 3216621497, %v1615_v36 }
 0x3d2   : > { %v7668_v22 = vmul.bf16 3216621497, %v1614_v12  ;;  %v8661_v29 = vpop.f32.mrb[36].mxu1  ;;  %v8681_v44 = vpop.f32.mrb[52].mxu0 }
 0x3d3   : > { %9530 = vpow.bf16 %v7669_v20  ;;  %v1442_v27 = vpop.f32.mrb[37].mxu1  ;;  %v1567_v30 = vpop.f32.mrb[53].mxu0  ;;  %v10950_v15 = vadd.f32 %v8661_v29, %v10922_v47  ;;  %v1576_v9 = vadd.f32 %v8681_v44, %v10927_v52 }
 0x3d4   : > { %9532 = vpow.bf16 %v7668_v22  ;;  %v8662_v33 = vpop.f32.mrb[38].mxu1  ;;  %v8682_v42 = vpop.f32.mrb[54].mxu0  ;;  %v10958_v40 = vadd.f32 %v10922_v47, %v1442_v27  ;;  %v1568_v39 = vadd.f32 %v10927_v52, %v1567_v30 }
 0x3d5   : > { %v10954_v17 = vadd.f32 %v8662_v33, %v10922_v47  ;;  %v1579_v41 = vadd.f32 %v8682_v42, %v10927_v52  ;;  %v1445_v21 = vpop.f32.mrb[39].mxu1  ;;  %v1570_v25 = vpop.f32.mrb[55].mxu0 }
 0x3d6   : > { %v10962_v37 = vadd.f32 %v10922_v47, %v1445_v21  ;;  %v1571_v56 = vadd.f32 %v10927_v52, %v1570_v25 }
 0x3d7   : > { %v1492_v0 = vpack.c.bf16 %v10954_v17, %v10950_v15  ;;  %v1617_v28 = vpack.c.bf16 %v1579_v41, %v1576_v9 }
 0x3d8   : > { %v1491_v45 = vpack.c.bf16 %v10962_v37, %v10958_v40  ;;  %v1616_v53 = vpack.c.bf16 %v1571_v56, %v1568_v39 }
 0x3d9   : > { %v7671_v5 = vmul.bf16 3216621497, %v1617_v28 }
 0x3da   : > { %v7670_v54 = vmul.bf16 3216621497, %v1616_v53  ;;  %v8665_v8 = vpop.f32.mrb[40].mxu1  ;;  %v8685_v2 = vpop.f32.mrb[56].mxu0 }
 0x3db   : > { %9534 = vpow.bf16 %v7671_v5  ;;  %v1458_v18 = vpop.f32.mrb[41].mxu1  ;;  %v1583_v31 = vpop.f32.mrb[57].mxu0  ;;  %v10970_v12 = vadd.f32 %v8665_v8, %v10922_v47  ;;  %v1592_v20 = vadd.f32 %v8685_v2, %v10927_v52 }
 0x3dc   : > { %9536 = vpow.bf16 %v7670_v54  ;;  %v8666_v62 = vpop.f32.mrb[42].mxu1  ;;  %v8686_v36 = vpop.f32.mrb[58].mxu0  ;;  %v10978_v33 = vadd.f32 %v10922_v47, %v1458_v18  ;;  %v1584_v42 = vadd.f32 %v10927_v52, %v1583_v31 }
 0x3dd   : > { %v10974_v22 = vadd.f32 %v8666_v62, %v10922_v47  ;;  %v1595_v29 = vadd.f32 %v8686_v36, %v10927_v52  ;;  %v1461_v44 = vpop.f32.mrb[43].mxu1  ;;  %v1586_v27 = vpop.f32.mrb[59].mxu0 }
 0x3de   : > { %v9531_v30 = vpop.eup %9530  ;;  %v10982_v9 = vadd.f32 %v10922_v47, %v1461_v44  ;;  %v1587_v41 = vadd.f32 %v10927_v52, %v1586_v27 }
 0x3df   : > { %v9533_v21 = vpop.eup %9532  ;;  %v1655_v25 = vadd.bf16 1065369472, %v9531_v30  ;;  %v1619_v56 = vpack.c.bf16 %v1595_v29, %v1592_v20 }
 0x3e0   : > { %v1654_v28 = vadd.bf16 1065369472, %v9533_v21  ;;  %v1618_v5 = vpack.c.bf16 %v1587_v41, %v1584_v42 }
 0x3e1   : > { %9538 = vrcp.bf16 %v1655_v25  ;;  %v7673_v54 = vmul.bf16 3216621497, %v1619_v56 }
 0x3e2   : > { %9540 = vrcp.bf16 %v1654_v28  ;;  %v7672_v8 = vmul.bf16 3216621497, %v1618_v5  ;;  %v8669_v2 = vpop.f32.mrb[44].mxu1  ;;  %v8689_v18 = vpop.f32.mrb[60].mxu0 }
 0x3e3   : > { %9542 = vpow.bf16 %v7673_v54  ;;  %v1474_v31 = vpop.f32.mrb[45].mxu1  ;;  %v1599_v62 = vpop.f32.mrb[61].mxu0  ;;  %v10990_v27 = vadd.f32 %v8669_v2, %v10922_v47  ;;  %v1608_v20 = vadd.f32 %v8689_v18, %v10927_v52 }
 0x3e4   : > { %9544 = vpow.bf16 %v7672_v8  ;;  %v8670_v36 = vpop.f32.mrb[46].mxu1  ;;  %v8690_v44 = vpop.f32.mrb[62].mxu0  ;;  %v10998_v25 = vadd.f32 %v10922_v47, %v1474_v31  ;;  %v1600_v56 = vadd.f32 %v10927_v52, %v1599_v62 }
 0x3e5   : > { %v10994_v29 = vadd.f32 %v8670_v36, %v10922_v47  ;;  %v1611_v30 = vadd.f32 %v8690_v44, %v10927_v52  ;;  %v1477_v42 = vpop.f32.mrb[47].mxu1  ;;  %v1602_v41 = vpop.f32.mrb[63].mxu0 }
 0x3e6   : > { %v9535_v21 = vpop.eup %9534  ;;  %v11002_v28 = vadd.f32 %v10922_v47, %v1477_v42  ;;  %v1603_v5 = vadd.f32 %v10927_v52, %v1602_v41 }
 0x3e7   : > { %v9537_v54 = vpop.eup %9536  ;;  %v1657_v8 = vadd.bf16 1065369472, %v9535_v21  ;;  %v1496_v2 = vpack.c.bf16 %v10994_v29, %v10990_v27  ;;  %v1621_v18 = vpack.c.bf16 %v1611_v30, %v1608_v20  ;;  %v10176_v27 = vld [vmem:[%s14234_s3 + $0x30] sm:$0xff]   ;;  %v9434_v29 = vld [vmem:[%s14238_s7] sm:$0xff]  }
 0x3e8   : > { %v1656_v36 = vadd.bf16 1065369472, %v9537_v54  ;;  %v1495_v44 = vpack.c.bf16 %v11002_v28, %v10998_v25  ;;  %v1620_v53 = vpack.c.bf16 %v1603_v5, %v1600_v56  ;;  %8731 = vmatprep.subr.bf16.mxu1 %v9434_v29  ;;  %v9435_v25 = vld [vmem:[%s14238_s7 + $0x8] sm:$0xff]   ;;  %v11126_v28 = vld [vmem:[%s14234_s3 + $0x40] sm:$0xff]  }
 0x3e9   : > { %9546 = vrcp.bf16 %v1657_v8  ;;  %v7675_v31 = vmul.bf16 3216621497, %v1621_v18 }
 0x3ea   : > { %9548 = vrcp.bf16 %v1656_v36  ;;  %v7674_v62 = vmul.bf16 3216621497, %v1620_v53 }
 0x3eb   : > { %9550 = vpow.bf16 %v7675_v31 }
 0x3ec   : > { %v9539_v47 = vpop.eup %9538  ;;  %9552 = vpow.bf16 %v7674_v62  ;;  %v10171_v62 = vld [vmem:[%s14234_s3 + $0x8] sm:$0xff]  }
 0x3ed   : > { %v9541_v42 = vpop.eup %9540  ;;  %v1665_v52 = vmul.bf16 1065369472, %v9539_v47 }
 0x3ee   : > { %v9543_v41 = vpop.eup %9542  ;;  %v1663_v21 = vmul.bf16 1065369472, %v9541_v42  ;;  %v14330_v42 = vpack.c.bf16 %v10982_v9, %v10978_v33  ;;  %v10174_v33 = vld [vmem:[%s14234_s3 + $0x20] sm:$0xff]  }
 0x3ef   : > { %v9545_v39 = vpop.eup %9544  ;;  %v1679_v20 = vmul.bf16 %v1665_v52, %v1490_v34  ;;  %v1659_v30 = vadd.bf16 1065369472, %v9543_v41 }
 0x3f0   : > { %v1658_v54 = vadd.bf16 1065369472, %v9545_v39  ;;  %v1678_v56 = vmul.bf16 %v1663_v21, %v1489_v7  ;;  %v10173_v21 = vld [vmem:[%s14234_s3 + $0x18] sm:$0xff]  }
 0x3f1   : > { %v1687_v53 = vadd.bf16 %v1679_v20, %v10831_v24  ;;  %9554 = vrcp.bf16 %v1659_v30 }
 0x3f2   : > { %9556 = vrcp.bf16 %v1658_v54  ;;  %v1686_v5 = vadd.bf16 %v1678_v56, %v10829_v59 }
 0x3f3   : > { %v11019_v31 = vmul.bf16 1060454197, %v1687_v53 }
 0x3f4   : > { %v9547_v8 = vpop.eup %9546  ;;  %v11017_v18 = vmul.bf16 1060454197, %v1686_v5  ;;  %v10175_v5 = vld [vmem:[%s14234_s3 + $0x28] sm:$0xff]  }
 0x3f5   : > { %v9549_v36 = vpop.eup %9548  ;;  %v1669_v51 = vmul.bf16 1065369472, %v9547_v8 }
 0x3f6   : > { %v9551_v26 = vpop.eup %9550  ;;  %v1667_v34 = vmul.bf16 1065369472, %v9549_v36  ;;  %8695 = vmatprep.mubr.msk.bf16.mxu1 %vm1003_vm2, %v11017_v18  ;;  %8715 = vmatprep.mubr.msk.bf16.mxu0 %vm1003_vm2, %v11017_v18 }
 0x3f7   : > { %v9553_v24 = vpop.eup %9552  ;;  %v1661_v10 = vadd.bf16 1065369472, %v9551_v26  ;;  %8696 = vmatmul.mubr.msk.bf16.vlgmr.msra.gmra.mrb[48].mxu1 %vm1003_vm2, %v11019_v31  ;;  %8716 = vmatmul.mubr.msk.bf16.vlgmr.msra.gmra.mrb[64].mxu0 %vm1003_vm2, %v11019_v31  ;;  %v1681_v59 = vmul.bf16 %v1669_v51, %v1492_v0 }
 0x3f8   : > { %v1660_v35 = vadd.bf16 1065369472, %v9553_v24  ;;  %v1680_v7 = vmul.bf16 %v1667_v34, %v1491_v45  ;;  %8752 = vmatpush3.bf16.msra.mxu0 %v10916_v32  ;;  %8732 = vmatpush3.bf16.msra.mxu1 %v9434_v29  ;;  %v11137_v34 = vld [vmem:[%s14237_s6 + $0x5] ss:$0 sm:$0xff] }
 0x3f9   : > { %9558 = vrcp.bf16 %v1661_v10  ;;  %v1689_v39 = vadd.bf16 %v1681_v59, %v10851_v61  ;;  %8753 = vmatprep.subr.bf16.mxu0 %v10171_v62  ;;  %v10172_v61 = vld [vmem:[%s14234_s3 + $0x10] sm:$0xff]   ;;  %8733 = vmatprep.subr.bf16.mxu1 %v9435_v25 }
 0x3fa   : > { %9560 = vrcp.bf16 %v1660_v35  ;;  %v1688_v47 = vadd.bf16 %v1680_v7, %v10849_v19  ;;  %v14329_v19 = vpack.c.bf16 %v10974_v22, %v10970_v12 }
 0x3fb   : > { %v11043_v37 = vmul.bf16 1060454197, %v1689_v39 }
 0x3fc   : > { %v9555_v15 = vpop.eup %9554  ;;  %v11041_v17 = vmul.bf16 1060454197, %v1688_v47  ;;  %8754 = vmatpush3.bf16.msra.mxu0 %v10171_v62  ;;  %8734 = vmatpush3.bf16.msra.mxu1 %v9435_v25 }
 0x3fd   : > { %v9557_v0 = vpop.eup %9556  ;;  %v1673_v40 = vmul.bf16 1065369472, %v9555_v15  ;;  %8755 = vmatprep.subr.bf16.mxu0 %v10172_v61  ;;  %8783 = vmatprep.subr.bf16.mxu1 %v11126_v28 }
 0x3fe   : > { %v1671_v32 = vmul.bf16 1065369472, %v9557_v0  ;;  %8699 = vmatprep.mubr.msk.bf16.mxu1 %vm1003_vm2, %v11041_v17  ;;  %8719 = vmatprep.mubr.msk.bf16.mxu0 %vm1003_vm2, %v11041_v17 }
 0x3ff   : > { %8700 = vmatmul.mubr.msk.bf16.gmra.mrb[52].mxu1 %vm1003_vm2, %v11043_v37  ;;  %8720 = vmatmul.mubr.msk.bf16.gmra.mrb[68].mxu0 %vm1003_vm2, %v11043_v37  ;;  %v1683_v45 = vmul.bf16 %v1673_v40, %v14329_v19 }
 0x400   : > { %v1682_v52 = vmul.bf16 %v1671_v32, %v14330_v42  ;;  %8756 = vmatpush3.bf16.msra.mxu0 %v10172_v61 }
 0x401   : > { %v1691_v41 = vadd.bf16 %v1683_v45, %v10871_v43  ;;  %8757 = vmatprep.subr.bf16.mxu0 %v10173_v21 }
 0x402   : > { %v1690_v20 = vadd.bf16 %v1682_v52, %v10869_v38 }
 0x403   : > { %v11069_v56 = vmul.bf16 1060454197, %v1691_v41 }
 0x404   : > { %v9559_v30 = vpop.eup %9558  ;;  %v11067_v54 = vmul.bf16 1060454197, %v1690_v20  ;;  %8758 = vmatpush3.bf16.msra.mxu0 %v10173_v21 }
 0x405   : > { %v9561_v12 = vpop.eup %9560  ;;  %v1677_v22 = vmul.bf16 1065369472, %v9559_v30  ;;  %8759 = vmatprep.subr.bf16.mxu0 %v10174_v33 }
 0x406   : > { %v1675_v43 = vmul.bf16 1065369472, %v9561_v12  ;;  %8703 = vmatprep.mubr.msk.bf16.mxu1 %vm1003_vm2, %v11067_v54  ;;  %8723 = vmatprep.mubr.msk.bf16.mxu0 %vm1003_vm2, %v11067_v54 }
 0x407   : > { %8704 = vmatmul.mubr.msk.bf16.gmra.mrb[56].mxu1 %vm1003_vm2, %v11069_v56  ;;  %8724 = vmatmul.mubr.msk.bf16.gmra.mrb[72].mxu0 %vm1003_vm2, %v11069_v56  ;;  %v1685_v38 = vmul.bf16 %v1677_v22, %v1496_v2 }
 0x408   : > { %v1684_v9 = vmul.bf16 %v1675_v43, %v1495_v44  ;;  %8760 = vmatpush3.bf16.msra.mxu0 %v10174_v33  ;;  %v11132_v44 = vld [vmem:[%s14237_s6 + $0x4] ss:$0 sm:$0xff] }
 0x409   : > { %v1693_v53 = vadd.bf16 %v1685_v38, %v10891_v23  ;;  %8761 = vmatprep.subr.bf16.mxu0 %v10175_v5  ;;  %v11114_v23 = vld [vmem:[%s14236_s5] sm:$0xff]  }
 0x40a   : > { %v1692_v8 = vadd.bf16 %v1684_v9, %v10889_v63  ;;  %v10177_v63 = vld [vmem:[%s14234_s3 + $0x38] sm:$0xff]  }
 0x40b   : > { %v11095_v51 = vmul.bf16 1060454197, %v1693_v53 }
 0x40c   : > { %v11093_v36 = vmul.bf16 1060454197, %v1692_v8  ;;  %8762 = vmatpush3.bf16.msra.mxu0 %v10175_v5 }
 0x40d   : > { %8763 = vmatprep.subr.bf16.mxu0 %v10176_v27 }
 0x40e   : > { %8707 = vmatprep.mubr.msk.bf16.mxu1 %vm1003_vm2, %v11093_v36  ;;  %8727 = vmatprep.mubr.msk.bf16.mxu0 %vm1003_vm2, %v11093_v36 }
 0x40f   : > { %8708 = vmatmul.mubr.msk.bf16.gmra.mrb[60].mxu1 %vm1003_vm2, %v11095_v51  ;;  %8728 = vmatmul.mubr.msk.bf16.gmra.mrb[76].mxu0 %vm1003_vm2, %v11095_v51 }
 0x410   : > { %8764 = vmatpush3.bf16.msra.mxu0 %v10176_v27 }
 0x411   : > { %8765 = vmatprep.subr.bf16.mxu0 %v10177_v63 }
 0x414   : > { %8766 = vmatpush3.bf16.msra.mxu0 %v10177_v63 }
 0x415   : > { %8815 = vmatprep.subr.bf16.mxu0 %v11114_v23 }
 0x4ca   : > { %v8697_v2 = vpop.f32.mrb[48].mxu1  ;;  %v8717_v26 = vpop.f32.mrb[64].mxu0 }
 0x4cb   : > { %v1790_v24 = vpop.f32.mrb[49].mxu1  ;;  %v1915_v10 = vpop.f32.mrb[65].mxu0  ;;  %v11140_v7 = vadd.f32 %v8697_v2, %v11132_v44  ;;  %v1924_v39 = vadd.f32 %v8717_v26, %v11137_v34 }
 0x4cc   : > { %v8698_v59 = vpop.f32.mrb[50].mxu1  ;;  %v8718_v35 = vpop.f32.mrb[66].mxu0  ;;  %v11148_v40 = vadd.f32 %v11132_v44, %v1790_v24  ;;  %v1916_v61 = vadd.f32 %v11137_v34, %v1915_v10 }
 0x4cd   : > { %v11144_v62 = vadd.f32 %v8698_v59, %v11132_v44  ;;  %v1927_v47 = vadd.f32 %v8718_v35, %v11137_v34  ;;  %v1793_v15 = vpop.f32.mrb[51].mxu1  ;;  %v1918_v0 = vpop.f32.mrb[67].mxu0 }
 0x4ce   : > { %v11152_v32 = vadd.f32 %v11132_v44, %v1793_v15  ;;  %v1919_v19 = vadd.f32 %v11137_v34, %v1918_v0 }
 0x4cf   : > { %v1854_v45 = vpack.c.bf16 %v11144_v62, %v11140_v7  ;;  %v1979_v42 = vpack.c.bf16 %v1927_v47, %v1924_v39 }
 0x4d0   : > { %v1853_v52 = vpack.c.bf16 %v11152_v32, %v11148_v40  ;;  %v1978_v41 = vpack.c.bf16 %v1919_v19, %v1916_v61 }
 0x4d1   : > { %v7709_v21 = vmul.bf16 3216621497, %v1979_v42 }
 0x4d2   : > { %v7708_v20 = vmul.bf16 3216621497, %v1978_v41  ;;  %v8701_v30 = vpop.f32.mrb[52].mxu1  ;;  %v8721_v12 = vpop.f32.mrb[68].mxu0 }
 0x4d3   : > { %9562 = vpow.bf16 %v7709_v21  ;;  %v1806_v22 = vpop.f32.mrb[53].mxu1  ;;  %v1931_v33 = vpop.f32.mrb[69].mxu0  ;;  %v11160_v9 = vadd.f32 %v8701_v30, %v11132_v44  ;;  %v1940_v53 = vadd.f32 %v8721_v12, %v11137_v34 }
 0x4d4   : > { %9564 = vpow.bf16 %v7708_v20  ;;  %v8702_v43 = vpop.f32.mrb[54].mxu1  ;;  %v8722_v38 = vpop.f32.mrb[70].mxu0  ;;  %v11168_v29 = vadd.f32 %v11132_v44, %v1806_v22  ;;  %v1932_v25 = vadd.f32 %v11137_v34, %v1931_v33 }
 0x4d5   : > { %v11164_v5 = vadd.f32 %v8702_v43, %v11132_v44  ;;  %v1943_v8 = vadd.f32 %v8722_v38, %v11137_v34  ;;  %v1809_v27 = vpop.f32.mrb[55].mxu1  ;;  %v1934_v63 = vpop.f32.mrb[71].mxu0 }
 0x4d6   : > { %v11172_v2 = vadd.f32 %v11132_v44, %v1809_v27  ;;  %v1935_v26 = vadd.f32 %v11137_v34, %v1934_v63 }
 0x4d7   : > { %v1856_v24 = vpack.c.bf16 %v11164_v5, %v11160_v9  ;;  %v1981_v10 = vpack.c.bf16 %v1943_v8, %v1940_v53 }
 0x4d8   : > { %v1980_v35 = vpack.c.bf16 %v1935_v26, %v1932_v25 }
 0x4d9   : > { %v7711_v39 = vmul.bf16 3216621497, %v1981_v10 }
 0x4da   : > { %v7710_v47 = vmul.bf16 3216621497, %v1980_v35  ;;  %v8705_v15 = vpop.f32.mrb[56].mxu1  ;;  %v8725_v0 = vpop.f32.mrb[72].mxu0 }
 0x4db   : > { %9566 = vpow.bf16 %v7711_v39  ;;  %v1822_v61 = vpop.f32.mrb[57].mxu1  ;;  %v1947_v19 = vpop.f32.mrb[73].mxu0  ;;  %v11180_v21 = vadd.f32 %v8705_v15, %v11132_v44  ;;  %v1956_v20 = vadd.f32 %v8725_v0, %v11137_v34 }
 0x4dc   : > { %9568 = vpow.bf16 %v7710_v47  ;;  %v8706_v42 = vpop.f32.mrb[58].mxu1  ;;  %v8726_v41 = vpop.f32.mrb[74].mxu0  ;;  %v11188_v38 = vadd.f32 %v11132_v44, %v1822_v61  ;;  %v1948_v53 = vadd.f32 %v11137_v34, %v1947_v19 }
 0x4dd   : > { %v11184_v30 = vadd.f32 %v8706_v42, %v11132_v44  ;;  %v1959_v12 = vadd.f32 %v8726_v41, %v11137_v34  ;;  %v1825_v22 = vpop.f32.mrb[59].mxu1  ;;  %v1950_v33 = vpop.f32.mrb[75].mxu0 }
 0x4de   : > { %v9563_v43 = vpop.eup %9562  ;;  %v11192_v8 = vadd.f32 %v11132_v44, %v1825_v22  ;;  %v1951_v27 = vadd.f32 %v11137_v34, %v1950_v33 }
 0x4df   : > { %v9565_v63 = vpop.eup %9564  ;;  %v2019_v25 = vadd.bf16 1065369472, %v9563_v43  ;;  %v1983_v10 = vpack.c.bf16 %v1959_v12, %v1956_v20 }
 0x4e0   : > { %v2018_v35 = vadd.bf16 1065369472, %v9565_v63  ;;  %v1982_v47 = vpack.c.bf16 %v1951_v27, %v1948_v53 }
 0x4e1   : > { %9570 = vrcp.bf16 %v2019_v25  ;;  %v7713_v15 = vmul.bf16 3216621497, %v1983_v10 }
 0x4e2   : > { %9572 = vrcp.bf16 %v2018_v35  ;;  %v7712_v0 = vmul.bf16 3216621497, %v1982_v47  ;;  %v8709_v61 = vpop.f32.mrb[60].mxu1  ;;  %v8729_v19 = vpop.f32.mrb[76].mxu0 }
 0x4e3   : > { %9574 = vpow.bf16 %v7713_v15  ;;  %v1838_v42 = vpop.f32.mrb[61].mxu1  ;;  %v1963_v41 = vpop.f32.mrb[77].mxu0  ;;  %v11200_v43 = vadd.f32 %v8709_v61, %v11132_v44  ;;  %v1972_v20 = vadd.f32 %v8729_v19, %v11137_v34 }
 0x4e4   : > { %9576 = vpow.bf16 %v7712_v0  ;;  %v8710_v22 = vpop.f32.mrb[62].mxu1  ;;  %v8730_v33 = vpop.f32.mrb[78].mxu0  ;;  %v11208_v10 = vadd.f32 %v11132_v44, %v1838_v42  ;;  %v1964_v35 = vadd.f32 %v11137_v34, %v1963_v41 }
 0x4e5   : > { %v11204_v12 = vadd.f32 %v8710_v22, %v11132_v44  ;;  %v1975_v53 = vadd.f32 %v8730_v33, %v11137_v34  ;;  %v1841_v27 = vpop.f32.mrb[63].mxu1  ;;  %v1966_v63 = vpop.f32.mrb[79].mxu0 }
 0x4e6   : > { %v9567_v25 = vpop.eup %9566  ;;  %v11212_v47 = vadd.f32 %v11132_v44, %v1841_v27  ;;  %v1967_v15 = vadd.f32 %v11137_v34, %v1966_v63 }
 0x4e7   : > { %v9569_v0 = vpop.eup %9568  ;;  %v2021_v61 = vadd.bf16 1065369472, %v9567_v25  ;;  %v1860_v19 = vpack.c.bf16 %v11204_v12, %v11200_v43  ;;  %v1985_v22 = vpack.c.bf16 %v1975_v53, %v1972_v20  ;;  %v10185_v43 = vld [vmem:[%s14234_s3 + $0x70] sm:$0xff]  }
 0x4e8   : > { %v2020_v33 = vadd.bf16 1065369472, %v9569_v0  ;;  %v1859_v39 = vpack.c.bf16 %v11212_v47, %v11208_v10  ;;  %v1984_v26 = vpack.c.bf16 %v1967_v15, %v1964_v35 }
 0x4e9   : > { %9578 = vrcp.bf16 %v2021_v61  ;;  %v7715_v42 = vmul.bf16 3216621497, %v1985_v22 }
 0x4ea   : > { %9580 = vrcp.bf16 %v2020_v33  ;;  %v7714_v41 = vmul.bf16 3216621497, %v1984_v26 }
 0x4eb   : > { %9582 = vpow.bf16 %v7715_v42 }
 0x4ec   : > { %v9571_v44 = vpop.eup %9570  ;;  %9584 = vpow.bf16 %v7714_v41 }
 0x4ed   : > { %v9573_v27 = vpop.eup %9572  ;;  %v2029_v34 = vmul.bf16 1065369472, %v9571_v44 }
 0x4ee   : > { %v9575_v63 = vpop.eup %9574  ;;  %v2027_v25 = vmul.bf16 1065369472, %v9573_v27 }
 0x4ef   : > { %v9577_v59 = vpop.eup %9576  ;;  %v2043_v20 = vmul.bf16 %v2029_v34, %v1854_v45  ;;  %v2023_v53 = vadd.bf16 1065369472, %v9575_v63  ;;  %v14333_v63 = vpack.c.bf16 %v11192_v8, %v11188_v38  ;;  %v10183_v38 = vld [vmem:[%s14234_s3 + $0x60] sm:$0xff]  }
 0x4f0   : > { %v2022_v0 = vadd.bf16 1065369472, %v9577_v59  ;;  %v2042_v35 = vmul.bf16 %v2027_v25, %v1853_v52  ;;  %v10180_v59 = vld [vmem:[%s14234_s3 + $0x48] sm:$0xff]  }
 0x4f1   : > { %v2051_v26 = vadd.bf16 %v2043_v20, %v11019_v31  ;;  %9586 = vrcp.bf16 %v2023_v53  ;;  %v10182_v53 = vld [vmem:[%s14234_s3 + $0x58] sm:$0xff]  }
 0x4f2   : > { %9588 = vrcp.bf16 %v2022_v0  ;;  %v2050_v15 = vadd.bf16 %v2042_v35, %v11017_v18  ;;  %v14331_v18 = vpack.c.bf16 %v11172_v2, %v11168_v29  ;;  %v14332_v2 = vpack.c.bf16 %v11184_v30, %v11180_v21 }
 0x4f3   : > { %v2059_v42 = vmul.bf16 1060454197, %v2051_v26 }
 0x4f4   : > { %v9579_v61 = vpop.eup %9578  ;;  %v2058_v22 = vmul.bf16 1060454197, %v2050_v15 }
 0x4f5   : > { %v9581_v33 = vpop.eup %9580  ;;  %v2033_v41 = vmul.bf16 1065369472, %v9579_v61 }
 0x4f6   : > { %v9583_v44 = vpop.eup %9582  ;;  %v2031_v7 = vmul.bf16 1065369472, %v9581_v33  ;;  %8735 = vmatprep.mubr.msk.bf16.mxu1 %vm1003_vm2, %v2058_v22  ;;  %v10184_v22 = vld [vmem:[%s14234_s3 + $0x68] sm:$0xff]  }
 0x4f7   : > { %v9585_v62 = vpop.eup %9584  ;;  %v2025_v45 = vadd.bf16 1065369472, %v9583_v44  ;;  %8736 = vmatmul.mubr.msk.bf16.vlgmr.msra.gmra.mrb[64].mxu1 %vm1003_vm2, %v2059_v42  ;;  %v2045_v31 = vmul.bf16 %v2033_v41, %v1856_v24 }
 0x4f8   : > { %v2024_v40 = vadd.bf16 1065369472, %v9585_v62  ;;  %v2044_v32 = vmul.bf16 %v2031_v7, %v14331_v18  ;;  %8784 = vmatpush3.bf16.msra.mxu1 %v11126_v28  ;;  %v10181_v28 = vld [vmem:[%s14234_s3 + $0x50] sm:$0xff]  }
 0x4f9   : > { %9590 = vrcp.bf16 %v2025_v45  ;;  %v2053_v52 = vadd.bf16 %v2045_v31, %v11043_v37  ;;  %8785 = vmatprep.subr.bf16.mxu1 %v10180_v59 }
 0x4fa   : > { %9592 = vrcp.bf16 %v2024_v40  ;;  %v2052_v27 = vadd.bf16 %v2044_v32, %v11041_v17 }
 0x4fb   : > { %v2061_v29 = vmul.bf16 1060454197, %v2053_v52 }
 0x4fc   : > { %v9587_v9 = vpop.eup %9586  ;;  %v2060_v5 = vmul.bf16 1060454197, %v2052_v27  ;;  %8786 = vmatpush3.bf16.msra.mxu1 %v10180_v59 }
 0x4fd   : > { %v9589_v24 = vpop.eup %9588  ;;  %v2037_v34 = vmul.bf16 1065369472, %v9587_v9  ;;  %8787 = vmatprep.subr.bf16.mxu1 %v10181_v28 }
 0x4fe   : > { %v2035_v37 = vmul.bf16 1065369472, %v9589_v24  ;;  %8739 = vmatprep.mubr.msk.bf16.mxu1 %vm1003_vm2, %v2060_v5 }
 0x4ff   : > { %8740 = vmatmul.mubr.msk.bf16.gmra.mrb[68].mxu1 %vm1003_vm2, %v2061_v29  ;;  %v2047_v17 = vmul.bf16 %v2037_v34, %v14332_v2 }
 0x500   : > { %v2046_v25 = vmul.bf16 %v2035_v37, %v14333_v63  ;;  %8788 = vmatpush3.bf16.msra.mxu1 %v10181_v28 }
 0x501   : > { %v2055_v20 = vadd.bf16 %v2047_v17, %v11069_v56  ;;  %8789 = vmatprep.subr.bf16.mxu1 %v10182_v53 }
 0x502   : > { %v2054_v0 = vadd.bf16 %v2046_v25, %v11067_v54 }
 0x503   : > { %v2063_v30 = vmul.bf16 1060454197, %v2055_v20 }
 0x504   : > { %v9591_v35 = vpop.eup %9590  ;;  %v2062_v26 = vmul.bf16 1060454197, %v2054_v0  ;;  %8790 = vmatpush3.bf16.msra.mxu1 %v10182_v53 }
 0x505   : > { %v9593_v15 = vpop.eup %9592  ;;  %v2041_v21 = vmul.bf16 1065369472, %v9591_v35  ;;  %8791 = vmatprep.subr.bf16.mxu1 %v10183_v38 }
 0x506   : > { %v2039_v8 = vmul.bf16 1065369472, %v9593_v15  ;;  %8743 = vmatprep.mubr.msk.bf16.mxu1 %vm1003_vm2, %v2062_v26 }
 0x507   : > { %8744 = vmatmul.mubr.msk.bf16.gmra.mrb[72].mxu1 %vm1003_vm2, %v2063_v30  ;;  %v2049_v54 = vmul.bf16 %v2041_v21, %v1860_v19 }
 0x508   : > { %v2048_v56 = vmul.bf16 %v2039_v8, %v1859_v39  ;;  %8792 = vmatpush3.bf16.msra.mxu1 %v10183_v38  ;;  %v7716_v39 = vld [vmem:[%s14239_s8] ss:$0 sm:$0xff] }
 0x509   : > { %v2057_v61 = vadd.bf16 %v2049_v54, %v11095_v51  ;;  %8793 = vmatprep.subr.bf16.mxu1 %v10184_v22  ;;  %v10186_v51 = vld [vmem:[%s14234_s3 + $0x78] sm:$0xff]  }
 0x50a   : > { %v2056_v33 = vadd.bf16 %v2048_v56, %v11093_v36  ;;  %v11284_v36 = vld [vmem:[%s14236_s5 + $0x10] sm:$0xff]  }
 0x50b   : > { %v2065_v41 = vmul.bf16 1060454197, %v2057_v61 }
 0x50c   : > { %v2064_v42 = vmul.bf16 1060454197, %v2056_v33  ;;  %8794 = vmatpush3.bf16.msra.mxu1 %v10184_v22 }
 0x50d   : > { %8795 = vmatprep.subr.bf16.mxu1 %v10185_v43 }
 0x50e   : > { %8747 = vmatprep.mubr.msk.bf16.mxu1 %vm1003_vm2, %v2064_v42 }
 0x50f   : > { %8748 = vmatmul.mubr.msk.bf16.gmra.mrb[76].mxu1 %vm1003_vm2, %v2065_v41 }
 0x510   : > { %8796 = vmatpush3.bf16.msra.mxu1 %v10185_v43 }
 0x511   : > { %8797 = vmatprep.subr.bf16.mxu1 %v10186_v51 }
 0x514   : > { %8798 = vmatpush3.bf16.msra.mxu1 %v10186_v51 }
 0x515   : > { %8835 = vmatprep.subr.bf16.mxu1 %v11284_v36 }
 0x5ca   : > { %v8737_v12 = vpop.f32.mrb[64].mxu1 }
 0x5cb   : > { %v2156_v10 = vadd.f32 %v8737_v12, %v7716_v39  ;;  %v2147_v47 = vpop.f32.mrb[65].mxu1 }
 0x5cc   : > { %v2148_v19 = vadd.f32 %v7716_v39, %v2147_v47  ;;  %v8738_v44 = vpop.f32.mrb[66].mxu1 }
 0x5cd   : > { %2214 = vmax.xlane.f32.xlu1 %v2156_v10  ;;  %v2150_v7 = vpop.f32.mrb[67].mxu1  ;;  %v2159_v62 = vadd.f32 %v8738_v44, %v7716_v39 }
 0x5ce   : > { %2210 = vmax.xlane.f32.xlu0 %v2148_v19  ;;  %v2151_v45 = vadd.f32 %v7716_v39, %v2150_v7 }
 0x5d1   : > { %2216 = vmax.xlane.f32.xlu1 %v2159_v62 }
 0x5d2   : > { %v8741_v31 = vpop.f32.mrb[68].mxu1  ;;  %2212 = vmax.xlane.f32.xlu0 %v2151_v45 }
 0x5d3   : > { %v2163_v40 = vpop.f32.mrb[69].mxu1  ;;  %v2172_v27 = vadd.f32 %v8741_v31, %v7716_v39 }
 0x5d4   : > { %v2164_v18 = vadd.f32 %v7716_v39, %v2163_v40  ;;  %v8742_v32 = vpop.f32.mrb[70].mxu1 }
 0x5d5   : > { %v2166_v52 = vpop.f32.mrb[71].mxu1  ;;  %v2175_v9 = vadd.f32 %v8742_v32, %v7716_v39 }
 0x5d6   : > { %v2167_v59 = vadd.f32 %v7716_v39, %v2166_v52  ;;  %2218 = vmax.xlane.f32.xlu0 %v2164_v18 }
 0x5d8   : > { %2220 = vmax.xlane.f32.xlu1 %v2167_v59 }
 0x5da   : > { %v8745_v5 = vpop.f32.mrb[72].mxu1  ;;  %2222 = vmax.xlane.f32.xlu0 %v2172_v27 }
 0x5db   : > { %v2179_v24 = vpop.f32.mrb[73].mxu1  ;;  %v11292_v2 = vadd.f32 %v8745_v5, %v7716_v39 }
 0x5dc   : > { %v2180_v34 = vadd.f32 %v7716_v39, %v2179_v24  ;;  %v8746_v29 = vpop.f32.mrb[74].mxu1  ;;  %2224 = vmax.xlane.f32.xlu1 %v2175_v9 }
 0x5dd   : > { %v2182_v28 = vpop.f32.mrb[75].mxu1  ;;  %v11295_v17 = vadd.f32 %v8746_v29, %v7716_v39 }
 0x5de   : > { %v11290_v37 = vadd.f32 %v7716_v39, %v2182_v28  ;;  %2226 = vmax.xlane.f32.xlu0 %v2180_v34 }
 0x5e0   : > { %2228 = vmax.xlane.f32.xlu1 %v11290_v37 }
 0x5e2   : > { %v8749_v63 = vpop.f32.mrb[76].mxu1  ;;  %2230 = vmax.xlane.f32.xlu0 %v11292_v2 }
 0x5e3   : > { %v2195_v25 = vpop.f32.mrb[77].mxu1  ;;  %v11304_v26 = vadd.f32 %v8749_v63, %v7716_v39 }
 0x5e4   : > { %v11298_v20 = vadd.f32 %v7716_v39, %v2195_v25  ;;  %v8750_v53 = vpop.f32.mrb[78].mxu1  ;;  %2232 = vmax.xlane.f32.xlu1 %v11295_v17 }
 0x5e5   : > { %v2198_v0 = vpop.f32.mrb[79].mxu1  ;;  %v11307_v15 = vadd.f32 %v8750_v53, %v7716_v39 }
 0x5e6   : > { %v11301_v35 = vadd.f32 %v7716_v39, %v2198_v0  ;;  %2234 = vmax.xlane.f32.xlu0 %v11298_v20 }
 0x5e8   : > { %2236 = vmax.xlane.f32.xlu1 %v11301_v35 }
 0x5ea   : > { %2238 = vmax.xlane.f32.xlu0 %v11304_v26 }
 0x5ec   : > { %2240 = vmax.xlane.f32.xlu1 %v11307_v15 }
 0x65a   : > { %v2215_v21 = vpop.xlane.xlu1 %2214 }
 0x65b   : > { %v2244_v30 = vsub.f32 %v2156_v10, %v2215_v21  ;;  %v2211_v38 = vpop.xlane.xlu0 %2210 }
 0x65c   : > { %v2242_v8 = vsub.f32 %v2148_v19, %v2211_v38 }
 0x65d   : > { %v2262_v61 = vmul.f32 1.442695, %v2244_v30 }
 0x65e   : > { %v2258_v54 = vmul.f32 1.442695, %v2242_v8  ;;  %v2217_v56 = vpop.xlane.xlu1 %2216 }
 0x65f   : > { %v2245_v22 = vsub.f32 %v2159_v62, %v2217_v56  ;;  %v2213_v33 = vpop.xlane.xlu0 %2212 }
 0x660   : > { %9594 = vpow2.f32 %v2258_v54  ;;  %v2243_v42 = vsub.f32 %v2151_v45, %v2213_v33 }
 0x661   : > { %9596 = vpow2.f32 %v2262_v61  ;;  %v2264_v43 = vmul.f32 1.442695, %v2245_v22 }
 0x662   : > { %v2260_v41 = vmul.f32 1.442695, %v2243_v42 }
 0x663   : > { %v2219_v51 = vpop.xlane.xlu0 %2218 }
 0x664   : > { %9598 = vpow2.f32 %v2260_v41  ;;  %v2246_v39 = vsub.f32 %v2164_v18, %v2219_v51 }
 0x665   : > { %v2221_v12 = vpop.xlane.xlu1 %2220  ;;  %9600 = vpow2.f32 %v2264_v43 }
 0x666   : > { %v2266_v47 = vmul.f32 1.442695, %v2246_v39  ;;  %v2247_v44 = vsub.f32 %v2167_v59, %v2221_v12 }
 0x667   : > { %v2223_v10 = vpop.xlane.xlu0 %2222 }
 0x668   : > { %9602 = vpow2.f32 %v2266_v47  ;;  %v2268_v19 = vmul.f32 1.442695, %v2247_v44  ;;  %v2248_v7 = vsub.f32 %v2172_v27, %v2223_v10 }
 0x669   : > { %v2225_v31 = vpop.xlane.xlu1 %2224 }
 0x66a   : > { %v11311_v40 = vpop.eup %9594  ;;  %v2270_v62 = vmul.f32 1.442695, %v2248_v7  ;;  %v2249_v32 = vsub.f32 %v2175_v9, %v2225_v31  ;;  %9604 = vpow2.f32 %v2268_v19 }
 0x66b   : > { %2290 = vadd.xlane.f32.xlu0 %v11311_v40  ;;  %v2227_v45 = vpop.xlane.xlu0 %2226  ;;  %v11314_v5 = vpop.eup %9596 }
 0x66c   : > { %9606 = vpow2.f32 %v2270_v62  ;;  %v2272_v52 = vmul.f32 1.442695, %v2249_v32  ;;  %v2250_v18 = vsub.f32 %v2180_v34, %v2227_v45 }
 0x66d   : > { %v2229_v59 = vpop.xlane.xlu1 %2228 }
 0x66e   : > { %v11316_v24 = vpop.eup %9598  ;;  %v2274_v29 = vmul.f32 1.442695, %v2250_v18  ;;  %v2251_v27 = vsub.f32 %v11290_v37, %v2229_v59  ;;  %9608 = vpow2.f32 %v2272_v52 }
 0x66f   : > { %2294 = vadd.xlane.f32.xlu0 %v11314_v5  ;;  %2292 = vadd.xlane.f32.xlu1 %v11316_v24  ;;  %v2231_v9 = vpop.xlane.xlu0 %2230  ;;  %v11322_v25 = vpop.eup %9600 }
 0x670   : > { %9610 = vpow2.f32 %v2274_v29  ;;  %v2276_v28 = vmul.f32 1.442695, %v2251_v27  ;;  %v2252_v63 = vsub.f32 %v11292_v2, %v2231_v9 }
 0x671   : > { %v2233_v34 = vpop.xlane.xlu1 %2232 }
 0x672   : > { %v11324_v53 = vpop.eup %9602  ;;  %v2278_v0 = vmul.f32 1.442695, %v2252_v63  ;;  %v2253_v21 = vsub.f32 %v11295_v17, %v2233_v34  ;;  %9612 = vpow2.f32 %v2276_v28 }
 0x673   : > { %2296 = vadd.xlane.f32.xlu1 %v11322_v25  ;;  %2298 = vadd.xlane.f32.xlu0 %v11324_v53  ;;  %v2235_v37 = vpop.xlane.xlu0 %2234 }
 0x674   : > { %9614 = vpow2.f32 %v2278_v0  ;;  %v2280_v30 = vmul.f32 1.442695, %v2253_v21  ;;  %v2254_v38 = vsub.f32 %v11298_v20, %v2235_v37  ;;  %v11330_v8 = vpop.eup %9604 }
 0x675   : > { %v2237_v2 = vpop.xlane.xlu1 %2236 }
 0x676   : > { %v11332_v54 = vpop.eup %9606  ;;  %v2282_v56 = vmul.f32 1.442695, %v2254_v38  ;;  %v2255_v61 = vsub.f32 %v11301_v35, %v2237_v2  ;;  %9616 = vpow2.f32 %v2280_v30 }
 0x677   : > { %2300 = vadd.xlane.f32.xlu1 %v11330_v8  ;;  %2302 = vadd.xlane.f32.xlu0 %v11332_v54  ;;  %v2239_v17 = vpop.xlane.xlu0 %2238 }
 0x678   : > { %9618 = vpow2.f32 %v2282_v56  ;;  %v2284_v22 = vmul.f32 1.442695, %v2255_v61  ;;  %v2256_v33 = vsub.f32 %v11304_v26, %v2239_v17  ;;  %v11338_v42 = vpop.eup %9608 }
 0x679   : > { %v2241_v20 = vpop.xlane.xlu1 %2240 }
 0x67a   : > { %v11340_v41 = vpop.eup %9610  ;;  %v2286_v43 = vmul.f32 1.442695, %v2256_v33  ;;  %v2257_v51 = vsub.f32 %v11307_v15, %v2241_v20  ;;  %9620 = vpow2.f32 %v2284_v22 }
 0x67b   : > { %2304 = vadd.xlane.f32.xlu1 %v11338_v42  ;;  %2306 = vadd.xlane.f32.xlu0 %v11340_v41 }
 0x67c   : > { %9622 = vpow2.f32 %v2286_v43  ;;  %v2288_v35 = vmul.f32 1.442695, %v2257_v51  ;;  %v11345_v39 = vpop.eup %9612 }
 0x67e   : > { %v11347_v12 = vpop.eup %9614  ;;  %9624 = vpow2.f32 %v2288_v35 }
 0x67f   : > { %2308 = vadd.xlane.f32.xlu1 %v11345_v39  ;;  %2310 = vadd.xlane.f32.xlu0 %v11347_v12 }
 0x680   : > { %v11351_v26 = vpop.eup %9616 }
 0x682   : > { %v11353_v47 = vpop.eup %9618 }
 0x683   : > { %2312 = vadd.xlane.f32.xlu1 %v11351_v26  ;;  %2314 = vadd.xlane.f32.xlu0 %v11353_v47 }
 0x684   : > { %v11357_v15 = vpop.eup %9620 }
 0x686   : > { %v11359_v44 = vpop.eup %9622 }
 0x687   : > { %2316 = vadd.xlane.f32.xlu1 %v11357_v15  ;;  %2318 = vadd.xlane.f32.xlu0 %v11359_v44 }
 0x688   : > { %v11363_v10 = vpop.eup %9624 }
 0x68b   : > { %2320 = vadd.xlane.f32.xlu1 %v11363_v10 }
 0x6f8   : > { %v2291_v19 = vpop.xlane.xlu0 %2290 }
 0x6f9   : > { %9626 = vrcp.f32 %v2291_v19 }
 0x6fc   : > { %v2293_v7 = vpop.xlane.xlu1 %2292  ;;  %v2295_v31 = vpop.xlane.xlu0 %2294 }
 0x6fd   : > { %9628 = vrcp.f32 %v2293_v7 }
 0x6fe   : > { %9630 = vrcp.f32 %v2295_v31 }
 0x700   : > { %v2297_v62 = vpop.xlane.xlu1 %2296  ;;  %v2299_v32 = vpop.xlane.xlu0 %2298 }
 0x701   : > { %9632 = vrcp.f32 %v2297_v62 }
 0x702   : > { %9634 = vrcp.f32 %v2299_v32 }
 0x703   : > { %v9627_v45 = vpop.eup %9626 }
 0x704   : > { %v2338_v52 = vmul.f32 %v9627_v45, %v2291_v19  ;;  %v2301_v18 = vpop.xlane.xlu1 %2300  ;;  %v2303_v59 = vpop.xlane.xlu0 %2302 }
 0x705   : > { %9636 = vrcp.f32 %v2301_v18 }
 0x706   : > { %v2354_v29 = vsub.f32 2.0, %v2338_v52  ;;  %9638 = vrcp.f32 %v2303_v59 }
 0x707   : > { %v9629_v27 = vpop.eup %9628 }
 0x708   : > { %v9631_v9 = vpop.eup %9630  ;;  %v2370_v28 = vmul.f32 %v9627_v45, %v2354_v29  ;;  %v2339_v63 = vmul.f32 %v9629_v27, %v2293_v7  ;;  %v2305_v34 = vpop.xlane.xlu1 %2304 }
 0x709   : > { %v2307_v0 = vpop.xlane.xlu0 %2306  ;;  %v2340_v21 = vmul.f32 %v9631_v9, %v2295_v31  ;;  %9640 = vrcp.f32 %v2305_v34 }
 0x70a   : > { %v2355_v37 = vsub.f32 2.0, %v2339_v63  ;;  %9642 = vrcp.f32 %v2307_v0  ;;  %v11367_v56 = vmul.f32 %v11311_v40, %v2370_v28 }
 0x70b   : > { %v9633_v30 = vpop.eup %9632  ;;  %v2356_v38 = vsub.f32 2.0, %v2340_v21 }
 0x70c   : > { %v9635_v2 = vpop.eup %9634  ;;  %v2371_v61 = vmul.f32 %v9629_v27, %v2355_v37  ;;  %v2341_v17 = vmul.f32 %v9633_v30, %v2297_v62  ;;  %v2309_v22 = vpop.xlane.xlu1 %2308 }
 0x70d   : > { %v2311_v33 = vpop.xlane.xlu0 %2310  ;;  %v2372_v20 = vmul.f32 %v9631_v9, %v2356_v38  ;;  %v2342_v43 = vmul.f32 %v9635_v2, %v2299_v32  ;;  %9644 = vrcp.f32 %v2309_v22  ;;  %v2418_v32 = vmul.f32 %v11367_v56, %v10505_v48 }
 0x70e   : > { %v11370_v51 = vmul.f32 %v11316_v24, %v2371_v61  ;;  %v2357_v35 = vsub.f32 2.0, %v2341_v17  ;;  %9646 = vrcp.f32 %v2311_v33 }
 0x70f   : > { %v9637_v19 = vpop.eup %9636  ;;  %v11373_v7 = vmul.f32 %v11314_v5, %v2372_v20  ;;  %v2358_v31 = vsub.f32 2.0, %v2342_v43 }
 0x710   : > { %v9639_v45 = vpop.eup %9638  ;;  %v2373_v40 = vmul.f32 %v9633_v30, %v2357_v35  ;;  %v2343_v52 = vmul.f32 %v9637_v19, %v2301_v18  ;;  %v2313_v29 = vpop.xlane.xlu1 %2312  ;;  %v2419_v24 = vmul.f32 %v11370_v51, %v10507_v49 }
 0x711   : > { %v11375_v62 = vpop.xlane.xlu0 %2314  ;;  %v2374_v27 = vmul.f32 %v9635_v2, %v2358_v31  ;;  %v2344_v9 = vmul.f32 %v9639_v45, %v2303_v59  ;;  %9648 = vrcp.f32 %v2313_v29  ;;  %v2420_v21 = vmul.f32 %v11373_v7, %v10509_v50 }
 0x712   : > { %v11382_v28 = vmul.f32 %v11322_v25, %v2373_v40  ;;  %v2359_v5 = vsub.f32 2.0, %v2343_v52  ;;  %9650 = vrcp.f32 %v11375_v62  ;;  %v2434_v63 = vpack.c.bf16 %v2419_v24, %v2418_v32 }
 0x713   : > { %v9641_v18 = vpop.eup %9640  ;;  %v11388_v37 = vmul.f32 %v11324_v53, %v2374_v27  ;;  %v2360_v30 = vsub.f32 2.0, %v2344_v9 }
 0x714   : > { %v9643_v38 = vpop.eup %9642  ;;  %v2421_v59 = vmul.f32 %v11382_v28, %v10503_v46  ;;  %v2375_v2 = vmul.f32 %v9637_v19, %v2359_v5  ;;  %v2345_v61 = vmul.f32 %v9641_v18, %v2305_v34  ;;  %v2317_v25 = vpop.xlane.xlu1 %2316  ;;  %8767 = vmatprep.mubr.bf16.mxu0 %v2434_v63  ;;  %8799 = vmatprep.mubr.bf16.mxu1 %v2434_v63 }
 0x715   : > { %14334 = vst [vmem:[#allocation21_spill] sm:$0xff] %v11388_v37  ;;  %v2319_v17 = vpop.xlane.xlu0 %2318  ;;  %v2376_v20 = vmul.f32 %v9639_v45, %v2360_v30  ;;  %v2346_v43 = vmul.f32 %v9643_v38, %v2307_v0  ;;  %9652 = vrcp.f32 %v2317_v25  ;;  %v2422_v34 = vmul.f32 %v11388_v37, %v10515_v55 }
 0x716   : > { %v2435_v35 = vpack.c.bf16 %v2421_v59, %v2420_v21  ;;  %v11393_v31 = vmul.f32 %v11330_v8, %v2375_v2  ;;  %v2361_v53 = vsub.f32 2.0, %v2345_v61  ;;  %9654 = vrcp.f32 %v2319_v17 }
 0x717   : > { %v9645_v40 = vpop.eup %9644  ;;  %v11396_v52 = vmul.f32 %v11332_v54, %v2376_v20  ;;  %v2362_v32 = vsub.f32 2.0, %v2346_v43 }
 0x718   : > { %14335 = vst [vmem:[#allocation22_spill] sm:$0xff] %v11393_v31  ;;  %v9647_v19 = vpop.eup %9646  ;;  %v2377_v24 = vmul.f32 %v9641_v18, %v2361_v53  ;;  %v2347_v27 = vmul.f32 %v9645_v40, %v2309_v22  ;;  %v2321_v45 = vpop.xlane.xlu1 %2320  ;;  %8768 = vmatmul.mubr.bf16.vlgmr.msra.gmra.mrb[80].mxu0 %v2435_v35  ;;  %8800 = vmatmul.mubr.bf16.vlgmr.msra.gmra.mrb[80].mxu1 %v2435_v35  ;;  %v10188_v22 = vld [vmem:[%s14236_s5 + $0x18] sm:$0xff]   ;;  %v10189_v18 = vld [vmem:[%s14236_s5 + $0x8] sm:$0xff]  }
 0x719   : > { %14336 = vst [vmem:[#allocation23_spill] sm:$0xff] %v11396_v52  ;;  %v2423_v8 = vmul.f32 %v11393_v31, %v10521_v60  ;;  %v2378_v0 = vmul.f32 %v9643_v38, %v2362_v32  ;;  %v2348_v9 = vmul.f32 %v9647_v19, %v2311_v33  ;;  %9656 = vrcp.f32 %v2321_v45  ;;  %8836 = vmatpush3.bf16.msra.mxu1 %v11284_v36 }
 0x71a   : > { %8816 = vmatpush3.bf16.msra.mxu0 %v11114_v23  ;;  %v11405_v54 = vmul.f32 %v11338_v42, %v2377_v24  ;;  %v2363_v5 = vsub.f32 2.0, %v2347_v27  ;;  %8837 = vmatprep.subr.bf16.mxu1 %v10188_v22  ;;  %v2424_v42 = vmul.f32 %v11396_v52, %v10517_v57 }
 0x71b   : > { %v2436_v63 = vpack.c.bf16 %v2423_v8, %v2422_v34  ;;  %8817 = vmatprep.subr.bf16.mxu0 %v10189_v18  ;;  %v9649_v33 = vpop.eup %9648  ;;  %v11414_v36 = vmul.f32 %v11340_v41, %v2378_v0  ;;  %v2364_v23 = vsub.f32 2.0, %v2348_v9 }
 0x71c   : > { %14337 = vst [vmem:[#allocation24_spill] sm:$0xff] %v11405_v54  ;;  %v9651_v21 = vpop.eup %9650  ;;  %v2379_v30 = vmul.f32 %v9645_v40, %v2363_v5  ;;  %v2349_v38 = vmul.f32 %v9649_v33, %v2313_v29  ;;  %v2425_v59 = vmul.f32 %v11405_v54, %v10519_v58 }
 0x71d   : > { %14338 = vst [vmem:[#allocation25_spill] sm:$0xff] %v11414_v36  ;;  %8771 = vmatprep.mubr.bf16.mxu0 %v2436_v63  ;;  %8803 = vmatprep.mubr.bf16.mxu1 %v2436_v63  ;;  %v2380_v2 = vmul.f32 %v9647_v19, %v2364_v23  ;;  %v2350_v61 = vmul.f32 %v9651_v21, %v11375_v62 }
 0x71e   : > { %8838 = vmatpush3.bf16.msra.mxu1 %v10188_v22  ;;  %8818 = vmatpush3.bf16.msra.mxu0 %v10189_v18  ;;  %v11422_v41 = vmul.f32 %v11345_v39, %v2379_v30  ;;  %v2365_v20 = vsub.f32 2.0, %v2349_v38  ;;  %v2437_v43 = vpack.c.bf16 %v2425_v59, %v2424_v42  ;;  %v2426_v40 = vmul.f32 %v11414_v36, %v10527_v1 }
 0x71f   : > { %v9653_v35 = vpop.eup %9652  ;;  %v11425_v53 = vmul.f32 %v11347_v12, %v2380_v2  ;;  %v2366_v29 = vsub.f32 2.0, %v2350_v61 }
 0x720   : > { %14339 = vst [vmem:[#allocation26_spill] sm:$0xff] %v11422_v41  ;;  %v9655_v32 = vpop.eup %9654  ;;  %v2381_v34 = vmul.f32 %v9649_v33, %v2365_v20  ;;  %v2351_v19 = vmul.f32 %v9653_v35, %v2317_v25  ;;  %8772 = vmatmul.mubr.bf16.gmra.mrb[84].mxu0 %v2437_v43  ;;  %8804 = vmatmul.mubr.bf16.gmra.mrb[84].mxu1 %v2437_v43 }
 0x721   : > { %14340 = vst [vmem:[#allocation27_spill] sm:$0xff] %v11425_v53  ;;  %v2427_v62 = vmul.f32 %v11422_v41, %v10533_v6  ;;  %v2382_v39 = vmul.f32 %v9651_v21, %v2366_v29  ;;  %v2352_v24 = vmul.f32 %v9655_v32, %v2319_v17  ;;  %v2428_v25 = vmul.f32 %v11425_v53, %v10529_v3 }
 0x722   : > { %v11432_v27 = vmul.f32 %v11351_v26, %v2381_v34  ;;  %v2367_v8 = vsub.f32 2.0, %v2351_v19 }
 0x723   : > { %v2438_v12 = vpack.c.bf16 %v2427_v62, %v2426_v40  ;;  %v9657_v0 = vpop.eup %9656  ;;  %v11435_v9 = vmul.f32 %v11353_v47, %v2382_v39  ;;  %v2368_v5 = vsub.f32 2.0, %v2352_v24 }
 0x724   : > { %14341 = vst [vmem:[#allocation28_spill] sm:$0xff] %v11432_v27  ;;  %v2383_v63 = vmul.f32 %v9653_v35, %v2367_v8  ;;  %v2353_v22 = vmul.f32 %v9657_v0, %v2321_v45  ;;  %v2429_v17 = vmul.f32 %v11432_v27, %v10531_v4 }
 0x725   : > { %14342 = vst [vmem:[#allocation29_spill] sm:$0xff] %v11435_v9  ;;  %8775 = vmatprep.mubr.bf16.mxu0 %v2438_v12  ;;  %8807 = vmatprep.mubr.bf16.mxu1 %v2438_v12  ;;  %v2384_v18 = vmul.f32 %v9655_v32, %v2368_v5  ;;  %v2430_v47 = vmul.f32 %v11435_v9, %v10539_v11  ;;  %v11469_v32 = vld [vmem:[%s14235_s4 + $0x1] ss:$0 sm:$0xff] }
 0x726   : > { %v11442_v26 = vmul.f32 %v11357_v15, %v2383_v63  ;;  %v2369_v33 = vsub.f32 2.0, %v2353_v22  ;;  %v2439_v23 = vpack.c.bf16 %v2429_v17, %v2428_v25 }
 0x727   : > { %v11447_v42 = vmul.f32 %v11359_v44, %v2384_v18 }
 0x728   : > { %14343 = vst [vmem:[#allocation30_spill] sm:$0xff] %v11442_v26  ;;  %v2385_v21 = vmul.f32 %v9657_v0, %v2369_v33  ;;  %8776 = vmatmul.mubr.bf16.gmra.mrb[88].mxu0 %v2439_v23  ;;  %8808 = vmatmul.mubr.bf16.gmra.mrb[88].mxu1 %v2439_v23  ;;  %v2431_v45 = vmul.f32 %v11442_v26, %v10545_v16 }
 0x729   : > { %14344 = vst [vmem:[#allocation31_spill] sm:$0xff] %v11447_v42  ;;  %v2432_v15 = vmul.f32 %v11447_v42, %v10541_v13 }
 0x72a   : > { %v11452_v30 = vmul.f32 %v11363_v10, %v2385_v21  ;;  %v2440_v38 = vpack.c.bf16 %v2431_v45, %v2430_v47  ;;  %v11461_v10 = vld [vmem:[%s14235_s4] ss:$0 sm:$0xff] }
 0x72c   : > { %14345 = vst [vmem:[#allocation32_spill] sm:$0xff] %v11452_v30  ;;  %8779 = vmatprep.mubr.bf16.mxu0 %v2440_v38  ;;  %8811 = vmatprep.mubr.bf16.mxu1 %v2440_v38  ;;  %v2433_v59 = vmul.f32 %v11452_v30, %v10543_v14 }
 0x72e   : > { %v2441_v44 = vpack.c.bf16 %v2433_v59, %v2432_v15 }
 0x730   : > { %8780 = vmatmul.mubr.bf16.gmra.mrb[92].mxu0 %v2441_v44  ;;  %8812 = vmatmul.mubr.bf16.gmra.mrb[92].mxu1 %v2441_v44 }
 0x7eb   : > { %v8769_v2 = vpop.f32.mrb[80].mxu0  ;;  %v8801_v61 = vpop.f32.mrb[80].mxu1 }
 0x7ec   : > { %v2476_v20 = vpop.f32.mrb[81].mxu0  ;;  %v2581_v43 = vpop.f32.mrb[81].mxu1  ;;  %v11464_v40 = vadd.f32 %v11461_v10, %v8769_v2  ;;  %v2590_v34 = vadd.f32 %v11469_v32, %v8801_v61 }
 0x7ed   : > { %v8770_v35 = vpop.f32.mrb[82].mxu0  ;;  %v8802_v29 = vpop.f32.mrb[82].mxu1  ;;  %v11477_v8 = vadd.f32 %v11461_v10, %v2476_v20  ;;  %v2582_v12 = vadd.f32 %v11469_v32, %v2581_v43 }
 0x7ee   : > { %v11473_v19 = vadd.f32 %v11461_v10, %v8770_v35  ;;  %v2593_v62 = vadd.f32 %v11469_v32, %v8802_v29  ;;  %v2479_v39 = vpop.f32.mrb[83].mxu0  ;;  %v2584_v24 = vpop.f32.mrb[83].mxu1 }
 0x7ef   : > { %v11481_v0 = vadd.f32 %v11461_v10, %v2479_v39  ;;  %v2585_v5 = vadd.f32 %v11469_v32, %v2584_v24 }
 0x7f0   : > { %v2645_v63 = vpack.c.bf16 %v2593_v62, %v2590_v34 }
 0x7f1   : > { %v2644_v17 = vpack.c.bf16 %v2585_v5, %v2582_v12 }
 0x7f2   : > { %v7728_v18 = vmul.bf16 3216621497, %v2645_v63 }
 0x7f3   : > { %v7727_v33 = vmul.bf16 3216621497, %v2644_v17  ;;  %v8773_v23 = vpop.f32.mrb[84].mxu0  ;;  %v8805_v47 = vpop.f32.mrb[84].mxu1 }
 0x7f4   : > { %9658 = vpow.bf16 %v7728_v18  ;;  %v2492_v21 = vpop.f32.mrb[85].mxu0  ;;  %v2597_v45 = vpop.f32.mrb[85].mxu1  ;;  %v11489_v59 = vadd.f32 %v11461_v10, %v8773_v23  ;;  %v2606_v44 = vadd.f32 %v11469_v32, %v8805_v47 }
 0x7f5   : > { %9660 = vpow.bf16 %v7727_v33  ;;  %v8774_v38 = vpop.f32.mrb[86].mxu0  ;;  %v8806_v15 = vpop.f32.mrb[86].mxu1  ;;  %v11497_v35 = vadd.f32 %v11461_v10, %v2492_v21  ;;  %v2598_v29 = vadd.f32 %v11469_v32, %v2597_v45 }
 0x7f6   : > { %v11493_v2 = vadd.f32 %v11461_v10, %v8774_v38  ;;  %v2609_v61 = vadd.f32 %v11469_v32, %v8806_v15  ;;  %v2495_v20 = vpop.f32.mrb[87].mxu0  ;;  %v2600_v43 = vpop.f32.mrb[87].mxu1 }
 0x7f7   : > { %v11501_v34 = vadd.f32 %v11461_v10, %v2495_v20  ;;  %v2601_v62 = vadd.f32 %v11469_v32, %v2600_v43 }
 0x7f8   : > { %v2647_v24 = vpack.c.bf16 %v2609_v61, %v2606_v44 }
 0x7f9   : > { %v2646_v5 = vpack.c.bf16 %v2601_v62, %v2598_v29 }
 0x7fa   : > { %v7730_v63 = vmul.bf16 3216621497, %v2647_v24 }
 0x7fb   : > { %v7729_v17 = vmul.bf16 3216621497, %v2646_v5  ;;  %v8777_v18 = vpop.f32.mrb[88].mxu0  ;;  %v8809_v33 = vpop.f32.mrb[88].mxu1 }
 0x7fc   : > { %9662 = vpow.bf16 %v7730_v63  ;;  %v2508_v23 = vpop.f32.mrb[89].mxu0  ;;  %v2613_v47 = vpop.f32.mrb[89].mxu1  ;;  %v11509_v38 = vadd.f32 %v11461_v10, %v8777_v18  ;;  %v2622_v15 = vadd.f32 %v11469_v32, %v8809_v33 }
 0x7fd   : > { %9664 = vpow.bf16 %v7729_v17  ;;  %v8778_v21 = vpop.f32.mrb[90].mxu0  ;;  %v8810_v45 = vpop.f32.mrb[90].mxu1  ;;  %v11517_v62 = vadd.f32 %v11461_v10, %v2508_v23  ;;  %v2614_v24 = vadd.f32 %v11469_v32, %v2613_v47 }
 0x7fe   : > { %v11513_v44 = vadd.f32 %v11461_v10, %v8778_v21  ;;  %v2625_v61 = vadd.f32 %v11469_v32, %v8810_v45  ;;  %v2511_v20 = vpop.f32.mrb[91].mxu0  ;;  %v2616_v43 = vpop.f32.mrb[91].mxu1 }
 0x7ff   : > { %v9659_v29 = vpop.eup %9658  ;;  %v11521_v5 = vadd.f32 %v11461_v10, %v2511_v20  ;;  %v2617_v63 = vadd.f32 %v11469_v32, %v2616_v43 }
 0x800   : > { %v9661_v17 = vpop.eup %9660  ;;  %v2685_v18 = vadd.bf16 1065369472, %v9659_v29  ;;  %v2649_v21 = vpack.c.bf16 %v2625_v61, %v2622_v15 }
 0x801   : > { %v2684_v45 = vadd.bf16 1065369472, %v9661_v17  ;;  %v2648_v39 = vpack.c.bf16 %v2617_v63, %v2614_v24 }
 0x802   : > { %9666 = vrcp.bf16 %v2685_v18  ;;  %v7732_v23 = vmul.bf16 3216621497, %v2649_v21 }
 0x803   : > { %9668 = vrcp.bf16 %v2684_v45  ;;  %v7731_v47 = vmul.bf16 3216621497, %v2648_v39  ;;  %v8781_v22 = vpop.f32.mrb[92].mxu0  ;;  %v8813_v20 = vpop.f32.mrb[92].mxu1 }
 0x804   : > { %9670 = vpow.bf16 %v7732_v23  ;;  %v2524_v25 = vpop.f32.mrb[93].mxu0  ;;  %v2629_v43 = vpop.f32.mrb[93].mxu1  ;;  %v11529_v33 = vadd.f32 %v11461_v10, %v8781_v22  ;;  %v2638_v15 = vadd.f32 %v11469_v32, %v8813_v20 }
 0x805   : > { %9672 = vpow.bf16 %v7731_v47  ;;  %v8782_v29 = vpop.f32.mrb[94].mxu0  ;;  %v8814_v14 = vpop.f32.mrb[94].mxu1  ;;  %v11537_v18 = vadd.f32 %v11461_v10, %v2524_v25  ;;  %v2630_v21 = vadd.f32 %v11469_v32, %v2629_v43 }
 0x806   : > { %v11533_v61 = vadd.f32 %v11461_v10, %v8782_v29  ;;  %v2641_v24 = vadd.f32 %v11469_v32, %v8814_v14  ;;  %v2527_v63 = vpop.f32.mrb[95].mxu0  ;;  %v2632_v39 = vpop.f32.mrb[95].mxu1 }
 0x807   : > { %v9663_v17 = vpop.eup %9662  ;;  %v11541_v45 = vadd.f32 %v11461_v10, %v2527_v63  ;;  %v2633_v22 = vadd.f32 %v11469_v32, %v2632_v39 }
 0x808   : > { %v9665_v23 = vpop.eup %9664  ;;  %v2687_v47 = vadd.bf16 1065369472, %v9663_v17  ;;  %v2546_v20 = vpack.c.bf16 %v11533_v61, %v11529_v33  ;;  %v2651_v29 = vpack.c.bf16 %v2641_v24, %v2638_v15  ;;  %v14346_v33 = vpack.c.bf16 %v11473_v19, %v11464_v40 }
 0x809   : > { %v2686_v14 = vadd.bf16 1065369472, %v9665_v23  ;;  %v2545_v12 = vpack.c.bf16 %v11541_v45, %v11537_v18  ;;  %v2650_v13 = vpack.c.bf16 %v2633_v22, %v2630_v21  ;;  %v14347_v18 = vpack.c.bf16 %v11481_v0, %v11477_v8 }
 0x80a   : > { %9674 = vrcp.bf16 %v2687_v47  ;;  %v7734_v25 = vmul.bf16 3216621497, %v2651_v29  ;;  %v14348_v22 = vpack.c.bf16 %v11493_v2, %v11489_v59  ;;  %v14349_v29 = vpack.c.bf16 %v11501_v34, %v11497_v35 }
 0x80b   : > { %9676 = vrcp.bf16 %v2686_v14  ;;  %v7733_v43 = vmul.bf16 3216621497, %v2650_v13  ;;  %v14350_v34 = vpack.c.bf16 %v11513_v44, %v11509_v38 }
 0x80c   : > { %9678 = vpow.bf16 %v7734_v25 }
 0x80d   : > { %v9667_v10 = vpop.eup %9666  ;;  %9680 = vpow.bf16 %v7733_v43 }
 0x80e   : > { %v9669_v63 = vpop.eup %9668  ;;  %v2695_v32 = vmul.bf16 1065369472, %v9667_v10  ;;  %v14351_v10 = vpack.c.bf16 %v11521_v5, %v11517_v62  ;;  %v9436_v5 = vld [vmem:[%s14236_s5 + $0x70] sm:$0xff]  }
 0x80f   : > { %v9671_v39 = vpop.eup %9670  ;;  %v2693_v17 = vmul.bf16 1065369472, %v9669_v63  ;;  %8875 = vmatprep.subr.bf16.mxu1 %v9436_v5 }
 0x810   : > { %v9673_v16 = vpop.eup %9672  ;;  %v11551_v15 = vmul.bf16 %v2695_v32, %v14346_v33  ;;  %v2689_v61 = vadd.bf16 1065369472, %v9671_v39  ;;  %v9439_v33 = vld [vmem:[%s14236_s5 + $0x68] sm:$0xff]  }
 0x811   : > { %v2688_v24 = vadd.bf16 1065369472, %v9673_v16  ;;  %v11556_v21 = vmul.bf16 %v2693_v17, %v14347_v18 }
 0x812   : > { %9682 = vrcp.bf16 %v2689_v61 }
 0x813   : > { %9684 = vrcp.bf16 %v2688_v24  ;;  %8819 = vmatprep.mubr.msk.bf16.mxu0 %vm1003_vm2, %v11556_v21  ;;  %8839 = vmatprep.mubr.msk.bf16.mxu1 %vm1003_vm2, %v11556_v21 }
 0x814   : > { %8820 = vmatmul.mubr.msk.bf16.vlgmr.msra.gmra.mrb[96].mxu0 %vm1003_vm2, %v11551_v15  ;;  %8840 = vmatmul.mubr.msk.bf16.vlgmr.msra.gmra.mrb[96].mxu1 %vm1003_vm2, %v11551_v15 }
 0x815   : > { %v9675_v13 = vpop.eup %9674  ;;  %8876 = vmatpush3.bf16.msra.mxu1 %v9436_v5 }
 0x816   : > { %v9677_v16 = vpop.eup %9676  ;;  %v2699_v40 = vmul.bf16 1065369472, %v9675_v13 }
 0x817   : > { %v9679_v19 = vpop.eup %9678  ;;  %v2697_v8 = vmul.bf16 1065369472, %v9677_v16 }
 0x818   : > { %v9681_v0 = vpop.eup %9680  ;;  %v2691_v45 = vadd.bf16 1065369472, %v9679_v19  ;;  %v11569_v23 = vmul.bf16 %v2699_v40, %v14348_v22  ;;  %v11629_v19 = vld [vmem:[%s14237_s6] ss:$0 sm:$0xff] }
 0x819   : > { %v2690_v47 = vadd.bf16 1065369472, %v9681_v0  ;;  %v11574_v14 = vmul.bf16 %v2697_v8, %v14349_v29  ;;  %v11637_v0 = vld [vmem:[%s14237_s6 + $0x1] ss:$0 sm:$0xff] }
 0x81a   : > { %9686 = vrcp.bf16 %v2691_v45 }
 0x81b   : > { %9688 = vrcp.bf16 %v2690_v47  ;;  %8823 = vmatprep.mubr.msk.bf16.mxu0 %vm1003_vm2, %v11574_v14  ;;  %8843 = vmatprep.mubr.msk.bf16.mxu1 %vm1003_vm2, %v11574_v14 }
 0x81c   : > { %8824 = vmatmul.mubr.msk.bf16.gmra.mrb[100].mxu0 %vm1003_vm2, %v11569_v23  ;;  %8844 = vmatmul.mubr.msk.bf16.gmra.mrb[100].mxu1 %vm1003_vm2, %v11569_v23 }
 0x81d   : > { %v9683_v59 = vpop.eup %9682 }
 0x81e   : > { %v9685_v2 = vpop.eup %9684  ;;  %v2703_v25 = vmul.bf16 1065369472, %v9683_v59 }
 0x81f   : > { %v2701_v35 = vmul.bf16 1065369472, %v9685_v2 }
 0x820   : > { %v11587_v43 = vmul.bf16 %v2703_v25, %v14350_v34 }
 0x821   : > { %v11592_v63 = vmul.bf16 %v2701_v35, %v14351_v10 }
 0x823   : > { %8827 = vmatprep.mubr.msk.bf16.mxu0 %vm1003_vm2, %v11592_v63  ;;  %8847 = vmatprep.mubr.msk.bf16.mxu1 %vm1003_vm2, %v11592_v63 }
 0x824   : > { %8828 = vmatmul.mubr.msk.bf16.gmra.mrb[104].mxu0 %vm1003_vm2, %v11587_v43  ;;  %8848 = vmatmul.mubr.msk.bf16.gmra.mrb[104].mxu1 %vm1003_vm2, %v11587_v43 }
 0x825   : > { %v9687_v38 = vpop.eup %9686 }
 0x826   : > { %v9689_v44 = vpop.eup %9688  ;;  %v2707_v32 = vmul.bf16 1065369472, %v9687_v38 }
 0x827   : > { %v2705_v39 = vmul.bf16 1065369472, %v9689_v44 }
 0x828   : > { %v11602_v17 = vmul.bf16 %v2707_v32, %v2546_v20  ;;  %v9437_v20 = vld [vmem:[%s14236_s5 + $0x78] sm:$0xff]  }
 0x829   : > { %v11604_v62 = vmul.bf16 %v2705_v39, %v2545_v12  ;;  %v9438_v12 = vld [vmem:[%s14236_s5 + $0x60] sm:$0xff]   ;;  %8877 = vmatprep.subr.bf16.mxu1 %v9437_v20 }
 0x82a   : > { %8855 = vmatprep.subr.bf16.mxu0 %v9438_v12  ;;  %8878 = vmatpush3.bf16.msra.mxu1 %v9437_v20 }
 0x82b   : > { %8831 = vmatprep.mubr.msk.bf16.mxu0 %vm1003_vm2, %v11604_v62  ;;  %8851 = vmatprep.mubr.msk.bf16.mxu1 %vm1003_vm2, %v11604_v62 }
 0x82c   : > { %8832 = vmatmul.mubr.msk.bf16.gmra.mrb[108].mxu0 %vm1003_vm2, %v11602_v17  ;;  %8852 = vmatmul.mubr.msk.bf16.gmra.mrb[108].mxu1 %vm1003_vm2, %v11602_v17 }
 0x82d   : > { %8856 = vmatpush3.bf16.msra.mxu0 %v9438_v12 }
 0x82e   : > { %8857 = vmatprep.subr.bf16.mxu0 %v9439_v33 }
 0x831   : > { %8858 = vmatpush3.bf16.msra.mxu0 %v9439_v33 }
 0x8e7   : > { %v8821_v61 = vpop.f32.mrb[96].mxu0  ;;  %v8841_v24 = vpop.f32.mrb[96].mxu1 }
 0x8e8   : > { %v2774_v18 = vpop.f32.mrb[97].mxu0  ;;  %v2879_v13 = vpop.f32.mrb[97].mxu1  ;;  %v11632_v8 = vadd.f32 %v11629_v19, %v8821_v61  ;;  %v2888_v45 = vadd.f32 %v11637_v0, %v8841_v24 }
 0x8e9   : > { %v8822_v16 = vpop.f32.mrb[98].mxu0  ;;  %v8842_v40 = vpop.f32.mrb[98].mxu1  ;;  %v11645_v2 = vadd.f32 %v11629_v19, %v2774_v18  ;;  %v2880_v25 = vadd.f32 %v11637_v0, %v2879_v13 }
 0x8ea   : > { %v11641_v22 = vadd.f32 %v11629_v19, %v8822_v16  ;;  %v2891_v47 = vadd.f32 %v11637_v0, %v8842_v40  ;;  %v2777_v29 = vpop.f32.mrb[99].mxu0  ;;  %v2882_v59 = vpop.f32.mrb[99].mxu1 }
 0x8eb   : > { %v11649_v35 = vadd.f32 %v11629_v19, %v2777_v29  ;;  %v2883_v34 = vadd.f32 %v11637_v0, %v2882_v59 }
 0x8ec   : > { %v2943_v38 = vpack.c.bf16 %v2891_v47, %v2888_v45 }
 0x8ed   : > { %v2942_v32 = vpack.c.bf16 %v2883_v34, %v2880_v25 }
 0x8ee   : > { %v7752_v39 = vmul.bf16 3216621497, %v2943_v38 }
 0x8ef   : > { %v7751_v5 = vmul.bf16 3216621497, %v2942_v32  ;;  %v8825_v12 = vpop.f32.mrb[100].mxu0  ;;  %v8845_v20 = vpop.f32.mrb[100].mxu1 }
 0x8f0   : > { %9690 = vpow.bf16 %v7752_v39  ;;  %v2790_v33 = vpop.f32.mrb[101].mxu0  ;;  %v2895_v61 = vpop.f32.mrb[101].mxu1  ;;  %v11657_v13 = vadd.f32 %v11629_v19, %v8825_v12  ;;  %v2904_v16 = vadd.f32 %v11637_v0, %v8845_v20 }
 0x8f1   : > { %9692 = vpow.bf16 %v7751_v5  ;;  %v8826_v24 = vpop.f32.mrb[102].mxu0  ;;  %v8846_v18 = vpop.f32.mrb[102].mxu1  ;;  %v11665_v59 = vadd.f32 %v11629_v19, %v2790_v33  ;;  %v2896_v25 = vadd.f32 %v11637_v0, %v2895_v61 }
 0x8f2   : > { %v11661_v40 = vadd.f32 %v11629_v19, %v8826_v24  ;;  %v2907_v45 = vadd.f32 %v11637_v0, %v8846_v18  ;;  %v2793_v47 = vpop.f32.mrb[103].mxu0  ;;  %v2898_v29 = vpop.f32.mrb[103].mxu1 }
 0x8f3   : > { %v11669_v34 = vadd.f32 %v11629_v19, %v2793_v47  ;;  %v2899_v38 = vadd.f32 %v11637_v0, %v2898_v29 }
 0x8f4   : > { %v2945_v39 = vpack.c.bf16 %v2907_v45, %v2904_v16 }
 0x8f5   : > { %v2944_v12 = vpack.c.bf16 %v2899_v38, %v2896_v25 }
 0x8f6   : > { %v7754_v20 = vmul.bf16 3216621497, %v2945_v39 }
 0x8f7   : > { %v7753_v24 = vmul.bf16 3216621497, %v2944_v12  ;;  %v8829_v18 = vpop.f32.mrb[104].mxu0  ;;  %v8849_v33 = vpop.f32.mrb[104].mxu1 }
 0x8f8   : > { %9694 = vpow.bf16 %v7754_v20  ;;  %v2806_v44 = vpop.f32.mrb[105].mxu0  ;;  %v2911_v61 = vpop.f32.mrb[105].mxu1  ;;  %v11677_v29 = vadd.f32 %v11629_v19, %v8829_v18  ;;  %v2920_v32 = vadd.f32 %v11637_v0, %v8849_v33 }
 0x8f9   : > { %9696 = vpow.bf16 %v7753_v24  ;;  %v8830_v47 = vpop.f32.mrb[106].mxu0  ;;  %v8850_v10 = vpop.f32.mrb[106].mxu1  ;;  %v11685_v12 = vadd.f32 %v11629_v19, %v2806_v44  ;;  %v2912_v20 = vadd.f32 %v11637_v0, %v2911_v61 }
 0x8fa   : > { %v11681_v16 = vadd.f32 %v11629_v19, %v8830_v47  ;;  %v2923_v45 = vadd.f32 %v11637_v0, %v8850_v10  ;;  %v2809_v25 = vpop.f32.mrb[107].mxu0  ;;  %v2914_v38 = vpop.f32.mrb[107].mxu1 }
 0x8fb   : > { %v9691_v39 = vpop.eup %9690  ;;  %v11689_v24 = vadd.f32 %v11629_v19, %v2809_v25  ;;  %v2915_v18 = vadd.f32 %v11637_v0, %v2914_v38 }
 0x8fc   : > { %v9693_v5 = vpop.eup %9692  ;;  %v2983_v33 = vadd.bf16 1065369472, %v9691_v39  ;;  %v2947_v11 = vpack.c.bf16 %v2923_v45, %v2920_v32 }
 0x8fd   : > { %v2982_v10 = vadd.bf16 1065369472, %v9693_v5  ;;  %v2946_v3 = vpack.c.bf16 %v2915_v18, %v2912_v20 }
 0x8fe   : > { %9698 = vrcp.bf16 %v2983_v33  ;;  %v7756_v44 = vmul.bf16 3216621497, %v2947_v11 }
 0x8ff   : > { %9700 = vrcp.bf16 %v2982_v10  ;;  %v7755_v61 = vmul.bf16 3216621497, %v2946_v3  ;;  %v8833_v6 = vpop.f32.mrb[108].mxu0  ;;  %v8853_v25 = vpop.f32.mrb[108].mxu1 }
 0x900   : > { %9702 = vpow.bf16 %v7756_v44  ;;  %v2822_v1 = vpop.f32.mrb[109].mxu0  ;;  %v2927_v38 = vpop.f32.mrb[109].mxu1  ;;  %v11697_v47 = vadd.f32 %v11629_v19, %v8833_v6  ;;  %v2936_v32 = vadd.f32 %v11637_v0, %v8853_v25 }
 0x901   : > { %9704 = vpow.bf16 %v7755_v61  ;;  %v8834_v39 = vpop.f32.mrb[110].mxu0  ;;  %v8854_v58 = vpop.f32.mrb[110].mxu1  ;;  %v11705_v18 = vadd.f32 %v11629_v19, %v2822_v1  ;;  %v2928_v33 = vadd.f32 %v11637_v0, %v2927_v38 }
 0x902   : > { %v11701_v5 = vadd.f32 %v11629_v19, %v8834_v39  ;;  %v2939_v11 = vadd.f32 %v11637_v0, %v8854_v58  ;;  %v2825_v45 = vpop.f32.mrb[111].mxu0  ;;  %v2930_v3 = vpop.f32.mrb[111].mxu1 }
 0x903   : > { %v9695_v20 = vpop.eup %9694  ;;  %v11709_v10 = vadd.f32 %v11629_v19, %v2825_v45  ;;  %v2931_v6 = vadd.f32 %v11637_v0, %v2930_v3 }
 0x904   : > { %v9697_v44 = vpop.eup %9696  ;;  %v2985_v61 = vadd.bf16 1065369472, %v9695_v20  ;;  %v2949_v39 = vpack.c.bf16 %v2939_v11, %v2936_v32  ;;  %v14352_v32 = vpack.c.bf16 %v11641_v22, %v11632_v8 }
 0x905   : > { %v2984_v58 = vadd.bf16 1065369472, %v9697_v44  ;;  %v2843_v4 = vpack.c.bf16 %v11709_v10, %v11705_v18  ;;  %v2948_v57 = vpack.c.bf16 %v2931_v6, %v2928_v33  ;;  %v14353_v33 = vpack.c.bf16 %v11649_v35, %v11645_v2  ;;  %v11817_v10 = vld [vmem:[%s14237_s6 + $0x6] ss:$0 sm:$0xff] }
 0x906   : > { %9706 = vrcp.bf16 %v2985_v61  ;;  %v7758_v1 = vmul.bf16 3216621497, %v2949_v39 }
 0x907   : > { %9708 = vrcp.bf16 %v2984_v58  ;;  %v7757_v38 = vmul.bf16 3216621497, %v2948_v57 }
 0x908   : > { %9710 = vpow.bf16 %v7758_v1 }
 0x909   : > { %v9699_v19 = vpop.eup %9698  ;;  %9712 = vpow.bf16 %v7757_v38 }
 0x90a   : > { %v9701_v45 = vpop.eup %9700  ;;  %v2993_v0 = vmul.bf16 1065369472, %v9699_v19 }
 0x90b   : > { %v9703_v3 = vpop.eup %9702  ;;  %v2991_v20 = vmul.bf16 1065369472, %v9701_v45 }
 0x90c   : > { %v9705_v55 = vpop.eup %9704  ;;  %v3007_v11 = vmul.bf16 %v2993_v0, %v14352_v32  ;;  %v2987_v44 = vadd.bf16 1065369472, %v9703_v3 }
 0x90d   : > { %v2986_v25 = vadd.bf16 1065369472, %v9705_v55  ;;  %v3006_v6 = vmul.bf16 %v2991_v20, %v14353_v33 }
 0x90e   : > { %v3015_v57 = vadd.bf16 %v3007_v11, %v11551_v15  ;;  %9714 = vrcp.bf16 %v2987_v44 }
 0x90f   : > { %9716 = vrcp.bf16 %v2986_v25  ;;  %v3014_v61 = vadd.bf16 %v3006_v6, %v11556_v21  ;;  %v14354_v21 = vpack.c.bf16 %v11661_v40, %v11657_v13  ;;  %v14355_v25 = vpack.c.bf16 %v11669_v34, %v11665_v59 }
 0x910   : > { %v11726_v38 = vmul.bf16 1060454197, %v3015_v57  ;;  %v14357_v40 = vpack.c.bf16 %v11689_v24, %v11685_v12 }
 0x911   : > { %v9707_v39 = vpop.eup %9706  ;;  %v11724_v58 = vmul.bf16 1060454197, %v3014_v61 }
 0x912   : > { %v9709_v1 = vpop.eup %9708  ;;  %v2997_v8 = vmul.bf16 1065369472, %v9707_v39 }
 0x913   : > { %v9711_v22 = vpop.eup %9710  ;;  %v2995_v19 = vmul.bf16 1065369472, %v9709_v1  ;;  %8859 = vmatprep.mubr.msk.bf16.mxu0 %vm1003_vm2, %v11724_v58  ;;  %8879 = vmatprep.mubr.msk.bf16.mxu1 %vm1003_vm2, %v11724_v58 }
 0x914   : > { %v9713_v55 = vpop.eup %9712  ;;  %v2989_v15 = vadd.bf16 1065369472, %v9711_v22  ;;  %8860 = vmatmul.mubr.msk.bf16.vlgmr.msra.gmra.mrb[112].mxu0 %vm1003_vm2, %v11726_v38  ;;  %8880 = vmatmul.mubr.msk.bf16.vlgmr.msra.gmra.mrb[112].mxu1 %vm1003_vm2, %v11726_v38  ;;  %v3009_v2 = vmul.bf16 %v2997_v8, %v14354_v21 }
 0x915   : > { %v2988_v35 = vadd.bf16 1065369472, %v9713_v55  ;;  %v3008_v45 = vmul.bf16 %v2995_v19, %v14355_v25 }
 0x916   : > { %9718 = vrcp.bf16 %v2989_v15  ;;  %v3017_v0 = vadd.bf16 %v3009_v2, %v11569_v23  ;;  %v14356_v23 = vpack.c.bf16 %v11681_v16, %v11677_v29  ;;  %v11822_v15 = vld [vmem:[%s14237_s6 + $0x7] ss:$0 sm:$0xff] }
 0x917   : > { %9720 = vrcp.bf16 %v2988_v35  ;;  %v3016_v3 = vadd.bf16 %v3008_v45, %v11574_v14 }
 0x918   : > { %v11746_v33 = vmul.bf16 1060454197, %v3017_v0 }
 0x919   : > { %v9715_v20 = vpop.eup %9714  ;;  %v11744_v32 = vmul.bf16 1060454197, %v3016_v3 }
 0x91a   : > { %v9717_v11 = vpop.eup %9716  ;;  %v3001_v44 = vmul.bf16 1065369472, %v9715_v20 }
 0x91b   : > { %v2999_v13 = vmul.bf16 1065369472, %v9717_v11  ;;  %8863 = vmatprep.mubr.msk.bf16.mxu0 %vm1003_vm2, %v11744_v32  ;;  %8883 = vmatprep.mubr.msk.bf16.mxu1 %vm1003_vm2, %v11744_v32 }
 0x91c   : > { %8864 = vmatmul.mubr.msk.bf16.gmra.mrb[116].mxu0 %vm1003_vm2, %v11746_v33  ;;  %8884 = vmatmul.mubr.msk.bf16.gmra.mrb[116].mxu1 %vm1003_vm2, %v11746_v33  ;;  %v3011_v14 = vmul.bf16 %v3001_v44, %v14356_v23 }
 0x91d   : > { %v3010_v59 = vmul.bf16 %v2999_v13, %v14357_v40 }
 0x91e   : > { %v3019_v34 = vadd.bf16 %v3011_v14, %v11587_v43  ;;  %v14358_v43 = vpack.c.bf16 %v11701_v5, %v11697_v47  ;;  %v9443_v47 = vld [vmem:[%s14236_s5 + $0x88] sm:$0xff]   ;;  %v11811_v5 = vld [vmem:[%s14234_s3] sm:$0xff]  }
 0x91f   : > { %v3018_v6 = vadd.bf16 %v3010_v59, %v11592_v63 }
 0x920   : > { %v11766_v8 = vmul.bf16 1060454197, %v3019_v34 }
 0x921   : > { %v9719_v57 = vpop.eup %9718  ;;  %v11764_v61 = vmul.bf16 1060454197, %v3018_v6 }
 0x922   : > { %v9721_v39 = vpop.eup %9720  ;;  %v3005_v1 = vmul.bf16 1065369472, %v9719_v57 }
 0x923   : > { %v3003_v22 = vmul.bf16 1065369472, %v9721_v39  ;;  %8867 = vmatprep.mubr.msk.bf16.mxu0 %vm1003_vm2, %v11764_v61  ;;  %8887 = vmatprep.mubr.msk.bf16.mxu1 %vm1003_vm2, %v11764_v61 }
 0x924   : > { %8868 = vmatmul.mubr.msk.bf16.gmra.mrb[120].mxu0 %vm1003_vm2, %v11766_v8  ;;  %8888 = vmatmul.mubr.msk.bf16.gmra.mrb[120].mxu1 %vm1003_vm2, %v11766_v8  ;;  %v3013_v63 = vmul.bf16 %v3005_v1, %v14358_v43 }
 0x925   : > { %v3012_v29 = vmul.bf16 %v3003_v22, %v2843_v4  ;;  %v9440_v4 = vld [vmem:[%s14236_s5 + $0x90] sm:$0xff]  }
 0x926   : > { %v3021_v16 = vadd.bf16 %v3013_v63, %v11602_v17  ;;  %v9442_v17 = vld [vmem:[%s14236_s5 + $0x80] sm:$0xff]   ;;  %8915 = vmatprep.subr.bf16.mxu1 %v9440_v4 }
 0x927   : > { %v3020_v12 = vadd.bf16 %v3012_v29, %v11604_v62  ;;  %8895 = vmatprep.subr.bf16.mxu0 %v9442_v17  ;;  %8916 = vmatpush3.bf16.msra.mxu1 %v9440_v4  ;;  %v9441_v62 = vld [vmem:[%s14236_s5 + $0x98] sm:$0xff]  }
 0x928   : > { %v11786_v19 = vmul.bf16 1060454197, %v3021_v16  ;;  %8896 = vmatpush3.bf16.msra.mxu0 %v9442_v17  ;;  %8917 = vmatprep.subr.bf16.mxu1 %v9441_v62 }
 0x929   : > { %v11784_v24 = vmul.bf16 1060454197, %v3020_v12  ;;  %8897 = vmatprep.subr.bf16.mxu0 %v9443_v47 }
 0x92b   : > { %8871 = vmatprep.mubr.msk.bf16.mxu0 %vm1003_vm2, %v11784_v24  ;;  %8891 = vmatprep.mubr.msk.bf16.mxu1 %vm1003_vm2, %v11784_v24 }
 0x92c   : > { %8872 = vmatmul.mubr.msk.bf16.gmra.mrb[124].mxu0 %vm1003_vm2, %v11786_v19  ;;  %8892 = vmatmul.mubr.msk.bf16.gmra.mrb[124].mxu1 %vm1003_vm2, %v11786_v19 }
 0x92d   : > { %8918 = vmatpush3.bf16.msra.mxu1 %v9441_v62  ;;  %8898 = vmatpush3.bf16.msra.mxu0 %v9443_v47 }
 0x92e   : > { %8955 = vmatprep.subr.bf16.mxu1 %v11811_v5 }
 0x9e7   : > { %v8861_v18 = vpop.f32.mrb[112].mxu0  ;;  %v8881_v55 = vpop.f32.mrb[112].mxu1 }
 0x9e8   : > { %v3118_v21 = vpop.f32.mrb[113].mxu0  ;;  %v3243_v2 = vpop.f32.mrb[113].mxu1  ;;  %v11825_v45 = vadd.f32 %v8861_v18, %v11817_v10  ;;  %v3252_v0 = vadd.f32 %v8881_v55, %v11822_v15 }
 0x9e9   : > { %v8862_v35 = vpop.f32.mrb[114].mxu0  ;;  %v8882_v25 = vpop.f32.mrb[114].mxu1  ;;  %v11833_v13 = vadd.f32 %v11817_v10, %v3118_v21  ;;  %v3244_v23 = vadd.f32 %v11822_v15, %v3243_v2 }
 0x9ea   : > { %v11829_v3 = vadd.f32 %v8862_v35, %v11817_v10  ;;  %v3255_v20 = vadd.f32 %v8882_v25, %v11822_v15  ;;  %v3121_v11 = vpop.f32.mrb[115].mxu0  ;;  %v3246_v44 = vpop.f32.mrb[115].mxu1 }
 0x9eb   : > { %v11837_v14 = vadd.f32 %v11817_v10, %v3121_v11  ;;  %v3247_v40 = vadd.f32 %v11822_v15, %v3246_v44 }
 0x9ec   : > { %v3307_v34 = vpack.c.bf16 %v3255_v20, %v3252_v0 }
 0x9ed   : > { %v3306_v57 = vpack.c.bf16 %v3247_v40, %v3244_v23 }
 0x9ee   : > { %v7792_v39 = vmul.bf16 3216621497, %v3307_v34 }
 0x9ef   : > { %v7791_v1 = vmul.bf16 3216621497, %v3306_v57  ;;  %v8865_v22 = vpop.f32.mrb[116].mxu0  ;;  %v8885_v43 = vpop.f32.mrb[116].mxu1 }
 0x9f0   : > { %9722 = vpow.bf16 %v7792_v39  ;;  %v3134_v63 = vpop.f32.mrb[117].mxu0  ;;  %v3259_v29 = vpop.f32.mrb[117].mxu1  ;;  %v11845_v4 = vadd.f32 %v8865_v22, %v11817_v10  ;;  %v3268_v17 = vadd.f32 %v8885_v43, %v11822_v15 }
 0x9f1   : > { %9724 = vpow.bf16 %v7791_v1  ;;  %v8866_v16 = vpop.f32.mrb[118].mxu0  ;;  %v8886_v12 = vpop.f32.mrb[118].mxu1  ;;  %v11853_v21 = vadd.f32 %v11817_v10, %v3134_v63  ;;  %v3260_v2 = vadd.f32 %v11822_v15, %v3259_v29 }
 0x9f2   : > { %v11849_v62 = vadd.f32 %v8866_v16, %v11817_v10  ;;  %v3271_v47 = vadd.f32 %v8886_v12, %v11822_v15  ;;  %v3137_v18 = vpop.f32.mrb[119].mxu0  ;;  %v3262_v55 = vpop.f32.mrb[119].mxu1 }
 0x9f3   : > { %v11857_v35 = vadd.f32 %v11817_v10, %v3137_v18  ;;  %v3263_v25 = vadd.f32 %v11822_v15, %v3262_v55 }
 0x9f4   : > { %v3309_v20 = vpack.c.bf16 %v3271_v47, %v3268_v17 }
 0x9f5   : > { %v3308_v44 = vpack.c.bf16 %v3263_v25, %v3260_v2 }
 0x9f6   : > { %v7794_v23 = vmul.bf16 3216621497, %v3309_v20 }
 0x9f7   : > { %v7793_v40 = vmul.bf16 3216621497, %v3308_v44  ;;  %v8869_v34 = vpop.f32.mrb[120].mxu0  ;;  %v8889_v57 = vpop.f32.mrb[120].mxu1 }
 0x9f8   : > { %9726 = vpow.bf16 %v7794_v23  ;;  %v3150_v39 = vpop.f32.mrb[121].mxu0  ;;  %v3275_v1 = vpop.f32.mrb[121].mxu1  ;;  %v11865_v63 = vadd.f32 %v8869_v34, %v11817_v10  ;;  %v3284_v29 = vadd.f32 %v8889_v57, %v11822_v15 }
 0x9f9   : > { %9728 = vpow.bf16 %v7793_v40  ;;  %v8870_v22 = vpop.f32.mrb[122].mxu0  ;;  %v8890_v43 = vpop.f32.mrb[122].mxu1  ;;  %v11873_v55 = vadd.f32 %v11817_v10, %v3150_v39  ;;  %v3276_v2 = vadd.f32 %v11822_v15, %v3275_v1 }
 0x9fa   : > { %v11869_v16 = vadd.f32 %v8870_v22, %v11817_v10  ;;  %v3287_v12 = vadd.f32 %v8890_v43, %v11822_v15  ;;  %v3153_v17 = vpop.f32.mrb[123].mxu0  ;;  %v3278_v47 = vpop.f32.mrb[123].mxu1 }
 0x9fb   : > { %v9723_v18 = vpop.eup %9722  ;;  %v11877_v25 = vadd.f32 %v11817_v10, %v3153_v17  ;;  %v3279_v20 = vadd.f32 %v11822_v15, %v3278_v47 }
 0x9fc   : > { %v9725_v44 = vpop.eup %9724  ;;  %v3347_v23 = vadd.bf16 1065369472, %v9723_v18  ;;  %v3311_v34 = vpack.c.bf16 %v3287_v12, %v3284_v29 }
 0x9fd   : > { %v3346_v57 = vadd.bf16 1065369472, %v9725_v44  ;;  %v3310_v43 = vpack.c.bf16 %v3279_v20, %v3276_v2 }
 0x9fe   : > { %9730 = vrcp.bf16 %v3347_v23  ;;  %v7796_v39 = vmul.bf16 3216621497, %v3311_v34 }
 0x9ff   : > { %9732 = vrcp.bf16 %v3346_v57  ;;  %v7795_v1 = vmul.bf16 3216621497, %v3310_v43  ;;  %v8873_v11 = vpop.f32.mrb[124].mxu0  ;;  %v8893_v17 = vpop.f32.mrb[124].mxu1 }
 0xa00   : > { %9734 = vpow.bf16 %v7796_v39  ;;  %v3166_v0 = vpop.f32.mrb[125].mxu0  ;;  %v3291_v47 = vpop.f32.mrb[125].mxu1  ;;  %v11885_v40 = vadd.f32 %v8873_v11, %v11817_v10  ;;  %v3300_v29 = vadd.f32 %v8893_v17, %v11822_v15 }
 0xa01   : > { %9736 = vpow.bf16 %v7795_v1  ;;  %v8874_v18 = vpop.f32.mrb[126].mxu0  ;;  %v8894_v6 = vpop.f32.mrb[126].mxu1  ;;  %v11893_v34 = vadd.f32 %v11817_v10, %v3166_v0  ;;  %v3292_v57 = vadd.f32 %v11822_v15, %v3291_v47 }
 0xa02   : > { %v11889_v12 = vadd.f32 %v8874_v18, %v11817_v10  ;;  %v3303_v2 = vadd.f32 %v8894_v6, %v11822_v15  ;;  %v3169_v20 = vpop.f32.mrb[127].mxu0  ;;  %v3294_v44 = vpop.f32.mrb[127].mxu1 }
 0xa03   : > { %v9727_v23 = vpop.eup %9726  ;;  %v11897_v43 = vadd.f32 %v11817_v10, %v3169_v20  ;;  %v3295_v11 = vadd.f32 %v11822_v15, %v3294_v44 }
 0xa04   : > { %v9729_v39 = vpop.eup %9728  ;;  %v3349_v1 = vadd.bf16 1065369472, %v9727_v23  ;;  %v3313_v18 = vpack.c.bf16 %v3303_v2, %v3300_v29  ;;  %v14359_v29 = vpack.c.bf16 %v11829_v3, %v11825_v45 }
 0xa05   : > { %v3348_v6 = vadd.bf16 1065369472, %v9729_v39  ;;  %v3187_v22 = vpack.c.bf16 %v11897_v43, %v11893_v34  ;;  %v3312_v59 = vpack.c.bf16 %v3295_v11, %v3292_v57  ;;  %v14360_v57 = vpack.c.bf16 %v11837_v14, %v11833_v13  ;;  %v12021_v34 = vld [vmem:[%s14234_s3 + $0x40] sm:$0xff]  }
 0xa06   : > { %9738 = vrcp.bf16 %v3349_v1  ;;  %v7798_v0 = vmul.bf16 3216621497, %v3313_v18 }
 0xa07   : > { %9740 = vrcp.bf16 %v3348_v6  ;;  %v7797_v47 = vmul.bf16 3216621497, %v3312_v59 }
 0xa08   : > { %9742 = vpow.bf16 %v7798_v0 }
 0xa09   : > { %v9731_v10 = vpop.eup %9730  ;;  %9744 = vpow.bf16 %v7797_v47 }
 0xa0a   : > { %v9733_v20 = vpop.eup %9732  ;;  %v3357_v15 = vmul.bf16 1065369472, %v9731_v10 }
 0xa0b   : > { %v9735_v44 = vpop.eup %9734  ;;  %v3355_v23 = vmul.bf16 1065369472, %v9733_v20 }
 0xa0c   : > { %v9737_v60 = vpop.eup %9736  ;;  %v3371_v2 = vmul.bf16 %v3357_v15, %v14359_v29  ;;  %v3351_v39 = vadd.bf16 1065369472, %v9735_v44  ;;  %v10195_v44 = vld [vmem:[%s14234_s3 + $0x8] sm:$0xff]  }
 0xa0d   : > { %v3350_v17 = vadd.bf16 1065369472, %v9737_v60  ;;  %v3370_v11 = vmul.bf16 %v3355_v23, %v14360_v57 }
 0xa0e   : > { %v3379_v59 = vadd.bf16 %v3371_v2, %v11726_v38  ;;  %9746 = vrcp.bf16 %v3351_v39  ;;  %v14364_v39 = vpack.c.bf16 %v11877_v25, %v11873_v55  ;;  %v10198_v55 = vld [vmem:[%s14234_s3 + $0x20] sm:$0xff]  }
 0xa0f   : > { %9748 = vrcp.bf16 %v3350_v17  ;;  %v3378_v1 = vadd.bf16 %v3370_v11, %v11724_v58  ;;  %v14361_v58 = vpack.c.bf16 %v11849_v62, %v11845_v4  ;;  %v14362_v17 = vpack.c.bf16 %v11857_v35, %v11853_v21 }
 0xa10   : > { %v11914_v47 = vmul.bf16 1060454197, %v3379_v59  ;;  %v10197_v59 = vld [vmem:[%s14234_s3 + $0x18] sm:$0xff]  }
 0xa11   : > { %v9739_v18 = vpop.eup %9738  ;;  %v11912_v6 = vmul.bf16 1060454197, %v3378_v1 }
 0xa12   : > { %v9741_v0 = vpop.eup %9740  ;;  %v3361_v45 = vmul.bf16 1065369472, %v9739_v18 }
 0xa13   : > { %v9743_v3 = vpop.eup %9742  ;;  %v3359_v10 = vmul.bf16 1065369472, %v9741_v0  ;;  %8899 = vmatprep.mubr.msk.bf16.mxu0 %vm1003_vm2, %v11912_v6  ;;  %8919 = vmatprep.mubr.msk.bf16.mxu1 %vm1003_vm2, %v11912_v6 }
 0xa14   : > { %v9745_v60 = vpop.eup %9744  ;;  %v3353_v38 = vadd.bf16 1065369472, %v9743_v3  ;;  %8900 = vmatmul.mubr.msk.bf16.vlgmr.msra.gmra.mrb[128].mxu0 %vm1003_vm2, %v11914_v47  ;;  %8920 = vmatmul.mubr.msk.bf16.vlgmr.msra.gmra.mrb[128].mxu1 %vm1003_vm2, %v11914_v47  ;;  %v3373_v13 = vmul.bf16 %v3361_v45, %v14361_v58 }
 0xa15   : > { %v3352_v14 = vadd.bf16 1065369472, %v9745_v60  ;;  %v3372_v20 = vmul.bf16 %v3359_v10, %v14362_v17  ;;  %8956 = vmatpush3.bf16.msra.mxu1 %v11811_v5  ;;  %v10199_v60 = vld [vmem:[%s14234_s3 + $0x28] sm:$0xff]  }
 0xa16   : > { %9750 = vrcp.bf16 %v3353_v38  ;;  %v3381_v15 = vadd.bf16 %v3373_v13, %v11746_v33  ;;  %8957 = vmatprep.subr.bf16.mxu1 %v10195_v44  ;;  %v10196_v33 = vld [vmem:[%s14234_s3 + $0x10] sm:$0xff]  }
 0xa17   : > { %9752 = vrcp.bf16 %v3352_v14  ;;  %v3380_v23 = vadd.bf16 %v3372_v20, %v11744_v32  ;;  %v14363_v32 = vpack.c.bf16 %v11869_v16, %v11865_v63  ;;  %v12027_v14 = vld [vmem:[%s14237_s6 + $0x8] ss:$0 sm:$0xff]  ;;  %v12032_v20 = vld [vmem:[%s14237_s6 + $0x9] ss:$0 sm:$0xff] }
 0xa18   : > { %v11938_v35 = vmul.bf16 1060454197, %v3381_v15 }
 0xa19   : > { %v9747_v4 = vpop.eup %9746  ;;  %v11936_v62 = vmul.bf16 1060454197, %v3380_v23  ;;  %8958 = vmatpush3.bf16.msra.mxu1 %v10195_v44 }
 0xa1a   : > { %v9749_v29 = vpop.eup %9748  ;;  %v3365_v21 = vmul.bf16 1065369472, %v9747_v4  ;;  %8959 = vmatprep.subr.bf16.mxu1 %v10196_v33 }
 0xa1b   : > { %v3363_v5 = vmul.bf16 1065369472, %v9749_v29  ;;  %8903 = vmatprep.mubr.msk.bf16.mxu0 %vm1003_vm2, %v11936_v62  ;;  %8923 = vmatprep.mubr.msk.bf16.mxu1 %vm1003_vm2, %v11936_v62 }
 0xa1c   : > { %8904 = vmatmul.mubr.msk.bf16.gmra.mrb[132].mxu0 %vm1003_vm2, %v11938_v35  ;;  %8924 = vmatmul.mubr.msk.bf16.gmra.mrb[132].mxu1 %vm1003_vm2, %v11938_v35  ;;  %v3375_v2 = vmul.bf16 %v3365_v21, %v14363_v32 }
 0xa1d   : > { %v3374_v57 = vmul.bf16 %v3363_v5, %v14364_v39  ;;  %8960 = vmatpush3.bf16.msra.mxu1 %v10196_v33 }
 0xa1e   : > { %v3383_v11 = vadd.bf16 %v3375_v2, %v11766_v8  ;;  %8961 = vmatprep.subr.bf16.mxu1 %v10197_v59 }
 0xa1f   : > { %v3382_v1 = vadd.bf16 %v3374_v57, %v11764_v61  ;;  %v14365_v61 = vpack.c.bf16 %v11889_v12, %v11885_v40  ;;  %v10200_v40 = vld [vmem:[%s14234_s3 + $0x30] sm:$0xff]   ;;  %v9445_v12 = vld [vmem:[%s14238_s7 + $0x18] sm:$0xff]  }
 0xa20   : > { %v11964_v45 = vmul.bf16 1060454197, %v3383_v11 }
 0xa21   : > { %v9751_v18 = vpop.eup %9750  ;;  %v11962_v0 = vmul.bf16 1060454197, %v3382_v1  ;;  %8962 = vmatpush3.bf16.msra.mxu1 %v10197_v59 }
 0xa22   : > { %v9753_v63 = vpop.eup %9752  ;;  %v3369_v16 = vmul.bf16 1065369472, %v9751_v18  ;;  %8963 = vmatprep.subr.bf16.mxu1 %v10198_v55 }
 0xa23   : > { %v3367_v8 = vmul.bf16 1065369472, %v9753_v63  ;;  %8907 = vmatprep.mubr.msk.bf16.mxu0 %vm1003_vm2, %v11962_v0  ;;  %8927 = vmatprep.mubr.msk.bf16.mxu1 %vm1003_vm2, %v11962_v0 }
 0xa24   : > { %8908 = vmatmul.mubr.msk.bf16.gmra.mrb[136].mxu0 %vm1003_vm2, %v11964_v45  ;;  %8928 = vmatmul.mubr.msk.bf16.gmra.mrb[136].mxu1 %vm1003_vm2, %v11964_v45  ;;  %v3377_v25 = vmul.bf16 %v3369_v16, %v14365_v61 }
 0xa25   : > { %v3376_v3 = vmul.bf16 %v3367_v8, %v3187_v22  ;;  %8964 = vmatpush3.bf16.msra.mxu1 %v10198_v55  ;;  %v9444_v22 = vld [vmem:[%s14238_s7 + $0x10] sm:$0xff]  }
 0xa26   : > { %v3385_v10 = vadd.bf16 %v3377_v25, %v11786_v19  ;;  %8965 = vmatprep.subr.bf16.mxu1 %v10199_v60  ;;  %v12009_v19 = vld [vmem:[%s14236_s5] sm:$0xff]   ;;  %8935 = vmatprep.subr.bf16.mxu0 %v9444_v22 }
 0xa27   : > { %v3384_v38 = vadd.bf16 %v3376_v3, %v11784_v24  ;;  %v10201_v24 = vld [vmem:[%s14234_s3 + $0x38] sm:$0xff]   ;;  %14366 = vst [vmem:[#allocation33_spill] sm:$0xff] %v12009_v19  ;;  %8936 = vmatpush3.bf16.msra.mxu0 %v9444_v22 }
 0xa28   : > { %v11990_v13 = vmul.bf16 1060454197, %v3385_v10  ;;  %8937 = vmatprep.subr.bf16.mxu0 %v9445_v12 }
 0xa29   : > { %v11988_v58 = vmul.bf16 1060454197, %v3384_v38  ;;  %8966 = vmatpush3.bf16.msra.mxu1 %v10199_v60 }
 0xa2a   : > { %8967 = vmatprep.subr.bf16.mxu1 %v10200_v40 }
 0xa2b   : > { %8911 = vmatprep.mubr.msk.bf16.mxu0 %vm1003_vm2, %v11988_v58  ;;  %8931 = vmatprep.mubr.msk.bf16.mxu1 %vm1003_vm2, %v11988_v58 }
 0xa2c   : > { %8912 = vmatmul.mubr.msk.bf16.gmra.mrb[140].mxu0 %vm1003_vm2, %v11990_v13  ;;  %8932 = vmatmul.mubr.msk.bf16.gmra.mrb[140].mxu1 %vm1003_vm2, %v11990_v13 }
 0xa2d   : > { %8968 = vmatpush3.bf16.msra.mxu1 %v10200_v40  ;;  %8938 = vmatpush3.bf16.msra.mxu0 %v9445_v12 }
 0xa2e   : > { %8969 = vmatprep.subr.bf16.mxu1 %v10201_v24  ;;  %8987 = vmatprep.subr.bf16.mxu0 %v12021_v34 }
 0xa31   : > { %8970 = vmatpush3.bf16.msra.mxu1 %v10201_v24 }
 0xa32   : > { %9019 = vmatprep.subr.bf16.mxu1 %v12009_v19 }
 0xae7   : > { %v8901_v43 = vpop.f32.mrb[128].mxu0  ;;  %v8921_v17 = vpop.f32.mrb[128].mxu1 }
 0xae8   : > { %v3482_v15 = vpop.f32.mrb[129].mxu0  ;;  %v3607_v44 = vpop.f32.mrb[129].mxu1  ;;  %v12035_v29 = vadd.f32 %v8901_v43, %v12027_v14  ;;  %v3616_v21 = vadd.f32 %v8921_v17, %v12032_v20 }
 0xae9   : > { %v8902_v23 = vpop.f32.mrb[130].mxu0  ;;  %v8922_v4 = vpop.f32.mrb[130].mxu1  ;;  %v12043_v39 = vadd.f32 %v12027_v14, %v3482_v15  ;;  %v3608_v57 = vadd.f32 %v12032_v20, %v3607_v44 }
 0xaea   : > { %v12039_v33 = vadd.f32 %v8902_v23, %v12027_v14  ;;  %v3619_v5 = vadd.f32 %v8922_v4, %v12032_v20  ;;  %v3485_v32 = vpop.f32.mrb[131].mxu0  ;;  %v3610_v2 = vpop.f32.mrb[131].mxu1 }
 0xaeb   : > { %v12047_v11 = vadd.f32 %v12027_v14, %v3485_v32  ;;  %v3611_v59 = vadd.f32 %v12032_v20, %v3610_v2 }
 0xaec   : > { %v3671_v18 = vpack.c.bf16 %v3619_v5, %v3616_v21 }
 0xaed   : > { %v3670_v16 = vpack.c.bf16 %v3611_v59, %v3608_v57 }
 0xaee   : > { %v7832_v55 = vmul.bf16 3216621497, %v3671_v18 }
 0xaef   : > { %v7831_v8 = vmul.bf16 3216621497, %v3670_v16  ;;  %v8905_v61 = vpop.f32.mrb[132].mxu0  ;;  %v8925_v25 = vpop.f32.mrb[132].mxu1 }
 0xaf0   : > { %9754 = vpow.bf16 %v7832_v55  ;;  %v3498_v3 = vpop.f32.mrb[133].mxu0  ;;  %v3623_v10 = vpop.f32.mrb[133].mxu1  ;;  %v12055_v40 = vadd.f32 %v8905_v61, %v12027_v14  ;;  %v3632_v24 = vadd.f32 %v8925_v25, %v12032_v20 }
 0xaf1   : > { %9756 = vpow.bf16 %v7831_v8  ;;  %v8906_v60 = vpop.f32.mrb[134].mxu0  ;;  %v8926_v38 = vpop.f32.mrb[134].mxu1  ;;  %v12063_v15 = vadd.f32 %v12027_v14, %v3498_v3  ;;  %v3624_v44 = vadd.f32 %v12032_v20, %v3623_v10 }
 0xaf2   : > { %v12059_v22 = vadd.f32 %v8906_v60, %v12027_v14  ;;  %v3635_v12 = vadd.f32 %v8926_v38, %v12032_v20  ;;  %v3501_v43 = vpop.f32.mrb[135].mxu0  ;;  %v3626_v17 = vpop.f32.mrb[135].mxu1 }
 0xaf3   : > { %v12067_v23 = vadd.f32 %v12027_v14, %v3501_v43  ;;  %v3627_v4 = vadd.f32 %v12032_v20, %v3626_v17 }
 0xaf4   : > { %v3673_v5 = vpack.c.bf16 %v3635_v12, %v3632_v24 }
 0xaf5   : > { %v3672_v2 = vpack.c.bf16 %v3627_v4, %v3624_v44 }
 0xaf6   : > { %v7834_v57 = vmul.bf16 3216621497, %v3673_v5 }
 0xaf7   : > { %v7833_v59 = vmul.bf16 3216621497, %v3672_v2  ;;  %v8909_v18 = vpop.f32.mrb[136].mxu0  ;;  %v8929_v16 = vpop.f32.mrb[136].mxu1 }
 0xaf8   : > { %9758 = vpow.bf16 %v7834_v57  ;;  %v3514_v55 = vpop.f32.mrb[137].mxu0  ;;  %v3639_v8 = vpop.f32.mrb[137].mxu1  ;;  %v12075_v3 = vadd.f32 %v8909_v18, %v12027_v14  ;;  %v3648_v10 = vadd.f32 %v8929_v16, %v12032_v20 }
 0xaf9   : > { %9760 = vpow.bf16 %v7833_v59  ;;  %v8910_v61 = vpop.f32.mrb[138].mxu0  ;;  %v8930_v25 = vpop.f32.mrb[138].mxu1  ;;  %v12083_v17 = vadd.f32 %v12027_v14, %v3514_v55  ;;  %v3640_v44 = vadd.f32 %v12032_v20, %v3639_v8 }
 0xafa   : > { %v12079_v60 = vadd.f32 %v8910_v61, %v12027_v14  ;;  %v3651_v38 = vadd.f32 %v8930_v25, %v12032_v20  ;;  %v3517_v24 = vpop.f32.mrb[139].mxu0  ;;  %v3642_v12 = vpop.f32.mrb[139].mxu1 }
 0xafb   : > { %v9755_v43 = vpop.eup %9754  ;;  %v12087_v4 = vadd.f32 %v12027_v14, %v3517_v24  ;;  %v3643_v5 = vadd.f32 %v12032_v20, %v3642_v12 }
 0xafc   : > { %v9757_v2 = vpop.eup %9756  ;;  %v3711_v57 = vadd.bf16 1065369472, %v9755_v43  ;;  %v3675_v18 = vpack.c.bf16 %v3651_v38, %v3648_v10 }
 0xafd   : > { %v3710_v16 = vadd.bf16 1065369472, %v9757_v2  ;;  %v3674_v25 = vpack.c.bf16 %v3643_v5, %v3640_v44 }
 0xafe   : > { %9762 = vrcp.bf16 %v3711_v57  ;;  %v7836_v55 = vmul.bf16 3216621497, %v3675_v18 }
 0xaff   : > { %9764 = vrcp.bf16 %v3710_v16  ;;  %v7835_v8 = vmul.bf16 3216621497, %v3674_v25  ;;  %v8913_v32 = vpop.f32.mrb[140].mxu0  ;;  %v8933_v24 = vpop.f32.mrb[140].mxu1 }
 0xb00   : > { %9766 = vpow.bf16 %v7836_v55  ;;  %v3530_v21 = vpop.f32.mrb[141].mxu0  ;;  %v3655_v12 = vpop.f32.mrb[141].mxu1  ;;  %v12095_v59 = vadd.f32 %v8913_v32, %v12027_v14  ;;  %v3664_v10 = vadd.f32 %v8933_v24, %v12032_v20 }
 0xb01   : > { %9768 = vpow.bf16 %v7835_v8  ;;  %v8914_v43 = vpop.f32.mrb[142].mxu0  ;;  %v8934_v63 = vpop.f32.mrb[142].mxu1  ;;  %v12103_v18 = vadd.f32 %v12027_v14, %v3530_v21  ;;  %v3656_v16 = vadd.f32 %v12032_v20, %v3655_v12 }
 0xb02   : > { %v12099_v38 = vadd.f32 %v8914_v43, %v12027_v14  ;;  %v3667_v44 = vadd.f32 %v8934_v63, %v12032_v20  ;;  %v3533_v5 = vpop.f32.mrb[143].mxu0  ;;  %v3658_v2 = vpop.f32.mrb[143].mxu1 }
 0xb03   : > { %v9759_v57 = vpop.eup %9758  ;;  %v12107_v25 = vadd.f32 %v12027_v14, %v3533_v5  ;;  %v3659_v32 = vadd.f32 %v12032_v20, %v3658_v2 }
 0xb04   : > { %v9761_v55 = vpop.eup %9760  ;;  %v3713_v8 = vadd.bf16 1065369472, %v9759_v57  ;;  %v3677_v43 = vpack.c.bf16 %v3667_v44, %v3664_v10  ;;  %v14367_v10 = vpack.c.bf16 %v12039_v33, %v12035_v29 }
 0xb05   : > { %v3712_v63 = vadd.bf16 1065369472, %v9761_v55  ;;  %v3551_v61 = vpack.c.bf16 %v12107_v25, %v12103_v18  ;;  %v3676_v1 = vpack.c.bf16 %v3659_v32, %v3656_v16  ;;  %v14368_v16 = vpack.c.bf16 %v12047_v11, %v12043_v39 }
 0xb06   : > { %9770 = vrcp.bf16 %v3713_v8  ;;  %v7838_v21 = vmul.bf16 3216621497, %v3677_v43 }
 0xb07   : > { %9772 = vrcp.bf16 %v3712_v63  ;;  %v7837_v12 = vmul.bf16 3216621497, %v3676_v1 }
 0xb08   : > { %9774 = vpow.bf16 %v7838_v21 }
 0xb09   : > { %v9763_v14 = vpop.eup %9762  ;;  %9776 = vpow.bf16 %v7837_v12 }
 0xb0a   : > { %v9765_v5 = vpop.eup %9764  ;;  %v3721_v20 = vmul.bf16 1065369472, %v9763_v14 }
 0xb0b   : > { %v9767_v2 = vpop.eup %9766  ;;  %v3719_v57 = vmul.bf16 1065369472, %v9765_v5 }
 0xb0c   : > { %v9769_v19 = vpop.eup %9768  ;;  %v3735_v44 = vmul.bf16 %v3721_v20, %v14367_v10  ;;  %v3715_v55 = vadd.bf16 1065369472, %v9767_v2  ;;  %v10204_v2 = vld [vmem:[%s14234_s3 + $0x48] sm:$0xff]  }
 0xb0d   : > { %v3714_v24 = vadd.bf16 1065369472, %v9769_v19  ;;  %v3734_v32 = vmul.bf16 %v3719_v57, %v14368_v16 }
 0xb0e   : > { %v3743_v1 = vadd.bf16 %v3735_v44, %v11914_v47  ;;  %9778 = vrcp.bf16 %v3715_v55  ;;  %v14372_v55 = vpack.c.bf16 %v12087_v4, %v12083_v17  ;;  %v10207_v17 = vld [vmem:[%s14234_s3 + $0x60] sm:$0xff]  }
 0xb0f   : > { %9780 = vrcp.bf16 %v3714_v24  ;;  %v3742_v8 = vadd.bf16 %v3734_v32, %v11912_v6  ;;  %v14369_v6 = vpack.c.bf16 %v12059_v22, %v12055_v40  ;;  %v14370_v24 = vpack.c.bf16 %v12067_v23, %v12063_v15 }
 0xb10   : > { %v12124_v12 = vmul.bf16 1060454197, %v3743_v1  ;;  %v10206_v1 = vld [vmem:[%s14234_s3 + $0x58] sm:$0xff]  }
 0xb11   : > { %v9771_v43 = vpop.eup %9770  ;;  %v12122_v63 = vmul.bf16 1060454197, %v3742_v8 }
 0xb12   : > { %v9773_v21 = vpop.eup %9772  ;;  %v3725_v29 = vmul.bf16 1065369472, %v9771_v43 }
 0xb13   : > { %v9775_v33 = vpop.eup %9774  ;;  %v3723_v14 = vmul.bf16 1065369472, %v9773_v21  ;;  %8939 = vmatprep.mubr.msk.bf16.mxu0 %vm1003_vm2, %v12122_v63 }
 0xb14   : > { %v9777_v19 = vpop.eup %9776  ;;  %v3717_v39 = vadd.bf16 1065369472, %v9775_v33  ;;  %8940 = vmatmul.mubr.msk.bf16.vlgmr.msra.gmra.mrb[144].mxu0 %vm1003_vm2, %v12124_v12  ;;  %v3737_v47 = vmul.bf16 %v3725_v29, %v14369_v6 }
 0xb15   : > { %v3716_v11 = vadd.bf16 1065369472, %v9777_v19  ;;  %v3736_v5 = vmul.bf16 %v3723_v14, %v14370_v24  ;;  %8988 = vmatpush3.bf16.msra.mxu0 %v12021_v34  ;;  %v10208_v19 = vld [vmem:[%s14234_s3 + $0x68] sm:$0xff]   ;;  %v14282_v24 = vsub.f32 1.3, %v11367_v56 }
 0xb16   : > { %9782 = vrcp.bf16 %v3717_v39  ;;  %v3745_v20 = vadd.bf16 %v3737_v47, %v11938_v35  ;;  %8989 = vmatprep.subr.bf16.mxu0 %v10204_v2  ;;  %v10205_v35 = vld [vmem:[%s14234_s3 + $0x50] sm:$0xff]  }
 0xb17   : > { %9784 = vrcp.bf16 %v3716_v11  ;;  %v3744_v57 = vadd.bf16 %v3736_v5, %v11936_v62  ;;  %v14371_v62 = vpack.c.bf16 %v12079_v60, %v12075_v3 }
 0xb18   : > { %v12144_v23 = vmul.bf16 1060454197, %v3745_v20 }
 0xb19   : > { %v9779_v40 = vpop.eup %9778  ;;  %v12142_v22 = vmul.bf16 1060454197, %v3744_v57  ;;  %8990 = vmatpush3.bf16.msra.mxu0 %v10204_v2 }
 0xb1a   : > { %v9781_v10 = vpop.eup %9780  ;;  %v3729_v15 = vmul.bf16 1065369472, %v9779_v40  ;;  %8991 = vmatprep.subr.bf16.mxu0 %v10205_v35  ;;  %v14280_v40 = vsub.f32 1.3, %v11370_v51 }
 0xb1b   : > { %v3727_v34 = vmul.bf16 1065369472, %v9781_v10  ;;  %8943 = vmatprep.mubr.msk.bf16.mxu0 %vm1003_vm2, %v12142_v22 }
 0xb1c   : > { %8944 = vmatmul.mubr.msk.bf16.gmra.mrb[148].mxu0 %vm1003_vm2, %v12144_v23  ;;  %v3739_v44 = vmul.bf16 %v3729_v15, %v14371_v62 }
 0xb1d   : > { %v3738_v16 = vmul.bf16 %v3727_v34, %v14372_v55  ;;  %8992 = vmatpush3.bf16.msra.mxu0 %v10205_v35  ;;  %v14283_v35 = vsub.f32 1.3, %v11373_v7 }
 0xb1e   : > { %v3747_v32 = vadd.bf16 %v3739_v44, %v11964_v45  ;;  %8993 = vmatprep.subr.bf16.mxu0 %v10206_v1  ;;  %v14281_v44 = vsub.f32 1.3, %v11382_v28 }
 0xb1f   : > { %v3746_v8 = vadd.bf16 %v3738_v16, %v11962_v0  ;;  %v14373_v0 = vpack.c.bf16 %v12099_v38, %v12095_v59  ;;  %v10209_v59 = vld [vmem:[%s14234_s3 + $0x70] sm:$0xff]  }
 0xb20   : > { %v12166_v29 = vmul.bf16 1060454197, %v3747_v32 }
 0xb21   : > { %v9783_v43 = vpop.eup %9782  ;;  %v12164_v21 = vmul.bf16 1060454197, %v3746_v8  ;;  %8994 = vmatpush3.bf16.msra.mxu0 %v10206_v1  ;;  %v14278_v8 = vsub.f32 1.3, %v11388_v37 }
 0xb22   : > { %v9785_v3 = vpop.eup %9784  ;;  %v3733_v60 = vmul.bf16 1065369472, %v9783_v43  ;;  %8995 = vmatprep.subr.bf16.mxu0 %v10207_v17 }
 0xb23   : > { %v3731_v45 = vmul.bf16 1065369472, %v9785_v3  ;;  %8947 = vmatprep.mubr.msk.bf16.mxu0 %vm1003_vm2, %v12164_v21 }
 0xb24   : > { %8948 = vmatmul.mubr.msk.bf16.gmra.mrb[152].mxu0 %vm1003_vm2, %v12166_v29  ;;  %v3741_v4 = vmul.bf16 %v3733_v60, %v14373_v0 }
 0xb25   : > { %v3740_v33 = vmul.bf16 %v3731_v45, %v3551_v61  ;;  %8996 = vmatpush3.bf16.msra.mxu0 %v10207_v17  ;;  %v12209_v61 = vld [vmem:[%s14239_s8 + $0x1] ss:$0 sm:$0xff]  ;;  %v14275_v45 = vsub.f32 1.3, %v11393_v31 }
 0xb26   : > { %v3749_v14 = vadd.bf16 %v3741_v4, %v11990_v13  ;;  %8997 = vmatprep.subr.bf16.mxu0 %v10208_v19  ;;  %v12203_v13 = vld [vmem:[%s14236_s5 + $0x10] sm:$0xff]  }
 0xb27   : > { %v3748_v39 = vadd.bf16 %v3740_v33, %v11988_v58  ;;  %v10210_v58 = vld [vmem:[%s14234_s3 + $0x78] sm:$0xff]   ;;  %v14279_v33 = vsub.f32 1.3, %v11396_v52 }
 0xb28   : > { %v12188_v47 = vmul.bf16 1060454197, %v3749_v14 }
 0xb29   : > { %v12186_v6 = vmul.bf16 1060454197, %v3748_v39  ;;  %8998 = vmatpush3.bf16.msra.mxu0 %v10208_v19  ;;  %v14277_v39 = vsub.f32 1.3, %v11405_v54 }
 0xb2a   : > { %8999 = vmatprep.subr.bf16.mxu0 %v10209_v59 }
 0xb2b   : > { %8951 = vmatprep.mubr.msk.bf16.mxu0 %vm1003_vm2, %v12186_v6 }
 0xb2c   : > { %8952 = vmatmul.mubr.msk.bf16.gmra.mrb[156].mxu0 %vm1003_vm2, %v12188_v47 }
 0xb2d   : > { %9000 = vmatpush3.bf16.msra.mxu0 %v10209_v59 }
 0xb2e   : > { %9001 = vmatprep.subr.bf16.mxu0 %v10210_v58 }
 0xb31   : > { %9002 = vmatpush3.bf16.msra.mxu0 %v10210_v58 }
 0xb32   : > { %9039 = vmatprep.subr.bf16.mxu0 %v12203_v13 }
 0xbe7   : > { %v8941_v38 = vpop.f32.mrb[144].mxu0 }
 0xbe8   : > { %v3881_v18 = vpop.f32.mrb[145].mxu0  ;;  %v3890_v20 = vadd.f32 %v8941_v38, %v12209_v61 }
 0xbe9   : > { %v3882_v25 = vadd.f32 %v12209_v61, %v3881_v18  ;;  %v8942_v11 = vpop.f32.mrb[146].mxu0 }
 0xbea   : > { %v3884_v5 = vpop.f32.mrb[147].mxu0  ;;  %v3893_v10 = vadd.f32 %v8942_v11, %v12209_v61  ;;  %v12230_v62 = vmul.f32 %v3890_v20, %v14283_v35 }
 0xbeb   : > { %v3885_v2 = vadd.f32 %v12209_v61, %v3884_v5  ;;  %v12217_v57 = vmul.f32 %v3882_v25, %v14282_v24  ;;  %v14272_v25 = vsub.f32 1.3, %v11414_v36 }
 0xbec   : > { %v12237_v1 = vmul.f32 %v3893_v10, %v14281_v44  ;;  %v14268_v10 = vsub.f32 1.3, %v11422_v41 }
 0xbed   : > { %3960 = vmax.xlane.f32.xlu0 %v12217_v57  ;;  %v12224_v15 = vmul.f32 %v3885_v2, %v14280_v40 }
 0xbef   : > { %v8945_v34 = vpop.f32.mrb[148].mxu0  ;;  %3962 = vmax.xlane.f32.xlu1 %v12224_v15 }
 0xbf0   : > { %v3897_v55 = vpop.f32.mrb[149].mxu0  ;;  %v3906_v3 = vadd.f32 %v8945_v34, %v12209_v61 }
 0xbf1   : > { %v3898_v16 = vadd.f32 %v12209_v61, %v3897_v55  ;;  %v8946_v32 = vpop.f32.mrb[150].mxu0  ;;  %3964 = vmax.xlane.f32.xlu0 %v12230_v62 }
 0xbf2   : > { %v3900_v43 = vpop.f32.mrb[151].mxu0  ;;  %v3909_v0 = vadd.f32 %v8946_v32, %v12209_v61  ;;  %v12258_v19 = vmul.f32 %v3906_v3, %v14279_v33  ;;  %v14271_v3 = vsub.f32 1.3, %v11432_v27 }
 0xbf3   : > { %v3901_v60 = vadd.f32 %v12209_v61, %v3900_v43  ;;  %3966 = vmax.xlane.f32.xlu1 %v12237_v1  ;;  %v12245_v17 = vmul.f32 %v3898_v16, %v14278_v8  ;;  %v14274_v16 = vsub.f32 1.3, %v11425_v53 }
 0xbf4   : > { %v12265_v18 = vmul.f32 %v3909_v0, %v14277_v39 }
 0xbf5   : > { %3968 = vmax.xlane.f32.xlu0 %v12245_v17  ;;  %v12252_v4 = vmul.f32 %v3901_v60, %v14275_v45 }
 0xbf7   : > { %v8949_v14 = vpop.f32.mrb[152].mxu0  ;;  %3970 = vmax.xlane.f32.xlu1 %v12252_v4 }
 0xbf8   : > { %v3913_v59 = vpop.f32.mrb[153].mxu0  ;;  %v3922_v5 = vadd.f32 %v8949_v14, %v12209_v61 }
 0xbf9   : > { %v3914_v58 = vadd.f32 %v12209_v61, %v3913_v59  ;;  %v8950_v38 = vpop.f32.mrb[154].mxu0  ;;  %3972 = vmax.xlane.f32.xlu0 %v12258_v19 }
 0xbfa   : > { %v3916_v11 = vpop.f32.mrb[155].mxu0  ;;  %v3925_v34 = vadd.f32 %v8950_v38, %v12209_v61  ;;  %v12286_v43 = vmul.f32 %v3922_v5, %v14274_v16 }
 0xbfb   : > { %v3917_v20 = vadd.f32 %v12209_v61, %v3916_v11  ;;  %3974 = vmax.xlane.f32.xlu1 %v12265_v18  ;;  %v12273_v2 = vmul.f32 %v3914_v58, %v14272_v25  ;;  %v14270_v58 = vsub.f32 1.3, %v11435_v9 }
 0xbfc   : > { %v12293_v59 = vmul.f32 %v3925_v34, %v14271_v3 }
 0xbfd   : > { %3976 = vmax.xlane.f32.xlu0 %v12273_v2  ;;  %v12280_v55 = vmul.f32 %v3917_v20, %v14268_v10 }
 0xbff   : > { %3978 = vmax.xlane.f32.xlu1 %v12280_v55  ;;  %v8953_v32 = vpop.f32.mrb[156].mxu0 }
 0xc00   : > { %v3929_v60 = vpop.f32.mrb[157].mxu0  ;;  %v3938_v11 = vadd.f32 %v8953_v32, %v12209_v61  ;;  %v14273_v32 = vsub.f32 1.3, %v11447_v42 }
 0xc01   : > { %v3930_v0 = vadd.f32 %v12209_v61, %v3929_v60  ;;  %3980 = vmax.xlane.f32.xlu0 %v12286_v43  ;;  %v8954_v14 = vpop.f32.mrb[158].mxu0  ;;  %v14269_v60 = vsub.f32 1.3, %v11442_v26 }
 0xc02   : > { %v3932_v38 = vpop.f32.mrb[159].mxu0  ;;  %v3941_v10 = vadd.f32 %v8954_v14, %v12209_v61 }
 0xc03   : > { %v3933_v5 = vadd.f32 %v12209_v61, %v3932_v38  ;;  %3982 = vmax.xlane.f32.xlu1 %v12293_v59  ;;  %v12301_v20 = vmul.f32 %v3930_v0, %v14270_v58  ;;  %v12314_v38 = vmul.f32 %v3938_v11, %v14273_v32  ;;  %v14276_v0 = vsub.f32 1.3, %v11452_v30 }
 0xc05   : > { %3984 = vmax.xlane.f32.xlu0 %v12301_v20  ;;  %v12308_v34 = vmul.f32 %v3933_v5, %v14269_v60  ;;  %v12320_v61 = vmul.f32 %v3941_v10, %v14276_v0 }
 0xc07   : > { %3986 = vmax.xlane.f32.xlu1 %v12308_v34 }
 0xc09   : > { %3988 = vmax.xlane.f32.xlu0 %v12314_v38 }
 0xc0b   : > { %3990 = vmax.xlane.f32.xlu1 %v12320_v61 }
 0xc7a   : > { %v3961_v14 = vpop.xlane.xlu0 %3960 }
 0xc7b   : > { %v3992_v5 = vsub.f32 %v12217_v57, %v3961_v14 }
 0xc7c   : > { %v3963_v60 = vpop.xlane.xlu1 %3962 }
 0xc7d   : > { %v4008_v58 = vmul.f32 1.442695, %v3992_v5  ;;  %v3993_v3 = vsub.f32 %v12224_v15, %v3963_v60 }
 0xc7e   : > { %v3965_v25 = vpop.xlane.xlu0 %3964 }
 0xc7f   : > { %9786 = vpow2.f32 %v4008_v58  ;;  %v4010_v11 = vmul.f32 1.442695, %v3993_v3  ;;  %v3994_v32 = vsub.f32 %v12230_v62, %v3965_v25 }
 0xc80   : > { %v3967_v16 = vpop.xlane.xlu1 %3966 }
 0xc81   : > { %9788 = vpow2.f32 %v4010_v11  ;;  %v4012_v45 = vmul.f32 1.442695, %v3994_v32  ;;  %v3995_v10 = vsub.f32 %v12237_v1, %v3967_v16 }
 0xc82   : > { %v3969_v0 = vpop.xlane.xlu0 %3968 }
 0xc83   : > { %9790 = vpow2.f32 %v4012_v45  ;;  %v4014_v39 = vmul.f32 1.442695, %v3995_v10  ;;  %v3996_v8 = vsub.f32 %v12245_v17, %v3969_v0 }
 0xc84   : > { %v3971_v57 = vpop.xlane.xlu1 %3970 }
 0xc85   : > { %9792 = vpow2.f32 %v4014_v39  ;;  %v4016_v14 = vmul.f32 1.442695, %v3996_v8  ;;  %v3997_v15 = vsub.f32 %v12252_v4, %v3971_v57 }
 0xc86   : > { %v3973_v60 = vpop.xlane.xlu0 %3972 }
 0xc87   : > { %9794 = vpow2.f32 %v4016_v14  ;;  %v4018_v3 = vmul.f32 1.442695, %v3997_v15  ;;  %v3998_v62 = vsub.f32 %v12258_v19, %v3973_v60 }
 0xc88   : > { %v3975_v25 = vpop.xlane.xlu1 %3974 }
 0xc89   : > { %v12330_v58 = vpop.eup %9786  ;;  %9796 = vpow2.f32 %v4018_v3  ;;  %v4020_v1 = vmul.f32 1.442695, %v3998_v62  ;;  %v3999_v45 = vsub.f32 %v12265_v18, %v3975_v25 }
 0xc8a   : > { %v3977_v16 = vpop.xlane.xlu0 %3976  ;;  %4040 = vadd.xlane.f32.xlu0 %v12330_v58 }
 0xc8b   : > { %v12334_v17 = vpop.eup %9788  ;;  %9798 = vpow2.f32 %v4020_v1  ;;  %v4022_v8 = vmul.f32 1.442695, %v3999_v45  ;;  %v4000_v4 = vsub.f32 %v12273_v2, %v3977_v16 }
 0xc8c   : > { %v3979_v39 = vpop.xlane.xlu1 %3978  ;;  %4042 = vadd.xlane.f32.xlu1 %v12334_v17 }
 0xc8d   : > { %v12338_v19 = vpop.eup %9790  ;;  %9800 = vpow2.f32 %v4022_v8  ;;  %v4024_v32 = vmul.f32 1.442695, %v4000_v4  ;;  %v4001_v0 = vsub.f32 %v12280_v55, %v3979_v39 }
 0xc8e   : > { %v3981_v5 = vpop.xlane.xlu0 %3980  ;;  %4044 = vadd.xlane.f32.xlu0 %v12338_v19 }
 0xc8f   : > { %v12342_v18 = vpop.eup %9792  ;;  %9802 = vpow2.f32 %v4024_v32  ;;  %v4026_v11 = vmul.f32 1.442695, %v4001_v0  ;;  %v4002_v10 = vsub.f32 %v12286_v43, %v3981_v5 }
 0xc90   : > { %v3983_v57 = vpop.xlane.xlu1 %3982  ;;  %4046 = vadd.xlane.f32.xlu1 %v12342_v18 }
 0xc91   : > { %v12346_v2 = vpop.eup %9794  ;;  %9804 = vpow2.f32 %v4026_v11  ;;  %v4028_v14 = vmul.f32 1.442695, %v4002_v10  ;;  %v4003_v15 = vsub.f32 %v12293_v59, %v3983_v57 }
 0xc92   : > { %v3985_v60 = vpop.xlane.xlu0 %3984  ;;  %4048 = vadd.xlane.f32.xlu0 %v12346_v2 }
 0xc93   : > { %v12350_v55 = vpop.eup %9796  ;;  %9806 = vpow2.f32 %v4028_v14  ;;  %v4030_v3 = vmul.f32 1.442695, %v4003_v15  ;;  %v4004_v62 = vsub.f32 %v12301_v20, %v3985_v60 }
 0xc94   : > { %4050 = vadd.xlane.f32.xlu1 %v12350_v55  ;;  %v3987_v43 = vpop.xlane.xlu1 %3986 }
 0xc95   : > { %v12354_v25 = vpop.eup %9798  ;;  %9808 = vpow2.f32 %v4030_v3  ;;  %v4032_v1 = vmul.f32 1.442695, %v4004_v62  ;;  %v4005_v45 = vsub.f32 %v12308_v34, %v3987_v43 }
 0xc96   : > { %4052 = vadd.xlane.f32.xlu0 %v12354_v25  ;;  %v3989_v59 = vpop.xlane.xlu0 %3988 }
 0xc97   : > { %v12358_v16 = vpop.eup %9800  ;;  %9810 = vpow2.f32 %v4032_v1  ;;  %v4034_v8 = vmul.f32 1.442695, %v4005_v45  ;;  %v4006_v4 = vsub.f32 %v12314_v38, %v3989_v59 }
 0xc98   : > { %4054 = vadd.xlane.f32.xlu1 %v12358_v16  ;;  %v3991_v20 = vpop.xlane.xlu1 %3990 }
 0xc99   : > { %v12362_v39 = vpop.eup %9802  ;;  %9812 = vpow2.f32 %v4034_v8  ;;  %v4036_v32 = vmul.f32 1.442695, %v4006_v4  ;;  %v4007_v0 = vsub.f32 %v12320_v61, %v3991_v20 }
 0xc9a   : > { %4056 = vadd.xlane.f32.xlu0 %v12362_v39 }
 0xc9b   : > { %v12366_v34 = vpop.eup %9804  ;;  %9814 = vpow2.f32 %v4036_v32  ;;  %v4038_v5 = vmul.f32 1.442695, %v4007_v0 }
 0xc9c   : > { %4058 = vadd.xlane.f32.xlu1 %v12366_v34 }
 0xc9d   : > { %v12369_v11 = vpop.eup %9806  ;;  %9816 = vpow2.f32 %v4038_v5 }
 0xc9e   : > { %4060 = vadd.xlane.f32.xlu0 %v12369_v11 }
 0xc9f   : > { %v12372_v38 = vpop.eup %9808 }
 0xca0   : > { %4062 = vadd.xlane.f32.xlu1 %v12372_v38 }
 0xca1   : > { %v12375_v10 = vpop.eup %9810 }
 0xca2   : > { %4064 = vadd.xlane.f32.xlu0 %v12375_v10 }
 0xca3   : > { %v12378_v61 = vpop.eup %9812 }
 0xca4   : > { %4066 = vadd.xlane.f32.xlu1 %v12378_v61 }
 0xca5   : > { %v12381_v57 = vpop.eup %9814 }
 0xca6   : > { %4068 = vadd.xlane.f32.xlu0 %v12381_v57 }
 0xca7   : > { %v12384_v14 = vpop.eup %9816 }
 0xca8   : > { %4070 = vadd.xlane.f32.xlu1 %v12384_v14 }
 0xd17   : > { %v4041_v15 = vpop.xlane.xlu0 %4040 }
 0xd18   : > { %9818 = vrcp.f32 %v4041_v15 }
 0xd19   : > { %v4043_v60 = vpop.xlane.xlu1 %4042 }
 0xd1a   : > { %9820 = vrcp.f32 %v4043_v60 }
 0xd1b   : > { %v4045_v3 = vpop.xlane.xlu0 %4044 }
 0xd1c   : > { %9822 = vrcp.f32 %v4045_v3 }
 0xd1d   : > { %v4047_v62 = vpop.xlane.xlu1 %4046 }
 0xd1e   : > { %9824 = vrcp.f32 %v4047_v62 }
 0xd1f   : > { %v4049_v43 = vpop.xlane.xlu0 %4048 }
 0xd20   : > { %9826 = vrcp.f32 %v4049_v43 }
 0xd21   : > { %v4051_v1 = vpop.xlane.xlu1 %4050 }
 0xd22   : > { %v9819_v45 = vpop.eup %9818  ;;  %9828 = vrcp.f32 %v4051_v1 }
 0xd23   : > { %v4088_v59 = vmul.f32 %v9819_v45, %v4041_v15  ;;  %v4053_v8 = vpop.xlane.xlu0 %4052 }
 0xd24   : > { %v9821_v4 = vpop.eup %9820  ;;  %9830 = vrcp.f32 %v4053_v8 }
 0xd25   : > { %v4104_v20 = vsub.f32 2.0, %v4088_v59  ;;  %v4089_v32 = vmul.f32 %v9821_v4, %v4043_v60  ;;  %v4055_v0 = vpop.xlane.xlu1 %4054 }
 0xd26   : > { %v9823_v5 = vpop.eup %9822  ;;  %9832 = vrcp.f32 %v4055_v0 }
 0xd27   : > { %v4120_v33 = vmul.f32 %v9819_v45, %v4104_v20  ;;  %v4105_v40 = vsub.f32 2.0, %v4089_v32  ;;  %v4090_v44 = vmul.f32 %v9823_v5, %v4045_v3  ;;  %v4057_v24 = vpop.xlane.xlu0 %4056 }
 0xd28   : > { %v9825_v35 = vpop.eup %9824  ;;  %9834 = vrcp.f32 %v4057_v24 }
 0xd29   : > { %v4121_v26 = vmul.f32 %v9821_v4, %v4105_v40  ;;  %v4106_v30 = vsub.f32 2.0, %v4090_v44  ;;  %v4091_v9 = vmul.f32 %v9825_v35, %v4047_v62  ;;  %v4059_v42 = vpop.xlane.xlu1 %4058  ;;  %v12388_v15 = vmul.f32 %v12330_v58, %v4120_v33 }
 0xd2a   : > { %v9827_v41 = vpop.eup %9826  ;;  %9836 = vrcp.f32 %v4059_v42 }
 0xd2b   : > { %v12391_v60 = vmul.f32 %v12334_v17, %v4121_v26  ;;  %v4122_v59 = vmul.f32 %v9823_v5, %v4106_v30  ;;  %v4107_v27 = vsub.f32 2.0, %v4091_v9  ;;  %v4092_v45 = vmul.f32 %v9827_v41, %v4049_v43  ;;  %v4061_v20 = vpop.xlane.xlu0 %4060 }
 0xd2c   : > { %v9829_v3 = vpop.eup %9828  ;;  %9838 = vrcp.f32 %v4061_v20  ;;  %v4184_v33 = vmul.f32 %v12388_v15, %v10505_v48 }
 0xd2d   : > { %v12394_v32 = vmul.f32 %v12338_v19, %v4122_v59  ;;  %v4123_v40 = vmul.f32 %v9825_v35, %v4107_v27  ;;  %v4108_v44 = vsub.f32 2.0, %v4092_v45  ;;  %v4093_v62 = vmul.f32 %v9829_v3, %v4051_v1  ;;  %v4063_v4 = vpop.xlane.xlu1 %4062 }
 0xd2e   : > { %v9831_v36 = vpop.eup %9830  ;;  %9840 = vrcp.f32 %v4063_v4  ;;  %v4185_v26 = vmul.f32 %v12391_v60, %v10507_v49 }
 0xd2f   : > { %v12401_v9 = vmul.f32 %v12342_v18, %v4123_v40  ;;  %v4124_v30 = vmul.f32 %v9827_v41, %v4108_v44  ;;  %v4109_v58 = vsub.f32 2.0, %v4093_v62  ;;  %v4065_v17 = vpop.xlane.xlu0 %4064  ;;  %v4094_v43 = vmul.f32 %v9831_v36, %v4053_v8 }
 0xd30   : > { %v9833_v19 = vpop.eup %9832  ;;  %9842 = vrcp.f32 %v4065_v17  ;;  %v4200_v27 = vpack.c.bf16 %v4185_v26, %v4184_v33  ;;  %v4186_v35 = vmul.f32 %v12394_v32, %v10509_v50 }
 0xd31   : > { %v4187_v1 = vmul.f32 %v12401_v9, %v10503_v46  ;;  %v4125_v5 = vmul.f32 %v9829_v3, %v4109_v58  ;;  %v4095_v59 = vmul.f32 %v9833_v19, %v4055_v0  ;;  %v4067_v45 = vpop.xlane.xlu1 %4066  ;;  %v12408_v18 = vmul.f32 %v12346_v2, %v4124_v30  ;;  %v14374_v2 = vld [vmem:[#allocation12_spill] sm:$0xff] }
 0xd32   : > { %v9835_v49 = vpop.eup %9834  ;;  %v4110_v41 = vsub.f32 2.0, %v4094_v43  ;;  %9844 = vrcp.f32 %v4067_v45  ;;  %8971 = vmatprep.mubr.bf16.mxu1 %v4200_v27  ;;  %9003 = vmatprep.mubr.bf16.mxu0 %v4200_v27 }
 0xd33   : > { %v4201_v8 = vpack.c.bf16 %v4187_v1, %v4186_v35  ;;  %v12411_v40 = vmul.f32 %v12350_v55, %v4125_v5  ;;  %v4111_v44 = vsub.f32 2.0, %v4095_v59  ;;  %v4096_v62 = vmul.f32 %v9835_v49, %v4057_v24  ;;  %v4069_v33 = vpop.xlane.xlu0 %4068  ;;  %v14375_v55 = vld [vmem:[#allocation9_spill] sm:$0xff]  ;;  %v10212_v5 = vld [vmem:[%s14236_s5 + $0x18] sm:$0xff]  }
 0xd34   : > { %v9837_v26 = vpop.eup %9836  ;;  %v4126_v46 = vmul.f32 %v9831_v36, %v4110_v41  ;;  %9846 = vrcp.f32 %v4069_v33  ;;  %v4188_v24 = vmul.f32 %v12408_v18, %v14375_v55  ;;  %v14376_v36 = vld [vmem:[#allocation33_spill] sm:$0xff] }
 0xd35   : > { %v4127_v0 = vmul.f32 %v9833_v19, %v4111_v44  ;;  %v4112_v3 = vsub.f32 2.0, %v4096_v62  ;;  %v4097_v58 = vmul.f32 %v9837_v26, %v4059_v42  ;;  %v4071_v50 = vpop.xlane.xlu1 %4070  ;;  %8972 = vmatmul.mubr.bf16.vlgmr.msra.gmra.mrb[144].mxu1 %v4201_v8  ;;  %9004 = vmatmul.mubr.bf16.vlgmr.msra.gmra.mrb[160].mxu0 %v4201_v8  ;;  %v4189_v30 = vmul.f32 %v12411_v40, %v14374_v2  ;;  %v14379_v62 = vld [vmem:[#allocation11_spill] sm:$0xff] }
 0xd36   : > { %v9839_v43 = vpop.eup %9838  ;;  %v12416_v27 = vmul.f32 %v12354_v25, %v4126_v46  ;;  %9848 = vrcp.f32 %v4071_v50  ;;  %9040 = vmatpush3.bf16.msra.mxu0 %v12203_v13  ;;  %9020 = vmatpush3.bf16.msra.mxu1 %v14376_v36  ;;  %v10213_v46 = vld [vmem:[%s14236_s5 + $0x8] sm:$0xff]  }
 0xd37   : > { %v12423_v42 = vmul.f32 %v12358_v16, %v4127_v0  ;;  %v4128_v19 = vmul.f32 %v9835_v49, %v4112_v3  ;;  %v4113_v35 = vsub.f32 2.0, %v4097_v58  ;;  %v4098_v1 = vmul.f32 %v9839_v43, %v4061_v20  ;;  %9041 = vmatprep.subr.bf16.mxu0 %v10212_v5  ;;  %9021 = vmatprep.subr.bf16.mxu1 %v10213_v46  ;;  %v14378_v20 = vld [vmem:[#allocation10_spill] sm:$0xff] }
 0xd38   : > { %v9841_v25 = vpop.eup %9840  ;;  %v4202_v13 = vpack.c.bf16 %v4189_v30, %v4188_v24  ;;  %v4190_v44 = vmul.f32 %v12416_v27, %v14378_v20 }
 0xd39   : > { %v4129_v59 = vmul.f32 %v9837_v26, %v4113_v35  ;;  %v4114_v41 = vsub.f32 2.0, %v4098_v1  ;;  %v4099_v8 = vmul.f32 %v9841_v25, %v4063_v4  ;;  %v12432_v49 = vmul.f32 %v12362_v39, %v4128_v19 }
 0xd3a   : > { %v9843_v16 = vpop.eup %9842  ;;  %8975 = vmatprep.mubr.bf16.mxu1 %v4202_v13  ;;  %9007 = vmatprep.mubr.bf16.mxu0 %v4202_v13  ;;  %v4191_v0 = vmul.f32 %v12423_v42, %v14379_v62  ;;  %v14382_v13 = vld [vmem:[#allocation13_spill] sm:$0xff] }
 0xd3b   : > { %14377 = vst [vmem:[#allocation33_spill] sm:$0xff] %v12432_v49  ;;  %v12439_v3 = vmul.f32 %v12366_v34, %v4129_v59  ;;  %v4130_v58 = vmul.f32 %v9839_v43, %v4114_v41  ;;  %v4115_v30 = vsub.f32 2.0, %v4099_v8  ;;  %v4100_v26 = vmul.f32 %v9843_v16, %v4065_v17  ;;  %9042 = vmatpush3.bf16.msra.mxu0 %v10212_v5  ;;  %v14383_v59 = vld [vmem:[#allocation16_spill] sm:$0xff] }
 0xd3c   : > { %9022 = vmatpush3.bf16.msra.mxu1 %v10213_v46  ;;  %v9845_v4 = vpop.eup %9844  ;;  %v4203_v24 = vpack.c.bf16 %v4191_v0, %v4190_v44  ;;  %v4192_v34 = vmul.f32 %v12432_v49, %v14382_v13 }
 0xd3d   : > { %14380 = vst [vmem:[#allocation34_spill] sm:$0xff] %v12439_v3  ;;  %v4131_v39 = vmul.f32 %v9841_v25, %v4115_v30  ;;  %v4116_v36 = vsub.f32 2.0, %v4100_v26  ;;  %v4101_v19 = vmul.f32 %v9845_v4, %v4067_v45  ;;  %v12442_v1 = vmul.f32 %v12369_v11, %v4130_v58  ;;  %v14386_v58 = vld [vmem:[#allocation14_spill] sm:$0xff]  ;;  %v14387_v26 = vld [vmem:[#allocation15_spill] sm:$0xff] }
 0xd3e   : > { %v9847_v35 = vpop.eup %9846  ;;  %8976 = vmatmul.mubr.bf16.gmra.mrb[148].mxu1 %v4203_v24  ;;  %9008 = vmatmul.mubr.bf16.gmra.mrb[164].mxu0 %v4203_v24  ;;  %v4193_v43 = vmul.f32 %v12439_v3, %v14383_v59 }
 0xd3f   : > { %14381 = vst [vmem:[#allocation35_spill] sm:$0xff] %v12442_v1  ;;  %v12449_v17 = vmul.f32 %v12372_v38, %v4131_v39  ;;  %v4132_v5 = vmul.f32 %v9843_v16, %v4116_v36  ;;  %v4117_v46 = vsub.f32 2.0, %v4101_v19  ;;  %v4102_v25 = vmul.f32 %v9847_v35, %v4069_v33  ;;  %v14390_v36 = vld [vmem:[#allocation17_spill] sm:$0xff]  ;;  %v14391_v19 = vld [vmem:[#allocation20_spill] sm:$0xff] }
 0xd40   : > { %v9849_v41 = vpop.eup %9848  ;;  %v4204_v45 = vpack.c.bf16 %v4193_v43, %v4192_v34  ;;  %v4194_v30 = vmul.f32 %v12442_v1, %v14386_v58 }
 0xd41   : > { %14384 = vst [vmem:[#allocation36_spill] sm:$0xff] %v12449_v17  ;;  %v12452_v8 = vmul.f32 %v12375_v10, %v4132_v5  ;;  %v4133_v11 = vmul.f32 %v9845_v4, %v4117_v46  ;;  %v4118_v44 = vsub.f32 2.0, %v4102_v25  ;;  %v4103_v0 = vmul.f32 %v9849_v41, %v4071_v50 }
 0xd42   : > { %8979 = vmatprep.mubr.bf16.mxu1 %v4204_v45  ;;  %9011 = vmatprep.mubr.bf16.mxu0 %v4204_v45  ;;  %v4195_v38 = vmul.f32 %v12449_v17, %v14387_v26 }
 0xd43   : > { %14385 = vst [vmem:[#allocation37_spill] sm:$0xff] %v12452_v8  ;;  %v12459_v16 = vmul.f32 %v12378_v61, %v4133_v11  ;;  %v4134_v33 = vmul.f32 %v9847_v35, %v4118_v44  ;;  %v4119_v24 = vsub.f32 2.0, %v4103_v0  ;;  %v4196_v50 = vmul.f32 %v12452_v8, %v14390_v36  ;;  %v14393_v35 = vld [vmem:[#allocation18_spill] sm:$0xff] }
 0xd44   : > { %v4205_v39 = vpack.c.bf16 %v4195_v38, %v4194_v30 }
 0xd45   : > { %14388 = vst [vmem:[#allocation38_spill] sm:$0xff] %v12459_v16  ;;  %v12462_v10 = vmul.f32 %v12381_v57, %v4134_v33  ;;  %v4135_v4 = vmul.f32 %v9849_v41, %v4119_v24  ;;  %v4197_v34 = vmul.f32 %v12459_v16, %v14391_v19  ;;  %v14394_v57 = vld [vmem:[#allocation19_spill] sm:$0xff]  ;;  %v12486_v33 = vld [vmem:[%s14235_s4 + $0x1] ss:$0 sm:$0xff] }
 0xd46   : > { %8980 = vmatmul.mubr.bf16.gmra.mrb[152].mxu1 %v4205_v39  ;;  %9012 = vmatmul.mubr.bf16.gmra.mrb[168].mxu0 %v4205_v39 }
 0xd47   : > { %14389 = vst [vmem:[#allocation39_spill] sm:$0xff] %v12462_v10  ;;  %v12469_v43 = vmul.f32 %v12384_v14, %v4135_v4  ;;  %v4206_v61 = vpack.c.bf16 %v4197_v34, %v4196_v50  ;;  %v4198_v5 = vmul.f32 %v12462_v10, %v14393_v35  ;;  %v12478_v14 = vld [vmem:[%s14235_s4] ss:$0 sm:$0xff] }
 0xd49   : > { %14392 = vst [vmem:[#allocation40_spill] sm:$0xff] %v12469_v43  ;;  %8983 = vmatprep.mubr.bf16.mxu1 %v4206_v61  ;;  %9015 = vmatprep.mubr.bf16.mxu0 %v4206_v61  ;;  %v4199_v46 = vmul.f32 %v12469_v43, %v14394_v57 }
 0xd4b   : > { %v4207_v25 = vpack.c.bf16 %v4199_v46, %v4198_v5 }
 0xd4e   : > { %8984 = vmatmul.mubr.bf16.gmra.mrb[156].mxu1 %v4207_v25  ;;  %9016 = vmatmul.mubr.bf16.gmra.mrb[172].mxu0 %v4207_v25 }
 0xe08   : > { %v8973_v41 = vpop.f32.mrb[144].mxu1  ;;  %v9005_v45 = vpop.f32.mrb[160].mxu0 }
 0xe09   : > { %v4242_v11 = vpop.f32.mrb[145].mxu1  ;;  %v4347_v44 = vpop.f32.mrb[161].mxu0  ;;  %v12481_v38 = vadd.f32 %v12478_v14, %v8973_v41  ;;  %v4356_v24 = vadd.f32 %v12486_v33, %v9005_v45 }
 0xe0a   : > { %v8974_v0 = vpop.f32.mrb[146].mxu1  ;;  %v9006_v30 = vpop.f32.mrb[162].mxu0  ;;  %v12494_v61 = vadd.f32 %v12478_v14, %v4242_v11  ;;  %v4348_v5 = vadd.f32 %v12486_v33, %v4347_v44 }
 0xe0b   : > { %v12490_v39 = vadd.f32 %v12478_v14, %v8974_v0  ;;  %v4359_v4 = vadd.f32 %v12486_v33, %v9006_v30  ;;  %v4245_v50 = vpop.f32.mrb[147].mxu1  ;;  %v4350_v34 = vpop.f32.mrb[163].mxu0 }
 0xe0c   : > { %v12498_v46 = vadd.f32 %v12478_v14, %v4245_v50  ;;  %v4351_v25 = vadd.f32 %v12486_v33, %v4350_v34 }
 0xe0d   : > { %v4411_v45 = vpack.c.bf16 %v4359_v4, %v4356_v24 }
 0xe0e   : > { %v4410_v30 = vpack.c.bf16 %v4351_v25, %v4348_v5 }
 0xe0f   : > { %v7856_v57 = vmul.bf16 3216621497, %v4411_v45 }
 0xe10   : > { %v7855_v35 = vmul.bf16 3216621497, %v4410_v30 }
 0xe11   : > { %9850 = vpow.bf16 %v7856_v57  ;;  %v8977_v11 = vpop.f32.mrb[148].mxu1  ;;  %v9009_v19 = vpop.f32.mrb[164].mxu0 }
 0xe12   : > { %9852 = vpow.bf16 %v7855_v35  ;;  %v4258_v44 = vpop.f32.mrb[149].mxu1  ;;  %v4363_v36 = vpop.f32.mrb[165].mxu0  ;;  %v12506_v34 = vadd.f32 %v12478_v14, %v8977_v11  ;;  %v4372_v41 = vadd.f32 %v12486_v33, %v9009_v19 }
 0xe13   : > { %v8978_v50 = vpop.f32.mrb[150].mxu1  ;;  %v9010_v26 = vpop.f32.mrb[166].mxu0  ;;  %v12514_v57 = vadd.f32 %v12478_v14, %v4258_v44  ;;  %v4364_v35 = vadd.f32 %v12486_v33, %v4363_v36 }
 0xe14   : > { %v12510_v24 = vadd.f32 %v12478_v14, %v8978_v50  ;;  %v4375_v4 = vadd.f32 %v12486_v33, %v9010_v26  ;;  %v4261_v5 = vpop.f32.mrb[151].mxu1  ;;  %v4366_v25 = vpop.f32.mrb[167].mxu0 }
 0xe15   : > { %v12518_v45 = vadd.f32 %v12478_v14, %v4261_v5  ;;  %v4367_v30 = vadd.f32 %v12486_v33, %v4366_v25 }
 0xe16   : > { %v4413_v11 = vpack.c.bf16 %v4375_v4, %v4372_v41 }
 0xe17   : > { %v4412_v26 = vpack.c.bf16 %v4367_v30, %v4364_v35 }
 0xe18   : > { %v7858_v0 = vmul.bf16 3216621497, %v4413_v11 }
 0xe19   : > { %v7857_v58 = vmul.bf16 3216621497, %v4412_v26  ;;  %v8981_v59 = vpop.f32.mrb[152].mxu1  ;;  %v9013_v44 = vpop.f32.mrb[168].mxu0 }
 0xe1a   : > { %9854 = vpow.bf16 %v7858_v0  ;;  %v4274_v13 = vpop.f32.mrb[153].mxu1  ;;  %v4379_v36 = vpop.f32.mrb[169].mxu0  ;;  %v12526_v5 = vadd.f32 %v12478_v14, %v8981_v59  ;;  %v4388_v41 = vadd.f32 %v12486_v33, %v9013_v44 }
 0xe1b   : > { %9856 = vpow.bf16 %v7857_v58  ;;  %v8982_v25 = vpop.f32.mrb[154].mxu1  ;;  %v9014_v20 = vpop.f32.mrb[170].mxu0  ;;  %v12530_v4 = vadd.f32 %v12478_v14, %v4274_v13  ;;  %v4380_v59 = vadd.f32 %v12486_v33, %v4379_v36 }
 0xe1c   : > { %v9851_v62 = vpop.eup %9850  ;;  %v12533_v35 = vadd.f32 %v12478_v14, %v8982_v25  ;;  %v4391_v30 = vadd.f32 %v12486_v33, %v9014_v20  ;;  %v4277_v0 = vpop.f32.mrb[155].mxu1 }
 0xe1d   : > { %v4382_v11 = vpop.f32.mrb[171].mxu0  ;;  %v9853_v26 = vpop.eup %9852  ;;  %v4451_v58 = vadd.bf16 1065369472, %v9851_v62  ;;  %v12538_v50 = vadd.f32 %v12478_v14, %v4277_v0 }
 0xe1e   : > { %v4383_v19 = vadd.f32 %v12486_v33, %v4382_v11  ;;  %v4450_v44 = vadd.bf16 1065369472, %v9853_v26  ;;  %v4415_v2 = vpack.c.bf16 %v4391_v30, %v4388_v41 }
 0xe1f   : > { %9858 = vrcp.bf16 %v4451_v58 }
 0xe20   : > { %v4414_v25 = vpack.c.bf16 %v4383_v19, %v4380_v59  ;;  %9860 = vrcp.bf16 %v4450_v44  ;;  %v7860_v55 = vmul.bf16 3216621497, %v4415_v2 }
 0xe21   : > { %v8985_v48 = vpop.f32.mrb[156].mxu1  ;;  %v9017_v36 = vpop.f32.mrb[172].mxu0 }
 0xe22   : > { %v7859_v62 = vmul.bf16 3216621497, %v4414_v25  ;;  %9862 = vpow.bf16 %v7860_v55  ;;  %v4290_v0 = vpop.f32.mrb[157].mxu1  ;;  %v4395_v16 = vpop.f32.mrb[173].mxu0  ;;  %v12546_v43 = vadd.f32 %v12478_v14, %v8985_v48  ;;  %v4404_v41 = vadd.f32 %v12486_v33, %v9017_v36 }
 0xe23   : > { %v8986_v11 = vpop.f32.mrb[158].mxu1  ;;  %v9018_v26 = vpop.f32.mrb[174].mxu0  ;;  %v12554_v55 = vadd.f32 %v12478_v14, %v4290_v0  ;;  %v4396_v44 = vadd.f32 %v12486_v33, %v4395_v16 }
 0xe24   : > { %9864 = vpow.bf16 %v7859_v62  ;;  %v12550_v30 = vadd.f32 %v12478_v14, %v8986_v11  ;;  %v4407_v19 = vadd.f32 %v12486_v33, %v9018_v26  ;;  %v4293_v2 = vpop.f32.mrb[159].mxu1  ;;  %v4398_v58 = vpop.f32.mrb[175].mxu0 }
 0xe25   : > { %v9855_v59 = vpop.eup %9854  ;;  %v12558_v25 = vadd.f32 %v12478_v14, %v4293_v2  ;;  %v4399_v48 = vadd.f32 %v12486_v33, %v4398_v58 }
 0xe26   : > { %v9857_v62 = vpop.eup %9856  ;;  %v4453_v36 = vadd.bf16 1065369472, %v9855_v59  ;;  %v4312_v11 = vpack.c.bf16 %v12550_v30, %v12546_v43  ;;  %v4417_v20 = vpack.c.bf16 %v4407_v19, %v4404_v41  ;;  %v14395_v43 = vpack.c.bf16 %v12490_v39, %v12481_v38 }
 0xe27   : > { %v4452_v26 = vadd.bf16 1065369472, %v9857_v62  ;;  %v4311_v13 = vpack.c.bf16 %v12558_v25, %v12554_v55  ;;  %v4416_v8 = vpack.c.bf16 %v4399_v48, %v4396_v44  ;;  %v14396_v59 = vpack.c.bf16 %v12498_v46, %v12494_v61 }
 0xe28   : > { %9866 = vrcp.bf16 %v4453_v36  ;;  %v7862_v0 = vmul.bf16 3216621497, %v4417_v20  ;;  %v14397_v25 = vpack.c.bf16 %v12510_v24, %v12506_v34  ;;  %v14398_v36 = vpack.c.bf16 %v12518_v45, %v12514_v57 }
 0xe29   : > { %9868 = vrcp.bf16 %v4452_v26  ;;  %v7861_v16 = vmul.bf16 3216621497, %v4416_v8  ;;  %v14399_v45 = vpack.c.bf16 %v12533_v35, %v12526_v5 }
 0xe2a   : > { %v9859_v10 = vpop.eup %9858  ;;  %9870 = vpow.bf16 %v7862_v0 }
 0xe2b   : > { %v9861_v14 = vpop.eup %9860  ;;  %v4461_v2 = vmul.bf16 1065369472, %v9859_v10  ;;  %9872 = vpow.bf16 %v7861_v16 }
 0xe2c   : > { %v4459_v33 = vmul.bf16 1065369472, %v9861_v14  ;;  %v14400_v14 = vpack.c.bf16 %v12538_v50, %v12530_v4  ;;  %v9446_v4 = vld [vmem:[%s14236_s5 + $0xb0] sm:$0xff]  }
 0xe2d   : > { %v9863_v58 = vpop.eup %9862  ;;  %v12568_v41 = vmul.bf16 %v4461_v2, %v14395_v43  ;;  %9079 = vmatprep.subr.bf16.mxu0 %v9446_v4 }
 0xe2e   : > { %v4455_v19 = vadd.bf16 1065369472, %v9863_v58  ;;  %v12573_v20 = vmul.bf16 %v4459_v33, %v14396_v59 }
 0xe2f   : > { %v9865_v30 = vpop.eup %9864 }
 0xe30   : > { %v4454_v8 = vadd.bf16 1065369472, %v9865_v30  ;;  %9874 = vrcp.bf16 %v4455_v19  ;;  %9023 = vmatprep.mubr.msk.bf16.mxu1 %vm1003_vm2, %v12573_v20  ;;  %9043 = vmatprep.mubr.msk.bf16.mxu0 %vm1003_vm2, %v12573_v20  ;;  %v9449_v30 = vld [vmem:[%s14236_s5 + $0xa8] sm:$0xff]  }
 0xe31   : > { %9024 = vmatmul.mubr.msk.bf16.vlgmr.msra.gmra.mrb[160].mxu1 %vm1003_vm2, %v12568_v41  ;;  %9044 = vmatmul.mubr.msk.bf16.vlgmr.msra.gmra.mrb[176].mxu0 %vm1003_vm2, %v12568_v41 }
 0xe32   : > { %9876 = vrcp.bf16 %v4454_v8  ;;  %9080 = vmatpush3.bf16.msra.mxu0 %v9446_v4 }
 0xe33   : > { %v9867_v10 = vpop.eup %9866 }
 0xe34   : > { %v9869_v38 = vpop.eup %9868  ;;  %v4465_v39 = vmul.bf16 1065369472, %v9867_v10 }
 0xe35   : > { %v9871_v61 = vpop.eup %9870  ;;  %v4463_v46 = vmul.bf16 1065369472, %v9869_v38 }
 0xe36   : > { %v9873_v55 = vpop.eup %9872  ;;  %v4457_v44 = vadd.bf16 1065369472, %v9871_v61  ;;  %v12586_v48 = vmul.bf16 %v4465_v39, %v14397_v25  ;;  %v12646_v61 = vld [vmem:[%s14237_s6] ss:$0 sm:$0xff] }
 0xe37   : > { %v4456_v62 = vadd.bf16 1065369472, %v9873_v55  ;;  %v12591_v26 = vmul.bf16 %v4463_v46, %v14398_v36  ;;  %v12654_v55 = vld [vmem:[%s14237_s6 + $0x1] ss:$0 sm:$0xff] }
 0xe38   : > { %9878 = vrcp.bf16 %v4457_v44 }
 0xe39   : > { %9880 = vrcp.bf16 %v4456_v62  ;;  %9027 = vmatprep.mubr.msk.bf16.mxu1 %vm1003_vm2, %v12591_v26  ;;  %9047 = vmatprep.mubr.msk.bf16.mxu0 %vm1003_vm2, %v12591_v26 }
 0xe3a   : > { %9028 = vmatmul.mubr.msk.bf16.gmra.mrb[164].mxu1 %vm1003_vm2, %v12586_v48  ;;  %9048 = vmatmul.mubr.msk.bf16.gmra.mrb[180].mxu0 %vm1003_vm2, %v12586_v48 }
 0xe3b   : > { %v9875_v34 = vpop.eup %9874 }
 0xe3c   : > { %v4469_v0 = vmul.bf16 1065369472, %v9875_v34 }
 0xe3d   : > { %v9877_v24 = vpop.eup %9876 }
 0xe3e   : > { %v4467_v57 = vmul.bf16 1065369472, %v9877_v24  ;;  %v12604_v16 = vmul.bf16 %v4469_v0, %v14399_v45 }
 0xe40   : > { %v12609_v2 = vmul.bf16 %v4467_v57, %v14400_v14 }
 0xe42   : > { %9031 = vmatprep.mubr.msk.bf16.mxu1 %vm1003_vm2, %v12609_v2  ;;  %9051 = vmatprep.mubr.msk.bf16.mxu0 %vm1003_vm2, %v12609_v2 }
 0xe43   : > { %9032 = vmatmul.mubr.msk.bf16.gmra.mrb[168].mxu1 %vm1003_vm2, %v12604_v16  ;;  %9052 = vmatmul.mubr.msk.bf16.gmra.mrb[184].mxu0 %vm1003_vm2, %v12604_v16  ;;  %v9879_v5 = vpop.eup %9878 }
 0xe44   : > { %v9881_v35 = vpop.eup %9880  ;;  %v4473_v33 = vmul.bf16 1065369472, %v9879_v5 }
 0xe45   : > { %v4471_v58 = vmul.bf16 1065369472, %v9881_v35 }
 0xe46   : > { %v12619_v43 = vmul.bf16 %v4473_v33, %v4312_v11  ;;  %v9447_v11 = vld [vmem:[%s14236_s5 + $0xb8] sm:$0xff]  }
 0xe47   : > { %v12621_v50 = vmul.bf16 %v4471_v58, %v4311_v13  ;;  %v9448_v13 = vld [vmem:[%s14236_s5 + $0xa0] sm:$0xff]   ;;  %9081 = vmatprep.subr.bf16.mxu0 %v9447_v11 }
 0xe48   : > { %9059 = vmatprep.subr.bf16.mxu1 %v9448_v13  ;;  %9082 = vmatpush3.bf16.msra.mxu0 %v9447_v11 }
 0xe49   : > { %9035 = vmatprep.mubr.msk.bf16.mxu1 %vm1003_vm2, %v12621_v50  ;;  %9055 = vmatprep.mubr.msk.bf16.mxu0 %vm1003_vm2, %v12621_v50 }
 0xe4a   : > { %9060 = vmatpush3.bf16.msra.mxu1 %v9448_v13 }
 0xe4b   : > { %9036 = vmatmul.mubr.msk.bf16.gmra.mrb[172].mxu1 %vm1003_vm2, %v12619_v43  ;;  %9056 = vmatmul.mubr.msk.bf16.gmra.mrb[188].mxu0 %vm1003_vm2, %v12619_v43 }
 0xe4c   : > { %9061 = vmatprep.subr.bf16.mxu1 %v9449_v30 }
 0xe4e   : > { %9062 = vmatpush3.bf16.msra.mxu1 %v9449_v30 }
 0xf04   : > { %v9025_v19 = vpop.f32.mrb[160].mxu1  ;;  %v9045_v59 = vpop.f32.mrb[176].mxu0 }
 0xf05   : > { %v4540_v8 = vpop.f32.mrb[161].mxu1  ;;  %v4645_v10 = vpop.f32.mrb[177].mxu0  ;;  %v12649_v46 = vadd.f32 %v12646_v61, %v9025_v19  ;;  %v4654_v44 = vadd.f32 %v12654_v55, %v9045_v59 }
 0xf06   : > { %v9026_v38 = vpop.f32.mrb[162].mxu1  ;;  %v9046_v39 = vpop.f32.mrb[178].mxu0  ;;  %v12662_v24 = vadd.f32 %v12646_v61, %v4540_v8  ;;  %v4646_v0 = vadd.f32 %v12654_v55, %v4645_v10 }
 0xf07   : > { %v12658_v25 = vadd.f32 %v12646_v61, %v9026_v38  ;;  %v4657_v62 = vadd.f32 %v12654_v55, %v9046_v39  ;;  %v4543_v36 = vpop.f32.mrb[163].mxu1  ;;  %v4648_v34 = vpop.f32.mrb[179].mxu0 }
 0xf08   : > { %v12666_v57 = vadd.f32 %v12646_v61, %v4543_v36  ;;  %v4649_v45 = vadd.f32 %v12654_v55, %v4648_v34 }
 0xf09   : > { %v4709_v5 = vpack.c.bf16 %v4657_v62, %v4654_v44 }
 0xf0a   : > { %v4708_v33 = vpack.c.bf16 %v4649_v45, %v4646_v0 }
 0xf0b   : > { %v7880_v58 = vmul.bf16 3216621497, %v4709_v5 }
 0xf0c   : > { %v7879_v4 = vmul.bf16 3216621497, %v4708_v33 }
 0xf0d   : > { %9882 = vpow.bf16 %v7880_v58  ;;  %v9029_v13 = vpop.f32.mrb[164].mxu1  ;;  %v9049_v11 = vpop.f32.mrb[180].mxu0 }
 0xf0e   : > { %9884 = vpow.bf16 %v7879_v4  ;;  %v4556_v30 = vpop.f32.mrb[165].mxu1  ;;  %v4661_v19 = vpop.f32.mrb[181].mxu0  ;;  %v12674_v10 = vadd.f32 %v12646_v61, %v9029_v13  ;;  %v4670_v38 = vadd.f32 %v12654_v55, %v9049_v11 }
 0xf0f   : > { %v9030_v59 = vpop.f32.mrb[166].mxu1  ;;  %v9050_v8 = vpop.f32.mrb[182].mxu0  ;;  %v12682_v34 = vadd.f32 %v12646_v61, %v4556_v30  ;;  %v4662_v0 = vadd.f32 %v12654_v55, %v4661_v19 }
 0xf10   : > { %v12678_v39 = vadd.f32 %v12646_v61, %v9030_v59  ;;  %v4673_v44 = vadd.f32 %v12654_v55, %v9050_v8  ;;  %v4559_v62 = vpop.f32.mrb[167].mxu1  ;;  %v4664_v36 = vpop.f32.mrb[183].mxu0 }
 0xf11   : > { %v12686_v45 = vadd.f32 %v12646_v61, %v4559_v62  ;;  %v4665_v5 = vadd.f32 %v12654_v55, %v4664_v36 }
 0xf12   : > { %v4711_v58 = vpack.c.bf16 %v4673_v44, %v4670_v38 }
 0xf13   : > { %v4710_v13 = vpack.c.bf16 %v4665_v5, %v4662_v0 }
 0xf14   : > { %v7882_v11 = vmul.bf16 3216621497, %v4711_v58 }
 0xf15   : > { %v7881_v59 = vmul.bf16 3216621497, %v4710_v13 }
 0xf16   : > { %v9033_v8 = vpop.f32.mrb[168].mxu1  ;;  %v9053_v30 = vpop.f32.mrb[184].mxu0  ;;  %9886 = vpow.bf16 %v7882_v11 }
 0xf17   : > { %v4572_v35 = vpop.f32.mrb[169].mxu1  ;;  %v4677_v19 = vpop.f32.mrb[185].mxu0  ;;  %9888 = vpow.bf16 %v7881_v59  ;;  %v12694_v62 = vadd.f32 %v12646_v61, %v9033_v8  ;;  %v4686_v38 = vadd.f32 %v12654_v55, %v9053_v30 }
 0xf18   : > { %v9034_v36 = vpop.f32.mrb[170].mxu1  ;;  %v9054_v14 = vpop.f32.mrb[186].mxu0  ;;  %v12698_v44 = vadd.f32 %v12646_v61, %v4572_v35  ;;  %v4678_v8 = vadd.f32 %v12654_v55, %v4677_v19 }
 0xf19   : > { %v9883_v53 = vpop.eup %9882  ;;  %v12701_v0 = vadd.f32 %v12646_v61, %v9034_v36  ;;  %v4689_v5 = vadd.f32 %v12654_v55, %v9054_v14  ;;  %v4575_v58 = vpop.f32.mrb[171].mxu1 }
 0xf1a   : > { %v4680_v13 = vpop.f32.mrb[187].mxu0  ;;  %v9885_v11 = vpop.eup %9884  ;;  %v4749_v59 = vadd.bf16 1065369472, %v9883_v53  ;;  %v12706_v4 = vadd.f32 %v12646_v61, %v4575_v58 }
 0xf1b   : > { %v4681_v33 = vadd.f32 %v12654_v55, %v4680_v13  ;;  %v4748_v30 = vadd.bf16 1065369472, %v9885_v11  ;;  %v4713_v3 = vpack.c.bf16 %v4689_v5, %v4686_v38 }
 0xf1c   : > { %9890 = vrcp.bf16 %v4749_v59 }
 0xf1d   : > { %v4712_v36 = vpack.c.bf16 %v4681_v33, %v4678_v8  ;;  %9892 = vrcp.bf16 %v4748_v30  ;;  %v7884_v17 = vmul.bf16 3216621497, %v4713_v3 }
 0xf1e   : > { %v9037_v49 = vpop.f32.mrb[172].mxu1  ;;  %v9057_v19 = vpop.f32.mrb[188].mxu0 }
 0xf1f   : > { %v7883_v53 = vmul.bf16 3216621497, %v4712_v36  ;;  %9894 = vpow.bf16 %v7884_v17  ;;  %v4588_v58 = vpop.f32.mrb[173].mxu1  ;;  %v4693_v1 = vpop.f32.mrb[189].mxu0  ;;  %v12714_v31 = vadd.f32 %v12646_v61, %v9037_v49  ;;  %v4702_v38 = vadd.f32 %v12654_v55, %v9057_v19 }
 0xf20   : > { %v9038_v13 = vpop.f32.mrb[174].mxu1  ;;  %v9058_v11 = vpop.f32.mrb[190].mxu0  ;;  %v12722_v17 = vadd.f32 %v12646_v61, %v4588_v58  ;;  %v4694_v30 = vadd.f32 %v12654_v55, %v4693_v1 }
 0xf21   : > { %9896 = vpow.bf16 %v7883_v53  ;;  %v12718_v5 = vadd.f32 %v12646_v61, %v9038_v13  ;;  %v4705_v33 = vadd.f32 %v12654_v55, %v9058_v11  ;;  %v4591_v3 = vpop.f32.mrb[175].mxu1  ;;  %v4696_v59 = vpop.f32.mrb[191].mxu0 }
 0xf22   : > { %v9887_v8 = vpop.eup %9886  ;;  %v12726_v36 = vadd.f32 %v12646_v61, %v4591_v3  ;;  %v4697_v49 = vadd.f32 %v12654_v55, %v4696_v59 }
 0xf23   : > { %v9889_v53 = vpop.eup %9888  ;;  %v4751_v19 = vadd.bf16 1065369472, %v9887_v8  ;;  %v4610_v13 = vpack.c.bf16 %v12718_v5, %v12714_v31  ;;  %v4715_v14 = vpack.c.bf16 %v4705_v33, %v4702_v38  ;;  %v14401_v8 = vpack.c.bf16 %v12658_v25, %v12649_v46  ;;  %v9450_v31 = vld [vmem:[%s14236_s5 + $0xd0] sm:$0xff]   ;;  %v12828_v5 = vld [vmem:[%s14234_s3] sm:$0xff]  }
 0xf24   : > { %v4750_v11 = vadd.bf16 1065369472, %v9889_v53  ;;  %v4609_v35 = vpack.c.bf16 %v12726_v36, %v12722_v17  ;;  %v4714_v54 = vpack.c.bf16 %v4697_v49, %v4694_v30  ;;  %v14402_v30 = vpack.c.bf16 %v12666_v57, %v12662_v24  ;;  %9119 = vmatprep.subr.bf16.mxu0 %v9450_v31  ;;  %v12834_v36 = vld [vmem:[%s14237_s6 + $0xa] ss:$0 sm:$0xff] }
 0xf25   : > { %9898 = vrcp.bf16 %v4751_v19  ;;  %v7886_v58 = vmul.bf16 3216621497, %v4715_v14 }
 0xf26   : > { %9900 = vrcp.bf16 %v4750_v11  ;;  %v7885_v1 = vmul.bf16 3216621497, %v4714_v54 }
 0xf27   : > { %v9891_v37 = vpop.eup %9890  ;;  %9902 = vpow.bf16 %v7886_v58 }
 0xf28   : > { %v9893_v61 = vpop.eup %9892  ;;  %v4759_v3 = vmul.bf16 1065369472, %v9891_v37  ;;  %9904 = vpow.bf16 %v7885_v1  ;;  %v14403_v1 = vpack.c.bf16 %v12678_v39, %v12674_v10  ;;  %v14406_v39 = vpack.c.bf16 %v12706_v4, %v12698_v44 }
 0xf29   : > { %v4757_v55 = vmul.bf16 1065369472, %v9893_v61 }
 0xf2a   : > { %v9895_v59 = vpop.eup %9894  ;;  %v4773_v38 = vmul.bf16 %v4759_v3, %v14401_v8 }
 0xf2b   : > { %v4753_v53 = vadd.bf16 1065369472, %v9895_v59  ;;  %v4772_v49 = vmul.bf16 %v4757_v55, %v14402_v30  ;;  %v14404_v55 = vpack.c.bf16 %v12686_v45, %v12682_v34 }
 0xf2c   : > { %v9897_v33 = vpop.eup %9896  ;;  %v4781_v14 = vadd.bf16 %v4773_v38, %v12568_v41 }
 0xf2d   : > { %v4752_v54 = vadd.bf16 1065369472, %v9897_v33  ;;  %9906 = vrcp.bf16 %v4753_v53  ;;  %v4780_v19 = vadd.bf16 %v4772_v49, %v12573_v20 }
 0xf2e   : > { %v12743_v58 = vmul.bf16 1060454197, %v4781_v14 }
 0xf2f   : > { %9908 = vrcp.bf16 %v4752_v54  ;;  %v12741_v37 = vmul.bf16 1060454197, %v4780_v19 }
 0xf30   : > { %v9899_v11 = vpop.eup %9898 }
 0xf31   : > { %v9901_v46 = vpop.eup %9900  ;;  %v4763_v25 = vmul.bf16 1065369472, %v9899_v11  ;;  %9063 = vmatprep.mubr.msk.bf16.mxu1 %vm1003_vm2, %v12741_v37  ;;  %9083 = vmatprep.mubr.msk.bf16.mxu0 %vm1003_vm2, %v12741_v37 }
 0xf32   : > { %v9903_v24 = vpop.eup %9902  ;;  %v4761_v41 = vmul.bf16 1065369472, %v9901_v46  ;;  %9064 = vmatmul.mubr.msk.bf16.vlgmr.msra.gmra.mrb[176].mxu1 %vm1003_vm2, %v12743_v58  ;;  %9084 = vmatmul.mubr.msk.bf16.vlgmr.msra.gmra.mrb[192].mxu0 %vm1003_vm2, %v12743_v58 }
 0xf33   : > { %v9905_v20 = vpop.eup %9904  ;;  %v4755_v57 = vadd.bf16 1065369472, %v9903_v24  ;;  %v4775_v61 = vmul.bf16 %v4763_v25, %v14403_v1  ;;  %9120 = vmatpush3.bf16.msra.mxu0 %v9450_v31 }
 0xf34   : > { %v4754_v3 = vadd.bf16 1065369472, %v9905_v20  ;;  %v4774_v59 = vmul.bf16 %v4761_v41, %v14404_v55  ;;  %v12839_v20 = vld [vmem:[%s14237_s6 + $0xb] ss:$0 sm:$0xff] }
 0xf35   : > { %9910 = vrcp.bf16 %v4755_v57  ;;  %v4783_v8 = vadd.bf16 %v4775_v61, %v12586_v48  ;;  %v14405_v48 = vpack.c.bf16 %v12701_v0, %v12694_v62 }
 0xf36   : > { %9912 = vrcp.bf16 %v4754_v3  ;;  %v4782_v38 = vadd.bf16 %v4774_v59, %v12591_v26 }
 0xf37   : > { %v12763_v14 = vmul.bf16 1060454197, %v4783_v8 }
 0xf38   : > { %v9907_v33 = vpop.eup %9906  ;;  %v12761_v53 = vmul.bf16 1060454197, %v4782_v38 }
 0xf39   : > { %v4767_v49 = vmul.bf16 1065369472, %v9907_v33 }
 0xf3a   : > { %v9909_v30 = vpop.eup %9908  ;;  %9067 = vmatprep.mubr.msk.bf16.mxu1 %vm1003_vm2, %v12761_v53  ;;  %9087 = vmatprep.mubr.msk.bf16.mxu0 %vm1003_vm2, %v12761_v53 }
 0xf3b   : > { %v4765_v10 = vmul.bf16 1065369472, %v9909_v30  ;;  %9068 = vmatmul.mubr.msk.bf16.gmra.mrb[180].mxu1 %vm1003_vm2, %v12763_v14  ;;  %9088 = vmatmul.mubr.msk.bf16.gmra.mrb[196].mxu0 %vm1003_vm2, %v12763_v14  ;;  %v4777_v26 = vmul.bf16 %v4767_v49, %v14405_v48 }
 0xf3d   : > { %v4776_v34 = vmul.bf16 %v4765_v10, %v14406_v39  ;;  %v4785_v45 = vadd.bf16 %v4777_v26, %v12604_v16 }
 0xf3f   : > { %v4784_v54 = vadd.bf16 %v4776_v34, %v12609_v2  ;;  %v12783_v24 = vmul.bf16 1060454197, %v4785_v45 }
 0xf40   : > { %v9911_v19 = vpop.eup %9910 }
 0xf41   : > { %v12781_v11 = vmul.bf16 1060454197, %v4784_v54  ;;  %v9913_v46 = vpop.eup %9912  ;;  %v4771_v25 = vmul.bf16 1065369472, %v9911_v19 }
 0xf42   : > { %v4769_v41 = vmul.bf16 1065369472, %v9913_v46 }
 0xf43   : > { %9071 = vmatprep.mubr.msk.bf16.mxu1 %vm1003_vm2, %v12781_v11  ;;  %9091 = vmatprep.mubr.msk.bf16.mxu0 %vm1003_vm2, %v12781_v11  ;;  %v4779_v16 = vmul.bf16 %v4771_v25, %v4610_v13 }
 0xf44   : > { %9072 = vmatmul.mubr.msk.bf16.gmra.mrb[184].mxu1 %vm1003_vm2, %v12783_v24  ;;  %9092 = vmatmul.mubr.msk.bf16.gmra.mrb[200].mxu0 %vm1003_vm2, %v12783_v24  ;;  %v4778_v2 = vmul.bf16 %v4769_v41, %v4609_v35  ;;  %v9453_v35 = vld [vmem:[%s14236_s5 + $0xc8] sm:$0xff]  }
 0xf45   : > { %v4787_v4 = vadd.bf16 %v4779_v16, %v12619_v43  ;;  %v9452_v43 = vld [vmem:[%s14236_s5 + $0xc0] sm:$0xff]  }
 0xf46   : > { %v4786_v62 = vadd.bf16 %v4778_v2, %v12621_v50  ;;  %9099 = vmatprep.subr.bf16.mxu1 %v9452_v43  ;;  %v9451_v50 = vld [vmem:[%s14236_s5 + $0xd8] sm:$0xff]  }
 0xf47   : > { %v12803_v0 = vmul.bf16 1060454197, %v4787_v4  ;;  %9100 = vmatpush3.bf16.msra.mxu1 %v9452_v43  ;;  %9121 = vmatprep.subr.bf16.mxu0 %v9451_v50 }
 0xf48   : > { %v12801_v44 = vmul.bf16 1060454197, %v4786_v62  ;;  %9101 = vmatprep.subr.bf16.mxu1 %v9453_v35  ;;  %9122 = vmatpush3.bf16.msra.mxu0 %v9451_v50 }
 0xf49   : > { %9159 = vmatprep.subr.bf16.mxu0 %v12828_v5 }
 0xf4a   : > { %9075 = vmatprep.mubr.msk.bf16.mxu1 %vm1003_vm2, %v12801_v44  ;;  %9095 = vmatprep.mubr.msk.bf16.mxu0 %vm1003_vm2, %v12801_v44 }
 0xf4b   : > { %9102 = vmatpush3.bf16.msra.mxu1 %v9453_v35 }
 0xf4c   : > { %9076 = vmatmul.mubr.msk.bf16.gmra.mrb[188].mxu1 %vm1003_vm2, %v12803_v0  ;;  %9096 = vmatmul.mubr.msk.bf16.gmra.mrb[204].mxu0 %vm1003_vm2, %v12803_v0 }
0x1005   : > { %v9065_v17 = vpop.f32.mrb[176].mxu1  ;;  %v9085_v13 = vpop.f32.mrb[192].mxu0 }
0x1006   : > { %v4884_v57 = vpop.f32.mrb[177].mxu1  ;;  %v5009_v1 = vpop.f32.mrb[193].mxu0  ;;  %v12842_v55 = vadd.f32 %v9065_v17, %v12834_v36  ;;  %v5018_v59 = vadd.f32 %v9085_v13, %v12839_v20 }
0x1007   : > { %v9066_v61 = vpop.f32.mrb[178].mxu1  ;;  %v9086_v3 = vpop.f32.mrb[194].mxu0  ;;  %v12850_v49 = vadd.f32 %v12834_v36, %v4884_v57  ;;  %v5010_v10 = vadd.f32 %v12839_v20, %v5009_v1 }
0x1008   : > { %v12846_v8 = vadd.f32 %v9066_v61, %v12834_v36  ;;  %v5021_v38 = vadd.f32 %v9086_v3, %v12839_v20  ;;  %v4887_v33 = vpop.f32.mrb[179].mxu1  ;;  %v5012_v30 = vpop.f32.mrb[195].mxu0 }
0x1009   : > { %v12854_v48 = vadd.f32 %v12834_v36, %v4887_v33  ;;  %v5013_v26 = vadd.f32 %v12839_v20, %v5012_v30 }
0x100a   : > { %v5073_v34 = vpack.c.bf16 %v5021_v38, %v5018_v59 }
0x100b   : > { %v5072_v54 = vpack.c.bf16 %v5013_v26, %v5010_v10 }
0x100c   : > { %v7920_v19 = vmul.bf16 3216621497, %v5073_v34 }
0x100d   : > { %v7919_v46 = vmul.bf16 3216621497, %v5072_v54 }
0x100e   : > { %9914 = vpow.bf16 %v7920_v19  ;;  %v9069_v25 = vpop.f32.mrb[180].mxu1  ;;  %v9089_v41 = vpop.f32.mrb[196].mxu0 }
0x100f   : > { %9916 = vpow.bf16 %v7919_v46  ;;  %v4900_v16 = vpop.f32.mrb[181].mxu1  ;;  %v5025_v2 = vpop.f32.mrb[197].mxu0  ;;  %v12862_v31 = vadd.f32 %v9069_v25, %v12834_v36  ;;  %v5034_v43 = vadd.f32 %v9089_v41, %v12839_v20 }
0x1010   : > { %v9070_v4 = vpop.f32.mrb[182].mxu1  ;;  %v9090_v62 = vpop.f32.mrb[198].mxu0  ;;  %v12870_v57 = vadd.f32 %v12834_v36, %v4900_v16  ;;  %v5026_v1 = vadd.f32 %v12839_v20, %v5025_v2 }
0x1011   : > { %v12866_v50 = vadd.f32 %v9070_v4, %v12834_v36  ;;  %v5037_v35 = vadd.f32 %v9090_v62, %v12839_v20  ;;  %v4903_v17 = vpop.f32.mrb[183].mxu1  ;;  %v5028_v13 = vpop.f32.mrb[199].mxu0 }
0x1012   : > { %v12874_v61 = vadd.f32 %v12834_v36, %v4903_v17  ;;  %v5029_v3 = vadd.f32 %v12839_v20, %v5028_v13 }
0x1013   : > { %v5075_v38 = vpack.c.bf16 %v5037_v35, %v5034_v43 }
0x1014   : > { %v5074_v30 = vpack.c.bf16 %v5029_v3, %v5026_v1 }
0x1015   : > { %v7922_v10 = vmul.bf16 3216621497, %v5075_v38 }
0x1016   : > { %v7921_v26 = vmul.bf16 3216621497, %v5074_v30 }
0x1017   : > { %v9073_v34 = vpop.f32.mrb[184].mxu1  ;;  %v9093_v54 = vpop.f32.mrb[200].mxu0  ;;  %9918 = vpow.bf16 %v7922_v10 }
0x1018   : > { %v4916_v19 = vpop.f32.mrb[185].mxu1  ;;  %v5041_v46 = vpop.f32.mrb[201].mxu0  ;;  %9920 = vpow.bf16 %v7921_v26  ;;  %v12882_v25 = vadd.f32 %v9073_v34, %v12834_v36  ;;  %v5050_v4 = vadd.f32 %v9093_v54, %v12839_v20 }
0x1019   : > { %v9074_v41 = vpop.f32.mrb[186].mxu1  ;;  %v9094_v16 = vpop.f32.mrb[202].mxu0  ;;  %v12886_v62 = vadd.f32 %v12834_v36, %v4916_v19  ;;  %v5042_v38 = vadd.f32 %v12839_v20, %v5041_v46 }
0x101a   : > { %v9915_v2 = vpop.eup %9914  ;;  %v12889_v43 = vadd.f32 %v9074_v41, %v12834_v36  ;;  %v5053_v35 = vadd.f32 %v9094_v16, %v12839_v20  ;;  %v4919_v17 = vpop.f32.mrb[187].mxu1 }
0x101b   : > { %v5044_v13 = vpop.f32.mrb[203].mxu0  ;;  %v9917_v1 = vpop.eup %9916  ;;  %v5113_v3 = vadd.bf16 1065369472, %v9915_v2  ;;  %v12894_v30 = vadd.f32 %v12834_v36, %v4919_v17 }
0x101c   : > { %v5045_v10 = vadd.f32 %v12839_v20, %v5044_v13  ;;  %v5112_v26 = vadd.bf16 1065369472, %v9917_v1  ;;  %v5077_v54 = vpack.c.bf16 %v5053_v35, %v5050_v4 }
0x101d   : > { %9922 = vrcp.bf16 %v5113_v3 }
0x101e   : > { %v5076_v41 = vpack.c.bf16 %v5045_v10, %v5042_v38  ;;  %9924 = vrcp.bf16 %v5112_v26  ;;  %v7924_v16 = vmul.bf16 3216621497, %v5077_v54 }
0x101f   : > { %v9077_v33 = vpop.f32.mrb[188].mxu1  ;;  %v9097_v46 = vpop.f32.mrb[204].mxu0 }
0x1020   : > { %v7923_v2 = vmul.bf16 3216621497, %v5076_v41  ;;  %9926 = vpow.bf16 %v7924_v16  ;;  %v4932_v17 = vpop.f32.mrb[189].mxu1  ;;  %v5057_v59 = vpop.f32.mrb[205].mxu0  ;;  %v12902_v45 = vadd.f32 %v9077_v33, %v12834_v36  ;;  %v5066_v4 = vadd.f32 %v9097_v46, %v12839_v20 }
0x1021   : > { %v9078_v13 = vpop.f32.mrb[190].mxu1  ;;  %v9098_v1 = vpop.f32.mrb[206].mxu0  ;;  %v12910_v54 = vadd.f32 %v12834_v36, %v4932_v17  ;;  %v5058_v41 = vadd.f32 %v12839_v20, %v5057_v59 }
0x1022   : > { %9928 = vpow.bf16 %v7923_v2  ;;  %v12906_v35 = vadd.f32 %v9078_v13, %v12834_v36  ;;  %v5069_v3 = vadd.f32 %v9098_v1, %v12839_v20  ;;  %v4935_v38 = vpop.f32.mrb[191].mxu1  ;;  %v5060_v10 = vpop.f32.mrb[207].mxu0 }
0x1023   : > { %v9919_v26 = vpop.eup %9918  ;;  %v12914_v16 = vadd.f32 %v12834_v36, %v4935_v38  ;;  %v5061_v33 = vadd.f32 %v12839_v20, %v5060_v10 }
0x1024   : > { %v9921_v2 = vpop.eup %9920  ;;  %v5115_v46 = vadd.bf16 1065369472, %v9919_v26  ;;  %v4954_v13 = vpack.c.bf16 %v12906_v35, %v12902_v45  ;;  %v5079_v19 = vpack.c.bf16 %v5069_v3, %v5066_v4  ;;  %v14407_v26 = vpack.c.bf16 %v12846_v8, %v12842_v55  ;;  %v10224_v45 = vld [vmem:[%s14234_s3 + $0x30] sm:$0xff]   ;;  %v9455_v35 = vld [vmem:[%s14238_s7 + $0x28] sm:$0xff]  }
0x1025   : > { %v5114_v1 = vadd.bf16 1065369472, %v9921_v2  ;;  %v4953_v34 = vpack.c.bf16 %v12914_v16, %v12910_v54  ;;  %v5078_v39 = vpack.c.bf16 %v5061_v33, %v5058_v41  ;;  %v14408_v41 = vpack.c.bf16 %v12854_v48, %v12850_v49  ;;  %v13035_v54 = vld [vmem:[%s14234_s3 + $0x40] sm:$0xff]  }
0x1026   : > { %9930 = vrcp.bf16 %v5115_v46  ;;  %v7926_v17 = vmul.bf16 3216621497, %v5079_v19 }
0x1027   : > { %9932 = vrcp.bf16 %v5114_v1  ;;  %v7925_v59 = vmul.bf16 3216621497, %v5078_v39 }
0x1028   : > { %v9923_v52 = vpop.eup %9922  ;;  %9934 = vpow.bf16 %v7926_v17 }
0x1029   : > { %v9925_v36 = vpop.eup %9924  ;;  %v5123_v38 = vmul.bf16 1065369472, %v9923_v52  ;;  %9936 = vpow.bf16 %v7925_v59  ;;  %v14409_v59 = vpack.c.bf16 %v12866_v50, %v12862_v31 }
0x102a   : > { %v5121_v20 = vmul.bf16 1065369472, %v9925_v36 }
0x102b   : > { %v9927_v10 = vpop.eup %9926  ;;  %v5137_v4 = vmul.bf16 %v5123_v38, %v14407_v26  ;;  %v10219_v26 = vld [vmem:[%s14234_s3 + $0x8] sm:$0xff]  }
0x102c   : > { %v5117_v2 = vadd.bf16 1065369472, %v9927_v10  ;;  %v5136_v33 = vmul.bf16 %v5121_v20, %v14408_v41  ;;  %v14410_v20 = vpack.c.bf16 %v12874_v61, %v12870_v57 }
0x102d   : > { %v9929_v3 = vpop.eup %9928  ;;  %v5145_v19 = vadd.bf16 %v5137_v4, %v12743_v58 }
0x102e   : > { %v5116_v39 = vadd.bf16 1065369472, %v9929_v3  ;;  %9938 = vrcp.bf16 %v5117_v2  ;;  %v5144_v46 = vadd.bf16 %v5136_v33, %v12741_v37  ;;  %v14412_v33 = vpack.c.bf16 %v12894_v30, %v12886_v62  ;;  %v10222_v62 = vld [vmem:[%s14234_s3 + $0x20] sm:$0xff]  }
0x102f   : > { %v12931_v17 = vmul.bf16 1060454197, %v5145_v19 }
0x1030   : > { %9940 = vrcp.bf16 %v5116_v39  ;;  %v12929_v52 = vmul.bf16 1060454197, %v5144_v46  ;;  %v10221_v46 = vld [vmem:[%s14234_s3 + $0x18] sm:$0xff]  }
0x1031   : > { %v9931_v1 = vpop.eup %9930 }
0x1032   : > { %v9933_v55 = vpop.eup %9932  ;;  %v5127_v8 = vmul.bf16 1065369472, %v9931_v1  ;;  %9103 = vmatprep.mubr.msk.bf16.mxu1 %vm1003_vm2, %v12929_v52  ;;  %9123 = vmatprep.mubr.msk.bf16.mxu0 %vm1003_vm2, %v12929_v52 }
0x1033   : > { %v9935_v49 = vpop.eup %9934  ;;  %v5125_v58 = vmul.bf16 1065369472, %v9933_v55  ;;  %9104 = vmatmul.mubr.msk.bf16.vlgmr.msra.gmra.mrb[192].mxu1 %vm1003_vm2, %v12931_v17  ;;  %9124 = vmatmul.mubr.msk.bf16.vlgmr.msra.gmra.mrb[208].mxu0 %vm1003_vm2, %v12931_v17 }
0x1034   : > { %v9937_v37 = vpop.eup %9936  ;;  %v5119_v48 = vadd.bf16 1065369472, %v9935_v49  ;;  %v5139_v36 = vmul.bf16 %v5127_v8, %v14409_v59  ;;  %9160 = vmatpush3.bf16.msra.mxu0 %v12828_v5  ;;  %v10220_v5 = vld [vmem:[%s14234_s3 + $0x10] sm:$0xff]  }
0x1035   : > { %v5118_v38 = vadd.bf16 1065369472, %v9937_v37  ;;  %v5138_v10 = vmul.bf16 %v5125_v58, %v14410_v20  ;;  %9161 = vmatprep.subr.bf16.mxu0 %v10219_v26  ;;  %v10223_v37 = vld [vmem:[%s14234_s3 + $0x28] sm:$0xff]  }
0x1036   : > { %9942 = vrcp.bf16 %v5119_v48  ;;  %v5147_v4 = vadd.bf16 %v5139_v36, %v12763_v14  ;;  %v13046_v20 = vld [vmem:[%s14237_s6 + $0xd] ss:$0 sm:$0xff] }
0x1037   : > { %9944 = vrcp.bf16 %v5118_v38  ;;  %v5146_v3 = vadd.bf16 %v5138_v10, %v12761_v53  ;;  %v14411_v53 = vpack.c.bf16 %v12889_v43, %v12882_v25 }
0x1038   : > { %9162 = vmatpush3.bf16.msra.mxu0 %v10219_v26  ;;  %v12958_v2 = vmul.bf16 1060454197, %v5147_v4 }
0x1039   : > { %v9939_v31 = vpop.eup %9938  ;;  %v12953_v50 = vmul.bf16 1060454197, %v5146_v3  ;;  %9163 = vmatprep.subr.bf16.mxu0 %v10220_v5 }
0x103a   : > { %v5131_v61 = vmul.bf16 1065369472, %v9939_v31 }
0x103b   : > { %v9941_v57 = vpop.eup %9940  ;;  %9107 = vmatprep.mubr.msk.bf16.mxu1 %vm1003_vm2, %v12953_v50  ;;  %9127 = vmatprep.mubr.msk.bf16.mxu0 %vm1003_vm2, %v12953_v50 }
0x103c   : > { %v5129_v41 = vmul.bf16 1065369472, %v9941_v57  ;;  %9108 = vmatmul.mubr.msk.bf16.gmra.mrb[196].mxu1 %vm1003_vm2, %v12958_v2  ;;  %9128 = vmatmul.mubr.msk.bf16.gmra.mrb[212].mxu0 %vm1003_vm2, %v12958_v2  ;;  %v5141_v14 = vmul.bf16 %v5131_v61, %v14411_v53 }
0x103d   : > { %9164 = vmatpush3.bf16.msra.mxu0 %v10220_v5 }
0x103e   : > { %v5140_v19 = vmul.bf16 %v5129_v41, %v14412_v33  ;;  %v5149_v39 = vadd.bf16 %v5141_v14, %v12783_v24  ;;  %9165 = vmatprep.subr.bf16.mxu0 %v10221_v46 }
0x1040   : > { %v5148_v1 = vadd.bf16 %v5140_v19, %v12781_v11  ;;  %v12981_v49 = vmul.bf16 1060454197, %v5149_v39 }
0x1041   : > { %v9943_v55 = vpop.eup %9942  ;;  %9166 = vmatpush3.bf16.msra.mxu0 %v10221_v46 }
0x1042   : > { %v12979_v8 = vmul.bf16 1060454197, %v5148_v1  ;;  %v9945_v25 = vpop.eup %9944  ;;  %v5135_v43 = vmul.bf16 1065369472, %v9943_v55  ;;  %9167 = vmatprep.subr.bf16.mxu0 %v10222_v62 }
0x1043   : > { %v5133_v24 = vmul.bf16 1065369472, %v9945_v25 }
0x1044   : > { %9111 = vmatprep.mubr.msk.bf16.mxu1 %vm1003_vm2, %v12979_v8  ;;  %9131 = vmatprep.mubr.msk.bf16.mxu0 %vm1003_vm2, %v12979_v8  ;;  %v5143_v11 = vmul.bf16 %v5135_v43, %v4954_v13  ;;  %v13041_v13 = vld [vmem:[%s14237_s6 + $0xc] ss:$0 sm:$0xff] }
0x1045   : > { %9112 = vmatmul.mubr.msk.bf16.gmra.mrb[200].mxu1 %vm1003_vm2, %v12981_v49  ;;  %9132 = vmatmul.mubr.msk.bf16.gmra.mrb[216].mxu0 %vm1003_vm2, %v12981_v49  ;;  %v5142_v30 = vmul.bf16 %v5133_v24, %v4953_v34  ;;  %v9454_v34 = vld [vmem:[%s14238_s7 + $0x20] sm:$0xff]  }
0x1046   : > { %9168 = vmatpush3.bf16.msra.mxu0 %v10222_v62  ;;  %v5151_v58 = vadd.bf16 %v5143_v11, %v12803_v0  ;;  %v10226_v0 = vld [vmem:[%s14236_s5] sm:$0xff]   ;;  %9139 = vmatprep.subr.bf16.mxu1 %v9454_v34 }
0x1047   : > { %9169 = vmatprep.subr.bf16.mxu0 %v10223_v37  ;;  %v5150_v48 = vadd.bf16 %v5142_v30, %v12801_v44  ;;  %v10225_v44 = vld [vmem:[%s14234_s3 + $0x38] sm:$0xff]   ;;  %9140 = vmatpush3.bf16.msra.mxu1 %v9454_v34 }
0x1048   : > { %v13007_v36 = vmul.bf16 1060454197, %v5151_v58  ;;  %9141 = vmatprep.subr.bf16.mxu1 %v9455_v35 }
0x1049   : > { %v13005_v59 = vmul.bf16 1060454197, %v5150_v48 }
0x104a   : > { %9170 = vmatpush3.bf16.msra.mxu0 %v10223_v37 }
0x104b   : > { %9171 = vmatprep.subr.bf16.mxu0 %v10224_v45  ;;  %9115 = vmatprep.mubr.msk.bf16.mxu1 %vm1003_vm2, %v13005_v59 }
0x104c   : > { %9135 = vmatprep.mubr.msk.bf16.mxu0 %vm1003_vm2, %v13005_v59  ;;  %9142 = vmatpush3.bf16.msra.mxu1 %v9455_v35 }
0x104d   : > { %9116 = vmatmul.mubr.msk.bf16.gmra.mrb[204].mxu1 %vm1003_vm2, %v13007_v36  ;;  %9136 = vmatmul.mubr.msk.bf16.gmra.mrb[220].mxu0 %vm1003_vm2, %v13007_v36 }
0x104e   : > { %9172 = vmatpush3.bf16.msra.mxu0 %v10224_v45  ;;  %9191 = vmatprep.subr.bf16.mxu1 %v13035_v54 }
0x104f   : > { %9173 = vmatprep.subr.bf16.mxu0 %v10225_v44 }
0x1052   : > { %9174 = vmatpush3.bf16.msra.mxu0 %v10225_v44 }
0x1053   : > { %9223 = vmatprep.subr.bf16.mxu0 %v10226_v0 }
0x1106   : > { %v9105_v16 = vpop.f32.mrb[192].mxu1  ;;  %v9125_v38 = vpop.f32.mrb[208].mxu0 }
0x1107   : > { %v5248_v10 = vpop.f32.mrb[193].mxu1  ;;  %v5373_v26 = vpop.f32.mrb[209].mxu0  ;;  %v13049_v31 = vadd.f32 %v9105_v16, %v13041_v13  ;;  %v5382_v5 = vadd.f32 %v9125_v38, %v13046_v20 }
0x1108   : > { %v9106_v4 = vpop.f32.mrb[194].mxu1  ;;  %v9126_v3 = vpop.f32.mrb[210].mxu0  ;;  %v13057_v14 = vadd.f32 %v13041_v13, %v5248_v10  ;;  %v5374_v33 = vadd.f32 %v13046_v20, %v5373_v26 }
0x1109   : > { %v13053_v57 = vadd.f32 %v9106_v4, %v13041_v13  ;;  %v5385_v61 = vadd.f32 %v9126_v3, %v13046_v20  ;;  %v5251_v41 = vpop.f32.mrb[195].mxu1  ;;  %v5376_v53 = vpop.f32.mrb[211].mxu0 }
0x110a   : > { %v13061_v19 = vadd.f32 %v13041_v13, %v5251_v41  ;;  %v5377_v39 = vadd.f32 %v13046_v20, %v5376_v53 }
0x110b   : > { %v5437_v1 = vpack.c.bf16 %v5385_v61, %v5382_v5 }
0x110c   : > { %v5436_v25 = vpack.c.bf16 %v5377_v39, %v5374_v33 }
0x110d   : > { %v7960_v43 = vmul.bf16 3216621497, %v5437_v1 }
0x110e   : > { %v7959_v62 = vmul.bf16 3216621497, %v5436_v25 }
0x110f   : > { %9946 = vpow.bf16 %v7960_v43  ;;  %v9109_v24 = vpop.f32.mrb[196].mxu1  ;;  %v9129_v11 = vpop.f32.mrb[212].mxu0 }
0x1110   : > { %9948 = vpow.bf16 %v7959_v62  ;;  %v5264_v30 = vpop.f32.mrb[197].mxu1  ;;  %v5389_v58 = vpop.f32.mrb[213].mxu0  ;;  %v13069_v45 = vadd.f32 %v9109_v24, %v13041_v13  ;;  %v5398_v44 = vadd.f32 %v9129_v11, %v13046_v20 }
0x1111   : > { %v9110_v37 = vpop.f32.mrb[198].mxu1  ;;  %v9130_v48 = vpop.f32.mrb[214].mxu0  ;;  %v13077_v38 = vadd.f32 %v13041_v13, %v5264_v30  ;;  %v5390_v10 = vadd.f32 %v13046_v20, %v5389_v58 }
0x1112   : > { %v13073_v0 = vadd.f32 %v9110_v37, %v13041_v13  ;;  %v5401_v34 = vadd.f32 %v9130_v48, %v13046_v20  ;;  %v5267_v35 = vpop.f32.mrb[199].mxu1  ;;  %v5392_v16 = vpop.f32.mrb[215].mxu0 }
0x1113   : > { %v13081_v26 = vadd.f32 %v13041_v13, %v5267_v35  ;;  %v5393_v4 = vadd.f32 %v13046_v20, %v5392_v16 }
0x1114   : > { %v5439_v5 = vpack.c.bf16 %v5401_v34, %v5398_v44 }
0x1115   : > { %v5438_v41 = vpack.c.bf16 %v5393_v4, %v5390_v10 }
0x1116   : > { %v7962_v53 = vmul.bf16 3216621497, %v5439_v5 }
0x1117   : > { %v7961_v33 = vmul.bf16 3216621497, %v5438_v41 }
0x1118   : > { %v9113_v39 = vpop.f32.mrb[200].mxu1  ;;  %v9133_v1 = vpop.f32.mrb[216].mxu0  ;;  %9950 = vpow.bf16 %v7962_v53 }
0x1119   : > { %v5280_v25 = vpop.f32.mrb[201].mxu1  ;;  %v5405_v43 = vpop.f32.mrb[217].mxu0  ;;  %9952 = vpow.bf16 %v7961_v33  ;;  %v13089_v62 = vadd.f32 %v9113_v39, %v13041_v13  ;;  %v5414_v58 = vadd.f32 %v9133_v1, %v13046_v20 }
0x111a   : > { %v9114_v24 = vpop.f32.mrb[202].mxu1  ;;  %v9134_v11 = vpop.f32.mrb[218].mxu0  ;;  %v13093_v37 = vadd.f32 %v13041_v13, %v5280_v25  ;;  %v5406_v4 = vadd.f32 %v13046_v20, %v5405_v43 }
0x111b   : > { %v9947_v30 = vpop.eup %9946  ;;  %v13096_v48 = vadd.f32 %v9114_v24, %v13041_v13  ;;  %v5417_v44 = vadd.f32 %v9134_v11, %v13046_v20  ;;  %v5283_v34 = vpop.f32.mrb[203].mxu1 }
0x111c   : > { %v5408_v35 = vpop.f32.mrb[219].mxu0  ;;  %v9949_v16 = vpop.eup %9948  ;;  %v5477_v10 = vadd.bf16 1065369472, %v9947_v30  ;;  %v13101_v5 = vadd.f32 %v13041_v13, %v5283_v34 }
0x111d   : > { %v5409_v41 = vadd.f32 %v13046_v20, %v5408_v35  ;;  %v5476_v53 = vadd.bf16 1065369472, %v9949_v16  ;;  %v5441_v39 = vpack.c.bf16 %v5417_v44, %v5414_v58 }
0x111e   : > { %9954 = vrcp.bf16 %v5477_v10 }
0x111f   : > { %v5440_v25 = vpack.c.bf16 %v5409_v41, %v5406_v4  ;;  %9956 = vrcp.bf16 %v5476_v53  ;;  %v7964_v24 = vmul.bf16 3216621497, %v5441_v39 }
0x1120   : > { %v9117_v30 = vpop.f32.mrb[204].mxu1  ;;  %v9137_v43 = vpop.f32.mrb[220].mxu0 }
0x1121   : > { %v7963_v11 = vmul.bf16 3216621497, %v5440_v25  ;;  %9958 = vpow.bf16 %v7964_v24  ;;  %v5296_v34 = vpop.f32.mrb[205].mxu1  ;;  %v5421_v61 = vpop.f32.mrb[221].mxu0  ;;  %v13109_v3 = vadd.f32 %v9117_v30, %v13041_v13  ;;  %v5430_v58 = vadd.f32 %v9137_v43, %v13046_v20 }
0x1122   : > { %v9118_v35 = vpop.f32.mrb[206].mxu1  ;;  %v9138_v16 = vpop.f32.mrb[222].mxu0  ;;  %v13117_v39 = vadd.f32 %v13041_v13, %v5296_v34  ;;  %v5422_v25 = vadd.f32 %v13046_v20, %v5421_v61 }
0x1123   : > { %9960 = vpow.bf16 %v7963_v11  ;;  %v13113_v44 = vadd.f32 %v9118_v35, %v13041_v13  ;;  %v5433_v10 = vadd.f32 %v9138_v16, %v13046_v20  ;;  %v5299_v4 = vpop.f32.mrb[207].mxu1  ;;  %v5424_v41 = vpop.f32.mrb[223].mxu0 }
0x1124   : > { %v9951_v53 = vpop.eup %9950  ;;  %v13121_v24 = vadd.f32 %v13041_v13, %v5299_v4  ;;  %v5425_v11 = vadd.f32 %v13046_v20, %v5424_v41 }
0x1125   : > { %v9953_v30 = vpop.eup %9952  ;;  %v5479_v43 = vadd.bf16 1065369472, %v9951_v53  ;;  %v5318_v35 = vpack.c.bf16 %v13113_v44, %v13109_v3  ;;  %v5443_v1 = vpack.c.bf16 %v5433_v10, %v5430_v58  ;;  %v14413_v53 = vpack.c.bf16 %v13053_v57, %v13049_v31 }
0x1126   : > { %v5478_v16 = vadd.bf16 1065369472, %v9953_v30  ;;  %v5317_v33 = vpack.c.bf16 %v13121_v24, %v13117_v39  ;;  %v5442_v55 = vpack.c.bf16 %v5425_v11, %v5422_v25  ;;  %v14414_v25 = vpack.c.bf16 %v13061_v19, %v13057_v14 }
0x1127   : > { %9962 = vrcp.bf16 %v5479_v43  ;;  %v7966_v34 = vmul.bf16 3216621497, %v5443_v1  ;;  %v14308_v1 = vmov 0  }
0x1128   : > { %9964 = vrcp.bf16 %v5478_v16  ;;  %v7965_v61 = vmul.bf16 3216621497, %v5442_v55  ;;  %v3759_v55 = vmax.bf16 %v14308_v1, %v12124_v12  ;;  %v3758_v16 = vmax.bf16 %v14308_v1, %v12122_v63 }
0x1129   : > { %v9955_v46 = vpop.eup %9954  ;;  %9966 = vpow.bf16 %v7966_v34  ;;  %v3764_v24 = vmax.bf16 %v14308_v1, %v12186_v6 }
0x112a   : > { %v9957_v13 = vpop.eup %9956  ;;  %v5487_v4 = vmul.bf16 1065369472, %v9955_v46  ;;  %9968 = vpow.bf16 %v7965_v61  ;;  %v3767_v63 = vunpack.c.h.bf16 %v3758_v16 }
0x112b   : > { %v5485_v20 = vmul.bf16 1065369472, %v9957_v13  ;;  %v3768_v13 = vunpack.c.l.bf16 %v3759_v55  ;;  %v3778_v6 = vunpack.c.l.bf16 %v3764_v24 }
0x112c   : > { %v9959_v41 = vpop.eup %9958  ;;  %v5501_v58 = vmul.bf16 %v5487_v4, %v14413_v53  ;;  %v3769_v4 = vunpack.c.h.bf16 %v3759_v55  ;;  %v14415_v55 = vpack.c.bf16 %v13073_v0, %v13069_v45 }
0x112d   : > { %v5481_v30 = vadd.bf16 1065369472, %v9959_v41  ;;  %v5500_v11 = vmul.bf16 %v5485_v20, %v14414_v25  ;;  %v3766_v20 = vunpack.c.l.bf16 %v3758_v16 }
0x112e   : > { %v9961_v10 = vpop.eup %9960  ;;  %v5509_v43 = vadd.bf16 %v5501_v58, %v12931_v17 }
0x112f   : > { %v5480_v46 = vadd.bf16 1065369472, %v9961_v10  ;;  %9970 = vrcp.bf16 %v5481_v30  ;;  %v5508_v31 = vadd.bf16 %v5500_v11, %v12929_v52 }
0x1130   : > { %v5517_v57 = vmul.bf16 1060454197, %v5509_v43 }
0x1131   : > { %9972 = vrcp.bf16 %v5480_v46  ;;  %v5516_v34 = vmul.bf16 1060454197, %v5508_v31 }
0x1132   : > { %v9963_v61 = vpop.eup %9962  ;;  %v5525_v14 = vmax.bf16 %v14308_v1, %v5517_v57 }
0x1133   : > { %v9965_v19 = vpop.eup %9964  ;;  %v5491_v12 = vmul.bf16 1065369472, %v9963_v61  ;;  %v5524_v17 = vmax.bf16 %v14308_v1, %v5516_v34  ;;  %9143 = vmatprep.mubr.msk.bf16.mxu1 %vm1003_vm2, %v5516_v34  ;;  %v14416_v34 = vpack.c.bf16 %v13081_v26, %v13077_v38  ;;  %v3760_v38 = vmax.bf16 %v14308_v1, %v12142_v22 }
0x1134   : > { %v9967_v41 = vpop.eup %9966  ;;  %v5534_v53 = vunpack.c.l.bf16 %v5525_v14  ;;  %v5535_v58 = vunpack.c.h.bf16 %v5525_v14  ;;  %v5489_v52 = vmul.bf16 1065369472, %v9965_v19  ;;  %9144 = vmatmul.mubr.msk.bf16.vlgmr.msra.gmra.mrb[208].mxu1 %vm1003_vm2, %v5517_v57  ;;  %v10228_v57 = vld [vmem:[%s14234_s3 + $0x48] sm:$0xff]  }
0x1135   : > { %v9969_v10 = vpop.eup %9968  ;;  %v5483_v30 = vadd.bf16 1065369472, %v9967_v41  ;;  %v5532_v25 = vunpack.c.l.bf16 %v5524_v17  ;;  %v5533_v11 = vunpack.c.h.bf16 %v5524_v17  ;;  %v5503_v43 = vmul.bf16 %v5491_v12, %v14415_v55  ;;  %9192 = vmatpush3.bf16.msra.mxu1 %v13035_v54 }
0x1136   : > { %v13148_v46 = vadd.f32 %v5534_v53, %v3768_v13  ;;  %v13150_v31 = vadd.f32 %v5535_v58, %v3769_v4  ;;  %v5482_v16 = vadd.bf16 1065369472, %v9969_v10  ;;  %v5502_v61 = vmul.bf16 %v5489_v52, %v14416_v34  ;;  %9193 = vmatprep.subr.bf16.mxu1 %v10228_v57 }
0x1137   : > { %9974 = vrcp.bf16 %v5483_v30  ;;  %v5511_v45 = vadd.bf16 %v5503_v43, %v12958_v2  ;;  %v13159_v0 = vadd.f32 %v5532_v25, %v3766_v20  ;;  %v13161_v54 = vadd.f32 %v5533_v11, %v3767_v63  ;;  %v10229_v2 = vld [vmem:[%s14234_s3 + $0x50] sm:$0xff]  }
0x1138   : > { %v3761_v13 = vmax.bf16 %v14308_v1, %v12144_v23  ;;  %9976 = vrcp.bf16 %v5482_v16  ;;  %v5510_v14 = vadd.bf16 %v5502_v61, %v12953_v50  ;;  %v3770_v22 = vunpack.c.l.bf16 %v3760_v38 }
0x1139   : > { %v5519_v26 = vmul.bf16 1060454197, %v5511_v45  ;;  %9194 = vmatpush3.bf16.msra.mxu1 %v10228_v57  ;;  %v14417_v52 = vpack.c.bf16 %v13096_v48, %v13089_v62  ;;  %v3771_v30 = vunpack.c.h.bf16 %v3760_v38  ;;  %v14418_v55 = vpack.c.bf16 %v13101_v5, %v13093_v37  ;;  %v10230_v57 = vld [vmem:[%s14234_s3 + $0x58] sm:$0xff]  }
0x113a   : > { %v9971_v19 = vpop.eup %9970  ;;  %v5518_v4 = vmul.bf16 1060454197, %v5510_v14  ;;  %9195 = vmatprep.subr.bf16.mxu1 %v10229_v2  ;;  %v3772_v23 = vunpack.c.l.bf16 %v3761_v13  ;;  %v3773_v41 = vunpack.c.h.bf16 %v3761_v13  ;;  %v3763_v62 = vmax.bf16 %v14308_v1, %v12166_v29  ;;  %v10231_v29 = vld [vmem:[%s14234_s3 + $0x60] sm:$0xff]  }
0x113b   : > { %v5495_v12 = vmul.bf16 1065369472, %v9971_v19  ;;  %v5527_v17 = vmax.bf16 %v14308_v1, %v5519_v26  ;;  %v3762_v5 = vmax.bf16 %v14308_v1, %v12164_v21 }
0x113c   : > { %v9973_v20 = vpop.eup %9972  ;;  %v5526_v50 = vmax.bf16 %v14308_v1, %v5518_v4  ;;  %9147 = vmatprep.mubr.msk.bf16.mxu1 %vm1003_vm2, %v5518_v4  ;;  %v3777_v4 = vunpack.c.h.bf16 %v3763_v62 }
0x113d   : > { %v5493_v63 = vmul.bf16 1065369472, %v9973_v20  ;;  %v5538_v53 = vunpack.c.l.bf16 %v5527_v17  ;;  %v5539_v58 = vunpack.c.h.bf16 %v5527_v17  ;;  %9148 = vmatmul.mubr.msk.bf16.gmra.mrb[212].mxu1 %vm1003_vm2, %v5519_v26  ;;  %v5505_v10 = vmul.bf16 %v5495_v12, %v14417_v52 }
0x113e   : > { %v5536_v25 = vunpack.c.l.bf16 %v5526_v50  ;;  %v5537_v11 = vunpack.c.h.bf16 %v5526_v50  ;;  %9196 = vmatpush3.bf16.msra.mxu1 %v10229_v2  ;;  %v3774_v21 = vunpack.c.l.bf16 %v3762_v5 }
0x113f   : > { %v5504_v43 = vmul.bf16 %v5493_v63, %v14418_v55  ;;  %v13181_v16 = vadd.f32 %v5538_v53, %v3772_v23  ;;  %v13183_v34 = vadd.f32 %v5539_v58, %v3773_v41  ;;  %v5513_v61 = vadd.bf16 %v5505_v10, %v12981_v49  ;;  %9197 = vmatprep.subr.bf16.mxu1 %v10230_v57  ;;  %v10232_v10 = vld [vmem:[%s14234_s3 + $0x68] sm:$0xff]  }
0x1140   : > { %v13192_v45 = vadd.f32 %v5536_v25, %v3770_v22  ;;  %v13194_v37 = vadd.f32 %v5537_v11, %v3771_v30  ;;  %v3775_v41 = vunpack.c.h.bf16 %v3762_v5  ;;  %v10233_v25 = vld [vmem:[%s14234_s3 + $0x70] sm:$0xff]  }
0x1141   : > { %v5512_v48 = vadd.bf16 %v5504_v43, %v12979_v8  ;;  %v5521_v13 = vmul.bf16 1060454197, %v5513_v61  ;;  %v3776_v8 = vunpack.c.l.bf16 %v3763_v62  ;;  %v3779_v61 = vunpack.c.h.bf16 %v3764_v24 }
0x1142   : > { %v9975_v14 = vpop.eup %9974  ;;  %9198 = vmatpush3.bf16.msra.mxu1 %v10230_v57  ;;  %v4156_v24 = vsub.f32 1.3, %v12408_v18 }
0x1143   : > { %v5520_v49 = vmul.bf16 1060454197, %v5512_v48  ;;  %v9977_v38 = vpop.eup %9976  ;;  %v5499_v26 = vmul.bf16 1065369472, %v9975_v14  ;;  %v5529_v19 = vmax.bf16 %v14308_v1, %v5521_v13  ;;  %9199 = vmatprep.subr.bf16.mxu1 %v10231_v29 }
0x1144   : > { %v5497_v2 = vmul.bf16 1065369472, %v9977_v38  ;;  %v13249_v38 = vld [vmem:[%s14236_s5 + $0x10] sm:$0xff]  }
0x1145   : > { %v5528_v20 = vmax.bf16 %v14308_v1, %v5520_v49  ;;  %9151 = vmatprep.mubr.msk.bf16.mxu1 %vm1003_vm2, %v5520_v49  ;;  %v5542_v12 = vunpack.c.l.bf16 %v5529_v19  ;;  %v5543_v17 = vunpack.c.h.bf16 %v5529_v19  ;;  %v5507_v23 = vmul.bf16 %v5499_v26, %v5318_v35  ;;  %v13256_v19 = vld [vmem:[%s14239_s8 + $0x2] ss:$0 sm:$0xff] }
0x1146   : > { %9152 = vmatmul.mubr.msk.bf16.gmra.mrb[216].mxu1 %vm1003_vm2, %v5521_v13  ;;  %v5506_v22 = vmul.bf16 %v5497_v2, %v5317_v33  ;;  %v3765_v33 = vmax.bf16 %v14308_v1, %v12188_v47  ;;  %v10234_v13 = vld [vmem:[%s14234_s3 + $0x78] sm:$0xff]   ;;  %v4154_v26 = vsub.f32 1.3, %v12394_v32  ;;  %v4153_v2 = vsub.f32 1.3, %v12391_v60 }
0x1147   : > { %v5540_v63 = vunpack.c.l.bf16 %v5528_v20  ;;  %v5541_v50 = vunpack.c.h.bf16 %v5528_v20  ;;  %9200 = vmatpush3.bf16.msra.mxu1 %v10231_v29  ;;  %v13211_v53 = vadd.f32 %v5542_v12, %v3776_v8  ;;  %v13213_v58 = vadd.f32 %v5543_v17, %v3777_v4 }
0x1148   : > { %v5515_v52 = vadd.bf16 %v5507_v23, %v13007_v36  ;;  %9201 = vmatprep.subr.bf16.mxu1 %v10232_v10  ;;  %v5514_v3 = vadd.bf16 %v5506_v22, %v13005_v59  ;;  %v3780_v11 = vunpack.c.l.bf16 %v3765_v33  ;;  %v3781_v55 = vunpack.c.h.bf16 %v3765_v33 }
0x1149   : > { %v13220_v44 = vadd.f32 %v5540_v63, %v3774_v21  ;;  %v13222_v35 = vadd.f32 %v5541_v50, %v3775_v41  ;;  %v4152_v29 = vsub.f32 1.3, %v12388_v15  ;;  %v4155_v8 = vsub.f32 1.3, %v12401_v9 }
0x114a   : > { %v5523_v39 = vmul.bf16 1060454197, %v5515_v52  ;;  %v5522_v30 = vmul.bf16 1060454197, %v5514_v3  ;;  %v14419_v12 = vsub.f32 1.3, %v11373_v7 }
0x114b   : > { %9202 = vmatpush3.bf16.msra.mxu1 %v10232_v10  ;;  %v14420_v41 = vsub.f32 1.3, %v11367_v56  ;;  %v14421_v9 = vsub.f32 1.3, %v11382_v28  ;;  %v14422_v7 = vsub.f32 1.3, %v11370_v51 }
0x114c   : > { %v5531_v36 = vmax.bf16 %v14308_v1, %v5523_v39  ;;  %9203 = vmatprep.subr.bf16.mxu1 %v10233_v25  ;;  %v5530_v59 = vmax.bf16 %v14308_v1, %v5522_v30  ;;  %9155 = vmatprep.mubr.msk.bf16.mxu1 %vm1003_vm2, %v5522_v30  ;;  %v4170_v17 = vmul.f32 %v4154_v26, %v14419_v12  ;;  %v4159_v28 = vsub.f32 1.3, %v12423_v42 }
0x114d   : > { %v4168_v63 = vmul.f32 %v4152_v29, %v14420_v41  ;;  %v4171_v60 = vmul.f32 %v4155_v8, %v14421_v9  ;;  %v4169_v3 = vmul.f32 %v4153_v2, %v14422_v7  ;;  %v14429_v8 = vld [vmem:[#allocation22_spill] sm:$0xff]  ;;  %v14433_v41 = vld [vmem:[#allocation36_spill] sm:$0xff]  ;;  %v14435_v7 = vld [vmem:[#allocation27_spill] sm:$0xff] }
0x114e   : > { %v5546_v47 = vunpack.c.l.bf16 %v5531_v36  ;;  %v5547_v43 = vunpack.c.h.bf16 %v5531_v36  ;;  %9156 = vmatmul.mubr.msk.bf16.gmra.mrb[220].mxu1 %vm1003_vm2, %v5523_v39  ;;  %v5544_v57 = vunpack.c.l.bf16 %v5530_v59  ;;  %v5545_v62 = vunpack.c.h.bf16 %v5530_v59  ;;  %v14423_v59 = vld [vmem:[#allocation23_spill] sm:$0xff] }
0x114f   : > { %9204 = vmatpush3.bf16.msra.mxu1 %v10233_v25  ;;  %v4158_v39 = vsub.f32 1.3, %v12416_v27  ;;  %v4157_v36 = vsub.f32 1.3, %v12411_v40 }
0x1150   : > { %v13235_v48 = vadd.f32 %v5546_v47, %v3780_v11  ;;  %v13237_v5 = vadd.f32 %v5547_v43, %v3781_v55  ;;  %9205 = vmatprep.subr.bf16.mxu1 %v10234_v13  ;;  %v13242_v14 = vadd.f32 %v5544_v57, %v3778_v6  ;;  %v13244_v49 = vadd.f32 %v5545_v62, %v3779_v61  ;;  %v14425_v43 = vld [vmem:[#allocation21_spill] sm:$0xff]  ;;  %v14427_v57 = vld [vmem:[#allocation24_spill] sm:$0xff] }
0x1151   : > { %v14424_v11 = vsub.f32 1.3, %v14423_v59  ;;  %v14426_v18 = vsub.f32 1.3, %v14425_v43  ;;  %v14428_v62 = vsub.f32 1.3, %v14427_v57 }
0x1153   : > { %9206 = vmatpush3.bf16.msra.mxu1 %v10234_v13  ;;  %v4174_v55 = vmul.f32 %v4158_v39, %v14424_v11  ;;  %v4172_v6 = vmul.f32 %v4156_v24, %v14426_v18  ;;  %v4175_v13 = vmul.f32 %v4159_v28, %v14428_v62  ;;  %v14443_v62 = vld [vmem:[#allocation39_spill] sm:$0xff] }
0x1154   : > { %9243 = vmatprep.subr.bf16.mxu1 %v13249_v38 }
0x1207   : > { %v9145_v4 = vpop.f32.mrb[208].mxu1 }
0x1208   : > { %v5656_v20 = vadd.f32 %v9145_v4, %v13256_v19  ;;  %v5647_v21 = vpop.f32.mrb[209].mxu1  ;;  %v14430_v4 = vsub.f32 1.3, %v14429_v8  ;;  %v14444_v8 = vld [vmem:[#allocation37_spill] sm:$0xff] }
0x1209   : > { %v5648_v32 = vadd.f32 %v13256_v19, %v5647_v21  ;;  %v9146_v23 = vpop.f32.mrb[210].mxu1  ;;  %v14431_v21 = vld [vmem:[#allocation35_spill] sm:$0xff] }
0x120a   : > { %v5659_v50 = vadd.f32 %v9146_v23, %v13256_v19  ;;  %v5650_v15 = vpop.f32.mrb[211].mxu1  ;;  %v13268_v22 = vmul.f32 %v5656_v20, %v4170_v17  ;;  %v4173_v2 = vmul.f32 %v4157_v36, %v14430_v4  ;;  %v4162_v12 = vsub.f32 1.3, %v14431_v21 }
0x120b   : > { %v5651_v52 = vadd.f32 %v13256_v19, %v5650_v15  ;;  %v13273_v10 = vmul.f32 %v5648_v32, %v4168_v63  ;;  %v14432_v32 = vld [vmem:[#allocation33_spill] sm:$0xff]  ;;  %v4163_v63 = vsub.f32 1.3, %v14433_v41  ;;  %v14434_v15 = vld [vmem:[#allocation34_spill] sm:$0xff]  ;;  %v4164_v4 = vsub.f32 1.3, %v14444_v8 }
0x120c   : > { %v13277_v33 = vmul.f32 %v5659_v50, %v4171_v60  ;;  %v4160_v23 = vsub.f32 1.3, %v14432_v32  ;;  %v4161_v9 = vsub.f32 1.3, %v14434_v15  ;;  %v14446_v32 = vld [vmem:[#allocation38_spill] sm:$0xff] }
0x120d   : > { %5726 = vmax.xlane.f32.xlu0 %v13273_v10  ;;  %v13280_v56 = vmul.f32 %v5651_v52, %v4169_v3  ;;  %v14436_v3 = vsub.f32 1.3, %v14435_v7  ;;  %v14449_v7 = vld [vmem:[#allocation29_spill] sm:$0xff] }
0x120f   : > { %5728 = vmax.xlane.f32.xlu1 %v13280_v56  ;;  %v4178_v39 = vmul.f32 %v4162_v12, %v14436_v3  ;;  %v14450_v3 = vsub.f32 1.3, %v14449_v7 }
0x1210   : > { %v9149_v30 = vpop.f32.mrb[212].mxu1 }
0x1211   : > { %v5672_v51 = vadd.f32 %v9149_v30, %v13256_v19  ;;  %v5663_v25 = vpop.f32.mrb[213].mxu1  ;;  %5730 = vmax.xlane.f32.xlu0 %v13268_v22  ;;  %v14437_v30 = vld [vmem:[#allocation25_spill] sm:$0xff] }
0x1212   : > { %v5664_v47 = vadd.f32 %v13256_v19, %v5663_v25  ;;  %v9150_v27 = vpop.f32.mrb[214].mxu1  ;;  %v14438_v36 = vsub.f32 1.3, %v14437_v30 }
0x1213   : > { %v5675_v61 = vadd.f32 %v9150_v27, %v13256_v19  ;;  %v5666_v42 = vpop.f32.mrb[215].mxu1  ;;  %5732 = vmax.xlane.f32.xlu1 %v13277_v33  ;;  %v13296_v40 = vmul.f32 %v5672_v51, %v4174_v55  ;;  %v14439_v55 = vld [vmem:[#allocation28_spill] sm:$0xff] }
0x1214   : > { %v5667_v26 = vadd.f32 %v13256_v19, %v5666_v42  ;;  %v13301_v29 = vmul.f32 %v5664_v47, %v4172_v6  ;;  %v4176_v51 = vmul.f32 %v4160_v23, %v14438_v36  ;;  %v14440_v47 = vsub.f32 1.3, %v14439_v55  ;;  %v14441_v6 = vld [vmem:[#allocation26_spill] sm:$0xff]  ;;  %v14451_v36 = vld [vmem:[#allocation32_spill] sm:$0xff] }
0x1215   : > { %v13305_v20 = vmul.f32 %v5675_v61, %v4175_v13  ;;  %v14442_v61 = vsub.f32 1.3, %v14441_v6  ;;  %v4166_v13 = vsub.f32 1.3, %v14443_v62  ;;  %v4165_v23 = vsub.f32 1.3, %v14446_v32 }
0x1216   : > { %5734 = vmax.xlane.f32.xlu0 %v13301_v29  ;;  %v13309_v17 = vmul.f32 %v5667_v26, %v4173_v2  ;;  %v4179_v27 = vmul.f32 %v4163_v63, %v14440_v47  ;;  %v14445_v2 = vld [vmem:[#allocation40_spill] sm:$0xff]  ;;  %v14453_v47 = vld [vmem:[#allocation30_spill] sm:$0xff] }
0x1217   : > { %v4177_v42 = vmul.f32 %v4161_v9, %v14442_v61  ;;  %v4167_v21 = vsub.f32 1.3, %v14445_v2 }
0x1218   : > { %5736 = vmax.xlane.f32.xlu1 %v13309_v17 }
0x1219   : > { %v9153_v50 = vpop.f32.mrb[216].mxu1 }
0x121a   : > { %v5688_v60 = vadd.f32 %v9153_v50, %v13256_v19  ;;  %v5679_v52 = vpop.f32.mrb[217].mxu1  ;;  %5738 = vmax.xlane.f32.xlu0 %v13296_v40  ;;  %v14447_v50 = vld [vmem:[#allocation31_spill] sm:$0xff] }
0x121b   : > { %v5680_v24 = vadd.f32 %v13256_v19, %v5679_v52  ;;  %v9154_v28 = vpop.f32.mrb[218].mxu1  ;;  %v14448_v15 = vsub.f32 1.3, %v14447_v50 }
0x121c   : > { %v5691_v25 = vadd.f32 %v9154_v28, %v13256_v19  ;;  %v5682_v59 = vpop.f32.mrb[219].mxu1  ;;  %v13323_v11 = vmul.f32 %v5688_v60, %v4178_v39  ;;  %5740 = vmax.xlane.f32.xlu1 %v13305_v20  ;;  %v4180_v39 = vmul.f32 %v4164_v4, %v14450_v3 }
0x121d   : > { %v5683_v43 = vadd.f32 %v13256_v19, %v5682_v59  ;;  %v13329_v18 = vmul.f32 %v5680_v24, %v4176_v51  ;;  %v4182_v9 = vmul.f32 %v4166_v13, %v14448_v15  ;;  %v14452_v51 = vsub.f32 1.3, %v14451_v36 }
0x121e   : > { %v13333_v57 = vmul.f32 %v5691_v25, %v4179_v27  ;;  %v14454_v27 = vsub.f32 1.3, %v14453_v47 }
0x121f   : > { %5742 = vmax.xlane.f32.xlu0 %v13329_v18  ;;  %v13337_v26 = vmul.f32 %v5683_v43, %v4177_v42  ;;  %v4183_v25 = vmul.f32 %v4167_v21, %v14452_v51 }
0x1220   : > { %v4181_v43 = vmul.f32 %v4165_v23, %v14454_v27 }
0x1221   : > { %5744 = vmax.xlane.f32.xlu1 %v13337_v26  ;;  %v9157_v12 = vpop.f32.mrb[220].mxu1 }
0x1222   : > { %v5704_v41 = vadd.f32 %v9157_v12, %v13256_v19  ;;  %v5695_v63 = vpop.f32.mrb[221].mxu1 }
0x1223   : > { %v5696_v60 = vadd.f32 %v13256_v19, %v5695_v63  ;;  %5746 = vmax.xlane.f32.xlu0 %v13323_v11  ;;  %v9158_v52 = vpop.f32.mrb[222].mxu1 }
0x1224   : > { %v5707_v24 = vadd.f32 %v9158_v52, %v13256_v19  ;;  %v5698_v28 = vpop.f32.mrb[223].mxu1  ;;  %v13351_v30 = vmul.f32 %v5704_v41, %v4182_v9 }
0x1225   : > { %v5699_v59 = vadd.f32 %v13256_v19, %v5698_v28  ;;  %5748 = vmax.xlane.f32.xlu1 %v13333_v57  ;;  %v13357_v55 = vmul.f32 %v5696_v60, %v4180_v39 }
0x1226   : > { %v13361_v6 = vmul.f32 %v5707_v24, %v4183_v25 }
0x1227   : > { %5750 = vmax.xlane.f32.xlu0 %v13357_v55  ;;  %v13364_v61 = vmul.f32 %v5699_v59, %v4181_v43 }
0x1229   : > { %5752 = vmax.xlane.f32.xlu1 %v13364_v61 }
0x122b   : > { %5754 = vmax.xlane.f32.xlu0 %v13351_v30 }
0x122d   : > { %5756 = vmax.xlane.f32.xlu1 %v13361_v6 }
0x129a   : > { %v5727_v19 = vpop.xlane.xlu0 %5726 }
0x129b   : > { %v5758_v42 = vsub.f32 %v13273_v10, %v5727_v19 }
0x129c   : > { %v5729_v62 = vpop.xlane.xlu1 %5728 }
0x129d   : > { %v5774_v13 = vmul.f32 1.442695, %v5758_v42  ;;  %v5759_v8 = vsub.f32 %v13280_v56, %v5729_v62 }
0x129e   : > { %v5731_v4 = vpop.xlane.xlu0 %5730 }
0x129f   : > { %9978 = vpow2.f32 %v5774_v13  ;;  %v5776_v2 = vmul.f32 1.442695, %v5759_v8  ;;  %v5760_v21 = vsub.f32 %v13268_v22, %v5731_v4 }
0x12a0   : > { %v5733_v12 = vpop.xlane.xlu1 %5732 }
0x12a1   : > { %9980 = vpow2.f32 %v5776_v2  ;;  %v5778_v32 = vmul.f32 1.442695, %v5760_v21  ;;  %v5761_v23 = vsub.f32 %v13277_v33, %v5733_v12 }
0x12a3   : > { %9982 = vpow2.f32 %v5778_v32  ;;  %v5780_v41 = vmul.f32 1.442695, %v5761_v23  ;;  %v5735_v63 = vpop.xlane.xlu0 %5734 }
0x12a4   : > { %v5762_v50 = vsub.f32 %v13301_v29, %v5735_v63 }
0x12a5   : > { %9984 = vpow2.f32 %v5780_v41  ;;  %v5737_v10 = vpop.xlane.xlu1 %5736 }
0x12a6   : > { %v5782_v15 = vmul.f32 1.442695, %v5762_v50  ;;  %v5763_v56 = vsub.f32 %v13309_v17, %v5737_v10 }
0x12a7   : > { %v5739_v9 = vpop.xlane.xlu0 %5738 }
0x12a8   : > { %9986 = vpow2.f32 %v5782_v15  ;;  %v5784_v60 = vmul.f32 1.442695, %v5763_v56  ;;  %v5764_v22 = vsub.f32 %v13296_v40, %v5739_v9 }
0x12a9   : > { %v13376_v52 = vpop.eup %9978  ;;  %v5741_v7 = vpop.xlane.xlu1 %5740 }
0x12aa   : > { %9988 = vpow2.f32 %v5784_v60  ;;  %v5786_v33 = vmul.f32 1.442695, %v5764_v22  ;;  %v5765_v3 = vsub.f32 %v13305_v20, %v5741_v7  ;;  %5806 = vadd.xlane.f32.xlu0 %v13376_v52 }
0x12ab   : > { %v13380_v29 = vpop.eup %9980 }
0x12ac   : > { %v5743_v39 = vpop.xlane.xlu0 %5742  ;;  %9990 = vpow2.f32 %v5786_v33  ;;  %v5788_v24 = vmul.f32 1.442695, %v5765_v3  ;;  %5808 = vadd.xlane.f32.xlu1 %v13380_v29 }
0x12ad   : > { %v5766_v17 = vsub.f32 %v13329_v18, %v5743_v39  ;;  %v13384_v28 = vpop.eup %9982 }
0x12ae   : > { %v5745_v40 = vpop.xlane.xlu1 %5744  ;;  %9992 = vpow2.f32 %v5788_v24  ;;  %5810 = vadd.xlane.f32.xlu0 %v13384_v28 }
0x12af   : > { %v5790_v36 = vmul.f32 1.442695, %v5766_v17  ;;  %v5767_v51 = vsub.f32 %v13337_v26, %v5745_v40  ;;  %v13388_v20 = vpop.eup %9984 }
0x12b0   : > { %v5747_v25 = vpop.xlane.xlu0 %5746  ;;  %5812 = vadd.xlane.f32.xlu1 %v13388_v20 }
0x12b1   : > { %9994 = vpow2.f32 %v5790_v36  ;;  %v5792_v59 = vmul.f32 1.442695, %v5767_v51  ;;  %v5768_v47 = vsub.f32 %v13323_v11, %v5747_v25 }
0x12b2   : > { %v5749_v18 = vpop.xlane.xlu1 %5748  ;;  %v13392_v27 = vpop.eup %9986 }
0x12b3   : > { %9996 = vpow2.f32 %v5792_v59  ;;  %v5794_v43 = vmul.f32 1.442695, %v5768_v47  ;;  %v5769_v19 = vsub.f32 %v13333_v57, %v5749_v18  ;;  %5814 = vadd.xlane.f32.xlu0 %v13392_v27 }
0x12b4   : > { %v5751_v42 = vpop.xlane.xlu0 %5750  ;;  %v13396_v26 = vpop.eup %9988 }
0x12b5   : > { %9998 = vpow2.f32 %v5794_v43  ;;  %v5796_v62 = vmul.f32 1.442695, %v5769_v19  ;;  %v5770_v13 = vsub.f32 %v13357_v55, %v5751_v42  ;;  %5816 = vadd.xlane.f32.xlu1 %v13396_v26 }
0x12b6   : > { %v5753_v11 = vpop.xlane.xlu1 %5752  ;;  %v13400_v8 = vpop.eup %9990 }
0x12b7   : > { %10000 = vpow2.f32 %v5796_v62  ;;  %v5798_v4 = vmul.f32 1.442695, %v5770_v13  ;;  %v5771_v2 = vsub.f32 %v13364_v61, %v5753_v11  ;;  %5818 = vadd.xlane.f32.xlu0 %v13400_v8 }
0x12b8   : > { %v5755_v57 = vpop.xlane.xlu0 %5754  ;;  %v13404_v21 = vpop.eup %9992 }
0x12b9   : > { %10002 = vpow2.f32 %v5798_v4  ;;  %v5800_v12 = vmul.f32 1.442695, %v5771_v2  ;;  %v5772_v32 = vsub.f32 %v13351_v30, %v5755_v57  ;;  %5820 = vadd.xlane.f32.xlu1 %v13404_v21 }
0x12ba   : > { %v5757_v55 = vpop.xlane.xlu1 %5756 }
0x12bb   : > { %v13408_v23 = vpop.eup %9994  ;;  %10004 = vpow2.f32 %v5800_v12  ;;  %v5802_v41 = vmul.f32 1.442695, %v5772_v32  ;;  %v5773_v63 = vsub.f32 %v13361_v6, %v5757_v55 }
0x12bc   : > { %5822 = vadd.xlane.f32.xlu0 %v13408_v23 }
0x12bd   : > { %v13412_v61 = vpop.eup %9996  ;;  %10006 = vpow2.f32 %v5802_v41  ;;  %v5804_v50 = vmul.f32 1.442695, %v5773_v63 }
0x12be   : > { %5824 = vadd.xlane.f32.xlu1 %v13412_v61 }
0x12bf   : > { %v13415_v10 = vpop.eup %9998  ;;  %10008 = vpow2.f32 %v5804_v50 }
0x12c0   : > { %5826 = vadd.xlane.f32.xlu0 %v13415_v10 }
0x12c1   : > { %v13418_v30 = vpop.eup %10000 }
0x12c2   : > { %5828 = vadd.xlane.f32.xlu1 %v13418_v30 }
0x12c3   : > { %v13421_v15 = vpop.eup %10002 }
0x12c4   : > { %5830 = vadd.xlane.f32.xlu0 %v13421_v15 }
0x12c5   : > { %v13424_v6 = vpop.eup %10004 }
0x12c6   : > { %5832 = vadd.xlane.f32.xlu1 %v13424_v6 }
0x12c7   : > { %v13427_v56 = vpop.eup %10006 }
0x12c8   : > { %5834 = vadd.xlane.f32.xlu0 %v13427_v56 }
0x12c9   : > { %v13430_v9 = vpop.eup %10008 }
0x12ca   : > { %5836 = vadd.xlane.f32.xlu1 %v13430_v9 }
0x1337   : > { %v5807_v60 = vpop.xlane.xlu0 %5806 }
0x1338   : > { %10010 = vrcp.f32 %v5807_v60 }
0x1339   : > { %v5809_v22 = vpop.xlane.xlu1 %5808 }
0x133a   : > { %10012 = vrcp.f32 %v5809_v22 }
0x133b   : > { %v5811_v7 = vpop.xlane.xlu0 %5810 }
0x133c   : > { %10014 = vrcp.f32 %v5811_v7 }
0x133d   : > { %v5813_v33 = vpop.xlane.xlu1 %5812 }
0x133e   : > { %10016 = vrcp.f32 %v5813_v33 }
0x1340   : > { %v5815_v3 = vpop.xlane.xlu0 %5814 }
0x1341   : > { %10018 = vrcp.f32 %v5815_v3 }
0x1342   : > { %v10011_v39 = vpop.eup %10010  ;;  %v5817_v24 = vpop.xlane.xlu1 %5816 }
0x1343   : > { %v5854_v17 = vmul.f32 %v10011_v39, %v5807_v60  ;;  %10020 = vrcp.f32 %v5817_v24  ;;  %v14455_v60 = vld [vmem:[#allocation6_spill] sm:$0xff] }
0x1344   : > { %v10013_v40 = vpop.eup %10012  ;;  %v5819_v36 = vpop.xlane.xlu0 %5818 }
0x1345   : > { %v5870_v51 = vsub.f32 2.0, %v5854_v17  ;;  %v5855_v25 = vmul.f32 %v10013_v40, %v5809_v22  ;;  %10022 = vrcp.f32 %v5819_v36 }
0x1346   : > { %v10015_v59 = vpop.eup %10014  ;;  %v5821_v47 = vpop.xlane.xlu1 %5820 }
0x1347   : > { %v5886_v18 = vmul.f32 %v10011_v39, %v5870_v51  ;;  %v5871_v43 = vsub.f32 2.0, %v5855_v25  ;;  %v5856_v19 = vmul.f32 %v10015_v59, %v5811_v7  ;;  %10024 = vrcp.f32 %v5821_v47 }
0x1348   : > { %v10017_v42 = vpop.eup %10016 }
0x1349   : > { %v5823_v62 = vpop.xlane.xlu0 %5822  ;;  %v5902_v13 = vmul.f32 %v13376_v52, %v5886_v18  ;;  %v5887_v11 = vmul.f32 %v10013_v40, %v5871_v43  ;;  %v5872_v4 = vsub.f32 2.0, %v5856_v19  ;;  %v5857_v2 = vmul.f32 %v10017_v42, %v5813_v33  ;;  %v14456_v52 = vld [vmem:[#allocation7_spill] sm:$0xff] }
0x134a   : > { %10026 = vrcp.f32 %v5823_v62 }
0x134b   : > { %v5825_v57 = vpop.xlane.xlu1 %5824  ;;  %v10019_v12 = vpop.eup %10018  ;;  %v5903_v32 = vmul.f32 %v13380_v29, %v5887_v11  ;;  %v5888_v55 = vmul.f32 %v10015_v59, %v5872_v4  ;;  %v5873_v41 = vsub.f32 2.0, %v5857_v2  ;;  %v5918_v22 = vmul.f32 %v5902_v13, %v14455_v60  ;;  %v14457_v4 = vld [vmem:[#allocation8_spill] sm:$0xff] }
0x134c   : > { %10028 = vrcp.f32 %v5825_v57  ;;  %v5858_v63 = vmul.f32 %v10019_v12, %v5815_v3 }
0x134d   : > { %v5827_v50 = vpop.xlane.xlu0 %5826  ;;  %v10021_v7 = vpop.eup %10020  ;;  %v5904_v39 = vmul.f32 %v13384_v28, %v5888_v55  ;;  %v5889_v17 = vmul.f32 %v10017_v42, %v5873_v41  ;;  %v5919_v40 = vmul.f32 %v5903_v32, %v14456_v52  ;;  %v14458_v28 = vld [vmem:[#allocation5_spill] sm:$0xff] }
0x134e   : > { %10030 = vrcp.f32 %v5827_v50  ;;  %v5874_v33 = vsub.f32 2.0, %v5858_v63  ;;  %v5859_v51 = vmul.f32 %v10021_v7, %v5817_v24 }
0x134f   : > { %v5829_v25 = vpop.xlane.xlu1 %5828  ;;  %v10023_v18 = vpop.eup %10022  ;;  %v5905_v29 = vmul.f32 %v13388_v20, %v5889_v17  ;;  %v5934_v59 = vpack.c.bf16 %v5919_v40, %v5918_v22  ;;  %v5920_v2 = vmul.f32 %v5904_v39, %v14457_v4 }
0x1350   : > { %10032 = vrcp.f32 %v5829_v25  ;;  %v5890_v43 = vmul.f32 %v10019_v12, %v5874_v33  ;;  %v5875_v3 = vsub.f32 2.0, %v5859_v51  ;;  %v5860_v19 = vmul.f32 %v10023_v18, %v5819_v36 }
0x1351   : > { %v5831_v11 = vpop.xlane.xlu0 %5830  ;;  %v10025_v13 = vpop.eup %10024  ;;  %v5921_v42 = vmul.f32 %v5905_v29, %v14458_v28  ;;  %9175 = vmatprep.mubr.bf16.mxu0 %v5934_v59  ;;  %9207 = vmatprep.mubr.bf16.mxu1 %v5934_v59 }
0x1352   : > { %10034 = vrcp.f32 %v5831_v11  ;;  %v5906_v24 = vmul.f32 %v13392_v27, %v5890_v43  ;;  %v5891_v32 = vmul.f32 %v10021_v7, %v5875_v3  ;;  %v5876_v55 = vsub.f32 2.0, %v5860_v19  ;;  %v14459_v7 = vld [vmem:[#allocation9_spill] sm:$0xff] }
0x1353   : > { %v5861_v41 = vmul.f32 %v10025_v13, %v5821_v47  ;;  %v5833_v20 = vpop.xlane.xlu1 %5832  ;;  %v5935_v63 = vpack.c.bf16 %v5921_v42, %v5920_v2  ;;  %v14460_v47 = vld [vmem:[#allocation12_spill] sm:$0xff] }
0x1354   : > { %10036 = vrcp.f32 %v5833_v20  ;;  %v10027_v12 = vpop.eup %10026  ;;  %v5907_v36 = vmul.f32 %v13396_v26, %v5891_v32  ;;  %v5892_v60 = vmul.f32 %v10023_v18, %v5876_v55  ;;  %v5922_v51 = vmul.f32 %v5906_v24, %v14459_v7  ;;  %v14461_v24 = vld [vmem:[#allocation11_spill] sm:$0xff] }
0x1355   : > { %v5877_v22 = vsub.f32 2.0, %v5861_v41  ;;  %v5835_v17 = vpop.xlane.xlu0 %5834  ;;  %v5862_v52 = vmul.f32 %v10027_v12, %v5823_v62  ;;  %9176 = vmatmul.mubr.bf16.vlgmr.msra.gmra.mrb[224].mxu0 %v5935_v63  ;;  %9208 = vmatmul.mubr.bf16.vlgmr.msra.gmra.mrb[224].mxu1 %v5935_v63  ;;  %v10236_v62 = vld [vmem:[%s14236_s5 + $0x18] sm:$0xff]   ;;  %v14462_v41 = vld [vmem:[#allocation10_spill] sm:$0xff] }
0x1356   : > { %v10029_v39 = vpop.eup %10028  ;;  %10038 = vrcp.f32 %v5835_v17  ;;  %v5923_v29 = vmul.f32 %v5907_v36, %v14460_v47  ;;  %9244 = vmatpush3.bf16.msra.mxu1 %v13249_v38  ;;  %v5908_v26 = vmul.f32 %v13400_v8, %v5892_v60  ;;  %v10238_v8 = vld [vmem:[%s14236_s5 + $0x8] sm:$0xff]   ;;  %v14464_v47 = vld [vmem:[#allocation16_spill] sm:$0xff] }
0x1357   : > { %v5893_v40 = vmul.f32 %v10025_v13, %v5877_v22  ;;  %v5863_v33 = vmul.f32 %v10029_v39, %v5825_v57  ;;  %v5837_v27 = vpop.xlane.xlu1 %5836  ;;  %v5878_v18 = vsub.f32 2.0, %v5862_v52  ;;  %9245 = vmatprep.subr.bf16.mxu1 %v10236_v62  ;;  %v10237_v57 = vld [vmem:[%s14236_s5] sm:$0xff]  }
0x1358   : > { %v10031_v59 = vpop.eup %10030  ;;  %10040 = vrcp.f32 %v5837_v27  ;;  %9224 = vmatpush3.bf16.msra.mxu0 %v10237_v57  ;;  %v5936_v38 = vpack.c.bf16 %v5923_v29, %v5922_v51 }
0x1359   : > { %v5909_v43 = vmul.f32 %v13404_v21, %v5893_v40  ;;  %v5879_v3 = vsub.f32 2.0, %v5863_v33  ;;  %v5864_v19 = vmul.f32 %v10031_v59, %v5827_v50  ;;  %9225 = vmatprep.subr.bf16.mxu0 %v10238_v8  ;;  %v5894_v4 = vmul.f32 %v10027_v12, %v5878_v18 }
0x135a   : > { %v10033_v13 = vpop.eup %10032  ;;  %9179 = vmatprep.mubr.bf16.mxu0 %v5936_v38  ;;  %9211 = vmatprep.mubr.bf16.mxu1 %v5936_v38  ;;  %v5924_v50 = vmul.f32 %v5908_v26, %v14462_v41  ;;  %v14466_v38 = vld [vmem:[#allocation15_spill] sm:$0xff] }
0x135b   : > { %v5895_v2 = vmul.f32 %v10029_v39, %v5879_v3  ;;  %v5880_v28 = vsub.f32 2.0, %v5864_v19  ;;  %v5865_v42 = vmul.f32 %v10033_v13, %v5829_v25  ;;  %v5925_v32 = vmul.f32 %v5909_v43, %v14461_v24  ;;  %9246 = vmatpush3.bf16.msra.mxu1 %v10236_v62 }
0x135c   : > { %v10035_v55 = vpop.eup %10034  ;;  %v5910_v21 = vmul.f32 %v13408_v23, %v5894_v4  ;;  %9226 = vmatpush3.bf16.msra.mxu0 %v10238_v8  ;;  %v14463_v23 = vld [vmem:[#allocation13_spill] sm:$0xff] }
0x135d   : > { %v5911_v63 = vmul.f32 %v13412_v61, %v5895_v2  ;;  %v5896_v36 = vmul.f32 %v10031_v59, %v5880_v28  ;;  %v5881_v60 = vsub.f32 2.0, %v5865_v42  ;;  %v5866_v22 = vmul.f32 %v10035_v55, %v5831_v11  ;;  %v14467_v42 = vld [vmem:[#allocation17_spill] sm:$0xff] }
0x135e   : > { %v10037_v12 = vpop.eup %10036  ;;  %v5937_v39 = vpack.c.bf16 %v5925_v32, %v5924_v50  ;;  %v5926_v51 = vmul.f32 %v5910_v21, %v14463_v23  ;;  %v14469_v21 = vld [vmem:[#allocation18_spill] sm:$0xff] }
0x135f   : > { %v5897_v52 = vmul.f32 %v10033_v13, %v5881_v60  ;;  %v5882_v25 = vsub.f32 2.0, %v5866_v22  ;;  %v5867_v40 = vmul.f32 %v10037_v12, %v5833_v20  ;;  %v5912_v7 = vmul.f32 %v13415_v10, %v5896_v36  ;;  %v14465_v10 = vld [vmem:[#allocation14_spill] sm:$0xff] }
0x1360   : > { %v10039_v33 = vpop.eup %10038  ;;  %9180 = vmatmul.mubr.bf16.gmra.mrb[228].mxu0 %v5937_v39  ;;  %9212 = vmatmul.mubr.bf16.gmra.mrb[228].mxu1 %v5937_v39  ;;  %v5927_v29 = vmul.f32 %v5911_v63, %v14464_v47 }
0x1361   : > { %v5913_v26 = vmul.f32 %v13418_v30, %v5897_v52  ;;  %v5898_v61 = vmul.f32 %v10035_v55, %v5882_v25  ;;  %v5883_v59 = vsub.f32 2.0, %v5867_v40  ;;  %v5868_v18 = vmul.f32 %v10039_v33, %v5835_v17  ;;  %v13486_v25 = vld [vmem:[%s14235_s4 + $0x1] ss:$0 sm:$0xff] }
0x1362   : > { %v10041_v11 = vpop.eup %10040  ;;  %v5938_v62 = vpack.c.bf16 %v5927_v29, %v5926_v51  ;;  %v5928_v19 = vmul.f32 %v5912_v7, %v14465_v10 }
0x1363   : > { %v5914_v57 = vmul.f32 %v13421_v15, %v5898_v61  ;;  %v5899_v43 = vmul.f32 %v10037_v12, %v5883_v59  ;;  %v5884_v20 = vsub.f32 2.0, %v5868_v18  ;;  %v5869_v3 = vmul.f32 %v10041_v11, %v5837_v27  ;;  %v14468_v15 = vld [vmem:[#allocation20_spill] sm:$0xff] }
0x1364   : > { %9183 = vmatprep.mubr.bf16.mxu0 %v5938_v62  ;;  %9215 = vmatprep.mubr.bf16.mxu1 %v5938_v62  ;;  %v5929_v8 = vmul.f32 %v5913_v26, %v14466_v38 }
0x1365   : > { %v5915_v13 = vmul.f32 %v13424_v6, %v5899_v43  ;;  %v5900_v4 = vmul.f32 %v10039_v33, %v5884_v20  ;;  %v5885_v30 = vsub.f32 2.0, %v5869_v3  ;;  %v5930_v24 = vmul.f32 %v5914_v57, %v14467_v42  ;;  %v14470_v6 = vld [vmem:[#allocation19_spill] sm:$0xff] }
0x1366   : > { %v5939_v2 = vpack.c.bf16 %v5929_v8, %v5928_v19 }
0x1367   : > { %v5916_v17 = vmul.f32 %v13427_v56, %v5900_v4  ;;  %v5901_v28 = vmul.f32 %v10041_v11, %v5885_v30  ;;  %v5931_v32 = vmul.f32 %v5915_v13, %v14468_v15 }
0x1368   : > { %9184 = vmatmul.mubr.bf16.gmra.mrb[232].mxu0 %v5939_v2  ;;  %9216 = vmatmul.mubr.bf16.gmra.mrb[232].mxu1 %v5939_v2 }
0x1369   : > { %v5917_v27 = vmul.f32 %v13430_v9, %v5901_v28  ;;  %v5940_v55 = vpack.c.bf16 %v5931_v32, %v5930_v24  ;;  %v5932_v41 = vmul.f32 %v5916_v17, %v14469_v21  ;;  %v13478_v9 = vld [vmem:[%s14235_s4] ss:$0 sm:$0xff] }
0x136b   : > { %9187 = vmatprep.mubr.bf16.mxu0 %v5940_v55  ;;  %9219 = vmatprep.mubr.bf16.mxu1 %v5940_v55  ;;  %v5933_v50 = vmul.f32 %v5917_v27, %v14470_v6 }
0x136d   : > { %v5941_v63 = vpack.c.bf16 %v5933_v50, %v5932_v41 }
0x1370   : > { %9188 = vmatmul.mubr.bf16.gmra.mrb[236].mxu0 %v5941_v63  ;;  %9220 = vmatmul.mubr.bf16.gmra.mrb[236].mxu1 %v5941_v63 }
0x1428   : > { %v9177_v56 = vpop.f32.mrb[224].mxu0  ;;  %v9209_v36 = vpop.f32.mrb[224].mxu1 }
0x1429   : > { %v5976_v60 = vpop.f32.mrb[225].mxu0  ;;  %v6081_v22 = vpop.f32.mrb[225].mxu1  ;;  %v13481_v52 = vadd.f32 %v13478_v9, %v9177_v56  ;;  %v6090_v40 = vadd.f32 %v13486_v25, %v9209_v36 }
0x142a   : > { %v9178_v12 = vpop.f32.mrb[226].mxu0  ;;  %v9210_v39 = vpop.f32.mrb[226].mxu1  ;;  %v13494_v47 = vadd.f32 %v13478_v9, %v5976_v60  ;;  %v6082_v29 = vadd.f32 %v13486_v25, %v6081_v22 }
0x142b   : > { %v13490_v33 = vadd.f32 %v13478_v9, %v9178_v12  ;;  %v6093_v7 = vadd.f32 %v13486_v25, %v9210_v39  ;;  %v5979_v23 = vpop.f32.mrb[227].mxu0  ;;  %v6084_v51 = vpop.f32.mrb[227].mxu1 }
0x142c   : > { %v13498_v26 = vadd.f32 %v13478_v9, %v5979_v23  ;;  %v6085_v61 = vadd.f32 %v13486_v25, %v6084_v51 }
0x142d   : > { %v6040_v59 = vpack.c.bf16 %v13490_v33, %v13481_v52  ;;  %v6145_v18 = vpack.c.bf16 %v6093_v7, %v6090_v40 }
0x142e   : > { %v6039_v11 = vpack.c.bf16 %v13498_v26, %v13494_v47  ;;  %v6144_v62 = vpack.c.bf16 %v6085_v61, %v6082_v29 }
0x142f   : > { %v7984_v57 = vmul.bf16 3216621497, %v6145_v18 }
0x1430   : > { %v7983_v43 = vmul.bf16 3216621497, %v6144_v62 }
0x1431   : > { %10042 = vpow.bf16 %v7984_v57 }
0x1432   : > { %10044 = vpow.bf16 %v7983_v43 }
0x1433   : > { %v9181_v20 = vpop.f32.mrb[228].mxu0  ;;  %v9213_v3 = vpop.f32.mrb[228].mxu1 }
0x1434   : > { %v5992_v10 = vpop.f32.mrb[229].mxu0  ;;  %v6097_v19 = vpop.f32.mrb[229].mxu1  ;;  %v13506_v13 = vadd.f32 %v13478_v9, %v9181_v20  ;;  %v6106_v4 = vadd.f32 %v13486_v25, %v9213_v3 }
0x1435   : > { %v9182_v38 = vpop.f32.mrb[230].mxu0  ;;  %v9214_v8 = vpop.f32.mrb[230].mxu1  ;;  %v13514_v42 = vadd.f32 %v13478_v9, %v5992_v10  ;;  %v6098_v24 = vadd.f32 %v13486_v25, %v6097_v19 }
0x1436   : > { %v13510_v30 = vadd.f32 %v13478_v9, %v9182_v38  ;;  %v6109_v2 = vadd.f32 %v13486_v25, %v9214_v8  ;;  %v5995_v17 = vpop.f32.mrb[231].mxu0  ;;  %v6100_v28 = vpop.f32.mrb[231].mxu1 }
0x1437   : > { %v13518_v15 = vadd.f32 %v13478_v9, %v5995_v17  ;;  %v6101_v32 = vadd.f32 %v13486_v25, %v6100_v28 }
0x1438   : > { %v6042_v27 = vpack.c.bf16 %v13510_v30, %v13506_v13  ;;  %v6147_v55 = vpack.c.bf16 %v6109_v2, %v6106_v4 }
0x1439   : > { %v6041_v21 = vpack.c.bf16 %v13518_v15, %v13514_v42  ;;  %v6146_v41 = vpack.c.bf16 %v6101_v32, %v6098_v24 }
0x143a   : > { %v7986_v6 = vmul.bf16 3216621497, %v6147_v55 }
0x143b   : > { %v7985_v50 = vmul.bf16 3216621497, %v6146_v41  ;;  %v9185_v63 = vpop.f32.mrb[232].mxu0  ;;  %v9217_v56 = vpop.f32.mrb[232].mxu1 }
0x143c   : > { %10046 = vpow.bf16 %v7986_v6  ;;  %v6008_v36 = vpop.f32.mrb[233].mxu0  ;;  %v6113_v60 = vpop.f32.mrb[233].mxu1  ;;  %v13526_v12 = vadd.f32 %v13478_v9, %v9185_v63  ;;  %v6122_v39 = vadd.f32 %v13486_v25, %v9217_v56 }
0x143d   : > { %v10043_v22 = vpop.eup %10042  ;;  %10048 = vpow.bf16 %v7985_v50  ;;  %v9186_v40 = vpop.f32.mrb[234].mxu0  ;;  %v13530_v29 = vadd.f32 %v13478_v9, %v6008_v36  ;;  %v6114_v20 = vadd.f32 %v13486_v25, %v6113_v60 }
0x143e   : > { %v9218_v7 = vpop.f32.mrb[234].mxu1  ;;  %v10045_v23 = vpop.eup %10044  ;;  %v6185_v51 = vadd.bf16 1065369472, %v10043_v22  ;;  %v13533_v61 = vadd.f32 %v13478_v9, %v9186_v40 }
0x143f   : > { %v6125_v18 = vadd.f32 %v13486_v25, %v9218_v7  ;;  %v6011_v62 = vpop.f32.mrb[235].mxu0  ;;  %v6116_v57 = vpop.f32.mrb[235].mxu1  ;;  %v6184_v43 = vadd.bf16 1065369472, %v10045_v23 }
0x1440   : > { %v13538_v3 = vadd.f32 %v13478_v9, %v6011_v62  ;;  %v6117_v10 = vadd.f32 %v13486_v25, %v6116_v57  ;;  %10050 = vrcp.bf16 %v6185_v51  ;;  %v6044_v19 = vpack.c.bf16 %v13533_v61, %v13526_v12 }
0x1441   : > { %v6149_v38 = vpack.c.bf16 %v6125_v18, %v6122_v39  ;;  %10052 = vrcp.bf16 %v6184_v43 }
0x1442   : > { %v6043_v8 = vpack.c.bf16 %v13538_v3, %v13530_v29  ;;  %v6148_v4 = vpack.c.bf16 %v6117_v10, %v6114_v20  ;;  %v9456_v3 = vld [vmem:[%s14236_s5 + $0xf0] sm:$0xff]  }
0x1443   : > { %v7988_v2 = vmul.bf16 3216621497, %v6149_v38  ;;  %v9189_v28 = vpop.f32.mrb[236].mxu0  ;;  %v9221_v24 = vpop.f32.mrb[236].mxu1  ;;  %9283 = vmatprep.subr.bf16.mxu1 %v9456_v3 }
0x1444   : > { %v7987_v17 = vmul.bf16 3216621497, %v6148_v4  ;;  %v6024_v32 = vpop.f32.mrb[237].mxu0  ;;  %v6129_v55 = vpop.f32.mrb[237].mxu1  ;;  %v13546_v50 = vadd.f32 %v13478_v9, %v9189_v28  ;;  %v6138_v63 = vadd.f32 %v13486_v25, %v9221_v24 }
0x1445   : > { %10054 = vpow.bf16 %v7988_v2  ;;  %v9190_v41 = vpop.f32.mrb[238].mxu0  ;;  %v9222_v6 = vpop.f32.mrb[238].mxu1  ;;  %v13554_v40 = vadd.f32 %v13478_v9, %v6024_v32  ;;  %v6130_v7 = vadd.f32 %v13486_v25, %v6129_v55 }
0x1446   : > { %10056 = vpow.bf16 %v7987_v17  ;;  %v13550_v56 = vadd.f32 %v13478_v9, %v9190_v41  ;;  %v6141_v36 = vadd.f32 %v13486_v25, %v9222_v6  ;;  %v6027_v60 = vpop.f32.mrb[239].mxu0  ;;  %v6132_v22 = vpop.f32.mrb[239].mxu1 }
0x1447   : > { %v10047_v39 = vpop.eup %10046  ;;  %v13558_v23 = vadd.f32 %v13478_v9, %v6027_v60  ;;  %v6133_v51 = vadd.f32 %v13486_v25, %v6132_v22 }
0x1448   : > { %v10049_v18 = vpop.eup %10048  ;;  %v6187_v62 = vadd.bf16 1065369472, %v10047_v39  ;;  %v6046_v57 = vpack.c.bf16 %v13550_v56, %v13546_v50  ;;  %v6151_v43 = vpack.c.bf16 %v6141_v36, %v6138_v63 }
0x1449   : > { %v6186_v20 = vadd.bf16 1065369472, %v10049_v18  ;;  %v6045_v10 = vpack.c.bf16 %v13558_v23, %v13554_v40  ;;  %v6150_v38 = vpack.c.bf16 %v6133_v51, %v6130_v7  ;;  %v9457_v40 = vld [vmem:[%s14236_s5 + $0xf8] sm:$0xff]   ;;  %v9459_v7 = vld [vmem:[%s14236_s5 + $0xe8] sm:$0xff]  }
0x144a   : > { %10058 = vrcp.bf16 %v6187_v62  ;;  %v7990_v4 = vmul.bf16 3216621497, %v6151_v43 }
0x144b   : > { %v10051_v2 = vpop.eup %10050  ;;  %10060 = vrcp.bf16 %v6186_v20  ;;  %v7989_v17 = vmul.bf16 3216621497, %v6150_v38  ;;  %v13646_v20 = vld [vmem:[%s14237_s6] ss:$0 sm:$0xff]  ;;  %v13654_v38 = vld [vmem:[%s14237_s6 + $0x1] ss:$0 sm:$0xff] }
0x144c   : > { %v10053_v9 = vpop.eup %10052  ;;  %v6195_v28 = vmul.bf16 1065369472, %v10051_v2  ;;  %10062 = vpow.bf16 %v7990_v4 }
0x144d   : > { %10064 = vpow.bf16 %v7989_v17  ;;  %v6193_v25 = vmul.bf16 1065369472, %v10053_v9 }
0x144e   : > { %v13568_v24 = vmul.bf16 %v6195_v28, %v6040_v59 }
0x144f   : > { %v13573_v55 = vmul.bf16 %v6193_v25, %v6039_v11 }
0x1450   : > { %v10055_v32 = vpop.eup %10054 }
0x1451   : > { %v10057_v41 = vpop.eup %10056  ;;  %v6189_v6 = vadd.bf16 1065369472, %v10055_v32  ;;  %9227 = vmatprep.mubr.msk.bf16.mxu0 %vm1003_vm2, %v13573_v55  ;;  %9247 = vmatprep.mubr.msk.bf16.mxu1 %vm1003_vm2, %v13573_v55 }
0x1452   : > { %v6188_v50 = vadd.bf16 1065369472, %v10057_v41  ;;  %9228 = vmatmul.mubr.msk.bf16.vlgmr.msra.gmra.mrb[240].mxu0 %vm1003_vm2, %v13568_v24  ;;  %9248 = vmatmul.mubr.msk.bf16.vlgmr.msra.gmra.mrb[240].mxu1 %vm1003_vm2, %v13568_v24 }
0x1453   : > { %10066 = vrcp.bf16 %v6189_v6  ;;  %9284 = vmatpush3.bf16.msra.mxu1 %v9456_v3 }
0x1454   : > { %10068 = vrcp.bf16 %v6188_v50  ;;  %9285 = vmatprep.subr.bf16.mxu1 %v9457_v40 }
0x1455   : > { %v10059_v52 = vpop.eup %10058 }
0x1456   : > { %v10061_v33 = vpop.eup %10060  ;;  %v6199_v47 = vmul.bf16 1065369472, %v10059_v52 }
0x1457   : > { %v10063_v26 = vpop.eup %10062  ;;  %v6197_v59 = vmul.bf16 1065369472, %v10061_v33  ;;  %9286 = vmatpush3.bf16.msra.mxu1 %v9457_v40 }
0x1458   : > { %v10065_v11 = vpop.eup %10064  ;;  %v6191_v63 = vadd.bf16 1065369472, %v10063_v26  ;;  %v13586_v56 = vmul.bf16 %v6199_v47, %v6042_v27 }
0x1459   : > { %v6190_v36 = vadd.bf16 1065369472, %v10065_v11  ;;  %v13591_v60 = vmul.bf16 %v6197_v59, %v6041_v21 }
0x145a   : > { %10070 = vrcp.bf16 %v6191_v63 }
0x145b   : > { %10072 = vrcp.bf16 %v6190_v36  ;;  %9231 = vmatprep.mubr.msk.bf16.mxu0 %vm1003_vm2, %v13591_v60  ;;  %9251 = vmatprep.mubr.msk.bf16.mxu1 %vm1003_vm2, %v13591_v60 }
0x145c   : > { %9232 = vmatmul.mubr.msk.bf16.gmra.mrb[244].mxu0 %vm1003_vm2, %v13586_v56  ;;  %9252 = vmatmul.mubr.msk.bf16.gmra.mrb[244].mxu1 %vm1003_vm2, %v13586_v56 }
0x145e   : > { %v10067_v13 = vpop.eup %10066 }
0x145f   : > { %v10069_v30 = vpop.eup %10068  ;;  %v6203_v27 = vmul.bf16 1065369472, %v10067_v13 }
0x1460   : > { %v6201_v42 = vmul.bf16 1065369472, %v10069_v30 }
0x1461   : > { %v13604_v15 = vmul.bf16 %v6203_v27, %v6044_v19 }
0x1462   : > { %v13609_v21 = vmul.bf16 %v6201_v42, %v6043_v8  ;;  %v9458_v8 = vld [vmem:[%s14236_s5 + $0xe0] sm:$0xff]  }
0x1463   : > { %9263 = vmatprep.subr.bf16.mxu0 %v9458_v8 }
0x1464   : > { %9235 = vmatprep.mubr.msk.bf16.mxu0 %vm1003_vm2, %v13609_v21  ;;  %9255 = vmatprep.mubr.msk.bf16.mxu1 %vm1003_vm2, %v13609_v21 }
0x1465   : > { %9236 = vmatmul.mubr.msk.bf16.gmra.mrb[248].mxu0 %vm1003_vm2, %v13604_v15  ;;  %9256 = vmatmul.mubr.msk.bf16.gmra.mrb[248].mxu1 %vm1003_vm2, %v13604_v15  ;;  %v10071_v12 = vpop.eup %10070 }
0x1466   : > { %v10073_v61 = vpop.eup %10072  ;;  %v6207_v19 = vmul.bf16 1065369472, %v10071_v12  ;;  %9264 = vmatpush3.bf16.msra.mxu0 %v9458_v8 }
0x1467   : > { %v6205_v22 = vmul.bf16 1065369472, %v10073_v61  ;;  %9265 = vmatprep.subr.bf16.mxu0 %v9459_v7 }
0x1468   : > { %v13619_v39 = vmul.bf16 %v6207_v19, %v6046_v57 }
0x1469   : > { %v13621_v29 = vmul.bf16 %v6205_v22, %v6045_v10 }
0x146a   : > { %9266 = vmatpush3.bf16.msra.mxu0 %v9459_v7 }
0x146b   : > { %9239 = vmatprep.mubr.msk.bf16.mxu0 %vm1003_vm2, %v13621_v29  ;;  %9259 = vmatprep.mubr.msk.bf16.mxu1 %vm1003_vm2, %v13621_v29 }
0x146d   : > { %9240 = vmatmul.mubr.msk.bf16.gmra.mrb[252].mxu0 %vm1003_vm2, %v13619_v39  ;;  %9260 = vmatmul.mubr.msk.bf16.gmra.mrb[252].mxu1 %vm1003_vm2, %v13619_v39 }
0x1525   : > { %v9229_v23 = vpop.f32.mrb[240].mxu0  ;;  %v9249_v51 = vpop.f32.mrb[240].mxu1 }
0x1526   : > { %v6274_v18 = vpop.f32.mrb[241].mxu0  ;;  %v6379_v62 = vpop.f32.mrb[241].mxu1  ;;  %v13649_v10 = vadd.f32 %v13646_v20, %v9229_v23  ;;  %v6388_v4 = vadd.f32 %v13654_v38, %v9249_v51 }
0x1527   : > { %v9230_v57 = vpop.f32.mrb[242].mxu0  ;;  %v9250_v43 = vpop.f32.mrb[242].mxu1  ;;  %v13662_v25 = vadd.f32 %v13646_v20, %v6274_v18  ;;  %v6380_v32 = vadd.f32 %v13654_v38, %v6379_v62 }
0x1528   : > { %v13658_v2 = vadd.f32 %v13646_v20, %v9230_v57  ;;  %v6391_v17 = vadd.f32 %v13654_v38, %v9250_v43  ;;  %v6277_v9 = vpop.f32.mrb[243].mxu0  ;;  %v6382_v28 = vpop.f32.mrb[243].mxu1 }
0x1529   : > { %v13666_v41 = vadd.f32 %v13646_v20, %v6277_v9  ;;  %v6383_v6 = vadd.f32 %v13654_v38, %v6382_v28 }
0x152a   : > { %v6338_v50 = vpack.c.bf16 %v13658_v2, %v13649_v10  ;;  %v6443_v52 = vpack.c.bf16 %v6391_v17, %v6388_v4 }
0x152b   : > { %v6337_v33 = vpack.c.bf16 %v13666_v41, %v13662_v25  ;;  %v6442_v47 = vpack.c.bf16 %v6383_v6, %v6380_v32 }
0x152c   : > { %v8008_v26 = vmul.bf16 3216621497, %v6443_v52 }
0x152d   : > { %v8007_v59 = vmul.bf16 3216621497, %v6442_v47 }
0x152e   : > { %10074 = vpow.bf16 %v8008_v26 }
0x152f   : > { %10076 = vpow.bf16 %v8007_v59  ;;  %v9233_v11 = vpop.f32.mrb[244].mxu0  ;;  %v9253_v63 = vpop.f32.mrb[244].mxu1 }
0x1530   : > { %v6290_v36 = vpop.f32.mrb[245].mxu0  ;;  %v6395_v13 = vpop.f32.mrb[245].mxu1  ;;  %v13674_v42 = vadd.f32 %v13646_v20, %v9233_v11  ;;  %v6404_v12 = vadd.f32 %v13654_v38, %v9253_v63 }
0x1531   : > { %v9234_v30 = vpop.f32.mrb[246].mxu0  ;;  %v9254_v27 = vpop.f32.mrb[246].mxu1  ;;  %v13682_v8 = vadd.f32 %v13646_v20, %v6290_v36  ;;  %v6396_v40 = vadd.f32 %v13654_v38, %v6395_v13 }
0x1532   : > { %v13678_v61 = vadd.f32 %v13646_v20, %v9234_v30  ;;  %v6407_v19 = vadd.f32 %v13654_v38, %v9254_v27  ;;  %v6293_v22 = vpop.f32.mrb[247].mxu0  ;;  %v6398_v3 = vpop.f32.mrb[247].mxu1 }
0x1533   : > { %v13686_v7 = vadd.f32 %v13646_v20, %v6293_v22  ;;  %v6399_v23 = vadd.f32 %v13654_v38, %v6398_v3 }
0x1534   : > { %v6340_v51 = vpack.c.bf16 %v13678_v61, %v13674_v42  ;;  %v6445_v18 = vpack.c.bf16 %v6407_v19, %v6404_v12 }
0x1535   : > { %v6339_v62 = vpack.c.bf16 %v13686_v7, %v13682_v8  ;;  %v6444_v57 = vpack.c.bf16 %v6399_v23, %v6396_v40 }
0x1536   : > { %v8010_v43 = vmul.bf16 3216621497, %v6445_v18 }
0x1537   : > { %v8009_v4 = vmul.bf16 3216621497, %v6444_v57 }
0x1538   : > { %v9237_v17 = vpop.f32.mrb[248].mxu0  ;;  %v9257_v9 = vpop.f32.mrb[248].mxu1  ;;  %10078 = vpow.bf16 %v8010_v43 }
0x1539   : > { %v6306_v28 = vpop.f32.mrb[249].mxu0  ;;  %v6411_v32 = vpop.f32.mrb[249].mxu1  ;;  %10080 = vpow.bf16 %v8009_v4  ;;  %v13694_v52 = vadd.f32 %v13646_v20, %v9237_v17  ;;  %v6420_v47 = vadd.f32 %v13654_v38, %v9257_v9 }
0x153a   : > { %v10075_v6 = vpop.eup %10074  ;;  %v9238_v26 = vpop.f32.mrb[250].mxu0  ;;  %v13698_v36 = vadd.f32 %v13646_v20, %v6306_v28  ;;  %v6412_v22 = vadd.f32 %v13654_v38, %v6411_v32 }
0x153b   : > { %v9258_v59 = vpop.f32.mrb[250].mxu1  ;;  %v10077_v11 = vpop.eup %10076  ;;  %v6483_v63 = vadd.bf16 1065369472, %v10075_v6  ;;  %v13701_v13 = vadd.f32 %v13646_v20, %v9238_v26 }
0x153c   : > { %v6423_v30 = vadd.f32 %v13654_v38, %v9258_v59  ;;  %v6309_v27 = vpop.f32.mrb[251].mxu0  ;;  %v6414_v12 = vpop.f32.mrb[251].mxu1  ;;  %v6482_v19 = vadd.bf16 1065369472, %v10077_v11 }
0x153d   : > { %v13706_v3 = vadd.f32 %v13646_v20, %v6309_v27  ;;  %v6415_v40 = vadd.f32 %v13654_v38, %v6414_v12  ;;  %10082 = vrcp.bf16 %v6483_v63  ;;  %v6342_v23 = vpack.c.bf16 %v13701_v13, %v13694_v52 }
0x153e   : > { %v6447_v18 = vpack.c.bf16 %v6423_v30, %v6420_v47  ;;  %10084 = vrcp.bf16 %v6482_v19 }
0x153f   : > { %v6446_v43 = vpack.c.bf16 %v6415_v40, %v6412_v22 }
0x1540   : > { %v8012_v4 = vmul.bf16 3216621497, %v6447_v18  ;;  %v9241_v9 = vpop.f32.mrb[252].mxu0  ;;  %v9261_v28 = vpop.f32.mrb[252].mxu1 }
0x1541   : > { %v8011_v17 = vmul.bf16 3216621497, %v6446_v43  ;;  %v6322_v32 = vpop.f32.mrb[253].mxu0  ;;  %v6427_v6 = vpop.f32.mrb[253].mxu1  ;;  %v13714_v11 = vadd.f32 %v13646_v20, %v9241_v9  ;;  %v6436_v47 = vadd.f32 %v13654_v38, %v9261_v28 }
0x1542   : > { %10086 = vpow.bf16 %v8012_v4  ;;  %v9242_v26 = vpop.f32.mrb[254].mxu0  ;;  %v9262_v59 = vpop.f32.mrb[254].mxu1  ;;  %v13722_v22 = vadd.f32 %v13646_v20, %v6322_v32  ;;  %v6428_v40 = vadd.f32 %v13654_v38, %v6427_v6 }
0x1543   : > { %10088 = vpow.bf16 %v8011_v17  ;;  %v13718_v63 = vadd.f32 %v13646_v20, %v9242_v26  ;;  %v6439_v30 = vadd.f32 %v13654_v38, %v9262_v59  ;;  %v6325_v27 = vpop.f32.mrb[255].mxu0  ;;  %v6430_v12 = vpop.f32.mrb[255].mxu1 }
0x1544   : > { %v10079_v19 = vpop.eup %10078  ;;  %v13726_v18 = vadd.f32 %v13646_v20, %v6325_v27  ;;  %v6431_v43 = vadd.f32 %v13654_v38, %v6430_v12 }
0x1545   : > { %v10081_v4 = vpop.eup %10080  ;;  %v6485_v17 = vadd.bf16 1065369472, %v10079_v19  ;;  %v6344_v9 = vpack.c.bf16 %v13718_v63, %v13714_v11  ;;  %v6449_v28 = vpack.c.bf16 %v6439_v30, %v6436_v47  ;;  %v9461_v11 = vld [vmem:[%s14236_s5 + $0x118] sm:$0xff]   ;;  %v9463_v63 = vld [vmem:[%s14236_s5 + $0x108] sm:$0xff]  }
0x1546   : > { %v6484_v26 = vadd.bf16 1065369472, %v10081_v4  ;;  %v6343_v59 = vpack.c.bf16 %v13726_v18, %v13722_v22  ;;  %v6448_v1 = vpack.c.bf16 %v6431_v43, %v6428_v40  ;;  %v13828_v18 = vld [vmem:[%s14237_s6 + $0xe] ss:$0 sm:$0xff] }
0x1547   : > { %10090 = vrcp.bf16 %v6485_v17  ;;  %v8014_v32 = vmul.bf16 3216621497, %v6449_v28 }
0x1548   : > { %v10083_v57 = vpop.eup %10082  ;;  %10092 = vrcp.bf16 %v6484_v26  ;;  %v8013_v6 = vmul.bf16 3216621497, %v6448_v1 }
0x1549   : > { %v10085_v20 = vpop.eup %10084  ;;  %v6493_v27 = vmul.bf16 1065369472, %v10083_v57  ;;  %10094 = vpow.bf16 %v8014_v32 }
0x154a   : > { %v6491_v38 = vmul.bf16 1065369472, %v10085_v20  ;;  %10096 = vpow.bf16 %v8013_v6 }
0x154b   : > { %v6507_v12 = vmul.bf16 %v6493_v27, %v6338_v50 }
0x154c   : > { %v6506_v30 = vmul.bf16 %v6491_v38, %v6337_v33 }
0x154d   : > { %v10087_v47 = vpop.eup %10086  ;;  %v6515_v40 = vadd.bf16 %v6507_v12, %v13568_v24 }
0x154e   : > { %v10089_v19 = vpop.eup %10088  ;;  %v6487_v43 = vadd.bf16 1065369472, %v10087_v47  ;;  %v6514_v1 = vadd.bf16 %v6506_v30, %v13573_v55 }
0x154f   : > { %v6486_v4 = vadd.bf16 1065369472, %v10089_v19  ;;  %v13743_v17 = vmul.bf16 1060454197, %v6515_v40 }
0x1550   : > { %10098 = vrcp.bf16 %v6487_v43  ;;  %v13741_v57 = vmul.bf16 1060454197, %v6514_v1 }
0x1551   : > { %10100 = vrcp.bf16 %v6486_v4 }
0x1552   : > { %v10091_v10 = vpop.eup %10090  ;;  %9267 = vmatprep.mubr.msk.bf16.mxu0 %vm1003_vm2, %v13741_v57  ;;  %9287 = vmatprep.mubr.msk.bf16.mxu1 %vm1003_vm2, %v13741_v57 }
0x1553   : > { %v10093_v2 = vpop.eup %10092  ;;  %v6497_v25 = vmul.bf16 1065369472, %v10091_v10  ;;  %9268 = vmatmul.mubr.msk.bf16.vlgmr.msra.gmra.mrb[0].mxu0 %vm1003_vm2, %v13743_v17  ;;  %9288 = vmatmul.mubr.msk.bf16.vlgmr.msra.gmra.mrb[0].mxu1 %vm1003_vm2, %v13743_v17 }
0x1554   : > { %v10095_v24 = vpop.eup %10094  ;;  %v6495_v55 = vmul.bf16 1065369472, %v10093_v2 }
0x1555   : > { %v10097_v41 = vpop.eup %10096  ;;  %v6509_v50 = vmul.bf16 %v6497_v25, %v6340_v51  ;;  %v6489_v33 = vadd.bf16 1065369472, %v10095_v24 }
0x1556   : > { %v6488_v28 = vadd.bf16 1065369472, %v10097_v41  ;;  %v6508_v26 = vmul.bf16 %v6495_v55, %v6339_v62 }
0x1557   : > { %v6517_v32 = vadd.bf16 %v6509_v50, %v13586_v56  ;;  %10102 = vrcp.bf16 %v6489_v33 }
0x1558   : > { %10104 = vrcp.bf16 %v6488_v28  ;;  %v6516_v6 = vadd.bf16 %v6508_v26, %v13591_v60  ;;  %v14471_v60 = vpack.c.bf16 %v13706_v3, %v13698_v36 }
0x1559   : > { %v13763_v12 = vmul.bf16 1060454197, %v6517_v32 }
0x155a   : > { %v13761_v27 = vmul.bf16 1060454197, %v6516_v6 }
0x155b   : > { %v10099_v20 = vpop.eup %10098 }
0x155c   : > { %v10101_v38 = vpop.eup %10100  ;;  %v6501_v42 = vmul.bf16 1065369472, %v10099_v20  ;;  %9271 = vmatprep.mubr.msk.bf16.mxu0 %vm1003_vm2, %v13761_v27  ;;  %9291 = vmatprep.mubr.msk.bf16.mxu1 %vm1003_vm2, %v13761_v27 }
0x155d   : > { %v6499_v61 = vmul.bf16 1065369472, %v10101_v38  ;;  %9272 = vmatmul.mubr.msk.bf16.gmra.mrb[4].mxu0 %vm1003_vm2, %v13763_v12  ;;  %9292 = vmatmul.mubr.msk.bf16.gmra.mrb[4].mxu1 %vm1003_vm2, %v13763_v12 }
0x155e   : > { %v6511_v56 = vmul.bf16 %v6501_v42, %v6342_v23 }
0x155f   : > { %v6510_v8 = vmul.bf16 %v6499_v61, %v14471_v60 }
0x1560   : > { %v6519_v7 = vadd.bf16 %v6511_v56, %v13604_v15 }
0x1561   : > { %v6518_v51 = vadd.bf16 %v6510_v8, %v13609_v21 }
0x1562   : > { %v10103_v62 = vpop.eup %10102  ;;  %v13783_v52 = vmul.bf16 1060454197, %v6519_v7 }
0x1563   : > { %v13781_v47 = vmul.bf16 1060454197, %v6518_v51  ;;  %v10105_v30 = vpop.eup %10104  ;;  %v6505_v13 = vmul.bf16 1065369472, %v10103_v62 }
0x1564   : > { %v6503_v23 = vmul.bf16 1065369472, %v10105_v30 }
0x1565   : > { %9275 = vmatprep.mubr.msk.bf16.mxu0 %vm1003_vm2, %v13781_v47  ;;  %9295 = vmatprep.mubr.msk.bf16.mxu1 %vm1003_vm2, %v13781_v47  ;;  %v6513_v15 = vmul.bf16 %v6505_v13, %v6344_v9 }
0x1566   : > { %9276 = vmatmul.mubr.msk.bf16.gmra.mrb[8].mxu0 %vm1003_vm2, %v13783_v52  ;;  %9296 = vmatmul.mubr.msk.bf16.gmra.mrb[8].mxu1 %vm1003_vm2, %v13783_v52  ;;  %v6512_v21 = vmul.bf16 %v6503_v23, %v6343_v59  ;;  %v13833_v59 = vld [vmem:[%s14237_s6 + $0xf] ss:$0 sm:$0xff] }
0x1567   : > { %v6521_v36 = vadd.bf16 %v6513_v15, %v13619_v39  ;;  %v9460_v39 = vld [vmem:[%s14236_s5 + $0x110] sm:$0xff]  }
0x1568   : > { %v6520_v3 = vadd.bf16 %v6512_v21, %v13621_v29  ;;  %v9462_v29 = vld [vmem:[%s14236_s5 + $0x100] sm:$0xff]   ;;  %9323 = vmatprep.subr.bf16.mxu1 %v9460_v39 }
0x1569   : > { %v13803_v40 = vmul.bf16 1060454197, %v6521_v36  ;;  %9303 = vmatprep.subr.bf16.mxu0 %v9462_v29  ;;  %9324 = vmatpush3.bf16.msra.mxu1 %v9460_v39 }
0x156a   : > { %v13801_v19 = vmul.bf16 1060454197, %v6520_v3  ;;  %9304 = vmatpush3.bf16.msra.mxu0 %v9462_v29  ;;  %9325 = vmatprep.subr.bf16.mxu1 %v9461_v11 }
0x156b   : > { %9305 = vmatprep.subr.bf16.mxu0 %v9463_v63 }
0x156c   : > { %9279 = vmatprep.mubr.msk.bf16.mxu0 %vm1003_vm2, %v13801_v19  ;;  %9299 = vmatprep.mubr.msk.bf16.mxu1 %vm1003_vm2, %v13801_v19 }
0x156d   : > { %9326 = vmatpush3.bf16.msra.mxu1 %v9461_v11 }
0x156e   : > { %9280 = vmatmul.mubr.msk.bf16.gmra.mrb[12].mxu0 %vm1003_vm2, %v13803_v40  ;;  %9300 = vmatmul.mubr.msk.bf16.gmra.mrb[12].mxu1 %vm1003_vm2, %v13803_v40 }
0x156f   : > { %9306 = vmatpush3.bf16.msra.mxu0 %v9463_v63 }
0x1626   : > { %v9269_v22 = vpop.f32.mrb[0].mxu0  ;;  %v9289_v9 = vpop.f32.mrb[0].mxu1 }
0x1627   : > { %v6618_v43 = vpop.f32.mrb[1].mxu0  ;;  %v6743_v4 = vpop.f32.mrb[1].mxu1  ;;  %v13836_v2 = vadd.f32 %v9269_v22, %v13828_v18  ;;  %v6752_v25 = vadd.f32 %v9289_v9, %v13833_v59 }
0x1628   : > { %v9270_v1 = vpop.f32.mrb[2].mxu0  ;;  %v9290_v10 = vpop.f32.mrb[2].mxu1  ;;  %v13844_v33 = vadd.f32 %v13828_v18, %v6618_v43  ;;  %v6744_v28 = vadd.f32 %v13833_v59, %v6743_v4 }
0x1629   : > { %v13840_v24 = vadd.f32 %v9270_v1, %v13828_v18  ;;  %v6755_v55 = vadd.f32 %v9290_v10, %v13833_v59  ;;  %v6621_v41 = vpop.f32.mrb[3].mxu0  ;;  %v6746_v50 = vpop.f32.mrb[3].mxu1 }
0x162a   : > { %v13848_v26 = vadd.f32 %v13828_v18, %v6621_v41  ;;  %v6747_v32 = vadd.f32 %v13833_v59, %v6746_v50 }
0x162b   : > { %v6682_v6 = vpack.c.bf16 %v13840_v24, %v13836_v2  ;;  %v6807_v20 = vpack.c.bf16 %v6755_v55, %v6752_v25 }
0x162c   : > { %v6681_v38 = vpack.c.bf16 %v13848_v26, %v13844_v33  ;;  %v6806_v42 = vpack.c.bf16 %v6747_v32, %v6744_v28 }
0x162d   : > { %v8048_v61 = vmul.bf16 3216621497, %v6807_v20 }
0x162e   : > { %v8047_v56 = vmul.bf16 3216621497, %v6806_v42 }
0x162f   : > { %10106 = vpow.bf16 %v8048_v61 }
0x1630   : > { %10108 = vpow.bf16 %v8047_v56  ;;  %v9273_v60 = vpop.f32.mrb[4].mxu0  ;;  %v9293_v8 = vpop.f32.mrb[4].mxu1 }
0x1631   : > { %v6634_v7 = vpop.f32.mrb[5].mxu0  ;;  %v6759_v51 = vpop.f32.mrb[5].mxu1  ;;  %v13856_v13 = vadd.f32 %v9273_v60, %v13828_v18  ;;  %v6768_v23 = vadd.f32 %v9293_v8, %v13833_v59 }
0x1632   : > { %v9274_v62 = vpop.f32.mrb[6].mxu0  ;;  %v9294_v30 = vpop.f32.mrb[6].mxu1  ;;  %v13864_v39 = vadd.f32 %v13828_v18, %v6634_v7  ;;  %v6760_v29 = vadd.f32 %v13833_v59, %v6759_v51 }
0x1633   : > { %v13860_v15 = vadd.f32 %v9274_v62, %v13828_v18  ;;  %v6771_v21 = vadd.f32 %v9294_v30, %v13833_v59  ;;  %v6637_v36 = vpop.f32.mrb[7].mxu0  ;;  %v6762_v3 = vpop.f32.mrb[7].mxu1 }
0x1634   : > { %v13868_v11 = vadd.f32 %v13828_v18, %v6637_v36  ;;  %v6763_v63 = vadd.f32 %v13833_v59, %v6762_v3 }
0x1635   : > { %v6684_v22 = vpack.c.bf16 %v13860_v15, %v13856_v13  ;;  %v6809_v9 = vpack.c.bf16 %v6771_v21, %v6768_v23 }
0x1636   : > { %v6683_v43 = vpack.c.bf16 %v13868_v11, %v13864_v39  ;;  %v6808_v4 = vpack.c.bf16 %v6763_v63, %v6760_v29 }
0x1637   : > { %v8050_v1 = vmul.bf16 3216621497, %v6809_v9 }
0x1638   : > { %v8049_v10 = vmul.bf16 3216621497, %v6808_v4 }
0x1639   : > { %v9277_v25 = vpop.f32.mrb[8].mxu0  ;;  %v9297_v55 = vpop.f32.mrb[8].mxu1  ;;  %10110 = vpow.bf16 %v8050_v1 }
0x163a   : > { %v6650_v41 = vpop.f32.mrb[9].mxu0  ;;  %v6775_v50 = vpop.f32.mrb[9].mxu1  ;;  %10112 = vpow.bf16 %v8049_v10  ;;  %v13876_v32 = vadd.f32 %v9277_v25, %v13828_v18  ;;  %v6784_v20 = vadd.f32 %v9297_v55, %v13833_v59 }
0x163b   : > { %v10107_v28 = vpop.eup %10106  ;;  %v9278_v42 = vpop.f32.mrb[10].mxu0  ;;  %v13880_v8 = vadd.f32 %v13828_v18, %v6650_v41  ;;  %v6776_v21 = vadd.f32 %v13833_v59, %v6775_v50 }
0x163c   : > { %v9298_v61 = vpop.f32.mrb[10].mxu1  ;;  %v10109_v56 = vpop.eup %10108  ;;  %v6847_v60 = vadd.bf16 1065369472, %v10107_v28  ;;  %v13883_v7 = vadd.f32 %v9278_v42, %v13828_v18 }
0x163d   : > { %v6787_v51 = vadd.f32 %v9298_v61, %v13833_v59  ;;  %v6653_v62 = vpop.f32.mrb[11].mxu0  ;;  %v6778_v30 = vpop.f32.mrb[11].mxu1  ;;  %v6846_v23 = vadd.bf16 1065369472, %v10109_v56 }
0x163e   : > { %v13888_v36 = vadd.f32 %v13828_v18, %v6653_v62  ;;  %v6779_v3 = vadd.f32 %v13833_v59, %v6778_v30  ;;  %10114 = vrcp.bf16 %v6847_v60  ;;  %v6686_v29 = vpack.c.bf16 %v13883_v7, %v13876_v32 }
0x163f   : > { %v6811_v63 = vpack.c.bf16 %v6787_v51, %v6784_v20  ;;  %10116 = vrcp.bf16 %v6846_v23 }
0x1640   : > { %v6810_v4 = vpack.c.bf16 %v6779_v3, %v6776_v21 }
0x1641   : > { %v8052_v1 = vmul.bf16 3216621497, %v6811_v63  ;;  %v9281_v25 = vpop.f32.mrb[12].mxu0  ;;  %v9301_v55 = vpop.f32.mrb[12].mxu1 }
0x1642   : > { %v8051_v10 = vmul.bf16 3216621497, %v6810_v4  ;;  %v6666_v41 = vpop.f32.mrb[13].mxu0  ;;  %v6791_v50 = vpop.f32.mrb[13].mxu1  ;;  %v13896_v61 = vadd.f32 %v9281_v25, %v13828_v18  ;;  %v6800_v20 = vadd.f32 %v9301_v55, %v13833_v59 }
0x1643   : > { %10118 = vpow.bf16 %v8052_v1  ;;  %v9282_v28 = vpop.f32.mrb[14].mxu0  ;;  %v9302_v42 = vpop.f32.mrb[14].mxu1  ;;  %v13904_v23 = vadd.f32 %v13828_v18, %v6666_v41  ;;  %v6792_v21 = vadd.f32 %v13833_v59, %v6791_v50 }
0x1644   : > { %10120 = vpow.bf16 %v8051_v10  ;;  %v13900_v56 = vadd.f32 %v9282_v28, %v13828_v18  ;;  %v6803_v60 = vadd.f32 %v9302_v42, %v13833_v59  ;;  %v6669_v51 = vpop.f32.mrb[15].mxu0  ;;  %v6794_v62 = vpop.f32.mrb[15].mxu1 }
0x1645   : > { %v10111_v30 = vpop.eup %10110  ;;  %v13908_v3 = vadd.f32 %v13828_v18, %v6669_v51  ;;  %v6795_v63 = vadd.f32 %v13833_v59, %v6794_v62 }
0x1646   : > { %v10113_v4 = vpop.eup %10112  ;;  %v6849_v1 = vadd.bf16 1065369472, %v10111_v30  ;;  %v6688_v10 = vpack.c.bf16 %v13900_v56, %v13896_v61  ;;  %v6813_v25 = vpack.c.bf16 %v6803_v60, %v6800_v20  ;;  %v14004_v56 = vld [vmem:[%s14237_s6 + $0x10] ss:$0 sm:$0xff] }
0x1647   : > { %v6848_v55 = vadd.bf16 1065369472, %v10113_v4  ;;  %v6687_v28 = vpack.c.bf16 %v13908_v3, %v13904_v23  ;;  %v6812_v42 = vpack.c.bf16 %v6795_v63, %v6792_v21  ;;  %v14009_v3 = vld [vmem:[%s14237_s6 + $0x11] ss:$0 sm:$0xff] }
0x1648   : > { %10122 = vrcp.bf16 %v6849_v1  ;;  %v8054_v41 = vmul.bf16 3216621497, %v6813_v25 }
0x1649   : > { %v10115_v9 = vpop.eup %10114  ;;  %10124 = vrcp.bf16 %v6848_v55  ;;  %v8053_v50 = vmul.bf16 3216621497, %v6812_v42 }
0x164a   : > { %v10117_v18 = vpop.eup %10116  ;;  %v6857_v51 = vmul.bf16 1065369472, %v10115_v9  ;;  %10126 = vpow.bf16 %v8054_v41 }
0x164b   : > { %v6855_v59 = vmul.bf16 1065369472, %v10117_v18  ;;  %10128 = vpow.bf16 %v8053_v50 }
0x164c   : > { %v6871_v62 = vmul.bf16 %v6857_v51, %v6682_v6 }
0x164d   : > { %v6870_v60 = vmul.bf16 %v6855_v59, %v6681_v38 }
0x164e   : > { %v10119_v20 = vpop.eup %10118  ;;  %v6879_v21 = vadd.bf16 %v6871_v62, %v13743_v17 }
0x164f   : > { %v10121_v30 = vpop.eup %10120  ;;  %v6851_v63 = vadd.bf16 1065369472, %v10119_v20  ;;  %v6878_v1 = vadd.bf16 %v6870_v60, %v13741_v57 }
0x1650   : > { %v6850_v4 = vadd.bf16 1065369472, %v10121_v30  ;;  %v13925_v25 = vmul.bf16 1060454197, %v6879_v21 }
0x1651   : > { %10130 = vrcp.bf16 %v6851_v63  ;;  %v13923_v9 = vmul.bf16 1060454197, %v6878_v1 }
0x1652   : > { %10132 = vrcp.bf16 %v6850_v4 }
0x1653   : > { %v10123_v2 = vpop.eup %10122  ;;  %9307 = vmatprep.mubr.msk.bf16.mxu0 %vm1003_vm2, %v13923_v9  ;;  %9327 = vmatprep.mubr.msk.bf16.mxu1 %vm1003_vm2, %v13923_v9 }
0x1654   : > { %v10125_v24 = vpop.eup %10124  ;;  %v6861_v33 = vmul.bf16 1065369472, %v10123_v2  ;;  %9308 = vmatmul.mubr.msk.bf16.vlgmr.msra.gmra.mrb[16].mxu0 %vm1003_vm2, %v13925_v25  ;;  %9328 = vmatmul.mubr.msk.bf16.vlgmr.msra.gmra.mrb[16].mxu1 %vm1003_vm2, %v13925_v25 }
0x1655   : > { %v10127_v57 = vpop.eup %10126  ;;  %v6859_v17 = vmul.bf16 1065369472, %v10125_v24 }
0x1656   : > { %v10129_v26 = vpop.eup %10128  ;;  %v6873_v6 = vmul.bf16 %v6861_v33, %v6684_v22  ;;  %v6853_v38 = vadd.bf16 1065369472, %v10127_v57 }
0x1657   : > { %v6852_v55 = vadd.bf16 1065369472, %v10129_v26  ;;  %v6872_v42 = vmul.bf16 %v6859_v17, %v6683_v43 }
0x1658   : > { %v6881_v41 = vadd.bf16 %v6873_v6, %v13763_v12  ;;  %10134 = vrcp.bf16 %v6853_v38 }
0x1659   : > { %10136 = vrcp.bf16 %v6852_v55  ;;  %v6880_v50 = vadd.bf16 %v6872_v42, %v13761_v27  ;;  %v14472_v27 = vpack.c.bf16 %v13888_v36, %v13880_v8 }
0x165a   : > { %v13945_v62 = vmul.bf16 1060454197, %v6881_v41 }
0x165b   : > { %v13943_v51 = vmul.bf16 1060454197, %v6880_v50 }
0x165c   : > { %v10131_v18 = vpop.eup %10130 }
0x165d   : > { %v10133_v59 = vpop.eup %10132  ;;  %v6865_v13 = vmul.bf16 1065369472, %v10131_v18  ;;  %9311 = vmatprep.mubr.msk.bf16.mxu0 %vm1003_vm2, %v13943_v51  ;;  %9331 = vmatprep.mubr.msk.bf16.mxu1 %vm1003_vm2, %v13943_v51 }
0x165e   : > { %v6863_v15 = vmul.bf16 1065369472, %v10133_v59  ;;  %9312 = vmatmul.mubr.msk.bf16.gmra.mrb[20].mxu0 %vm1003_vm2, %v13945_v62  ;;  %9332 = vmatmul.mubr.msk.bf16.gmra.mrb[20].mxu1 %vm1003_vm2, %v13945_v62 }
0x165f   : > { %v6875_v12 = vmul.bf16 %v6865_v13, %v6686_v29 }
0x1660   : > { %v6874_v39 = vmul.bf16 %v6863_v15, %v14472_v27 }
0x1661   : > { %v6883_v11 = vadd.bf16 %v6875_v12, %v13783_v52 }
0x1662   : > { %v6882_v22 = vadd.bf16 %v6874_v39, %v13781_v47 }
0x1663   : > { %v10135_v43 = vpop.eup %10134  ;;  %v13965_v32 = vmul.bf16 1060454197, %v6883_v11 }
0x1664   : > { %v13963_v20 = vmul.bf16 1060454197, %v6882_v22  ;;  %v10137_v60 = vpop.eup %10136  ;;  %v6869_v7 = vmul.bf16 1065369472, %v10135_v43 }
0x1665   : > { %v6867_v29 = vmul.bf16 1065369472, %v10137_v60 }
0x1666   : > { %9315 = vmatprep.mubr.msk.bf16.mxu0 %vm1003_vm2, %v13963_v20  ;;  %9335 = vmatprep.mubr.msk.bf16.mxu1 %vm1003_vm2, %v13963_v20  ;;  %v6877_v52 = vmul.bf16 %v6869_v7, %v6688_v10 }
0x1667   : > { %9316 = vmatmul.mubr.msk.bf16.gmra.mrb[24].mxu0 %vm1003_vm2, %v13965_v32  ;;  %9336 = vmatmul.mubr.msk.bf16.gmra.mrb[24].mxu1 %vm1003_vm2, %v13965_v32  ;;  %v6876_v47 = vmul.bf16 %v6867_v29, %v6687_v28 }
0x1668   : > { %v6885_v8 = vadd.bf16 %v6877_v52, %v13803_v40  ;;  %v9465_v40 = vld [vmem:[%s14240_s9 + $0x8] sm:$0xff]  }
0x1669   : > { %v6884_v36 = vadd.bf16 %v6876_v47, %v13801_v19  ;;  %v9464_v19 = vld [vmem:[%s14240_s9] sm:$0xff]  }
0x166a   : > { %v13985_v21 = vmul.bf16 1060454197, %v6885_v8  ;;  %9343 = vmatprep.subr.bf16.mxu0 %v9464_v19 }
0x166b   : > { %v13983_v30 = vmul.bf16 1060454197, %v6884_v36  ;;  %9344 = vmatpush3.bf16.msra.mxu0 %v9464_v19 }
0x166c   : > { %9345 = vmatprep.subr.bf16.mxu0 %v9465_v40 }
0x166d   : > { %9319 = vmatprep.mubr.msk.bf16.mxu0 %vm1003_vm2, %v13983_v30  ;;  %9339 = vmatprep.mubr.msk.bf16.mxu1 %vm1003_vm2, %v13983_v30 }
0x166f   : > { %9320 = vmatmul.mubr.msk.bf16.gmra.mrb[28].mxu0 %vm1003_vm2, %v13985_v21  ;;  %9340 = vmatmul.mubr.msk.bf16.gmra.mrb[28].mxu1 %vm1003_vm2, %v13985_v21 }
0x1670   : > { %9346 = vmatpush3.bf16.msra.mxu0 %v9465_v40 }
0x1727   : > { %v9309_v61 = vpop.f32.mrb[16].mxu0  ;;  %v9329_v23 = vpop.f32.mrb[16].mxu1 }
0x1728   : > { %v6982_v10 = vpop.f32.mrb[17].mxu0  ;;  %v7107_v28 = vpop.f32.mrb[17].mxu1  ;;  %v14012_v1 = vadd.f32 %v9309_v61, %v14004_v56  ;;  %v7116_v2 = vadd.f32 %v9329_v23, %v14009_v3 }
0x1729   : > { %v9310_v63 = vpop.f32.mrb[18].mxu0  ;;  %v9330_v4 = vpop.f32.mrb[18].mxu1  ;;  %v14020_v26 = vadd.f32 %v14004_v56, %v6982_v10  ;;  %v7108_v6 = vadd.f32 %v14009_v3, %v7107_v28 }
0x172a   : > { %v14016_v24 = vadd.f32 %v9310_v63, %v14004_v56  ;;  %v7119_v33 = vadd.f32 %v9330_v4, %v14009_v3  ;;  %v6985_v57 = vpop.f32.mrb[19].mxu0  ;;  %v7110_v17 = vpop.f32.mrb[19].mxu1 }
0x172b   : > { %v14024_v38 = vadd.f32 %v14004_v56, %v6985_v57  ;;  %v7111_v55 = vadd.f32 %v14009_v3, %v7110_v17 }
0x172c   : > { %v7046_v42 = vpack.c.bf16 %v14016_v24, %v14012_v1  ;;  %v7171_v41 = vpack.c.bf16 %v7119_v33, %v7116_v2 }
0x172d   : > { %v7045_v50 = vpack.c.bf16 %v14024_v38, %v14020_v26  ;;  %v7170_v18 = vpack.c.bf16 %v7111_v55, %v7108_v6 }
0x172e   : > { %v8088_v59 = vmul.bf16 3216621497, %v7171_v41 }
0x172f   : > { %v8087_v13 = vmul.bf16 3216621497, %v7170_v18 }
0x1730   : > { %10138 = vpow.bf16 %v8088_v59 }
0x1731   : > { %10140 = vpow.bf16 %v8087_v13  ;;  %v9313_v15 = vpop.f32.mrb[20].mxu0  ;;  %v9333_v12 = vpop.f32.mrb[20].mxu1 }
0x1732   : > { %v6998_v27 = vpop.f32.mrb[21].mxu0  ;;  %v7123_v39 = vpop.f32.mrb[21].mxu1  ;;  %v14032_v43 = vadd.f32 %v9313_v15, %v14004_v56  ;;  %v7132_v60 = vadd.f32 %v9333_v12, %v14009_v3 }
0x1733   : > { %v9314_v11 = vpop.f32.mrb[22].mxu0  ;;  %v9334_v22 = vpop.f32.mrb[22].mxu1  ;;  %v14040_v8 = vadd.f32 %v14004_v56, %v6998_v27  ;;  %v7124_v36 = vadd.f32 %v14009_v3, %v7123_v39 }
0x1734   : > { %v14036_v7 = vadd.f32 %v9314_v11, %v14004_v56  ;;  %v7135_v29 = vadd.f32 %v9334_v22, %v14009_v3  ;;  %v7001_v52 = vpop.f32.mrb[23].mxu0  ;;  %v7126_v47 = vpop.f32.mrb[23].mxu1 }
0x1735   : > { %v14044_v19 = vadd.f32 %v14004_v56, %v7001_v52  ;;  %v7127_v40 = vadd.f32 %v14009_v3, %v7126_v47 }
0x1736   : > { %v7048_v61 = vpack.c.bf16 %v14036_v7, %v14032_v43  ;;  %v7173_v23 = vpack.c.bf16 %v7135_v29, %v7132_v60 }
0x1737   : > { %v7047_v10 = vpack.c.bf16 %v14044_v19, %v14040_v8  ;;  %v7172_v28 = vpack.c.bf16 %v7127_v40, %v7124_v36 }
0x1738   : > { %v8090_v63 = vmul.bf16 3216621497, %v7173_v23 }
0x1739   : > { %v8089_v4 = vmul.bf16 3216621497, %v7172_v28 }
0x173a   : > { %v9317_v2 = vpop.f32.mrb[24].mxu0  ;;  %v9337_v33 = vpop.f32.mrb[24].mxu1  ;;  %10142 = vpow.bf16 %v8090_v63 }
0x173b   : > { %v7014_v57 = vpop.f32.mrb[25].mxu0  ;;  %v7139_v17 = vpop.f32.mrb[25].mxu1  ;;  %10144 = vpow.bf16 %v8089_v4  ;;  %v14052_v55 = vadd.f32 %v9317_v2, %v14004_v56  ;;  %v7148_v41 = vadd.f32 %v9337_v33, %v14009_v3 }
0x173c   : > { %v10139_v6 = vpop.eup %10138  ;;  %v9318_v18 = vpop.f32.mrb[26].mxu0  ;;  %v14056_v12 = vadd.f32 %v14004_v56, %v7014_v57  ;;  %v7140_v29 = vadd.f32 %v14009_v3, %v7139_v17 }
0x173d   : > { %v9338_v59 = vpop.f32.mrb[26].mxu1  ;;  %v10141_v13 = vpop.eup %10140  ;;  %v7211_v15 = vadd.bf16 1065369472, %v10139_v6  ;;  %v14059_v27 = vadd.f32 %v9318_v18, %v14004_v56 }
0x173e   : > { %v7151_v39 = vadd.f32 %v9338_v59, %v14009_v3  ;;  %v7017_v11 = vpop.f32.mrb[27].mxu0  ;;  %v7142_v22 = vpop.f32.mrb[27].mxu1  ;;  %v7210_v60 = vadd.bf16 1065369472, %v10141_v13 }
0x173f   : > { %v14064_v52 = vadd.f32 %v14004_v56, %v7017_v11  ;;  %v7143_v47 = vadd.f32 %v14009_v3, %v7142_v22  ;;  %10146 = vrcp.bf16 %v7211_v15  ;;  %v7050_v36 = vpack.c.bf16 %v14059_v27, %v14052_v55 }
0x1740   : > { %v7175_v40 = vpack.c.bf16 %v7151_v39, %v7148_v41  ;;  %10148 = vrcp.bf16 %v7210_v60 }
0x1741   : > { %v7174_v28 = vpack.c.bf16 %v7143_v47, %v7140_v29 }
0x1742   : > { %v8092_v63 = vmul.bf16 3216621497, %v7175_v40  ;;  %v9321_v2 = vpop.f32.mrb[28].mxu0  ;;  %v9341_v33 = vpop.f32.mrb[28].mxu1 }
0x1743   : > { %v8091_v4 = vmul.bf16 3216621497, %v7174_v28  ;;  %v7030_v57 = vpop.f32.mrb[29].mxu0  ;;  %v7155_v17 = vpop.f32.mrb[29].mxu1  ;;  %v14072_v59 = vadd.f32 %v9321_v2, %v14004_v56  ;;  %v7164_v41 = vadd.f32 %v9341_v33, %v14009_v3 }
0x1744   : > { %10150 = vpow.bf16 %v8092_v63  ;;  %v9322_v6 = vpop.f32.mrb[30].mxu0  ;;  %v9342_v18 = vpop.f32.mrb[30].mxu1  ;;  %v14080_v60 = vadd.f32 %v14004_v56, %v7030_v57  ;;  %v7156_v29 = vadd.f32 %v14009_v3, %v7155_v17 }
0x1745   : > { %10152 = vpow.bf16 %v8091_v4  ;;  %v14076_v13 = vadd.f32 %v9322_v6, %v14004_v56  ;;  %v7167_v15 = vadd.f32 %v9342_v18, %v14009_v3  ;;  %v7033_v39 = vpop.f32.mrb[31].mxu0  ;;  %v7158_v11 = vpop.f32.mrb[31].mxu1 }
0x1746   : > { %v10143_v22 = vpop.eup %10142  ;;  %v14084_v47 = vadd.f32 %v14004_v56, %v7033_v39  ;;  %v7159_v40 = vadd.f32 %v14009_v3, %v7158_v11 }
0x1747   : > { %v10145_v28 = vpop.eup %10144  ;;  %v7213_v63 = vadd.bf16 1065369472, %v10143_v22  ;;  %v7052_v4 = vpack.c.bf16 %v14076_v13, %v14072_v59  ;;  %v7177_v2 = vpack.c.bf16 %v7167_v15, %v7164_v41 }
0x1748   : > { %v7212_v33 = vadd.bf16 1065369472, %v10145_v28  ;;  %v7051_v6 = vpack.c.bf16 %v14084_v47, %v14080_v60  ;;  %v7176_v18 = vpack.c.bf16 %v7159_v40, %v7156_v29 }
0x1749   : > { %10154 = vrcp.bf16 %v7213_v63  ;;  %v8094_v57 = vmul.bf16 3216621497, %v7177_v2 }
0x174a   : > { %v10147_v23 = vpop.eup %10146  ;;  %10156 = vrcp.bf16 %v7212_v33  ;;  %v8093_v17 = vmul.bf16 3216621497, %v7176_v18  ;;  %v14473_v33 = vmov 0  }
0x174b   : > { %v10149_v56 = vpop.eup %10148  ;;  %v7221_v39 = vmul.bf16 1065369472, %v10147_v23  ;;  %10158 = vpow.bf16 %v8094_v57 }
0x174c   : > { %v7219_v3 = vmul.bf16 1065369472, %v10149_v56  ;;  %10160 = vpow.bf16 %v8093_v17 }
0x174d   : > { %v7235_v11 = vmul.bf16 %v7221_v39, %v7046_v42 }
0x174e   : > { %v7234_v15 = vmul.bf16 %v7219_v3, %v7045_v50 }
0x174f   : > { %v10151_v41 = vpop.eup %10150  ;;  %v7243_v29 = vadd.bf16 %v7235_v11, %v13925_v25 }
0x1750   : > { %v10153_v22 = vpop.eup %10152  ;;  %v7215_v40 = vadd.bf16 1065369472, %v10151_v41  ;;  %v7242_v28 = vadd.bf16 %v7234_v15, %v13923_v9 }
0x1751   : > { %v7214_v63 = vadd.bf16 1065369472, %v10153_v22  ;;  %v7251_v23 = vmul.bf16 1060454197, %v7243_v29 }
0x1752   : > { %10162 = vrcp.bf16 %v7215_v40  ;;  %v7250_v2 = vmul.bf16 1060454197, %v7242_v28 }
0x1753   : > { %10164 = vrcp.bf16 %v7214_v63  ;;  %v7259_v18 = vmax.bf16 %v14473_v33, %v7251_v23 }
0x1754   : > { %v10155_v1 = vpop.eup %10154  ;;  %v7258_v24 = vmax.bf16 %v14473_v33, %v7250_v2  ;;  %v14474_v2 = vpack.c.bf16 %v14064_v52, %v14056_v12 }
0x1755   : > { %v10157_v42 = vpop.eup %10156  ;;  %v7268_v57 = vunpack.c.l.bf16 %v7259_v18  ;;  %v7269_v26 = vunpack.c.h.bf16 %v7259_v18  ;;  %v7225_v38 = vmul.bf16 1065369472, %v10155_v1 }
0x1756   : > { %v10159_v50 = vpop.eup %10158  ;;  %v7223_v17 = vmul.bf16 1065369472, %v10157_v42  ;;  %v7266_v25 = vunpack.c.l.bf16 %v7258_v24  ;;  %v7267_v56 = vunpack.c.h.bf16 %v7258_v24 }
0x1757   : > { %v10161_v39 = vpop.eup %10160  ;;  %v7284_v9 = vadd.f32 %v7268_v57, %v13148_v46  ;;  %v7285_v3 = vadd.f32 %v7269_v26, %v13150_v31  ;;  %v7237_v11 = vmul.bf16 %v7225_v38, %v7048_v61  ;;  %v7217_v41 = vadd.bf16 1065369472, %v10159_v50 }
0x1758   : > { %v7236_v15 = vmul.bf16 %v7223_v17, %v7047_v10  ;;  %v7216_v22 = vadd.bf16 1065369472, %v10161_v39  ;;  %v7282_v29 = vadd.f32 %v7266_v25, %v13159_v0  ;;  %v7283_v40 = vadd.f32 %v7267_v56, %v13161_v54 }
0x1759   : > { %v7299_v28 = vpack.c.bf16 %v7285_v3, %v7284_v9  ;;  %v7245_v63 = vadd.bf16 %v7237_v11, %v13945_v62  ;;  %10166 = vrcp.bf16 %v7217_v41 }
0x175a   : > { %v7244_v46 = vadd.bf16 %v7236_v15, %v13943_v51  ;;  %10168 = vrcp.bf16 %v7216_v22  ;;  %v7298_v31 = vpack.c.bf16 %v7283_v40, %v7282_v29 }
0x175b   : > { %v7253_v43 = vmul.bf16 1060454197, %v7245_v63 }
0x175c   : > { %v7252_v61 = vmul.bf16 1060454197, %v7244_v46  ;;  %9347 = vmatprep.mubr.msk.bf16.mxu0 %vm1003_vm2, %v7298_v31 }
0x175d   : > { %v10163_v7 = vpop.eup %10162  ;;  %v7261_v19 = vmax.bf16 %v14473_v33, %v7253_v43  ;;  %9348 = vmatmul.mubr.msk.bf16.vlgmr.msra.gmra.mrb[32].mxu0 %vm1003_vm2, %v7299_v28 }
0x175e   : > { %v10165_v8 = vpop.eup %10164  ;;  %v7229_v10 = vmul.bf16 1065369472, %v10163_v7  ;;  %v7260_v54 = vmax.bf16 %v14473_v33, %v7252_v61 }
0x175f   : > { %v7227_v0 = vmul.bf16 1065369472, %v10165_v8  ;;  %v7272_v62 = vunpack.c.l.bf16 %v7261_v19  ;;  %v7273_v23 = vunpack.c.h.bf16 %v7261_v19 }
0x1760   : > { %v7239_v51 = vmul.bf16 %v7229_v10, %v7050_v36  ;;  %v7270_v1 = vunpack.c.l.bf16 %v7260_v54  ;;  %v7271_v24 = vunpack.c.h.bf16 %v7260_v54 }
0x1761   : > { %v7238_v18 = vmul.bf16 %v7227_v0, %v14474_v2  ;;  %v7288_v42 = vadd.f32 %v7272_v62, %v13181_v16  ;;  %v7289_v57 = vadd.f32 %v7273_v23, %v13183_v34 }
0x1762   : > { %v7247_v26 = vadd.bf16 %v7239_v51, %v13965_v32  ;;  %v7286_v50 = vadd.f32 %v7270_v1, %v13192_v45  ;;  %v7287_v17 = vadd.f32 %v7271_v24, %v13194_v37 }
0x1763   : > { %v7246_v38 = vadd.bf16 %v7238_v18, %v13963_v20  ;;  %v7301_v55 = vpack.c.bf16 %v7289_v57, %v7288_v42 }
0x1764   : > { %v7255_v27 = vmul.bf16 1060454197, %v7247_v26  ;;  %v10167_v36 = vpop.eup %10166  ;;  %v7300_v12 = vpack.c.bf16 %v7287_v17, %v7286_v50 }
0x1765   : > { %v7254_v25 = vmul.bf16 1060454197, %v7246_v38  ;;  %v10169_v52 = vpop.eup %10168  ;;  %v7233_v39 = vmul.bf16 1065369472, %v10167_v36 }
0x1766   : > { %v7263_v56 = vmax.bf16 %v14473_v33, %v7255_v27  ;;  %v7231_v16 = vmul.bf16 1065369472, %v10169_v52  ;;  %9351 = vmatprep.mubr.msk.bf16.mxu0 %vm1003_vm2, %v7300_v12 }
0x1767   : > { %v7262_v34 = vmax.bf16 %v14473_v33, %v7254_v25  ;;  %v7241_v45 = vmul.bf16 %v7233_v39, %v7052_v4  ;;  %9352 = vmatmul.mubr.msk.bf16.gmra.mrb[36].mxu0 %vm1003_vm2, %v7301_v55 }
0x1768   : > { %v7276_v32 = vunpack.c.l.bf16 %v7263_v56  ;;  %v7277_v20 = vunpack.c.h.bf16 %v7263_v56  ;;  %v7240_v37 = vmul.bf16 %v7231_v16, %v7051_v6 }
0x1769   : > { %v7274_v9 = vunpack.c.l.bf16 %v7262_v34  ;;  %v7275_v3 = vunpack.c.h.bf16 %v7262_v34  ;;  %v7249_v15 = vadd.bf16 %v7241_v45, %v13985_v21 }
0x176a   : > { %v7292_v11 = vadd.f32 %v7276_v32, %v13211_v53  ;;  %v7293_v41 = vadd.f32 %v7277_v20, %v13213_v58  ;;  %v7248_v22 = vadd.bf16 %v7240_v37, %v13983_v30 }
0x176b   : > { %v7290_v29 = vadd.f32 %v7274_v9, %v13220_v44  ;;  %v7291_v59 = vadd.f32 %v7275_v3, %v13222_v35  ;;  %v7257_v4 = vmul.bf16 1060454197, %v7249_v15 }
0x176c   : > { %v7303_v13 = vpack.c.bf16 %v7293_v41, %v7292_v11  ;;  %v7256_v40 = vmul.bf16 1060454197, %v7248_v22 }
0x176d   : > { %v7302_v28 = vpack.c.bf16 %v7291_v59, %v7290_v29  ;;  %v7265_v60 = vmax.bf16 %v14473_v33, %v7257_v4 }
0x176e   : > { %v7264_v53 = vmax.bf16 %v14473_v33, %v7256_v40  ;;  %v8095_v33 = vld [vmem:[%s14241_s10] ss:$0 sm:$0xff] }
0x176f   : > { %9355 = vmatprep.mubr.msk.bf16.mxu0 %vm1003_vm2, %v7302_v28  ;;  %v7280_v58 = vunpack.c.l.bf16 %v7265_v60  ;;  %v7281_v21 = vunpack.c.h.bf16 %v7265_v60 }
0x1770   : > { %9356 = vmatmul.mubr.msk.bf16.gmra.mrb[40].mxu0 %vm1003_vm2, %v7303_v13  ;;  %v7278_v30 = vunpack.c.l.bf16 %v7264_v53  ;;  %v7279_v44 = vunpack.c.h.bf16 %v7264_v53 }
0x1771   : > { %v7296_v35 = vadd.f32 %v7280_v58, %v13235_v48  ;;  %v7297_v47 = vadd.f32 %v7281_v21, %v13237_v5 }
0x1772   : > { %v7294_v6 = vadd.f32 %v7278_v30, %v13242_v14  ;;  %v7295_v63 = vadd.f32 %v7279_v44, %v13244_v49 }
0x1773   : > { %v7305_v46 = vpack.c.bf16 %v7297_v47, %v7296_v35 }
0x1774   : > { %v7304_v31 = vpack.c.bf16 %v7295_v63, %v7294_v6 }
0x1776   : > { %9359 = vmatprep.mubr.msk.bf16.mxu0 %vm1003_vm2, %v7304_v31 }
0x1778   : > { %9360 = vmatmul.mubr.msk.bf16.gmra.mrb[44].mxu0 %vm1003_vm2, %v7305_v46 }
0x1830   : > { %v9349_v48 = vpop.f32.mrb[32].mxu0 }
0x1831   : > { %v7396_v43 = vadd.f32 %v9349_v48, %v8095_v33  ;;  %v7387_v5 = vpop.f32.mrb[33].mxu0 }
0x1832   : > { %v7388_v7 = vadd.f32 %v8095_v33, %v7387_v5  ;;  %v9350_v14 = vpop.f32.mrb[34].mxu0 }
0x1833   : > { %7452 = vst [vmem:[%s14161_s13 + $0x10] sm:$0xff] %v7396_v43  ;;  %v7399_v49 = vadd.f32 %v9350_v14, %v8095_v33  ;;  %v7390_v61 = vpop.f32.mrb[35].mxu0 }
0x1834   : > { %7450 = vst [vmem:[%s14161_s13] sm:$0xff] %v7388_v7  ;;  %v7391_v8 = vadd.f32 %v8095_v33, %v7390_v61 }
0x1835   : > { %7453 = vst [vmem:[%s14161_s13 + $0x18] sm:$0xff] %v7399_v49 }
0x1836   : > { %7451 = vst [vmem:[%s14161_s13 + $0x8] sm:$0xff] %v7391_v8 }
0x183a   : > { %v9353_v19 = vpop.f32.mrb[36].mxu0 }
0x183b   : > { %v7412_v10 = vadd.f32 %v9353_v19, %v8095_v33  ;;  %v7403_v0 = vpop.f32.mrb[37].mxu0 }
0x183c   : > { %v7404_v54 = vadd.f32 %v8095_v33, %v7403_v0  ;;  %v9354_v62 = vpop.f32.mrb[38].mxu0 }
0x183d   : > { %7456 = vst [vmem:[%s14161_s13 + $0x30] sm:$0xff] %v7412_v10  ;;  %v7415_v23 = vadd.f32 %v9354_v62, %v8095_v33  ;;  %v7406_v51 = vpop.f32.mrb[39].mxu0 }
0x183e   : > { %7454 = vst [vmem:[%s14161_s13 + $0x20] sm:$0xff] %v7404_v54  ;;  %v7407_v2 = vadd.f32 %v8095_v33, %v7406_v51 }
0x183f   : > { %7457 = vst [vmem:[%s14161_s13 + $0x38] sm:$0xff] %v7415_v23 }
0x1840   : > { %7455 = vst [vmem:[%s14161_s13 + $0x28] sm:$0xff] %v7407_v2 }
0x1843   : > { %v9357_v18 = vpop.f32.mrb[40].mxu0 }
0x1844   : > { %v7428_v1 = vadd.f32 %v9357_v18, %v8095_v33  ;;  %v7419_v24 = vpop.f32.mrb[41].mxu0 }
0x1845   : > { %v7420_v42 = vadd.f32 %v8095_v33, %v7419_v24  ;;  %v9358_v57 = vpop.f32.mrb[42].mxu0 }
0x1846   : > { %7460 = vst [vmem:[%s14161_s13 + $0x50] sm:$0xff] %v7428_v1  ;;  %v7431_v26 = vadd.f32 %v9358_v57, %v8095_v33  ;;  %v7422_v38 = vpop.f32.mrb[43].mxu0 }
0x1847   : > { %7458 = vst [vmem:[%s14161_s13 + $0x40] sm:$0xff] %v7420_v42  ;;  %v7423_v50 = vadd.f32 %v8095_v33, %v7422_v38 }
0x1848   : > { %7461 = vst [vmem:[%s14161_s13 + $0x58] sm:$0xff] %v7431_v26 }
0x1849   : > { %7459 = vst [vmem:[%s14161_s13 + $0x48] sm:$0xff] %v7423_v50 }
0x184b   : > { %v9361_v17 = vpop.f32.mrb[44].mxu0 }
0x184c   : > { %v7444_v55 = vadd.f32 %v9361_v17, %v8095_v33  ;;  %v7435_v27 = vpop.f32.mrb[45].mxu0 }
0x184d   : > { %v7436_v36 = vadd.f32 %v8095_v33, %v7435_v27  ;;  %v9362_v25 = vpop.f32.mrb[46].mxu0 }
0x184e   : > { %7464 = vst [vmem:[%s14161_s13 + $0x70] sm:$0xff] %v7444_v55  ;;  %v7447_v12 = vadd.f32 %v9362_v25, %v8095_v33  ;;  %v7438_v52 = vpop.f32.mrb[47].mxu0 }
0x184f   : > { %7462 = vst [vmem:[%s14161_s13 + $0x60] sm:$0xff] %v7436_v36  ;;  %v7439_v56 = vadd.f32 %v8095_v33, %v7438_v52 }
0x1850   : > { %7465 = vst [vmem:[%s14161_s13 + $0x78] sm:$0xff] %v7447_v12 }
0x1851   : > { %7463 = vst [vmem:[%s14161_s13 + $0x68] sm:$0xff] %v7439_v56 }
0x1852   : > { %10256 = shalt.err (!%p10253_p3)
}
0x1853   : > { %s10257_s14 = scalar_lea.hbm %s14181_s30, 2048  ;;  %s10261_s29 = scalar_lea.hbm %s14242_s11, 4096 }
0x1854   : > { %p10258_p4 = scmp.ne.s32.totalorder %s14181_s30, %s10257_s14  ;;  %p10262_p9 = scmp.lt.u32.totalorder %s14181_s30, %s14242_s11 }
0x1855   : > { %p10263_p10 = scmp.lt.u32.totalorder %s10261_s29, %s10257_s14  ;;  %p10265_p12 = scmp.lt.u32.totalorder %s10257_s14, %s14181_s30 }
0x1856   : > { %p10259_p7 = pnand %p10258_p4, %p10409_p5 }
0x1857   : > { %p10264_p11 = por %p10263_p10, %p10262_p9 }
0x1858   : > { %p10260_p8 = pneg %p10259_p7 }
0x1859   : > { %p10266_p13 = por %p10265_p12, %p10264_p11 }
0x185b   : > { %p10267_p0 = pnand %p10266_p13, %p10260_p8 }
0x185d   : > { %10270 = shalt.err (!%p10267_p0)
}
0x185e   : > { %s10309_s15 = smov 128   ;;  %s10310_s22 = smov 8  }
0x185f   : > { %9364 = dma.vmem_to_hbm [thread:$0]  (%p10409_p5), %s14183_s24, 2048, %s14181_s30, %s14190_s21, %s10309_s15, %s10309_s15, %s10310_s22  }
0x1860 PF: > { %p9370_p1 = scmp.ge.s32.totalorder %s10305_s20, 2  ;;  %s7495_s13 = sand.u32 1, %s10293_s17  }
0x1861   : > { %s7496_s14 = scalar_lea.sflag [#allocation3], %s7495_s13 }
0x1862   : > { %p9367_p2 = pnand %p9370_p1, %p10413_p6 }
0x1864   : > { %10288 = dma.done.wait (!%p9367_p2), %s7496_s14, 2048  }
0x1865   : > { %10290 = vsyncadd (!%p9367_p2), %s7496_s14, 4294965248  ;;  %p21_p3 = scmp.ge.s32.totalorder %s10396_s23, 4   ;;  %s14475_s17 = smov %s10297_s18 }
0x1866   : > { %s14476_s18 = smov %s10301_s19  ;;  %s14477_s19 = smov %s10407_s26 }
0x1867   : > { %s14478_s20 = smov %s10396_s23  ;;  %23 = sbr.rel (!%p21_p3) target bundleno = 3 (0x3), region = 139 }
0x186e   :  { %7501 = vsyncpa [#allocation3], 1 }
0x186f   :  { %7503 = vsyncpa [#allocation3 + $0x1], 1 }

</bundles_post_ra>
